<compile_context>
chip_gen: v6e
topology: v6e:2x2x1
jax: 0.10.0
libtpu: 0.0.40
codegen_flags: <defaults>
</compile_context>

<pallas_src>
import functools

import jax
import jax.numpy as jnp
from jax.experimental import pallas as pl
from jax.experimental.pallas import tpu as pltpu

BN_EPS = 1e-5


def _round_up(x, m):
    return ((x + m - 1) // m) * m


def _vmem_limit_bytes(B, H, W, C, Wp):
    """Rough VMEM budget: double-buffered in/out blocks, weights (counted double to
    also cover the conservative fallback), pad scratch and matmul temporaries."""
    xblk = B * H * W * C * 4
    io_bytes = 2 * 2 * xblk
    w_bytes = 2 * 3 * (9 * C * 4 + C * C * 2 + 2 * C * 4)
    pad_bytes = B * (H + 2) * (Wp + 2) * C * 4
    tmp_bytes = B * H * Wp * C * (4 + 4 + 2 + 4)   # dw acc, matmul out, bf16 copy, y
    need = io_bytes + w_bytes + pad_bytes + tmp_bytes
    return int(min(max(int(need * 1.5), 32 * 2**20), 64 * 2**20))


def _make_fused_kernel(B, H, W, C, Wp, use_xlu_roll):
    """Fused kernel: 3x (ReLU -> depthwise 3x3 pad=1 -> pointwise 1x1 on the MXU ->
    f32 BN scale+shift), then + identity shortcut. B batch samples per grid step."""

    def kernel(x_ref,
               dw1_ref, pw1_ref, sc1_ref, sh1_ref,
               dw2_ref, pw2_ref, sc2_ref, sh2_ref,
               dw3_ref, pw3_ref, sc3_ref, sh3_ref,
               o_ref, xpad_ref):
        # Zero only the halo ring + the (right halo .. spare) column strip. The
        # interior (rows 1..H, cols 1..W) is fully overwritten by every stage.
        # Must stay per-grid-step: with dimension_semantics=("parallel",) each
        # TensorCore has its own scratch and only one core ever sees program_id 0.
        zrow = jnp.zeros((B, 1, Wp + 2, C), jnp.float32)
        xpad_ref[:, pl.ds(0, 1), :, :] = zrow                       # top halo row
        xpad_ref[:, pl.ds(H + 1, 1), :, :] = zrow                   # bottom halo row
        xpad_ref[:, pl.ds(1, H), pl.ds(0, 1), :] = jnp.zeros((B, H, 1, C), jnp.float32)
        xpad_ref[:, pl.ds(1, H), pl.ds(W + 1, Wp + 1 - W), :] = (
            jnp.zeros((B, H, Wp + 1 - W, C), jnp.float32))          # right halo + spares

        def stage(act, dw_ref, pw_ref, sc_ref, sh_ref):
            aw = act.shape[2]  # W for stage 1 (raw input block), Wp for stages 2/3.
            # ReLU, write into the interior of the zero-haloed VMEM scratch. Stages
            # 2/3 write the full Wp-wide slab (unmasked-width store) and re-zero the
            # single right-halo column they just overwrote.
            xpad_ref[:, pl.ds(1, H), pl.ds(1, aw), :] = jnp.maximum(act, 0.0)
            if aw > W:
                xpad_ref[:, pl.ds(1, H), pl.ds(W + 1, 1), :] = (
                    jnp.zeros((B, H, 1, C), jnp.float32))

            xp = xpad_ref[...]                                      # (B, H+2, Wp+2, C) f32
            dw = dw_ref[...]                                        # (3, 3, C) f32

            # Depthwise 3x3 cross-correlation (padding=1) as 9 shifted MACs (VPU).
            # The sublane (W-axis) shift is hoisted once per kx — on the XLU via
            # pltpu.roll so the load/store slots stay free — and reused for the 3 ky
            # taps, which are cheap outer-dim slices along H.
            acc = None
            for kx in range(3):
                if kx == 0:
                    col = xp[:, :, 0:Wp, :]
                elif use_xlu_roll:
                    col = pltpu.roll(xp, shift=(Wp + 2) - kx, axis=2)[:, :, 0:Wp, :]
                else:
                    col = xp[:, :, kx:kx + Wp, :]   # conservative fallback path
                for ky in range(3):
                    t = col[:, ky:ky + H, :, :] * dw[ky, kx]
                    acc = t if acc is None else acc + t

            # Pointwise 1x1 conv == channel matmul on the MXU: bf16 operands, f32
            # accumulation, M = B*H*Wp. The f32 BN scale is applied AFTER the matmul
            # (pw stays bf16 unscaled, so large gamma/sqrt(var) does not amplify
            # bf16 weight quantization); then the BN shift.
            y = jnp.dot(acc.reshape(B * H * Wp, C).astype(jnp.bfloat16),
                        pw_ref[...],
                        preferred_element_type=jnp.float32)
            y = y * sc_ref[...] + sh_ref[...]
            return y.reshape(B, H, Wp, C)

        r = stage(x_ref[...], dw1_ref, pw1_ref, sc1_ref, sh1_ref)
        r = stage(r, dw2_ref, pw2_ref, sc2_ref, sh2_ref)
        r = stage(r, dw3_ref, pw3_ref, sc3_ref, sh3_ref)
        # Fused identity shortcut. NOTE: columns W..Wp-1 of r are deliberately-wasted
        # spare MXU rows (garbage); they are sliced off here — do not remove the slice.
        o_ref[...] = x_ref[...] + r[:, :, :W, :]

    return kernel


def middle_flow_block_nhwc(x_nhwc, kernel_params, *, block_batch=None,
                           single_buffer_weights=True, use_xlu_roll=True):
    """Fused MiddleFLowBlock forward on NHWC input, grid over batch slabs of B samples
    ("parallel" for megacore / 2-TC chips)."""
    N, H, W, C = x_nhwc.shape
    Wp = _round_up(W, 8)  # sublane-aligned width so the (B*H*Wp, C) reshape is tile-preserving

    if block_batch is None:
        # B samples per step: enlarges the matmul M dim and amortizes per-step
        # overhead / MXU fill-drain. 4 for v5e/v6e; prefer 2 at full Xception shapes
        # on v7x (64 MiB VMEM) and keep the grid length a multiple of 2 there.
        block_batch = min(N, 4)
    B = block_batch

    kernel = _make_fused_kernel(B, H, W, C, Wp, use_xlu_roll)

    # Weights are grid-invariant; single-buffer them to reclaim VMEM for batch tiles.
    w_kwargs = dict(pipeline_mode=pl.Buffered(1)) if single_buffer_weights else {}

    in_specs = [pl.BlockSpec((B, H, W, C), lambda n: (n, 0, 0, 0))]
    operands = [x_nhwc]
    for p in kernel_params:  # 3 stages
        in_specs += [
            pl.BlockSpec((3, 3, C), lambda n: (0, 0, 0), **w_kwargs),  # depthwise w (f32)
            pl.BlockSpec((C, C), lambda n: (0, 0), **w_kwargs),        # pointwise w (bf16)
            pl.BlockSpec((1, C), lambda n: (0, 0), **w_kwargs),        # BN scale (f32)
            pl.BlockSpec((1, C), lambda n: (0, 0), **w_kwargs),        # BN shift (f32)
        ]
        operands += [p["dw"], p["pw"], p["scale"], p["shift"]]

    flops = N * 3 * (2 * H * Wp * C * C + 2 * 9 * H * Wp * C)
    bytes_accessed = 2 * N * H * W * C * 4 + 3 * (C * C * 2 + 9 * C * 4 + 2 * C * 4)

    return pl.pallas_call(
        kernel,
        out_shape=jax.ShapeDtypeStruct((N, H, W, C), jnp.float32),
        grid=(pl.cdiv(N, B),),
        in_specs=in_specs,
        out_specs=pl.BlockSpec((B, H, W, C), lambda n: (n, 0, 0, 0)),
        scratch_shapes=[pltpu.VMEM((B, H + 2, Wp + 2, C), jnp.float32)],
        compiler_params=pltpu.CompilerParams(
            dimension_semantics=("parallel",),
            vmem_limit_bytes=_vmem_limit_bytes(B, H, W, C, Wp),
        ),
        cost_estimate=pl.CostEstimate(
            flops=int(flops), transcendentals=0, bytes_accessed=int(bytes_accessed)),
    )(*operands)


def middle_flow_block(x_nchw, kernel_params, *, block_batch=None,
                      single_buffer_weights=True, use_xlu_roll=True):
    """NCHW wrapper matching the PyTorch convention. If the surrounding model is
    channels-last already, call middle_flow_block_nhwc directly."""
    x = jnp.transpose(x_nchw, (0, 2, 3, 1))
    y = middle_flow_block_nhwc(x, kernel_params, block_batch=block_batch,
                               single_buffer_weights=single_buffer_weights,
                               use_xlu_roll=use_xlu_roll)
    return jnp.transpose(y, (0, 3, 1, 2))


# --------------- parameters (PyTorch-shaped raw -> kernel layout) ---------------
def init_raw_params(key, C):
    """Deterministic synthetic PyTorch-shaped params for the 3 (SeparableConv2d + BN)."""
    params = []
    for _ in range(3):
        key, k1, k2, k3, k4, k5, k6 = jax.random.split(key, 7)
        params.append(dict(
            dw=0.1 * jax.random.normal(k1, (C, 1, 3, 3), jnp.float32),   # depthwise (C,1,3,3)
            pw=0.05 * jax.random.normal(k2, (C, C, 1, 1), jnp.float32),  # pointwise (Cout,Cin,1,1)
            gamma=1.0 + 0.1 * jax.random.normal(k3, (C,), jnp.float32),
            beta=0.1 * jax.random.normal(k4, (C,), jnp.float32),
            mean=0.1 * jax.random.normal(k5, (C,), jnp.float32),
            var=jnp.abs(jax.random.normal(k6, (C,), jnp.float32)) + 0.5,
        ))
    return params


def fold_params(raw_params):
    """Kernel layouts: dw (3,3,C) f32, pw (Cin,Cout) bf16 (UNscaled), and eval-mode BN
    as f32 per-channel scale/shift applied post-matmul inside the kernel."""
    folded = []
    for p in raw_params:
        s = p["gamma"] / jnp.sqrt(p["var"] + BN_EPS)                 # (C,)
        folded.append(dict(
            dw=jnp.transpose(p["dw"][:, 0], (1, 2, 0)),              # (C,3,3) -> (3,3,C)
            pw=p["pw"][:, :, 0, 0].T.astype(jnp.bfloat16),           # (Cin, Cout) bf16
            scale=s.reshape(1, -1),                                  # (1, C) f32
            shift=(p["beta"] - p["mean"] * s).reshape(1, -1),        # (1, C) f32
        ))
    return folded


# --------------- pure-JAX f32 reference for the correctness check ---------------
def _ref_stage(x_nhwc, p):
    C = x_nhwc.shape[-1]
    a = jnp.maximum(x_nhwc, 0.0)
    dw_hwio = jnp.transpose(p["dw"], (2, 3, 1, 0))                   # (C,1,3,3)->(3,3,1,C)
    d = jax.lax.conv_general_dilated(
        a, dw_hwio, window_strides=(1, 1), padding=((1, 1), (1, 1)),
        dimension_numbers=("NHWC", "HWIO", "NHWC"), feature_group_count=C)
    y = jnp.einsum("nhwc,cd->nhwd", d, p["pw"][:, :, 0, 0].T)
    s = p["gamma"] / jnp.sqrt(p["var"] + BN_EPS)
    return y * s + (p["beta"] - p["mean"] * s)


def reference(x_nchw, raw_params):
    x = jnp.transpose(x_nchw, (0, 2, 3, 1))
    r = x
    for p in raw_params:
        r = _ref_stage(r, p)
    return jnp.transpose(x + r, (0, 3, 1, 2))


if __name__ == "__main__":
    # Small shapes consistent with the module (real Xception middle flow: C=728, H=W=19).
    N, C, H, W = 2, 128, 8, 8
    key = jax.random.PRNGKey(0)
    key_x, key_p = jax.random.split(key)
    x = jax.random.normal(key_x, (N, C, H, W), jnp.float32)

    raw = init_raw_params(key_p, C)
    params = fold_params(raw)

    def run(fast):
        fn = jax.jit(functools.partial(middle_flow_block, kernel_params=params,
                                       single_buffer_weights=fast, use_xlu_roll=fast))
        return jax.block_until_ready(fn(x))

    try:
        out = run(True)
    except Exception:
        # Conservative lowering (double-buffered weights, sublane-slice depthwise) in
        # case pl.Buffered(1) / sublane pltpu.roll is unsupported on this jax/libtpu.
        out = run(False)

    ref = jax.block_until_ready(reference(x, raw))

    assert out.shape == (N, C, H, W), out.shape
    # bf16 pointwise matmul inside the kernel -> relaxed tolerance vs the f32 reference.
    if not jnp.allclose(out, ref, rtol=2e-2, atol=2e-2):
        err = float(jnp.max(jnp.abs(out - ref)))
        raise AssertionError(f"Pallas output does not match reference (max abs err {err})")
    print("KERNEL_OK")
</pallas_src>

<mosaic_0001>
module attributes {stable_mosaic.version = 11 : i64} {
  func.func @kernel(%arg0: i32, %arg1: memref<2x8x8x128xf32, #tpu.memory_space<vmem>>, %arg2: memref<3x3x128xf32, #tpu.memory_space<vmem>>, %arg3: memref<128x128xbf16, #tpu.memory_space<vmem>>, %arg4: memref<1x128xf32, #tpu.memory_space<vmem>>, %arg5: memref<1x128xf32, #tpu.memory_space<vmem>>, %arg6: memref<3x3x128xf32, #tpu.memory_space<vmem>>, %arg7: memref<128x128xbf16, #tpu.memory_space<vmem>>, %arg8: memref<1x128xf32, #tpu.memory_space<vmem>>, %arg9: memref<1x128xf32, #tpu.memory_space<vmem>>, %arg10: memref<3x3x128xf32, #tpu.memory_space<vmem>>, %arg11: memref<128x128xbf16, #tpu.memory_space<vmem>>, %arg12: memref<1x128xf32, #tpu.memory_space<vmem>>, %arg13: memref<1x128xf32, #tpu.memory_space<vmem>>, %arg14: memref<2x8x8x128xf32, #tpu.memory_space<vmem>>, %arg15: memref<2x10x10x128xf32, #tpu.memory_space<vmem>>) attributes {dimension_semantics = [#tpu.dimension_semantics<parallel>], iteration_bounds = array<i64: 1>, scalar_prefetch = 0 : i64, scratch_operands = 1 : i64, tpu.core_type = #tpu.core_type<tc>, window_params = [{transform_indices = @transform_0, window_bounds = array<i64: 2, 8, 8, 128>}, {pipeline_mode = #tpu.pipeline_mode<synchronous>, transform_indices = @transform_1, window_bounds = array<i64: 3, 3, 128>}, {pipeline_mode = #tpu.pipeline_mode<synchronous>, transform_indices = @transform_2, window_bounds = array<i64: 128, 128>}, {pipeline_mode = #tpu.pipeline_mode<synchronous>, transform_indices = @transform_3, window_bounds = array<i64: 1, 128>}, {pipeline_mode = #tpu.pipeline_mode<synchronous>, transform_indices = @transform_4, window_bounds = array<i64: 1, 128>}, {pipeline_mode = #tpu.pipeline_mode<synchronous>, transform_indices = @transform_5, window_bounds = array<i64: 3, 3, 128>}, {pipeline_mode = #tpu.pipeline_mode<synchronous>, transform_indices = @transform_6, window_bounds = array<i64: 128, 128>}, {pipeline_mode = #tpu.pipeline_mode<synchronous>, transform_indices = @transform_7, window_bounds = array<i64: 1, 128>}, {pipeline_mode = #tpu.pipeline_mode<synchronous>, transform_indices = @transform_8, window_bounds = array<i64: 1, 128>}, {pipeline_mode = #tpu.pipeline_mode<synchronous>, transform_indices = @transform_9, window_bounds = array<i64: 3, 3, 128>}, {pipeline_mode = #tpu.pipeline_mode<synchronous>, transform_indices = @transform_10, window_bounds = array<i64: 128, 128>}, {pipeline_mode = #tpu.pipeline_mode<synchronous>, transform_indices = @transform_11, window_bounds = array<i64: 1, 128>}, {pipeline_mode = #tpu.pipeline_mode<synchronous>, transform_indices = @transform_12, window_bounds = array<i64: 1, 128>}, {transform_indices = @transform_13, window_bounds = array<i64: 2, 8, 8, 128>}]} {
    %cst = arith.constant 0.000000e+00 : f32
    %0 = vector.broadcast %cst : f32 to vector<2x1x10x128xf32>
    %c0 = arith.constant 0 : index
    %c0_0 = arith.constant 0 : index
    %c0_1 = arith.constant 0 : index
    %c0_2 = arith.constant 0 : index
    %1 = vector.load %arg15[%c0, %c0_0, %c0_1, %c0_2] : memref<2x10x10x128xf32, #tpu.memory_space<vmem>>, vector<2x1x10x128xf32>
    tpu.vector_store %arg15[%c0, %c0_0, %c0_1, %c0_2], %0 {strides = array<i32>} : memref<2x10x10x128xf32, #tpu.memory_space<vmem>>, vector<2x1x10x128xf32>,
    %c0_3 = arith.constant 0 : index
    %c9 = arith.constant 9 : index
    %c0_4 = arith.constant 0 : index
    %c0_5 = arith.constant 0 : index
    %2 = vector.load %arg15[%c0_3, %c9, %c0_4, %c0_5] : memref<2x10x10x128xf32, #tpu.memory_space<vmem>>, vector<2x1x10x128xf32>
    tpu.vector_store %arg15[%c0_3, %c9, %c0_4, %c0_5], %0 {strides = array<i32>} : memref<2x10x10x128xf32, #tpu.memory_space<vmem>>, vector<2x1x10x128xf32>,
    %cst_6 = arith.constant 0.000000e+00 : f32
    %3 = vector.broadcast %cst_6 : f32 to vector<2x8x1x128xf32>
    %c0_7 = arith.constant 0 : index
    %c1 = arith.constant 1 : index
    %c0_8 = arith.constant 0 : index
    %c0_9 = arith.constant 0 : index
    %4 = vector.load %arg15[%c0_7, %c1, %c0_8, %c0_9] : memref<2x10x10x128xf32, #tpu.memory_space<vmem>>, vector<2x8x1x128xf32>
    tpu.vector_store %arg15[%c0_7, %c1, %c0_8, %c0_9], %3 {strides = array<i32>} : memref<2x10x10x128xf32, #tpu.memory_space<vmem>>, vector<2x8x1x128xf32>,
    %cst_10 = arith.constant 0.000000e+00 : f32
    %5 = vector.broadcast %cst_10 : f32 to vector<2x8x1x128xf32>
    %c0_11 = arith.constant 0 : index
    %c1_12 = arith.constant 1 : index
    %c9_13 = arith.constant 9 : index
    %c0_14 = arith.constant 0 : index
    %6 = vector.load %arg15[%c0_11, %c1_12, %c9_13, %c0_14] : memref<2x10x10x128xf32, #tpu.memory_space<vmem>>, vector<2x8x1x128xf32>
    tpu.vector_store %arg15[%c0_11, %c1_12, %c9_13, %c0_14], %5 {strides = array<i32>} : memref<2x10x10x128xf32, #tpu.memory_space<vmem>>, vector<2x8x1x128xf32>,
    %c0_15 = arith.constant 0 : index
    %c0_16 = arith.constant 0 : index
    %c0_17 = arith.constant 0 : index
    %c0_18 = arith.constant 0 : index
    %7 = vector.load %arg1[%c0_15, %c0_16, %c0_17, %c0_18] : memref<2x8x8x128xf32, #tpu.memory_space<vmem>>, vector<2x8x8x128xf32>
    %cst_19 = arith.constant 0.000000e+00 : f32
    %8 = vector.broadcast %cst_19 : f32 to vector<2x8x8x128xf32>
    %9 = arith.maximumf %7, %8 : vector<2x8x8x128xf32>
    %c0_20 = arith.constant 0 : index
    %c1_21 = arith.constant 1 : index
    %c1_22 = arith.constant 1 : index
    %c0_23 = arith.constant 0 : index
    %10 = vector.load %arg15[%c0_20, %c1_21, %c1_22, %c0_23] : memref<2x10x10x128xf32, #tpu.memory_space<vmem>>, vector<2x8x8x128xf32>
    tpu.vector_store %arg15[%c0_20, %c1_21, %c1_22, %c0_23], %9 {strides = array<i32>} : memref<2x10x10x128xf32, #tpu.memory_space<vmem>>, vector<2x8x8x128xf32>,
    %c0_24 = arith.constant 0 : index
    %c0_25 = arith.constant 0 : index
    %c0_26 = arith.constant 0 : index
    %c0_27 = arith.constant 0 : index
    %11 = vector.load %arg15[%c0_24, %c0_25, %c0_26, %c0_27] : memref<2x10x10x128xf32, #tpu.memory_space<vmem>>, vector<2x10x10x128xf32>
    %c0_28 = arith.constant 0 : index
    %c0_29 = arith.constant 0 : index
    %c0_30 = arith.constant 0 : index
    %12 = vector.load %arg2[%c0_28, %c0_29, %c0_30] : memref<3x3x128xf32, #tpu.memory_space<vmem>>, vector<3x3x128xf32>
    %13 = vector.extract_strided_slice %11 {offsets = [0, 0, 0, 0], sizes = [2, 10, 8, 128], strides = [1, 1, 1, 1]} : vector<2x10x10x128xf32> to vector<2x10x8x128xf32>
    %14 = vector.extract_strided_slice %13 {offsets = [0, 0, 0, 0], sizes = [2, 8, 8, 128], strides = [1, 1, 1, 1]} : vector<2x10x8x128xf32> to vector<2x8x8x128xf32>
    %15 = vector.extract_strided_slice %12 {offsets = [0, 0, 0], sizes = [1, 1, 128], strides = [1, 1, 1]} : vector<3x3x128xf32> to vector<1x1x128xf32>
    %16 = vector.shape_cast %15 : vector<1x1x128xf32> to vector<128xf32>
    %17 = vector.shape_cast %16 : vector<128xf32> to vector<1x1x1x128xf32>
    %18 = vector.broadcast %17 : vector<1x1x1x128xf32> to vector<2x8x8x128xf32>
    %19 = arith.mulf %14, %18 : vector<2x8x8x128xf32>
    %20 = vector.extract_strided_slice %13 {offsets = [0, 1, 0, 0], sizes = [2, 8, 8, 128], strides = [1, 1, 1, 1]} : vector<2x10x8x128xf32> to vector<2x8x8x128xf32>
    %21 = vector.extract_strided_slice %12 {offsets = [1, 0, 0], sizes = [1, 1, 128], strides = [1, 1, 1]} : vector<3x3x128xf32> to vector<1x1x128xf32>
    %22 = vector.shape_cast %21 : vector<1x1x128xf32> to vector<128xf32>
    %23 = vector.shape_cast %22 : vector<128xf32> to vector<1x1x1x128xf32>
    %24 = vector.broadcast %23 : vector<1x1x1x128xf32> to vector<2x8x8x128xf32>
    %25 = arith.mulf %20, %24 : vector<2x8x8x128xf32>
    %26 = arith.addf %19, %25 : vector<2x8x8x128xf32>
    %27 = vector.extract_strided_slice %13 {offsets = [0, 2, 0, 0], sizes = [2, 8, 8, 128], strides = [1, 1, 1, 1]} : vector<2x10x8x128xf32> to vector<2x8x8x128xf32>
    %28 = vector.extract_strided_slice %12 {offsets = [2, 0, 0], sizes = [1, 1, 128], strides = [1, 1, 1]} : vector<3x3x128xf32> to vector<1x1x128xf32>
    %29 = vector.shape_cast %28 : vector<1x1x128xf32> to vector<128xf32>
    %30 = vector.shape_cast %29 : vector<128xf32> to vector<1x1x1x128xf32>
    %31 = vector.broadcast %30 : vector<1x1x1x128xf32> to vector<2x8x8x128xf32>
    %32 = arith.mulf %27, %31 : vector<2x8x8x128xf32>
    %33 = arith.addf %26, %32 : vector<2x8x8x128xf32>
    %c9_i32 = arith.constant 9 : i32
    %34 = tpu.dynamic_rotate %11 by %c9_i32 dim 2 : vector<2x10x10x128xf32>, i32 -> vector<2x10x10x128xf32>
    %35 = vector.extract_strided_slice %34 {offsets = [0, 0, 0, 0], sizes = [2, 10, 8, 128], strides = [1, 1, 1, 1]} : vector<2x10x10x128xf32> to vector<2x10x8x128xf32>
    %36 = vector.extract_strided_slice %35 {offsets = [0, 0, 0, 0], sizes = [2, 8, 8, 128], strides = [1, 1, 1, 1]} : vector<2x10x8x128xf32> to vector<2x8x8x128xf32>
    %37 = vector.extract_strided_slice %12 {offsets = [0, 1, 0], sizes = [1, 1, 128], strides = [1, 1, 1]} : vector<3x3x128xf32> to vector<1x1x128xf32>
    %38 = vector.shape_cast %37 : vector<1x1x128xf32> to vector<128xf32>
    %39 = vector.shape_cast %38 : vector<128xf32> to vector<1x1x1x128xf32>
    %40 = vector.broadcast %39 : vector<1x1x1x128xf32> to vector<2x8x8x128xf32>
    %41 = arith.mulf %36, %40 : vector<2x8x8x128xf32>
    %42 = arith.addf %33, %41 : vector<2x8x8x128xf32>
    %43 = vector.extract_strided_slice %35 {offsets = [0, 1, 0, 0], sizes = [2, 8, 8, 128], strides = [1, 1, 1, 1]} : vector<2x10x8x128xf32> to vector<2x8x8x128xf32>
    %44 = vector.extract_strided_slice %12 {offsets = [1, 1, 0], sizes = [1, 1, 128], strides = [1, 1, 1]} : vector<3x3x128xf32> to vector<1x1x128xf32>
    %45 = vector.shape_cast %44 : vector<1x1x128xf32> to vector<128xf32>
    %46 = vector.shape_cast %45 : vector<128xf32> to vector<1x1x1x128xf32>
    %47 = vector.broadcast %46 : vector<1x1x1x128xf32> to vector<2x8x8x128xf32>
    %48 = arith.mulf %43, %47 : vector<2x8x8x128xf32>
    %49 = arith.addf %42, %48 : vector<2x8x8x128xf32>
    %50 = vector.extract_strided_slice %35 {offsets = [0, 2, 0, 0], sizes = [2, 8, 8, 128], strides = [1, 1, 1, 1]} : vector<2x10x8x128xf32> to vector<2x8x8x128xf32>
    %51 = vector.extract_strided_slice %12 {offsets = [2, 1, 0], sizes = [1, 1, 128], strides = [1, 1, 1]} : vector<3x3x128xf32> to vector<1x1x128xf32>
    %52 = vector.shape_cast %51 : vector<1x1x128xf32> to vector<128xf32>
    %53 = vector.shape_cast %52 : vector<128xf32> to vector<1x1x1x128xf32>
    %54 = vector.broadcast %53 : vector<1x1x1x128xf32> to vector<2x8x8x128xf32>
    %55 = arith.mulf %50, %54 : vector<2x8x8x128xf32>
    %56 = arith.addf %49, %55 : vector<2x8x8x128xf32>
    %c8_i32 = arith.constant 8 : i32
    %57 = tpu.dynamic_rotate %11 by %c8_i32 dim 2 : vector<2x10x10x128xf32>, i32 -> vector<2x10x10x128xf32>
    %58 = vector.extract_strided_slice %57 {offsets = [0, 0, 0, 0], sizes = [2, 10, 8, 128], strides = [1, 1, 1, 1]} : vector<2x10x10x128xf32> to vector<2x10x8x128xf32>
    %59 = vector.extract_strided_slice %58 {offsets = [0, 0, 0, 0], sizes = [2, 8, 8, 128], strides = [1, 1, 1, 1]} : vector<2x10x8x128xf32> to vector<2x8x8x128xf32>
    %60 = vector.extract_strided_slice %12 {offsets = [0, 2, 0], sizes = [1, 1, 128], strides = [1, 1, 1]} : vector<3x3x128xf32> to vector<1x1x128xf32>
    %61 = vector.shape_cast %60 : vector<1x1x128xf32> to vector<128xf32>
    %62 = vector.shape_cast %61 : vector<128xf32> to vector<1x1x1x128xf32>
    %63 = vector.broadcast %62 : vector<1x1x1x128xf32> to vector<2x8x8x128xf32>
    %64 = arith.mulf %59, %63 : vector<2x8x8x128xf32>
    %65 = arith.addf %56, %64 : vector<2x8x8x128xf32>
    %66 = vector.extract_strided_slice %58 {offsets = [0, 1, 0, 0], sizes = [2, 8, 8, 128], strides = [1, 1, 1, 1]} : vector<2x10x8x128xf32> to vector<2x8x8x128xf32>
    %67 = vector.extract_strided_slice %12 {offsets = [1, 2, 0], sizes = [1, 1, 128], strides = [1, 1, 1]} : vector<3x3x128xf32> to vector<1x1x128xf32>
    %68 = vector.shape_cast %67 : vector<1x1x128xf32> to vector<128xf32>
    %69 = vector.shape_cast %68 : vector<128xf32> to vector<1x1x1x128xf32>
    %70 = vector.broadcast %69 : vector<1x1x1x128xf32> to vector<2x8x8x128xf32>
    %71 = arith.mulf %66, %70 : vector<2x8x8x128xf32>
    %72 = arith.addf %65, %71 : vector<2x8x8x128xf32>
    %73 = vector.extract_strided_slice %58 {offsets = [0, 2, 0, 0], sizes = [2, 8, 8, 128], strides = [1, 1, 1, 1]} : vector<2x10x8x128xf32> to vector<2x8x8x128xf32>
    %74 = vector.extract_strided_slice %12 {offsets = [2, 2, 0], sizes = [1, 1, 128], strides = [1, 1, 1]} : vector<3x3x128xf32> to vector<1x1x128xf32>
    %75 = vector.shape_cast %74 : vector<1x1x128xf32> to vector<128xf32>
    %76 = vector.shape_cast %75 : vector<128xf32> to vector<1x1x1x128xf32>
    %77 = vector.broadcast %76 : vector<1x1x1x128xf32> to vector<2x8x8x128xf32>
    %78 = arith.mulf %73, %77 : vector<2x8x8x128xf32>
    %79 = arith.addf %72, %78 : vector<2x8x8x128xf32>
    %80 = vector.shape_cast %79 : vector<2x8x8x128xf32> to vector<128x128xf32>
    %81 = arith.truncf %80 : vector<128x128xf32> to vector<128x128xbf16>
    %c0_31 = arith.constant 0 : index
    %c0_32 = arith.constant 0 : index
    %82 = vector.load %arg3[%c0_31, %c0_32] : memref<128x128xbf16, #tpu.memory_space<vmem>>, vector<128x128xbf16>
    %cst_33 = arith.constant dense<0.000000e+00> : vector<128x128xf32>
    %83 = tpu.matmul %81, %82, %cst_33 {dimension_numbers = #tpu.dot_dimension_numbers<[1], [0], [0], [1], [0, 0, 1, 1], [], []>} : vector<128x128xbf16>, vector<128x128xbf16>, vector<128x128xf32> -> vector<128x128xf32>
    %c0_34 = arith.constant 0 : index
    %c0_35 = arith.constant 0 : index
    %84 = vector.load %arg4[%c0_34, %c0_35] : memref<1x128xf32, #tpu.memory_space<vmem>>, vector<1x128xf32>
    %85 = vector.broadcast %84 : vector<1x128xf32> to vector<128x128xf32>
    %86 = arith.mulf %83, %85 : vector<128x128xf32>
    %c0_36 = arith.constant 0 : index
    %c0_37 = arith.constant 0 : index
    %87 = vector.load %arg5[%c0_36, %c0_37] : memref<1x128xf32, #tpu.memory_space<vmem>>, vector<1x128xf32>
    %88 = vector.broadcast %87 : vector<1x128xf32> to vector<128x128xf32>
    %89 = arith.addf %86, %88 : vector<128x128xf32>
    %90 = vector.shape_cast %89 : vector<128x128xf32> to vector<2x8x8x128xf32>
    %cst_38 = arith.constant 0.000000e+00 : f32
    %91 = vector.broadcast %cst_38 : f32 to vector<2x8x8x128xf32>
    %92 = arith.maximumf %90, %91 : vector<2x8x8x128xf32>
    %c0_39 = arith.constant 0 : index
    %c1_40 = arith.constant 1 : index
    %c1_41 = arith.constant 1 : index
    %c0_42 = arith.constant 0 : index
    %93 = vector.load %arg15[%c0_39, %c1_40, %c1_41, %c0_42] : memref<2x10x10x128xf32, #tpu.memory_space<vmem>>, vector<2x8x8x128xf32>
    tpu.vector_store %arg15[%c0_39, %c1_40, %c1_41, %c0_42], %92 {strides = array<i32>} : memref<2x10x10x128xf32, #tpu.memory_space<vmem>>, vector<2x8x8x128xf32>,
    %c0_43 = arith.constant 0 : index
    %c0_44 = arith.constant 0 : index
    %c0_45 = arith.constant 0 : index
    %c0_46 = arith.constant 0 : index
    %94 = vector.load %arg15[%c0_43, %c0_44, %c0_45, %c0_46] : memref<2x10x10x128xf32, #tpu.memory_space<vmem>>, vector<2x10x10x128xf32>
    %c0_47 = arith.constant 0 : index
    %c0_48 = arith.constant 0 : index
    %c0_49 = arith.constant 0 : index
    %95 = vector.load %arg6[%c0_47, %c0_48, %c0_49] : memref<3x3x128xf32, #tpu.memory_space<vmem>>, vector<3x3x128xf32>
    %96 = vector.extract_strided_slice %94 {offsets = [0, 0, 0, 0], sizes = [2, 10, 8, 128], strides = [1, 1, 1, 1]} : vector<2x10x10x128xf32> to vector<2x10x8x128xf32>
    %97 = vector.extract_strided_slice %96 {offsets = [0, 0, 0, 0], sizes = [2, 8, 8, 128], strides = [1, 1, 1, 1]} : vector<2x10x8x128xf32> to vector<2x8x8x128xf32>
    %98 = vector.extract_strided_slice %95 {offsets = [0, 0, 0], sizes = [1, 1, 128], strides = [1, 1, 1]} : vector<3x3x128xf32> to vector<1x1x128xf32>
    %99 = vector.shape_cast %98 : vector<1x1x128xf32> to vector<128xf32>
    %100 = vector.shape_cast %99 : vector<128xf32> to vector<1x1x1x128xf32>
    %101 = vector.broadcast %100 : vector<1x1x1x128xf32> to vector<2x8x8x128xf32>
    %102 = arith.mulf %97, %101 : vector<2x8x8x128xf32>
    %103 = vector.extract_strided_slice %96 {offsets = [0, 1, 0, 0], sizes = [2, 8, 8, 128], strides = [1, 1, 1, 1]} : vector<2x10x8x128xf32> to vector<2x8x8x128xf32>
    %104 = vector.extract_strided_slice %95 {offsets = [1, 0, 0], sizes = [1, 1, 128], strides = [1, 1, 1]} : vector<3x3x128xf32> to vector<1x1x128xf32>
    %105 = vector.shape_cast %104 : vector<1x1x128xf32> to vector<128xf32>
    %106 = vector.shape_cast %105 : vector<128xf32> to vector<1x1x1x128xf32>
    %107 = vector.broadcast %106 : vector<1x1x1x128xf32> to vector<2x8x8x128xf32>
    %108 = arith.mulf %103, %107 : vector<2x8x8x128xf32>
    %109 = arith.addf %102, %108 : vector<2x8x8x128xf32>
    %110 = vector.extract_strided_slice %96 {offsets = [0, 2, 0, 0], sizes = [2, 8, 8, 128], strides = [1, 1, 1, 1]} : vector<2x10x8x128xf32> to vector<2x8x8x128xf32>
    %111 = vector.extract_strided_slice %95 {offsets = [2, 0, 0], sizes = [1, 1, 128], strides = [1, 1, 1]} : vector<3x3x128xf32> to vector<1x1x128xf32>
    %112 = vector.shape_cast %111 : vector<1x1x128xf32> to vector<128xf32>
    %113 = vector.shape_cast %112 : vector<128xf32> to vector<1x1x1x128xf32>
    %114 = vector.broadcast %113 : vector<1x1x1x128xf32> to vector<2x8x8x128xf32>
    %115 = arith.mulf %110, %114 : vector<2x8x8x128xf32>
    %116 = arith.addf %109, %115 : vector<2x8x8x128xf32>
    %c9_i32_50 = arith.constant 9 : i32
    %117 = tpu.dynamic_rotate %94 by %c9_i32_50 dim 2 : vector<2x10x10x128xf32>, i32 -> vector<2x10x10x128xf32>
    %118 = vector.extract_strided_slice %117 {offsets = [0, 0, 0, 0], sizes = [2, 10, 8, 128], strides = [1, 1, 1, 1]} : vector<2x10x10x128xf32> to vector<2x10x8x128xf32>
    %119 = vector.extract_strided_slice %118 {offsets = [0, 0, 0, 0], sizes = [2, 8, 8, 128], strides = [1, 1, 1, 1]} : vector<2x10x8x128xf32> to vector<2x8x8x128xf32>
    %120 = vector.extract_strided_slice %95 {offsets = [0, 1, 0], sizes = [1, 1, 128], strides = [1, 1, 1]} : vector<3x3x128xf32> to vector<1x1x128xf32>
    %121 = vector.shape_cast %120 : vector<1x1x128xf32> to vector<128xf32>
    %122 = vector.shape_cast %121 : vector<128xf32> to vector<1x1x1x128xf32>
    %123 = vector.broadcast %122 : vector<1x1x1x128xf32> to vector<2x8x8x128xf32>
    %124 = arith.mulf %119, %123 : vector<2x8x8x128xf32>
    %125 = arith.addf %116, %124 : vector<2x8x8x128xf32>
    %126 = vector.extract_strided_slice %118 {offsets = [0, 1, 0, 0], sizes = [2, 8, 8, 128], strides = [1, 1, 1, 1]} : vector<2x10x8x128xf32> to vector<2x8x8x128xf32>
    %127 = vector.extract_strided_slice %95 {offsets = [1, 1, 0], sizes = [1, 1, 128], strides = [1, 1, 1]} : vector<3x3x128xf32> to vector<1x1x128xf32>
    %128 = vector.shape_cast %127 : vector<1x1x128xf32> to vector<128xf32>
    %129 = vector.shape_cast %128 : vector<128xf32> to vector<1x1x1x128xf32>
    %130 = vector.broadcast %129 : vector<1x1x1x128xf32> to vector<2x8x8x128xf32>
    %131 = arith.mulf %126, %130 : vector<2x8x8x128xf32>
    %132 = arith.addf %125, %131 : vector<2x8x8x128xf32>
    %133 = vector.extract_strided_slice %118 {offsets = [0, 2, 0, 0], sizes = [2, 8, 8, 128], strides = [1, 1, 1, 1]} : vector<2x10x8x128xf32> to vector<2x8x8x128xf32>
    %134 = vector.extract_strided_slice %95 {offsets = [2, 1, 0], sizes = [1, 1, 128], strides = [1, 1, 1]} : vector<3x3x128xf32> to vector<1x1x128xf32>
    %135 = vector.shape_cast %134 : vector<1x1x128xf32> to vector<128xf32>
    %136 = vector.shape_cast %135 : vector<128xf32> to vector<1x1x1x128xf32>
    %137 = vector.broadcast %136 : vector<1x1x1x128xf32> to vector<2x8x8x128xf32>
    %138 = arith.mulf %133, %137 : vector<2x8x8x128xf32>
    %139 = arith.addf %132, %138 : vector<2x8x8x128xf32>
    %c8_i32_51 = arith.constant 8 : i32
    %140 = tpu.dynamic_rotate %94 by %c8_i32_51 dim 2 : vector<2x10x10x128xf32>, i32 -> vector<2x10x10x128xf32>
    %141 = vector.extract_strided_slice %140 {offsets = [0, 0, 0, 0], sizes = [2, 10, 8, 128], strides = [1, 1, 1, 1]} : vector<2x10x10x128xf32> to vector<2x10x8x128xf32>
    %142 = vector.extract_strided_slice %141 {offsets = [0, 0, 0, 0], sizes = [2, 8, 8, 128], strides = [1, 1, 1, 1]} : vector<2x10x8x128xf32> to vector<2x8x8x128xf32>
    %143 = vector.extract_strided_slice %95 {offsets = [0, 2, 0], sizes = [1, 1, 128], strides = [1, 1, 1]} : vector<3x3x128xf32> to vector<1x1x128xf32>
    %144 = vector.shape_cast %143 : vector<1x1x128xf32> to vector<128xf32>
    %145 = vector.shape_cast %144 : vector<128xf32> to vector<1x1x1x128xf32>
    %146 = vector.broadcast %145 : vector<1x1x1x128xf32> to vector<2x8x8x128xf32>
    %147 = arith.mulf %142, %146 : vector<2x8x8x128xf32>
    %148 = arith.addf %139, %147 : vector<2x8x8x128xf32>
    %149 = vector.extract_strided_slice %141 {offsets = [0, 1, 0, 0], sizes = [2, 8, 8, 128], strides = [1, 1, 1, 1]} : vector<2x10x8x128xf32> to vector<2x8x8x128xf32>
    %150 = vector.extract_strided_slice %95 {offsets = [1, 2, 0], sizes = [1, 1, 128], strides = [1, 1, 1]} : vector<3x3x128xf32> to vector<1x1x128xf32>
    %151 = vector.shape_cast %150 : vector<1x1x128xf32> to vector<128xf32>
    %152 = vector.shape_cast %151 : vector<128xf32> to vector<1x1x1x128xf32>
    %153 = vector.broadcast %152 : vector<1x1x1x128xf32> to vector<2x8x8x128xf32>
    %154 = arith.mulf %149, %153 : vector<2x8x8x128xf32>
    %155 = arith.addf %148, %154 : vector<2x8x8x128xf32>
    %156 = vector.extract_strided_slice %141 {offsets = [0, 2, 0, 0], sizes = [2, 8, 8, 128], strides = [1, 1, 1, 1]} : vector<2x10x8x128xf32> to vector<2x8x8x128xf32>
    %157 = vector.extract_strided_slice %95 {offsets = [2, 2, 0], sizes = [1, 1, 128], strides = [1, 1, 1]} : vector<3x3x128xf32> to vector<1x1x128xf32>
    %158 = vector.shape_cast %157 : vector<1x1x128xf32> to vector<128xf32>
    %159 = vector.shape_cast %158 : vector<128xf32> to vector<1x1x1x128xf32>
    %160 = vector.broadcast %159 : vector<1x1x1x128xf32> to vector<2x8x8x128xf32>
    %161 = arith.mulf %156, %160 : vector<2x8x8x128xf32>
    %162 = arith.addf %155, %161 : vector<2x8x8x128xf32>
    %163 = vector.shape_cast %162 : vector<2x8x8x128xf32> to vector<128x128xf32>
    %164 = arith.truncf %163 : vector<128x128xf32> to vector<128x128xbf16>
    %c0_52 = arith.constant 0 : index
    %c0_53 = arith.constant 0 : index
    %165 = vector.load %arg7[%c0_52, %c0_53] : memref<128x128xbf16, #tpu.memory_space<vmem>>, vector<128x128xbf16>
    %cst_54 = arith.constant dense<0.000000e+00> : vector<128x128xf32>
    %166 = tpu.matmul %164, %165, %cst_54 {dimension_numbers = #tpu.dot_dimension_numbers<[1], [0], [0], [1], [0, 0, 1, 1], [], []>} : vector<128x128xbf16>, vector<128x128xbf16>, vector<128x128xf32> -> vector<128x128xf32>
    %c0_55 = arith.constant 0 : index
    %c0_56 = arith.constant 0 : index
    %167 = vector.load %arg8[%c0_55, %c0_56] : memref<1x128xf32, #tpu.memory_space<vmem>>, vector<1x128xf32>
    %168 = vector.broadcast %167 : vector<1x128xf32> to vector<128x128xf32>
    %169 = arith.mulf %166, %168 : vector<128x128xf32>
    %c0_57 = arith.constant 0 : index
    %c0_58 = arith.constant 0 : index
    %170 = vector.load %arg9[%c0_57, %c0_58] : memref<1x128xf32, #tpu.memory_space<vmem>>, vector<1x128xf32>
    %171 = vector.broadcast %170 : vector<1x128xf32> to vector<128x128xf32>
    %172 = arith.addf %169, %171 : vector<128x128xf32>
    %173 = vector.shape_cast %172 : vector<128x128xf32> to vector<2x8x8x128xf32>
    %cst_59 = arith.constant 0.000000e+00 : f32
    %174 = vector.broadcast %cst_59 : f32 to vector<2x8x8x128xf32>
    %175 = arith.maximumf %173, %174 : vector<2x8x8x128xf32>
    %c0_60 = arith.constant 0 : index
    %c1_61 = arith.constant 1 : index
    %c1_62 = arith.constant 1 : index
    %c0_63 = arith.constant 0 : index
    %176 = vector.load %arg15[%c0_60, %c1_61, %c1_62, %c0_63] : memref<2x10x10x128xf32, #tpu.memory_space<vmem>>, vector<2x8x8x128xf32>
    tpu.vector_store %arg15[%c0_60, %c1_61, %c1_62, %c0_63], %175 {strides = array<i32>} : memref<2x10x10x128xf32, #tpu.memory_space<vmem>>, vector<2x8x8x128xf32>,
    %c0_64 = arith.constant 0 : index
    %c0_65 = arith.constant 0 : index
    %c0_66 = arith.constant 0 : index
    %c0_67 = arith.constant 0 : index
    %177 = vector.load %arg15[%c0_64, %c0_65, %c0_66, %c0_67] : memref<2x10x10x128xf32, #tpu.memory_space<vmem>>, vector<2x10x10x128xf32>
    %c0_68 = arith.constant 0 : index
    %c0_69 = arith.constant 0 : index
    %c0_70 = arith.constant 0 : index
    %178 = vector.load %arg10[%c0_68, %c0_69, %c0_70] : memref<3x3x128xf32, #tpu.memory_space<vmem>>, vector<3x3x128xf32>
    %179 = vector.extract_strided_slice %177 {offsets = [0, 0, 0, 0], sizes = [2, 10, 8, 128], strides = [1, 1, 1, 1]} : vector<2x10x10x128xf32> to vector<2x10x8x128xf32>
    %180 = vector.extract_strided_slice %179 {offsets = [0, 0, 0, 0], sizes = [2, 8, 8, 128], strides = [1, 1, 1, 1]} : vector<2x10x8x128xf32> to vector<2x8x8x128xf32>
    %181 = vector.extract_strided_slice %178 {offsets = [0, 0, 0], sizes = [1, 1, 128], strides = [1, 1, 1]} : vector<3x3x128xf32> to vector<1x1x128xf32>
    %182 = vector.shape_cast %181 : vector<1x1x128xf32> to vector<128xf32>
    %183 = vector.shape_cast %182 : vector<128xf32> to vector<1x1x1x128xf32>
    %184 = vector.broadcast %183 : vector<1x1x1x128xf32> to vector<2x8x8x128xf32>
    %185 = arith.mulf %180, %184 : vector<2x8x8x128xf32>
    %186 = vector.extract_strided_slice %179 {offsets = [0, 1, 0, 0], sizes = [2, 8, 8, 128], strides = [1, 1, 1, 1]} : vector<2x10x8x128xf32> to vector<2x8x8x128xf32>
    %187 = vector.extract_strided_slice %178 {offsets = [1, 0, 0], sizes = [1, 1, 128], strides = [1, 1, 1]} : vector<3x3x128xf32> to vector<1x1x128xf32>
    %188 = vector.shape_cast %187 : vector<1x1x128xf32> to vector<128xf32>
    %189 = vector.shape_cast %188 : vector<128xf32> to vector<1x1x1x128xf32>
    %190 = vector.broadcast %189 : vector<1x1x1x128xf32> to vector<2x8x8x128xf32>
    %191 = arith.mulf %186, %190 : vector<2x8x8x128xf32>
    %192 = arith.addf %185, %191 : vector<2x8x8x128xf32>
    %193 = vector.extract_strided_slice %179 {offsets = [0, 2, 0, 0], sizes = [2, 8, 8, 128], strides = [1, 1, 1, 1]} : vector<2x10x8x128xf32> to vector<2x8x8x128xf32>
    %194 = vector.extract_strided_slice %178 {offsets = [2, 0, 0], sizes = [1, 1, 128], strides = [1, 1, 1]} : vector<3x3x128xf32> to vector<1x1x128xf32>
    %195 = vector.shape_cast %194 : vector<1x1x128xf32> to vector<128xf32>
    %196 = vector.shape_cast %195 : vector<128xf32> to vector<1x1x1x128xf32>
    %197 = vector.broadcast %196 : vector<1x1x1x128xf32> to vector<2x8x8x128xf32>
    %198 = arith.mulf %193, %197 : vector<2x8x8x128xf32>
    %199 = arith.addf %192, %198 : vector<2x8x8x128xf32>
    %c9_i32_71 = arith.constant 9 : i32
    %200 = tpu.dynamic_rotate %177 by %c9_i32_71 dim 2 : vector<2x10x10x128xf32>, i32 -> vector<2x10x10x128xf32>
    %201 = vector.extract_strided_slice %200 {offsets = [0, 0, 0, 0], sizes = [2, 10, 8, 128], strides = [1, 1, 1, 1]} : vector<2x10x10x128xf32> to vector<2x10x8x128xf32>
    %202 = vector.extract_strided_slice %201 {offsets = [0, 0, 0, 0], sizes = [2, 8, 8, 128], strides = [1, 1, 1, 1]} : vector<2x10x8x128xf32> to vector<2x8x8x128xf32>
    %203 = vector.extract_strided_slice %178 {offsets = [0, 1, 0], sizes = [1, 1, 128], strides = [1, 1, 1]} : vector<3x3x128xf32> to vector<1x1x128xf32>
    %204 = vector.shape_cast %203 : vector<1x1x128xf32> to vector<128xf32>
    %205 = vector.shape_cast %204 : vector<128xf32> to vector<1x1x1x128xf32>
    %206 = vector.broadcast %205 : vector<1x1x1x128xf32> to vector<2x8x8x128xf32>
    %207 = arith.mulf %202, %206 : vector<2x8x8x128xf32>
    %208 = arith.addf %199, %207 : vector<2x8x8x128xf32>
    %209 = vector.extract_strided_slice %201 {offsets = [0, 1, 0, 0], sizes = [2, 8, 8, 128], strides = [1, 1, 1, 1]} : vector<2x10x8x128xf32> to vector<2x8x8x128xf32>
    %210 = vector.extract_strided_slice %178 {offsets = [1, 1, 0], sizes = [1, 1, 128], strides = [1, 1, 1]} : vector<3x3x128xf32> to vector<1x1x128xf32>
    %211 = vector.shape_cast %210 : vector<1x1x128xf32> to vector<128xf32>
    %212 = vector.shape_cast %211 : vector<128xf32> to vector<1x1x1x128xf32>
    %213 = vector.broadcast %212 : vector<1x1x1x128xf32> to vector<2x8x8x128xf32>
    %214 = arith.mulf %209, %213 : vector<2x8x8x128xf32>
    %215 = arith.addf %208, %214 : vector<2x8x8x128xf32>
    %216 = vector.extract_strided_slice %201 {offsets = [0, 2, 0, 0], sizes = [2, 8, 8, 128], strides = [1, 1, 1, 1]} : vector<2x10x8x128xf32> to vector<2x8x8x128xf32>
    %217 = vector.extract_strided_slice %178 {offsets = [2, 1, 0], sizes = [1, 1, 128], strides = [1, 1, 1]} : vector<3x3x128xf32> to vector<1x1x128xf32>
    %218 = vector.shape_cast %217 : vector<1x1x128xf32> to vector<128xf32>
    %219 = vector.shape_cast %218 : vector<128xf32> to vector<1x1x1x128xf32>
    %220 = vector.broadcast %219 : vector<1x1x1x128xf32> to vector<2x8x8x128xf32>
    %221 = arith.mulf %216, %220 : vector<2x8x8x128xf32>
    %222 = arith.addf %215, %221 : vector<2x8x8x128xf32>
    %c8_i32_72 = arith.constant 8 : i32
    %223 = tpu.dynamic_rotate %177 by %c8_i32_72 dim 2 : vector<2x10x10x128xf32>, i32 -> vector<2x10x10x128xf32>
    %224 = vector.extract_strided_slice %223 {offsets = [0, 0, 0, 0], sizes = [2, 10, 8, 128], strides = [1, 1, 1, 1]} : vector<2x10x10x128xf32> to vector<2x10x8x128xf32>
    %225 = vector.extract_strided_slice %224 {offsets = [0, 0, 0, 0], sizes = [2, 8, 8, 128], strides = [1, 1, 1, 1]} : vector<2x10x8x128xf32> to vector<2x8x8x128xf32>
    %226 = vector.extract_strided_slice %178 {offsets = [0, 2, 0], sizes = [1, 1, 128], strides = [1, 1, 1]} : vector<3x3x128xf32> to vector<1x1x128xf32>
    %227 = vector.shape_cast %226 : vector<1x1x128xf32> to vector<128xf32>
    %228 = vector.shape_cast %227 : vector<128xf32> to vector<1x1x1x128xf32>
    %229 = vector.broadcast %228 : vector<1x1x1x128xf32> to vector<2x8x8x128xf32>
    %230 = arith.mulf %225, %229 : vector<2x8x8x128xf32>
    %231 = arith.addf %222, %230 : vector<2x8x8x128xf32>
    %232 = vector.extract_strided_slice %224 {offsets = [0, 1, 0, 0], sizes = [2, 8, 8, 128], strides = [1, 1, 1, 1]} : vector<2x10x8x128xf32> to vector<2x8x8x128xf32>
    %233 = vector.extract_strided_slice %178 {offsets = [1, 2, 0], sizes = [1, 1, 128], strides = [1, 1, 1]} : vector<3x3x128xf32> to vector<1x1x128xf32>
    %234 = vector.shape_cast %233 : vector<1x1x128xf32> to vector<128xf32>
    %235 = vector.shape_cast %234 : vector<128xf32> to vector<1x1x1x128xf32>
    %236 = vector.broadcast %235 : vector<1x1x1x128xf32> to vector<2x8x8x128xf32>
    %237 = arith.mulf %232, %236 : vector<2x8x8x128xf32>
    %238 = arith.addf %231, %237 : vector<2x8x8x128xf32>
    %239 = vector.extract_strided_slice %224 {offsets = [0, 2, 0, 0], sizes = [2, 8, 8, 128], strides = [1, 1, 1, 1]} : vector<2x10x8x128xf32> to vector<2x8x8x128xf32>
    %240 = vector.extract_strided_slice %178 {offsets = [2, 2, 0], sizes = [1, 1, 128], strides = [1, 1, 1]} : vector<3x3x128xf32> to vector<1x1x128xf32>
    %241 = vector.shape_cast %240 : vector<1x1x128xf32> to vector<128xf32>
    %242 = vector.shape_cast %241 : vector<128xf32> to vector<1x1x1x128xf32>
    %243 = vector.broadcast %242 : vector<1x1x1x128xf32> to vector<2x8x8x128xf32>
    %244 = arith.mulf %239, %243 : vector<2x8x8x128xf32>
    %245 = arith.addf %238, %244 : vector<2x8x8x128xf32>
    %246 = vector.shape_cast %245 : vector<2x8x8x128xf32> to vector<128x128xf32>
    %247 = arith.truncf %246 : vector<128x128xf32> to vector<128x128xbf16>
    %c0_73 = arith.constant 0 : index
    %c0_74 = arith.constant 0 : index
    %248 = vector.load %arg11[%c0_73, %c0_74] : memref<128x128xbf16, #tpu.memory_space<vmem>>, vector<128x128xbf16>
    %cst_75 = arith.constant dense<0.000000e+00> : vector<128x128xf32>
    %249 = tpu.matmul %247, %248, %cst_75 {dimension_numbers = #tpu.dot_dimension_numbers<[1], [0], [0], [1], [0, 0, 1, 1], [], []>} : vector<128x128xbf16>, vector<128x128xbf16>, vector<128x128xf32> -> vector<128x128xf32>
    %c0_76 = arith.constant 0 : index
    %c0_77 = arith.constant 0 : index
    %250 = vector.load %arg12[%c0_76, %c0_77] : memref<1x128xf32, #tpu.memory_space<vmem>>, vector<1x128xf32>
    %251 = vector.broadcast %250 : vector<1x128xf32> to vector<128x128xf32>
    %252 = arith.mulf %249, %251 : vector<128x128xf32>
    %c0_78 = arith.constant 0 : index
    %c0_79 = arith.constant 0 : index
    %253 = vector.load %arg13[%c0_78, %c0_79] : memref<1x128xf32, #tpu.memory_space<vmem>>, vector<1x128xf32>
    %254 = vector.broadcast %253 : vector<1x128xf32> to vector<128x128xf32>
    %255 = arith.addf %252, %254 : vector<128x128xf32>
    %256 = vector.shape_cast %255 : vector<128x128xf32> to vector<2x8x8x128xf32>
    %c0_80 = arith.constant 0 : index
    %c0_81 = arith.constant 0 : index
    %c0_82 = arith.constant 0 : index
    %c0_83 = arith.constant 0 : index
    %257 = vector.load %arg1[%c0_80, %c0_81, %c0_82, %c0_83] : memref<2x8x8x128xf32, #tpu.memory_space<vmem>>, vector<2x8x8x128xf32>
    %258 = arith.addf %257, %256 : vector<2x8x8x128xf32>
    %c0_84 = arith.constant 0 : index
    %c0_85 = arith.constant 0 : index
    %c0_86 = arith.constant 0 : index
    %c0_87 = arith.constant 0 : index
    %259 = vector.load %arg14[%c0_84, %c0_85, %c0_86, %c0_87] : memref<2x8x8x128xf32, #tpu.memory_space<vmem>>, vector<2x8x8x128xf32>
    tpu.vector_store %arg14[%c0_84, %c0_85, %c0_86, %c0_87], %258 {strides = array<i32>} : memref<2x8x8x128xf32, #tpu.memory_space<vmem>>, vector<2x8x8x128xf32>,
    return
  }
  func.func @transform_0(%arg0: i32) -> (i32, i32, i32, i32) {
    %c0_i32 = arith.constant 0 : i32
    %c0_i32_0 = arith.constant 0 : i32
    %c0_i32_1 = arith.constant 0 : i32
    %c0_i32_2 = arith.constant 0 : i32
    return %arg0, %c0_i32, %c0_i32_0, %c0_i32_1 : i32, i32, i32, i32
  }
  func.func @transform_1(%arg0: i32) -> (i32, i32, i32) {
    %c0_i32 = arith.constant 0 : i32
    %c0_i32_0 = arith.constant 0 : i32
    %c0_i32_1 = arith.constant 0 : i32
    %c0_i32_2 = arith.constant 0 : i32
    return %c0_i32, %c0_i32_0, %c0_i32_1 : i32, i32, i32
  }
  func.func @transform_2(%arg0: i32) -> (i32, i32) {
    %c0_i32 = arith.constant 0 : i32
    %c0_i32_0 = arith.constant 0 : i32
    %c0_i32_1 = arith.constant 0 : i32
    return %c0_i32, %c0_i32_0 : i32, i32
  }
  func.func @transform_3(%arg0: i32) -> (i32, i32) {
    %c0_i32 = arith.constant 0 : i32
    %c0_i32_0 = arith.constant 0 : i32
    %c0_i32_1 = arith.constant 0 : i32
    return %c0_i32, %c0_i32_0 : i32, i32
  }
  func.func @transform_4(%arg0: i32) -> (i32, i32) {
    %c0_i32 = arith.constant 0 : i32
    %c0_i32_0 = arith.constant 0 : i32
    %c0_i32_1 = arith.constant 0 : i32
    return %c0_i32, %c0_i32_0 : i32, i32
  }
  func.func @transform_5(%arg0: i32) -> (i32, i32, i32) {
    %c0_i32 = arith.constant 0 : i32
    %c0_i32_0 = arith.constant 0 : i32
    %c0_i32_1 = arith.constant 0 : i32
    %c0_i32_2 = arith.constant 0 : i32
    return %c0_i32, %c0_i32_0, %c0_i32_1 : i32, i32, i32
  }
  func.func @transform_6(%arg0: i32) -> (i32, i32) {
    %c0_i32 = arith.constant 0 : i32
    %c0_i32_0 = arith.constant 0 : i32
    %c0_i32_1 = arith.constant 0 : i32
    return %c0_i32, %c0_i32_0 : i32, i32
  }
  func.func @transform_7(%arg0: i32) -> (i32, i32) {
    %c0_i32 = arith.constant 0 : i32
    %c0_i32_0 = arith.constant 0 : i32
    %c0_i32_1 = arith.constant 0 : i32
    return %c0_i32, %c0_i32_0 : i32, i32
  }
  func.func @transform_8(%arg0: i32) -> (i32, i32) {
    %c0_i32 = arith.constant 0 : i32
    %c0_i32_0 = arith.constant 0 : i32
    %c0_i32_1 = arith.constant 0 : i32
    return %c0_i32, %c0_i32_0 : i32, i32
  }
  func.func @transform_9(%arg0: i32) -> (i32, i32, i32) {
    %c0_i32 = arith.constant 0 : i32
    %c0_i32_0 = arith.constant 0 : i32
    %c0_i32_1 = arith.constant 0 : i32
    %c0_i32_2 = arith.constant 0 : i32
    return %c0_i32, %c0_i32_0, %c0_i32_1 : i32, i32, i32
  }
  func.func @transform_10(%arg0: i32) -> (i32, i32) {
    %c0_i32 = arith.constant 0 : i32
    %c0_i32_0 = arith.constant 0 : i32
    %c0_i32_1 = arith.constant 0 : i32
    return %c0_i32, %c0_i32_0 : i32, i32
  }
  func.func @transform_11(%arg0: i32) -> (i32, i32) {
    %c0_i32 = arith.constant 0 : i32
    %c0_i32_0 = arith.constant 0 : i32
    %c0_i32_1 = arith.constant 0 : i32
    return %c0_i32, %c0_i32_0 : i32, i32
  }
  func.func @transform_12(%arg0: i32) -> (i32, i32) {
    %c0_i32 = arith.constant 0 : i32
    %c0_i32_0 = arith.constant 0 : i32
    %c0_i32_1 = arith.constant 0 : i32
    return %c0_i32, %c0_i32_0 : i32, i32
  }
  func.func @transform_13(%arg0: i32) -> (i32, i32, i32, i32) {
    %c0_i32 = arith.constant 0 : i32
    %c0_i32_0 = arith.constant 0 : i32
    %c0_i32_1 = arith.constant 0 : i32
    %c0_i32_2 = arith.constant 0 : i32
    return %arg0, %c0_i32, %c0_i32_0, %c0_i32_1 : i32, i32, i32, i32
  }
}

module attributes {stable_mosaic.version = 11 : i64} {
  func.func @kernel(%arg0: i32, %arg1: memref<2x8x8x128xf32, #tpu.memory_space<vmem>>, %arg2: memref<3x3x128xf32, #tpu.memory_space<vmem>>, %arg3: memref<128x128xbf16, #tpu.memory_space<vmem>>, %arg4: memref<1x128xf32, #tpu.memory_space<vmem>>, %arg5: memref<1x128xf32, #tpu.memory_space<vmem>>, %arg6: memref<3x3x128xf32, #tpu.memory_space<vmem>>, %arg7: memref<128x128xbf16, #tpu.memory_space<vmem>>, %arg8: memref<1x128xf32, #tpu.memory_space<vmem>>, %arg9: memref<1x128xf32, #tpu.memory_space<vmem>>, %arg10: memref<3x3x128xf32, #tpu.memory_space<vmem>>, %arg11: memref<128x128xbf16, #tpu.memory_space<vmem>>, %arg12: memref<1x128xf32, #tpu.memory_space<vmem>>, %arg13: memref<1x128xf32, #tpu.memory_space<vmem>>, %arg14: memref<2x8x8x128xf32, #tpu.memory_space<vmem>>, %arg15: memref<2x10x10x128xf32, #tpu.memory_space<vmem>>) attributes {dimension_semantics = [#tpu.dimension_semantics<parallel>], iteration_bounds = array<i64: 1>, scalar_prefetch = 0 : i64, scratch_operands = 1 : i64, tpu.core_type = #tpu.core_type<tc>, window_params = [{transform_indices = @transform_0, window_bounds = array<i64: 2, 8, 8, 128>}, {pipeline_mode = #tpu.pipeline_mode<synchronous>, transform_indices = @transform_1, window_bounds = array<i64: 3, 3, 128>}, {pipeline_mode = #tpu.pipeline_mode<synchronous>, transform_indices = @transform_2, window_bounds = array<i64: 128, 128>}, {pipeline_mode = #tpu.pipeline_mode<synchronous>, transform_indices = @transform_3, window_bounds = array<i64: 1, 128>}, {pipeline_mode = #tpu.pipeline_mode<synchronous>, transform_indices = @transform_4, window_bounds = array<i64: 1, 128>}, {pipeline_mode = #tpu.pipeline_mode<synchronous>, transform_indices = @transform_5, window_bounds = array<i64: 3, 3, 128>}, {pipeline_mode = #tpu.pipeline_mode<synchronous>, transform_indices = @transform_6, window_bounds = array<i64: 128, 128>}, {pipeline_mode = #tpu.pipeline_mode<synchronous>, transform_indices = @transform_7, window_bounds = array<i64: 1, 128>}, {pipeline_mode = #tpu.pipeline_mode<synchronous>, transform_indices = @transform_8, window_bounds = array<i64: 1, 128>}, {pipeline_mode = #tpu.pipeline_mode<synchronous>, transform_indices = @transform_9, window_bounds = array<i64: 3, 3, 128>}, {pipeline_mode = #tpu.pipeline_mode<synchronous>, transform_indices = @transform_10, window_bounds = array<i64: 128, 128>}, {pipeline_mode = #tpu.pipeline_mode<synchronous>, transform_indices = @transform_11, window_bounds = array<i64: 1, 128>}, {pipeline_mode = #tpu.pipeline_mode<synchronous>, transform_indices = @transform_12, window_bounds = array<i64: 1, 128>}, {transform_indices = @transform_13, window_bounds = array<i64: 2, 8, 8, 128>}]} {
    %cst = arith.constant 0.000000e+00 : f32
    %0 = vector.broadcast %cst : f32 to vector<2x1x10x128xf32>
    %c0 = arith.constant 0 : index
    %c0_0 = arith.constant 0 : index
    %c0_1 = arith.constant 0 : index
    %c0_2 = arith.constant 0 : index
    %1 = vector.load %arg15[%c0, %c0_0, %c0_1, %c0_2] : memref<2x10x10x128xf32, #tpu.memory_space<vmem>>, vector<2x1x10x128xf32>
    tpu.vector_store %arg15[%c0, %c0_0, %c0_1, %c0_2], %0 {strides = array<i32>} : memref<2x10x10x128xf32, #tpu.memory_space<vmem>>, vector<2x1x10x128xf32>,
    %c0_3 = arith.constant 0 : index
    %c9 = arith.constant 9 : index
    %c0_4 = arith.constant 0 : index
    %c0_5 = arith.constant 0 : index
    %2 = vector.load %arg15[%c0_3, %c9, %c0_4, %c0_5] : memref<2x10x10x128xf32, #tpu.memory_space<vmem>>, vector<2x1x10x128xf32>
    tpu.vector_store %arg15[%c0_3, %c9, %c0_4, %c0_5], %0 {strides = array<i32>} : memref<2x10x10x128xf32, #tpu.memory_space<vmem>>, vector<2x1x10x128xf32>,
    %cst_6 = arith.constant 0.000000e+00 : f32
    %3 = vector.broadcast %cst_6 : f32 to vector<2x8x1x128xf32>
    %c0_7 = arith.constant 0 : index
    %c1 = arith.constant 1 : index
    %c0_8 = arith.constant 0 : index
    %c0_9 = arith.constant 0 : index
    %4 = vector.load %arg15[%c0_7, %c1, %c0_8, %c0_9] : memref<2x10x10x128xf32, #tpu.memory_space<vmem>>, vector<2x8x1x128xf32>
    tpu.vector_store %arg15[%c0_7, %c1, %c0_8, %c0_9], %3 {strides = array<i32>} : memref<2x10x10x128xf32, #tpu.memory_space<vmem>>, vector<2x8x1x128xf32>,
    %cst_10 = arith.constant 0.000000e+00 : f32
    %5 = vector.broadcast %cst_10 : f32 to vector<2x8x1x128xf32>
    %c0_11 = arith.constant 0 : index
    %c1_12 = arith.constant 1 : index
    %c9_13 = arith.constant 9 : index
    %c0_14 = arith.constant 0 : index
    %6 = vector.load %arg15[%c0_11, %c1_12, %c9_13, %c0_14] : memref<2x10x10x128xf32, #tpu.memory_space<vmem>>, vector<2x8x1x128xf32>
    tpu.vector_store %arg15[%c0_11, %c1_12, %c9_13, %c0_14], %5 {strides = array<i32>} : memref<2x10x10x128xf32, #tpu.memory_space<vmem>>, vector<2x8x1x128xf32>,
    %c0_15 = arith.constant 0 : index
    %c0_16 = arith.constant 0 : index
    %c0_17 = arith.constant 0 : index
    %c0_18 = arith.constant 0 : index
    %7 = vector.load %arg1[%c0_15, %c0_16, %c0_17, %c0_18] : memref<2x8x8x128xf32, #tpu.memory_space<vmem>>, vector<2x8x8x128xf32>
    %cst_19 = arith.constant 0.000000e+00 : f32
    %8 = vector.broadcast %cst_19 : f32 to vector<2x8x8x128xf32>
    %9 = arith.maximumf %7, %8 : vector<2x8x8x128xf32>
    %c0_20 = arith.constant 0 : index
    %c1_21 = arith.constant 1 : index
    %c1_22 = arith.constant 1 : index
    %c0_23 = arith.constant 0 : index
    %10 = vector.load %arg15[%c0_20, %c1_21, %c1_22, %c0_23] : memref<2x10x10x128xf32, #tpu.memory_space<vmem>>, vector<2x8x8x128xf32>
    tpu.vector_store %arg15[%c0_20, %c1_21, %c1_22, %c0_23], %9 {strides = array<i32>} : memref<2x10x10x128xf32, #tpu.memory_space<vmem>>, vector<2x8x8x128xf32>,
    %c0_24 = arith.constant 0 : index
    %c0_25 = arith.constant 0 : index
    %c0_26 = arith.constant 0 : index
    %c0_27 = arith.constant 0 : index
    %11 = vector.load %arg15[%c0_24, %c0_25, %c0_26, %c0_27] : memref<2x10x10x128xf32, #tpu.memory_space<vmem>>, vector<2x10x10x128xf32>
    %c0_28 = arith.constant 0 : index
    %c0_29 = arith.constant 0 : index
    %c0_30 = arith.constant 0 : index
    %12 = vector.load %arg2[%c0_28, %c0_29, %c0_30] : memref<3x3x128xf32, #tpu.memory_space<vmem>>, vector<3x3x128xf32>
    %13 = vector.extract_strided_slice %11 {offsets = [0, 0, 0, 0], sizes = [2, 10, 8, 128], strides = [1, 1, 1, 1]} : vector<2x10x10x128xf32> to vector<2x10x8x128xf32>
    %14 = vector.extract_strided_slice %13 {offsets = [0, 0, 0, 0], sizes = [2, 8, 8, 128], strides = [1, 1, 1, 1]} : vector<2x10x8x128xf32> to vector<2x8x8x128xf32>
    %15 = vector.extract_strided_slice %12 {offsets = [0, 0, 0], sizes = [1, 1, 128], strides = [1, 1, 1]} : vector<3x3x128xf32> to vector<1x1x128xf32>
    %16 = vector.shape_cast %15 : vector<1x1x128xf32> to vector<128xf32>
    %17 = vector.shape_cast %16 : vector<128xf32> to vector<1x1x1x128xf32>
    %18 = vector.broadcast %17 : vector<1x1x1x128xf32> to vector<2x8x8x128xf32>
    %19 = arith.mulf %14, %18 : vector<2x8x8x128xf32>
    %20 = vector.extract_strided_slice %13 {offsets = [0, 1, 0, 0], sizes = [2, 8, 8, 128], strides = [1, 1, 1, 1]} : vector<2x10x8x128xf32> to vector<2x8x8x128xf32>
    %21 = vector.extract_strided_slice %12 {offsets = [1, 0, 0], sizes = [1, 1, 128], strides = [1, 1, 1]} : vector<3x3x128xf32> to vector<1x1x128xf32>
    %22 = vector.shape_cast %21 : vector<1x1x128xf32> to vector<128xf32>
    %23 = vector.shape_cast %22 : vector<128xf32> to vector<1x1x1x128xf32>
    %24 = vector.broadcast %23 : vector<1x1x1x128xf32> to vector<2x8x8x128xf32>
    %25 = arith.mulf %20, %24 : vector<2x8x8x128xf32>
    %26 = arith.addf %19, %25 : vector<2x8x8x128xf32>
    %27 = vector.extract_strided_slice %13 {offsets = [0, 2, 0, 0], sizes = [2, 8, 8, 128], strides = [1, 1, 1, 1]} : vector<2x10x8x128xf32> to vector<2x8x8x128xf32>
    %28 = vector.extract_strided_slice %12 {offsets = [2, 0, 0], sizes = [1, 1, 128], strides = [1, 1, 1]} : vector<3x3x128xf32> to vector<1x1x128xf32>
    %29 = vector.shape_cast %28 : vector<1x1x128xf32> to vector<128xf32>
    %30 = vector.shape_cast %29 : vector<128xf32> to vector<1x1x1x128xf32>
    %31 = vector.broadcast %30 : vector<1x1x1x128xf32> to vector<2x8x8x128xf32>
    %32 = arith.mulf %27, %31 : vector<2x8x8x128xf32>
    %33 = arith.addf %26, %32 : vector<2x8x8x128xf32>
    %34 = vector.extract_strided_slice %11 {offsets = [0, 0, 1, 0], sizes = [2, 10, 8, 128], strides = [1, 1, 1, 1]} : vector<2x10x10x128xf32> to vector<2x10x8x128xf32>
    %35 = vector.extract_strided_slice %34 {offsets = [0, 0, 0, 0], sizes = [2, 8, 8, 128], strides = [1, 1, 1, 1]} : vector<2x10x8x128xf32> to vector<2x8x8x128xf32>
    %36 = vector.extract_strided_slice %12 {offsets = [0, 1, 0], sizes = [1, 1, 128], strides = [1, 1, 1]} : vector<3x3x128xf32> to vector<1x1x128xf32>
    %37 = vector.shape_cast %36 : vector<1x1x128xf32> to vector<128xf32>
    %38 = vector.shape_cast %37 : vector<128xf32> to vector<1x1x1x128xf32>
    %39 = vector.broadcast %38 : vector<1x1x1x128xf32> to vector<2x8x8x128xf32>
    %40 = arith.mulf %35, %39 : vector<2x8x8x128xf32>
    %41 = arith.addf %33, %40 : vector<2x8x8x128xf32>
    %42 = vector.extract_strided_slice %34 {offsets = [0, 1, 0, 0], sizes = [2, 8, 8, 128], strides = [1, 1, 1, 1]} : vector<2x10x8x128xf32> to vector<2x8x8x128xf32>
    %43 = vector.extract_strided_slice %12 {offsets = [1, 1, 0], sizes = [1, 1, 128], strides = [1, 1, 1]} : vector<3x3x128xf32> to vector<1x1x128xf32>
    %44 = vector.shape_cast %43 : vector<1x1x128xf32> to vector<128xf32>
    %45 = vector.shape_cast %44 : vector<128xf32> to vector<1x1x1x128xf32>
    %46 = vector.broadcast %45 : vector<1x1x1x128xf32> to vector<2x8x8x128xf32>
    %47 = arith.mulf %42, %46 : vector<2x8x8x128xf32>
    %48 = arith.addf %41, %47 : vector<2x8x8x128xf32>
    %49 = vector.extract_strided_slice %34 {offsets = [0, 2, 0, 0], sizes = [2, 8, 8, 128], strides = [1, 1, 1, 1]} : vector<2x10x8x128xf32> to vector<2x8x8x128xf32>
    %50 = vector.extract_strided_slice %12 {offsets = [2, 1, 0], sizes = [1, 1, 128], strides = [1, 1, 1]} : vector<3x3x128xf32> to vector<1x1x128xf32>
    %51 = vector.shape_cast %50 : vector<1x1x128xf32> to vector<128xf32>
    %52 = vector.shape_cast %51 : vector<128xf32> to vector<1x1x1x128xf32>
    %53 = vector.broadcast %52 : vector<1x1x1x128xf32> to vector<2x8x8x128xf32>
    %54 = arith.mulf %49, %53 : vector<2x8x8x128xf32>
    %55 = arith.addf %48, %54 : vector<2x8x8x128xf32>
    %56 = vector.extract_strided_slice %11 {offsets = [0, 0, 2, 0], sizes = [2, 10, 8, 128], strides = [1, 1, 1, 1]} : vector<2x10x10x128xf32> to vector<2x10x8x128xf32>
    %57 = vector.extract_strided_slice %56 {offsets = [0, 0, 0, 0], sizes = [2, 8, 8, 128], strides = [1, 1, 1, 1]} : vector<2x10x8x128xf32> to vector<2x8x8x128xf32>
    %58 = vector.extract_strided_slice %12 {offsets = [0, 2, 0], sizes = [1, 1, 128], strides = [1, 1, 1]} : vector<3x3x128xf32> to vector<1x1x128xf32>
    %59 = vector.shape_cast %58 : vector<1x1x128xf32> to vector<128xf32>
    %60 = vector.shape_cast %59 : vector<128xf32> to vector<1x1x1x128xf32>
    %61 = vector.broadcast %60 : vector<1x1x1x128xf32> to vector<2x8x8x128xf32>
    %62 = arith.mulf %57, %61 : vector<2x8x8x128xf32>
    %63 = arith.addf %55, %62 : vector<2x8x8x128xf32>
    %64 = vector.extract_strided_slice %56 {offsets = [0, 1, 0, 0], sizes = [2, 8, 8, 128], strides = [1, 1, 1, 1]} : vector<2x10x8x128xf32> to vector<2x8x8x128xf32>
    %65 = vector.extract_strided_slice %12 {offsets = [1, 2, 0], sizes = [1, 1, 128], strides = [1, 1, 1]} : vector<3x3x128xf32> to vector<1x1x128xf32>
    %66 = vector.shape_cast %65 : vector<1x1x128xf32> to vector<128xf32>
    %67 = vector.shape_cast %66 : vector<128xf32> to vector<1x1x1x128xf32>
    %68 = vector.broadcast %67 : vector<1x1x1x128xf32> to vector<2x8x8x128xf32>
    %69 = arith.mulf %64, %68 : vector<2x8x8x128xf32>
    %70 = arith.addf %63, %69 : vector<2x8x8x128xf32>
    %71 = vector.extract_strided_slice %56 {offsets = [0, 2, 0, 0], sizes = [2, 8, 8, 128], strides = [1, 1, 1, 1]} : vector<2x10x8x128xf32> to vector<2x8x8x128xf32>
    %72 = vector.extract_strided_slice %12 {offsets = [2, 2, 0], sizes = [1, 1, 128], strides = [1, 1, 1]} : vector<3x3x128xf32> to vector<1x1x128xf32>
    %73 = vector.shape_cast %72 : vector<1x1x128xf32> to vector<128xf32>
    %74 = vector.shape_cast %73 : vector<128xf32> to vector<1x1x1x128xf32>
    %75 = vector.broadcast %74 : vector<1x1x1x128xf32> to vector<2x8x8x128xf32>
    %76 = arith.mulf %71, %75 : vector<2x8x8x128xf32>
    %77 = arith.addf %70, %76 : vector<2x8x8x128xf32>
    %78 = vector.shape_cast %77 : vector<2x8x8x128xf32> to vector<128x128xf32>
    %79 = arith.truncf %78 : vector<128x128xf32> to vector<128x128xbf16>
    %c0_31 = arith.constant 0 : index
    %c0_32 = arith.constant 0 : index
    %80 = vector.load %arg3[%c0_31, %c0_32] : memref<128x128xbf16, #tpu.memory_space<vmem>>, vector<128x128xbf16>
    %cst_33 = arith.constant dense<0.000000e+00> : vector<128x128xf32>
    %81 = tpu.matmul %79, %80, %cst_33 {dimension_numbers = #tpu.dot_dimension_numbers<[1], [0], [0], [1], [0, 0, 1, 1], [], []>} : vector<128x128xbf16>, vector<128x128xbf16>, vector<128x128xf32> -> vector<128x128xf32>
    %c0_34 = arith.constant 0 : index
    %c0_35 = arith.constant 0 : index
    %82 = vector.load %arg4[%c0_34, %c0_35] : memref<1x128xf32, #tpu.memory_space<vmem>>, vector<1x128xf32>
    %83 = vector.broadcast %82 : vector<1x128xf32> to vector<128x128xf32>
    %84 = arith.mulf %81, %83 : vector<128x128xf32>
    %c0_36 = arith.constant 0 : index
    %c0_37 = arith.constant 0 : index
    %85 = vector.load %arg5[%c0_36, %c0_37] : memref<1x128xf32, #tpu.memory_space<vmem>>, vector<1x128xf32>
    %86 = vector.broadcast %85 : vector<1x128xf32> to vector<128x128xf32>
    %87 = arith.addf %84, %86 : vector<128x128xf32>
    %88 = vector.shape_cast %87 : vector<128x128xf32> to vector<2x8x8x128xf32>
    %cst_38 = arith.constant 0.000000e+00 : f32
    %89 = vector.broadcast %cst_38 : f32 to vector<2x8x8x128xf32>
    %90 = arith.maximumf %88, %89 : vector<2x8x8x128xf32>
    %c0_39 = arith.constant 0 : index
    %c1_40 = arith.constant 1 : index
    %c1_41 = arith.constant 1 : index
    %c0_42 = arith.constant 0 : index
    %91 = vector.load %arg15[%c0_39, %c1_40, %c1_41, %c0_42] : memref<2x10x10x128xf32, #tpu.memory_space<vmem>>, vector<2x8x8x128xf32>
    tpu.vector_store %arg15[%c0_39, %c1_40, %c1_41, %c0_42], %90 {strides = array<i32>} : memref<2x10x10x128xf32, #tpu.memory_space<vmem>>, vector<2x8x8x128xf32>,
    %c0_43 = arith.constant 0 : index
    %c0_44 = arith.constant 0 : index
    %c0_45 = arith.constant 0 : index
    %c0_46 = arith.constant 0 : index
    %92 = vector.load %arg15[%c0_43, %c0_44, %c0_45, %c0_46] : memref<2x10x10x128xf32, #tpu.memory_space<vmem>>, vector<2x10x10x128xf32>
    %c0_47 = arith.constant 0 : index
    %c0_48 = arith.constant 0 : index
    %c0_49 = arith.constant 0 : index
    %93 = vector.load %arg6[%c0_47, %c0_48, %c0_49] : memref<3x3x128xf32, #tpu.memory_space<vmem>>, vector<3x3x128xf32>
    %94 = vector.extract_strided_slice %92 {offsets = [0, 0, 0, 0], sizes = [2, 10, 8, 128], strides = [1, 1, 1, 1]} : vector<2x10x10x128xf32> to vector<2x10x8x128xf32>
    %95 = vector.extract_strided_slice %94 {offsets = [0, 0, 0, 0], sizes = [2, 8, 8, 128], strides = [1, 1, 1, 1]} : vector<2x10x8x128xf32> to vector<2x8x8x128xf32>
    %96 = vector.extract_strided_slice %93 {offsets = [0, 0, 0], sizes = [1, 1, 128], strides = [1, 1, 1]} : vector<3x3x128xf32> to vector<1x1x128xf32>
    %97 = vector.shape_cast %96 : vector<1x1x128xf32> to vector<128xf32>
    %98 = vector.shape_cast %97 : vector<128xf32> to vector<1x1x1x128xf32>
    %99 = vector.broadcast %98 : vector<1x1x1x128xf32> to vector<2x8x8x128xf32>
    %100 = arith.mulf %95, %99 : vector<2x8x8x128xf32>
    %101 = vector.extract_strided_slice %94 {offsets = [0, 1, 0, 0], sizes = [2, 8, 8, 128], strides = [1, 1, 1, 1]} : vector<2x10x8x128xf32> to vector<2x8x8x128xf32>
    %102 = vector.extract_strided_slice %93 {offsets = [1, 0, 0], sizes = [1, 1, 128], strides = [1, 1, 1]} : vector<3x3x128xf32> to vector<1x1x128xf32>
    %103 = vector.shape_cast %102 : vector<1x1x128xf32> to vector<128xf32>
    %104 = vector.shape_cast %103 : vector<128xf32> to vector<1x1x1x128xf32>
    %105 = vector.broadcast %104 : vector<1x1x1x128xf32> to vector<2x8x8x128xf32>
    %106 = arith.mulf %101, %105 : vector<2x8x8x128xf32>
    %107 = arith.addf %100, %106 : vector<2x8x8x128xf32>
    %108 = vector.extract_strided_slice %94 {offsets = [0, 2, 0, 0], sizes = [2, 8, 8, 128], strides = [1, 1, 1, 1]} : vector<2x10x8x128xf32> to vector<2x8x8x128xf32>
    %109 = vector.extract_strided_slice %93 {offsets = [2, 0, 0], sizes = [1, 1, 128], strides = [1, 1, 1]} : vector<3x3x128xf32> to vector<1x1x128xf32>
    %110 = vector.shape_cast %109 : vector<1x1x128xf32> to vector<128xf32>
    %111 = vector.shape_cast %110 : vector<128xf32> to vector<1x1x1x128xf32>
    %112 = vector.broadcast %111 : vector<1x1x1x128xf32> to vector<2x8x8x128xf32>
    %113 = arith.mulf %108, %112 : vector<2x8x8x128xf32>
    %114 = arith.addf %107, %113 : vector<2x8x8x128xf32>
    %115 = vector.extract_strided_slice %92 {offsets = [0, 0, 1, 0], sizes = [2, 10, 8, 128], strides = [1, 1, 1, 1]} : vector<2x10x10x128xf32> to vector<2x10x8x128xf32>
    %116 = vector.extract_strided_slice %115 {offsets = [0, 0, 0, 0], sizes = [2, 8, 8, 128], strides = [1, 1, 1, 1]} : vector<2x10x8x128xf32> to vector<2x8x8x128xf32>
    %117 = vector.extract_strided_slice %93 {offsets = [0, 1, 0], sizes = [1, 1, 128], strides = [1, 1, 1]} : vector<3x3x128xf32> to vector<1x1x128xf32>
    %118 = vector.shape_cast %117 : vector<1x1x128xf32> to vector<128xf32>
    %119 = vector.shape_cast %118 : vector<128xf32> to vector<1x1x1x128xf32>
    %120 = vector.broadcast %119 : vector<1x1x1x128xf32> to vector<2x8x8x128xf32>
    %121 = arith.mulf %116, %120 : vector<2x8x8x128xf32>
    %122 = arith.addf %114, %121 : vector<2x8x8x128xf32>
    %123 = vector.extract_strided_slice %115 {offsets = [0, 1, 0, 0], sizes = [2, 8, 8, 128], strides = [1, 1, 1, 1]} : vector<2x10x8x128xf32> to vector<2x8x8x128xf32>
    %124 = vector.extract_strided_slice %93 {offsets = [1, 1, 0], sizes = [1, 1, 128], strides = [1, 1, 1]} : vector<3x3x128xf32> to vector<1x1x128xf32>
    %125 = vector.shape_cast %124 : vector<1x1x128xf32> to vector<128xf32>
    %126 = vector.shape_cast %125 : vector<128xf32> to vector<1x1x1x128xf32>
    %127 = vector.broadcast %126 : vector<1x1x1x128xf32> to vector<2x8x8x128xf32>
    %128 = arith.mulf %123, %127 : vector<2x8x8x128xf32>
    %129 = arith.addf %122, %128 : vector<2x8x8x128xf32>
    %130 = vector.extract_strided_slice %115 {offsets = [0, 2, 0, 0], sizes = [2, 8, 8, 128], strides = [1, 1, 1, 1]} : vector<2x10x8x128xf32> to vector<2x8x8x128xf32>
    %131 = vector.extract_strided_slice %93 {offsets = [2, 1, 0], sizes = [1, 1, 128], strides = [1, 1, 1]} : vector<3x3x128xf32> to vector<1x1x128xf32>
    %132 = vector.shape_cast %131 : vector<1x1x128xf32> to vector<128xf32>
    %133 = vector.shape_cast %132 : vector<128xf32> to vector<1x1x1x128xf32>
    %134 = vector.broadcast %133 : vector<1x1x1x128xf32> to vector<2x8x8x128xf32>
    %135 = arith.mulf %130, %134 : vector<2x8x8x128xf32>
    %136 = arith.addf %129, %135 : vector<2x8x8x128xf32>
    %137 = vector.extract_strided_slice %92 {offsets = [0, 0, 2, 0], sizes = [2, 10, 8, 128], strides = [1, 1, 1, 1]} : vector<2x10x10x128xf32> to vector<2x10x8x128xf32>
    %138 = vector.extract_strided_slice %137 {offsets = [0, 0, 0, 0], sizes = [2, 8, 8, 128], strides = [1, 1, 1, 1]} : vector<2x10x8x128xf32> to vector<2x8x8x128xf32>
    %139 = vector.extract_strided_slice %93 {offsets = [0, 2, 0], sizes = [1, 1, 128], strides = [1, 1, 1]} : vector<3x3x128xf32> to vector<1x1x128xf32>
    %140 = vector.shape_cast %139 : vector<1x1x128xf32> to vector<128xf32>
    %141 = vector.shape_cast %140 : vector<128xf32> to vector<1x1x1x128xf32>
    %142 = vector.broadcast %141 : vector<1x1x1x128xf32> to vector<2x8x8x128xf32>
    %143 = arith.mulf %138, %142 : vector<2x8x8x128xf32>
    %144 = arith.addf %136, %143 : vector<2x8x8x128xf32>
    %145 = vector.extract_strided_slice %137 {offsets = [0, 1, 0, 0], sizes = [2, 8, 8, 128], strides = [1, 1, 1, 1]} : vector<2x10x8x128xf32> to vector<2x8x8x128xf32>
    %146 = vector.extract_strided_slice %93 {offsets = [1, 2, 0], sizes = [1, 1, 128], strides = [1, 1, 1]} : vector<3x3x128xf32> to vector<1x1x128xf32>
    %147 = vector.shape_cast %146 : vector<1x1x128xf32> to vector<128xf32>
    %148 = vector.shape_cast %147 : vector<128xf32> to vector<1x1x1x128xf32>
    %149 = vector.broadcast %148 : vector<1x1x1x128xf32> to vector<2x8x8x128xf32>
    %150 = arith.mulf %145, %149 : vector<2x8x8x128xf32>
    %151 = arith.addf %144, %150 : vector<2x8x8x128xf32>
    %152 = vector.extract_strided_slice %137 {offsets = [0, 2, 0, 0], sizes = [2, 8, 8, 128], strides = [1, 1, 1, 1]} : vector<2x10x8x128xf32> to vector<2x8x8x128xf32>
    %153 = vector.extract_strided_slice %93 {offsets = [2, 2, 0], sizes = [1, 1, 128], strides = [1, 1, 1]} : vector<3x3x128xf32> to vector<1x1x128xf32>
    %154 = vector.shape_cast %153 : vector<1x1x128xf32> to vector<128xf32>
    %155 = vector.shape_cast %154 : vector<128xf32> to vector<1x1x1x128xf32>
    %156 = vector.broadcast %155 : vector<1x1x1x128xf32> to vector<2x8x8x128xf32>
    %157 = arith.mulf %152, %156 : vector<2x8x8x128xf32>
    %158 = arith.addf %151, %157 : vector<2x8x8x128xf32>
    %159 = vector.shape_cast %158 : vector<2x8x8x128xf32> to vector<128x128xf32>
    %160 = arith.truncf %159 : vector<128x128xf32> to vector<128x128xbf16>
    %c0_50 = arith.constant 0 : index
    %c0_51 = arith.constant 0 : index
    %161 = vector.load %arg7[%c0_50, %c0_51] : memref<128x128xbf16, #tpu.memory_space<vmem>>, vector<128x128xbf16>
    %cst_52 = arith.constant dense<0.000000e+00> : vector<128x128xf32>
    %162 = tpu.matmul %160, %161, %cst_52 {dimension_numbers = #tpu.dot_dimension_numbers<[1], [0], [0], [1], [0, 0, 1, 1], [], []>} : vector<128x128xbf16>, vector<128x128xbf16>, vector<128x128xf32> -> vector<128x128xf32>
    %c0_53 = arith.constant 0 : index
    %c0_54 = arith.constant 0 : index
    %163 = vector.load %arg8[%c0_53, %c0_54] : memref<1x128xf32, #tpu.memory_space<vmem>>, vector<1x128xf32>
    %164 = vector.broadcast %163 : vector<1x128xf32> to vector<128x128xf32>
    %165 = arith.mulf %162, %164 : vector<128x128xf32>
    %c0_55 = arith.constant 0 : index
    %c0_56 = arith.constant 0 : index
    %166 = vector.load %arg9[%c0_55, %c0_56] : memref<1x128xf32, #tpu.memory_space<vmem>>, vector<1x128xf32>
    %167 = vector.broadcast %166 : vector<1x128xf32> to vector<128x128xf32>
    %168 = arith.addf %165, %167 : vector<128x128xf32>
    %169 = vector.shape_cast %168 : vector<128x128xf32> to vector<2x8x8x128xf32>
    %cst_57 = arith.constant 0.000000e+00 : f32
    %170 = vector.broadcast %cst_57 : f32 to vector<2x8x8x128xf32>
    %171 = arith.maximumf %169, %170 : vector<2x8x8x128xf32>
    %c0_58 = arith.constant 0 : index
    %c1_59 = arith.constant 1 : index
    %c1_60 = arith.constant 1 : index
    %c0_61 = arith.constant 0 : index
    %172 = vector.load %arg15[%c0_58, %c1_59, %c1_60, %c0_61] : memref<2x10x10x128xf32, #tpu.memory_space<vmem>>, vector<2x8x8x128xf32>
    tpu.vector_store %arg15[%c0_58, %c1_59, %c1_60, %c0_61], %171 {strides = array<i32>} : memref<2x10x10x128xf32, #tpu.memory_space<vmem>>, vector<2x8x8x128xf32>,
    %c0_62 = arith.constant 0 : index
    %c0_63 = arith.constant 0 : index
    %c0_64 = arith.constant 0 : index
    %c0_65 = arith.constant 0 : index
    %173 = vector.load %arg15[%c0_62, %c0_63, %c0_64, %c0_65] : memref<2x10x10x128xf32, #tpu.memory_space<vmem>>, vector<2x10x10x128xf32>
    %c0_66 = arith.constant 0 : index
    %c0_67 = arith.constant 0 : index
    %c0_68 = arith.constant 0 : index
    %174 = vector.load %arg10[%c0_66, %c0_67, %c0_68] : memref<3x3x128xf32, #tpu.memory_space<vmem>>, vector<3x3x128xf32>
    %175 = vector.extract_strided_slice %173 {offsets = [0, 0, 0, 0], sizes = [2, 10, 8, 128], strides = [1, 1, 1, 1]} : vector<2x10x10x128xf32> to vector<2x10x8x128xf32>
    %176 = vector.extract_strided_slice %175 {offsets = [0, 0, 0, 0], sizes = [2, 8, 8, 128], strides = [1, 1, 1, 1]} : vector<2x10x8x128xf32> to vector<2x8x8x128xf32>
    %177 = vector.extract_strided_slice %174 {offsets = [0, 0, 0], sizes = [1, 1, 128], strides = [1, 1, 1]} : vector<3x3x128xf32> to vector<1x1x128xf32>
    %178 = vector.shape_cast %177 : vector<1x1x128xf32> to vector<128xf32>
    %179 = vector.shape_cast %178 : vector<128xf32> to vector<1x1x1x128xf32>
    %180 = vector.broadcast %179 : vector<1x1x1x128xf32> to vector<2x8x8x128xf32>
    %181 = arith.mulf %176, %180 : vector<2x8x8x128xf32>
    %182 = vector.extract_strided_slice %175 {offsets = [0, 1, 0, 0], sizes = [2, 8, 8, 128], strides = [1, 1, 1, 1]} : vector<2x10x8x128xf32> to vector<2x8x8x128xf32>
    %183 = vector.extract_strided_slice %174 {offsets = [1, 0, 0], sizes = [1, 1, 128], strides = [1, 1, 1]} : vector<3x3x128xf32> to vector<1x1x128xf32>
    %184 = vector.shape_cast %183 : vector<1x1x128xf32> to vector<128xf32>
    %185 = vector.shape_cast %184 : vector<128xf32> to vector<1x1x1x128xf32>
    %186 = vector.broadcast %185 : vector<1x1x1x128xf32> to vector<2x8x8x128xf32>
    %187 = arith.mulf %182, %186 : vector<2x8x8x128xf32>
    %188 = arith.addf %181, %187 : vector<2x8x8x128xf32>
    %189 = vector.extract_strided_slice %175 {offsets = [0, 2, 0, 0], sizes = [2, 8, 8, 128], strides = [1, 1, 1, 1]} : vector<2x10x8x128xf32> to vector<2x8x8x128xf32>
    %190 = vector.extract_strided_slice %174 {offsets = [2, 0, 0], sizes = [1, 1, 128], strides = [1, 1, 1]} : vector<3x3x128xf32> to vector<1x1x128xf32>
    %191 = vector.shape_cast %190 : vector<1x1x128xf32> to vector<128xf32>
    %192 = vector.shape_cast %191 : vector<128xf32> to vector<1x1x1x128xf32>
    %193 = vector.broadcast %192 : vector<1x1x1x128xf32> to vector<2x8x8x128xf32>
    %194 = arith.mulf %189, %193 : vector<2x8x8x128xf32>
    %195 = arith.addf %188, %194 : vector<2x8x8x128xf32>
    %196 = vector.extract_strided_slice %173 {offsets = [0, 0, 1, 0], sizes = [2, 10, 8, 128], strides = [1, 1, 1, 1]} : vector<2x10x10x128xf32> to vector<2x10x8x128xf32>
    %197 = vector.extract_strided_slice %196 {offsets = [0, 0, 0, 0], sizes = [2, 8, 8, 128], strides = [1, 1, 1, 1]} : vector<2x10x8x128xf32> to vector<2x8x8x128xf32>
    %198 = vector.extract_strided_slice %174 {offsets = [0, 1, 0], sizes = [1, 1, 128], strides = [1, 1, 1]} : vector<3x3x128xf32> to vector<1x1x128xf32>
    %199 = vector.shape_cast %198 : vector<1x1x128xf32> to vector<128xf32>
    %200 = vector.shape_cast %199 : vector<128xf32> to vector<1x1x1x128xf32>
    %201 = vector.broadcast %200 : vector<1x1x1x128xf32> to vector<2x8x8x128xf32>
    %202 = arith.mulf %197, %201 : vector<2x8x8x128xf32>
    %203 = arith.addf %195, %202 : vector<2x8x8x128xf32>
    %204 = vector.extract_strided_slice %196 {offsets = [0, 1, 0, 0], sizes = [2, 8, 8, 128], strides = [1, 1, 1, 1]} : vector<2x10x8x128xf32> to vector<2x8x8x128xf32>
    %205 = vector.extract_strided_slice %174 {offsets = [1, 1, 0], sizes = [1, 1, 128], strides = [1, 1, 1]} : vector<3x3x128xf32> to vector<1x1x128xf32>
    %206 = vector.shape_cast %205 : vector<1x1x128xf32> to vector<128xf32>
    %207 = vector.shape_cast %206 : vector<128xf32> to vector<1x1x1x128xf32>
    %208 = vector.broadcast %207 : vector<1x1x1x128xf32> to vector<2x8x8x128xf32>
    %209 = arith.mulf %204, %208 : vector<2x8x8x128xf32>
    %210 = arith.addf %203, %209 : vector<2x8x8x128xf32>
    %211 = vector.extract_strided_slice %196 {offsets = [0, 2, 0, 0], sizes = [2, 8, 8, 128], strides = [1, 1, 1, 1]} : vector<2x10x8x128xf32> to vector<2x8x8x128xf32>
    %212 = vector.extract_strided_slice %174 {offsets = [2, 1, 0], sizes = [1, 1, 128], strides = [1, 1, 1]} : vector<3x3x128xf32> to vector<1x1x128xf32>
    %213 = vector.shape_cast %212 : vector<1x1x128xf32> to vector<128xf32>
    %214 = vector.shape_cast %213 : vector<128xf32> to vector<1x1x1x128xf32>
    %215 = vector.broadcast %214 : vector<1x1x1x128xf32> to vector<2x8x8x128xf32>
    %216 = arith.mulf %211, %215 : vector<2x8x8x128xf32>
    %217 = arith.addf %210, %216 : vector<2x8x8x128xf32>
    %218 = vector.extract_strided_slice %173 {offsets = [0, 0, 2, 0], sizes = [2, 10, 8, 128], strides = [1, 1, 1, 1]} : vector<2x10x10x128xf32> to vector<2x10x8x128xf32>
    %219 = vector.extract_strided_slice %218 {offsets = [0, 0, 0, 0], sizes = [2, 8, 8, 128], strides = [1, 1, 1, 1]} : vector<2x10x8x128xf32> to vector<2x8x8x128xf32>
    %220 = vector.extract_strided_slice %174 {offsets = [0, 2, 0], sizes = [1, 1, 128], strides = [1, 1, 1]} : vector<3x3x128xf32> to vector<1x1x128xf32>
    %221 = vector.shape_cast %220 : vector<1x1x128xf32> to vector<128xf32>
    %222 = vector.shape_cast %221 : vector<128xf32> to vector<1x1x1x128xf32>
    %223 = vector.broadcast %222 : vector<1x1x1x128xf32> to vector<2x8x8x128xf32>
    %224 = arith.mulf %219, %223 : vector<2x8x8x128xf32>
    %225 = arith.addf %217, %224 : vector<2x8x8x128xf32>
    %226 = vector.extract_strided_slice %218 {offsets = [0, 1, 0, 0], sizes = [2, 8, 8, 128], strides = [1, 1, 1, 1]} : vector<2x10x8x128xf32> to vector<2x8x8x128xf32>
    %227 = vector.extract_strided_slice %174 {offsets = [1, 2, 0], sizes = [1, 1, 128], strides = [1, 1, 1]} : vector<3x3x128xf32> to vector<1x1x128xf32>
    %228 = vector.shape_cast %227 : vector<1x1x128xf32> to vector<128xf32>
    %229 = vector.shape_cast %228 : vector<128xf32> to vector<1x1x1x128xf32>
    %230 = vector.broadcast %229 : vector<1x1x1x128xf32> to vector<2x8x8x128xf32>
    %231 = arith.mulf %226, %230 : vector<2x8x8x128xf32>
    %232 = arith.addf %225, %231 : vector<2x8x8x128xf32>
    %233 = vector.extract_strided_slice %218 {offsets = [0, 2, 0, 0], sizes = [2, 8, 8, 128], strides = [1, 1, 1, 1]} : vector<2x10x8x128xf32> to vector<2x8x8x128xf32>
    %234 = vector.extract_strided_slice %174 {offsets = [2, 2, 0], sizes = [1, 1, 128], strides = [1, 1, 1]} : vector<3x3x128xf32> to vector<1x1x128xf32>
    %235 = vector.shape_cast %234 : vector<1x1x128xf32> to vector<128xf32>
    %236 = vector.shape_cast %235 : vector<128xf32> to vector<1x1x1x128xf32>
    %237 = vector.broadcast %236 : vector<1x1x1x128xf32> to vector<2x8x8x128xf32>
    %238 = arith.mulf %233, %237 : vector<2x8x8x128xf32>
    %239 = arith.addf %232, %238 : vector<2x8x8x128xf32>
    %240 = vector.shape_cast %239 : vector<2x8x8x128xf32> to vector<128x128xf32>
    %241 = arith.truncf %240 : vector<128x128xf32> to vector<128x128xbf16>
    %c0_69 = arith.constant 0 : index
    %c0_70 = arith.constant 0 : index
    %242 = vector.load %arg11[%c0_69, %c0_70] : memref<128x128xbf16, #tpu.memory_space<vmem>>, vector<128x128xbf16>
    %cst_71 = arith.constant dense<0.000000e+00> : vector<128x128xf32>
    %243 = tpu.matmul %241, %242, %cst_71 {dimension_numbers = #tpu.dot_dimension_numbers<[1], [0], [0], [1], [0, 0, 1, 1], [], []>} : vector<128x128xbf16>, vector<128x128xbf16>, vector<128x128xf32> -> vector<128x128xf32>
    %c0_72 = arith.constant 0 : index
    %c0_73 = arith.constant 0 : index
    %244 = vector.load %arg12[%c0_72, %c0_73] : memref<1x128xf32, #tpu.memory_space<vmem>>, vector<1x128xf32>
    %245 = vector.broadcast %244 : vector<1x128xf32> to vector<128x128xf32>
    %246 = arith.mulf %243, %245 : vector<128x128xf32>
    %c0_74 = arith.constant 0 : index
    %c0_75 = arith.constant 0 : index
    %247 = vector.load %arg13[%c0_74, %c0_75] : memref<1x128xf32, #tpu.memory_space<vmem>>, vector<1x128xf32>
    %248 = vector.broadcast %247 : vector<1x128xf32> to vector<128x128xf32>
    %249 = arith.addf %246, %248 : vector<128x128xf32>
    %250 = vector.shape_cast %249 : vector<128x128xf32> to vector<2x8x8x128xf32>
    %c0_76 = arith.constant 0 : index
    %c0_77 = arith.constant 0 : index
    %c0_78 = arith.constant 0 : index
    %c0_79 = arith.constant 0 : index
    %251 = vector.load %arg1[%c0_76, %c0_77, %c0_78, %c0_79] : memref<2x8x8x128xf32, #tpu.memory_space<vmem>>, vector<2x8x8x128xf32>
    %252 = arith.addf %251, %250 : vector<2x8x8x128xf32>
    %c0_80 = arith.constant 0 : index
    %c0_81 = arith.constant 0 : index
    %c0_82 = arith.constant 0 : index
    %c0_83 = arith.constant 0 : index
    %253 = vector.load %arg14[%c0_80, %c0_81, %c0_82, %c0_83] : memref<2x8x8x128xf32, #tpu.memory_space<vmem>>, vector<2x8x8x128xf32>
    tpu.vector_store %arg14[%c0_80, %c0_81, %c0_82, %c0_83], %252 {strides = array<i32>} : memref<2x8x8x128xf32, #tpu.memory_space<vmem>>, vector<2x8x8x128xf32>,
    return
  }
  func.func @transform_0(%arg0: i32) -> (i32, i32, i32, i32) {
    %c0_i32 = arith.constant 0 : i32
    %c0_i32_0 = arith.constant 0 : i32
    %c0_i32_1 = arith.constant 0 : i32
    %c0_i32_2 = arith.constant 0 : i32
    return %arg0, %c0_i32, %c0_i32_0, %c0_i32_1 : i32, i32, i32, i32
  }
  func.func @transform_1(%arg0: i32) -> (i32, i32, i32) {
    %c0_i32 = arith.constant 0 : i32
    %c0_i32_0 = arith.constant 0 : i32
    %c0_i32_1 = arith.constant 0 : i32
    %c0_i32_2 = arith.constant 0 : i32
    return %c0_i32, %c0_i32_0, %c0_i32_1 : i32, i32, i32
  }
  func.func @transform_2(%arg0: i32) -> (i32, i32) {
    %c0_i32 = arith.constant 0 : i32
    %c0_i32_0 = arith.constant 0 : i32
    %c0_i32_1 = arith.constant 0 : i32
    return %c0_i32, %c0_i32_0 : i32, i32
  }
  func.func @transform_3(%arg0: i32) -> (i32, i32) {
    %c0_i32 = arith.constant 0 : i32
    %c0_i32_0 = arith.constant 0 : i32
    %c0_i32_1 = arith.constant 0 : i32
    return %c0_i32, %c0_i32_0 : i32, i32
  }
  func.func @transform_4(%arg0: i32) -> (i32, i32) {
    %c0_i32 = arith.constant 0 : i32
    %c0_i32_0 = arith.constant 0 : i32
    %c0_i32_1 = arith.constant 0 : i32
    return %c0_i32, %c0_i32_0 : i32, i32
  }
  func.func @transform_5(%arg0: i32) -> (i32, i32, i32) {
    %c0_i32 = arith.constant 0 : i32
    %c0_i32_0 = arith.constant 0 : i32
    %c0_i32_1 = arith.constant 0 : i32
    %c0_i32_2 = arith.constant 0 : i32
    return %c0_i32, %c0_i32_0, %c0_i32_1 : i32, i32, i32
  }
  func.func @transform_6(%arg0: i32) -> (i32, i32) {
    %c0_i32 = arith.constant 0 : i32
    %c0_i32_0 = arith.constant 0 : i32
    %c0_i32_1 = arith.constant 0 : i32
    return %c0_i32, %c0_i32_0 : i32, i32
  }
  func.func @transform_7(%arg0: i32) -> (i32, i32) {
    %c0_i32 = arith.constant 0 : i32
    %c0_i32_0 = arith.constant 0 : i32
    %c0_i32_1 = arith.constant 0 : i32
    return %c0_i32, %c0_i32_0 : i32, i32
  }
  func.func @transform_8(%arg0: i32) -> (i32, i32) {
    %c0_i32 = arith.constant 0 : i32
    %c0_i32_0 = arith.constant 0 : i32
    %c0_i32_1 = arith.constant 0 : i32
    return %c0_i32, %c0_i32_0 : i32, i32
  }
  func.func @transform_9(%arg0: i32) -> (i32, i32, i32) {
    %c0_i32 = arith.constant 0 : i32
    %c0_i32_0 = arith.constant 0 : i32
    %c0_i32_1 = arith.constant 0 : i32
    %c0_i32_2 = arith.constant 0 : i32
    return %c0_i32, %c0_i32_0, %c0_i32_1 : i32, i32, i32
  }
  func.func @transform_10(%arg0: i32) -> (i32, i32) {
    %c0_i32 = arith.constant 0 : i32
    %c0_i32_0 = arith.constant 0 : i32
    %c0_i32_1 = arith.constant 0 : i32
    return %c0_i32, %c0_i32_0 : i32, i32
  }
  func.func @transform_11(%arg0: i32) -> (i32, i32) {
    %c0_i32 = arith.constant 0 : i32
    %c0_i32_0 = arith.constant 0 : i32
    %c0_i32_1 = arith.constant 0 : i32
    return %c0_i32, %c0_i32_0 : i32, i32
  }
  func.func @transform_12(%arg0: i32) -> (i32, i32) {
    %c0_i32 = arith.constant 0 : i32
    %c0_i32_0 = arith.constant 0 : i32
    %c0_i32_1 = arith.constant 0 : i32
    return %c0_i32, %c0_i32_0 : i32, i32
  }
  func.func @transform_13(%arg0: i32) -> (i32, i32, i32, i32) {
    %c0_i32 = arith.constant 0 : i32
    %c0_i32_0 = arith.constant 0 : i32
    %c0_i32_1 = arith.constant 0 : i32
    %c0_i32_2 = arith.constant 0 : i32
    return %arg0, %c0_i32, %c0_i32_0, %c0_i32_1 : i32, i32, i32, i32
  }
}

</mosaic_0001>

<bundles_post_ra>
// kernel: middle_flow_block.1
= control target key start
LH: loop header
LB: loop body
LE: loop exit
PB: predicated region body
PF: predicated region fallthrough
CT: control target
= control target key end

     0   :  { %18 = vsyncpa [#allocation4], 0  ;;  %s7071_s0 = inlined_call_operand.hbm [shape: f32[2,8,8,128], index: 0, kind: input, shape index: {}]   ;;  %s7072_s1 = inlined_call_operand.hbm [shape: f32[3,3,128], index: 1, kind: input, shape index: {}]   ;;  %s7073_s2 = inlined_call_operand.hbm [shape: bf16[128,128], index: 2, kind: input, shape index: {}]   ;;  %s7074_s3 = inlined_call_operand.vmem [shape: f32[1,128], index: 3, kind: input, shape index: {}]   ;;  %s7075_s4 = inlined_call_operand.vmem [shape: f32[1,128], index: 4, kind: input, shape index: {}]   ;;  %s7076_s5 = inlined_call_operand.hbm [shape: f32[3,3,128], index: 5, kind: input, shape index: {}]   ;;  %s7077_s6 = inlined_call_operand.hbm [shape: bf16[128,128], index: 6, kind: input, shape index: {}]   ;;  %s7078_s7 = inlined_call_operand.vmem [shape: f32[1,128], index: 7, kind: input, shape index: {}]   ;;  %s7079_s8 = inlined_call_operand.vmem [shape: f32[1,128], index: 8, kind: input, shape index: {}]   ;;  %s7080_s9 = inlined_call_operand.vmem [shape: f32[3,3,128], index: 9, kind: input, shape index: {}]   ;;  %s7081_s10 = inlined_call_operand.hbm [shape: bf16[128,128], index: 10, kind: input, shape index: {}]   ;;  %s7082_s11 = inlined_call_operand.vmem [shape: f32[1,128], index: 11, kind: input, shape index: {}]   ;;  %s7083_s12 = inlined_call_operand.vmem [shape: f32[1,128], index: 12, kind: input, shape index: {}]   ;;  %s7084_s13 = inlined_call_operand.hbm [shape: f32[2,8,8,128], index: 13, kind: output, shape index: {}]  }
   0x1   :  { %19 = vsyncpa [#allocation7], 0 }
   0x2   :  { %20 = vsyncpa [#allocation10], 0 }
   0x3   :  { %21 = vsyncpa [#allocation13], 0 }
   0x4   :  { %22 = vsyncpa [#allocation5], 0  ;;  %s4569_s25 = smov [#allocation6]  }
   0x5   :  { %s40_s26 = sshll.u32 %s4569_s25, 4  ;;  %s41_s26 = int_to_ptr.vmem [resolvable:$true] %s40_s26 }
   0x6   :  { %s4427_s27 = scalar_lea.vmem %s41_s26, 192  ;;  %p4432_p1 = scmp.lt.s32.totalorder %s41_s26, %s41_s26 }
   0x7   :  { %p4428_p0 = scmp.ne.s32.totalorder %s41_s26, %s4427_s27  ;;  %p4433_p2 = scmp.lt.s32.totalorder %s4427_s27, %s4427_s27 }
   0x9   :  { %p4434_p3 = por %p4433_p2, %p4432_p1 }
   0xb   :  { %p4435_p4 = pnand %p4434_p3, %p4428_p0 }
   0xd   :  { %4438 = shalt.err (!%p4435_p4)
}
   0xe   :  { %s4570_s28 = smov 64   ;;  %s4571_s29 = smov 4  }
   0xf   :  { %46 = dma.hbm_to_vmem [thread:$0]  %s7072_s1, 192, %s41_s26, [#allocation7], %s4570_s28, %s4570_s28, %s4571_s29  }
  0x10   :  { %s4572_s15 = smov [#allocation9]   ;;  %s4573_s17 = smov [#allocation3]  }
  0x11   :  { %s68_s16 = sshll.u32 %s4572_s15, 4  ;;  %s28_s18 = sshll.u32 %s4573_s17, 4  ;;  %s69_s16 = int_to_ptr.vmem [resolvable:$true] %s68_s16  ;;  %s29_s18 = int_to_ptr.vmem [resolvable:$true] %s28_s18 }
  0x12   :  { %s4447_s19 = scalar_lea.vmem %s69_s16, 192  ;;  %p4452_p6 = scmp.lt.s32.totalorder %s69_s16, %s69_s16 }
  0x13   :  { %p4448_p5 = scmp.ne.s32.totalorder %s69_s16, %s4447_s19  ;;  %p4453_p7 = scmp.lt.s32.totalorder %s4447_s19, %s4447_s19 }
  0x15   :  { %p4454_p8 = por %p4453_p7, %p4452_p6 }
  0x17   :  { %p4455_p9 = pnand %p4454_p8, %p4448_p5 }
  0x19   :  { %4458 = shalt.err (!%p4455_p9)
}
  0x1a   :  { %74 = dma.hbm_to_vmem [thread:$0]  %s7076_s5, 192, %s69_s16, [#allocation10], %s4570_s28, %s4570_s28, %s4571_s29  }
  0x1b   :  { %s4467_s1 = scalar_lea.vmem %s29_s18, 2048  ;;  %p4472_p11 = scmp.lt.s32.totalorder %s29_s18, %s29_s18 }
  0x1c   :  { %p4468_p10 = scmp.ne.s32.totalorder %s29_s18, %s4467_s1  ;;  %p4473_p12 = scmp.lt.s32.totalorder %s4467_s1, %s4467_s1 }
  0x1e   :  { %p4474_p13 = por %p4473_p12, %p4472_p11 }
  0x20   :  { %p4475_p0 = pnand %p4474_p13, %p4468_p10 }
  0x22   :  { %4478 = shalt.err (!%p4475_p0)
}
  0x23   :  { %s4574_s22 = smov 128   ;;  %s4575_s23 = smov 8  }
  0x24   :  { %34 = dma.hbm_to_vmem [thread:$0]  %s7071_s0, 2048, %s29_s18, [#allocation4], %s4574_s22, %s4574_s22, %s4575_s23  }
  0x25   :  { %s4576_s26 = smov [#allocation8]   ;;  %s4577_s5 = smov [#allocation11]  }
  0x26   :  { %s52_s27 = sshll.u32 %s4576_s26, 4  ;;  %s80_s30 = sshll.u32 %s4577_s5, 4  ;;  %s53_s27 = int_to_ptr.vmem [resolvable:$true] %s52_s27  ;;  %s81_s30 = int_to_ptr.vmem [resolvable:$true] %s80_s30 }
  0x27   :  { %s4487_s14 = scalar_lea.vmem %s53_s27, 1024  ;;  %p4492_p2 = scmp.lt.s32.totalorder %s53_s27, %s53_s27 }
  0x28   :  { %p4488_p1 = scmp.ne.s32.totalorder %s53_s27, %s4487_s14  ;;  %p4493_p3 = scmp.lt.s32.totalorder %s4487_s14, %s4487_s14 }
  0x2a   :  { %p4494_p4 = por %p4493_p3, %p4492_p2 }
  0x2c   :  { %p4495_p5 = pnand %p4494_p4, %p4488_p1 }
  0x2e   :  { %4498 = shalt.err (!%p4495_p5)
}
  0x2f   :  { %58 = dma.hbm_to_vmem [thread:$0]  %s7073_s2, 1024, %s53_s27, [#allocation7], %s4570_s28, %s4570_s28, %s4571_s29  }
  0x30   :  { %s4507_s0 = scalar_lea.vmem %s81_s30, 1024  ;;  %p4512_p7 = scmp.lt.s32.totalorder %s81_s30, %s81_s30 }
  0x31   :  { %p4508_p6 = scmp.ne.s32.totalorder %s81_s30, %s4507_s0  ;;  %p4513_p8 = scmp.lt.s32.totalorder %s4507_s0, %s4507_s0 }
  0x33   :  { %p4514_p9 = por %p4513_p8, %p4512_p7 }
  0x35   :  { %p4515_p10 = pnand %p4514_p9, %p4508_p6 }
  0x37   :  { %4518 = shalt.err (!%p4515_p10)
}
  0x38   :  { %86 = dma.hbm_to_vmem [thread:$0]  %s7077_s6, 1024, %s81_s30, [#allocation10], %s4570_s28, %s4570_s28, %s4571_s29  }
  0x39   :  { %s4578_s19 = smov [#allocation12]  }
  0x3a   :  { %s98_s20 = sshll.u32 %s4578_s19, 4  ;;  %s99_s20 = int_to_ptr.vmem [resolvable:$true] %s98_s20 }
  0x3b   :  { %s4527_s21 = scalar_lea.vmem %s99_s20, 1024  ;;  %p4532_p12 = scmp.lt.s32.totalorder %s99_s20, %s99_s20 }
  0x3c   :  { %p4528_p11 = scmp.ne.s32.totalorder %s99_s20, %s4527_s21  ;;  %p4533_p13 = scmp.lt.s32.totalorder %s4527_s21, %s4527_s21 }
  0x3e   :  { %p4534_p0 = por %p4533_p13, %p4532_p12 }
  0x40   :  { %p4535_p1 = pnand %p4534_p0, %p4528_p11 }
  0x42   :  { %4538 = shalt.err (!%p4535_p1)
}
  0x43   :  { %104 = dma.hbm_to_vmem [thread:$0]  %s7081_s10, 1024, %s99_s20, [#allocation13], %s4570_s28, %s4570_s28, %s4571_s29  }
  0x44   :  { %4559 = dma.done.wait [#allocation4], 2048  }
  0x45   :  { %4560 = vsyncadd [#allocation4], 4294965248 }
  0x46   :  { %4561 = dma.done.wait [#allocation7], 1216  }
  0x47   :  { %4562 = vsyncadd [#allocation7], 4294966080 }
  0x48   :  { %4563 = dma.done.wait [#allocation10], 1216  }
  0x49   :  { %4564 = vsyncadd [#allocation10], 4294966080 }
  0x4a   :  { %4565 = dma.done.wait [#allocation13], 1024  }
  0x4b   :  { %4566 = vsyncadd [#allocation13], 4294966272  ;;  %v4579_v0 = vmov 0.0   ;;  %v261_v1 = vlaneseq  ;;  %v4389_v2 = vld [vmem:[#allocation8 + $0x38] sm:$0xff]   ;;  %v4390_v3 = vld [vmem:[#allocation8 + $0x30] sm:$0xff]   ;;  %vm353_vm0 = vcmask 1047554  }
  0x4c   :  { %128 = vst [vmem:[#allocation2] sm:$0xff] %v4579_v0  ;;  %129 = vst [vmem:[#allocation2 + $0x8] sm:$0x3] %v4579_v0  ;;  %4265 = vmatprep.subr.bf16.mxu0 %v4389_v2  ;;  %v4391_v5 = vld [vmem:[#allocation8 + $0x28] sm:$0xff]   ;;  %v4689_v7 = vrot.slane %v4579_v0, 6  ;;  %v4392_v8 = vld [vmem:[#allocation8 + $0x20] sm:$0xff]  }
  0x4d   :  { %138 = vst [vmem:[#allocation2 + $0x10] sm:$0x1] %v4579_v0  ;;  %139 = vst [vmem:[#allocation2 + $0x20] sm:$0x1] %v4579_v0  ;;  %v262_v4 = vshrl.u32 %v261_v1, 7  ;;  %4266 = vmatpush3.bf16.msra.mxu0 %v4389_v2  ;;  %v170_v10 = vld [vmem:[#allocation3] sm:$0xff] }
  0x4e   :  { %140 = vst [vmem:[#allocation2 + $0x30] sm:$0x1] %v4579_v0  ;;  %154 = vst [vmem:[#allocation2 + $0x19] sm:$0x1] %v4579_v0  ;;  %4267 = vmatprep.subr.bf16.mxu0 %v4390_v3  ;;  %v171_v11 = vld [vmem:[#allocation3 + $0x8] sm:$0xff]  ;;  %v172_v12 = vld [vmem:[#allocation3 + $0x10] sm:$0xff] }
  0x4f   :  { %155 = vst [vmem:[#allocation2 + $0x29] sm:$0x1] %v4579_v0  ;;  %156 = vst [vmem:[#allocation2 + $0x39] sm:$0x1] %v4579_v0  ;;  %v4687_v6 = vsub.s32 0, %v262_v4  ;;  %v4691_v9 = vsub.s32 1, %v262_v4 }
  0x50   :  { %131 = vst [vmem:[#allocation2 + $0xa8] sm:$0x3] %v4579_v0  ;;  %134 = vst [vmem:[#allocation2 + $0x98] sm:$0x3] %v4579_v0  ;;  %vm462_vm1 = vcmask 1046528   ;;  %v4693_v13 = vsub.s32 2, %v262_v4 }
  0x51   :  { %136 = vst [vmem:[#allocation2 + $0x138] sm:$0x3] %v4579_v0  ;;  %141 = vst [vmem:[#allocation2 + $0x40] sm:$0x1] %v4579_v0  ;;  %4268 = vmatpush3.bf16.msra.mxu0 %v4390_v3  ;;  %v186_v14 = vmax.f32 %v170_v10, 0.0  ;;  %v187_v15 = vmax.f32 %v171_v11, 0.0 }
  0x52   :  { %142 = vst [vmem:[#allocation2 + $0x50] sm:$0x1] %v4579_v0  ;;  %143 = vst [vmem:[#allocation2 + $0x60] sm:$0x1] %v4579_v0  ;;  %4269 = vmatprep.subr.bf16.mxu0 %v4391_v5  ;;  %v188_v16 = vmax.f32 %v172_v12, 0.0  ;;  %vm907_vm2 = vcmask 1045504  }
  0x53   :  { %144 = vst [vmem:[#allocation2 + $0x70] sm:$0x1] %v4579_v0  ;;  %145 = vst [vmem:[#allocation2 + $0x80] sm:$0x1] %v4579_v0  ;;  %v219_v17 = vld [vmem:[#allocation2 + $0x8] sm:$0x3] }
  0x54   :  { %146 = vst [vmem:[#allocation2 + $0xb0] sm:$0x1] %v4579_v0  ;;  %147 = vst [vmem:[#allocation2 + $0xc0] sm:$0x1] %v4579_v0  ;;  %v258_v18 = vld [vmem:[#allocation6] sm:$0x7]  ;;  %v374_v21 = vsel %vm353_vm0, %v4689_v7, %v219_v17 }
  0x55   :  { %148 = vst [vmem:[#allocation2 + $0xd0] sm:$0x1] %v4579_v0  ;;  %149 = vst [vmem:[#allocation2 + $0xe0] sm:$0x1] %v4579_v0  ;;  %v259_v19 = vld [vmem:[#allocation6 + $0x4] sm:$0x7]  ;;  %4270 = vmatpush3.bf16.msra.mxu0 %v4391_v5  ;;  %v4698_v22 = vrot.slane %v258_v18, %v4687_v6  ;;  %v4707_v25 = vrot.slane %v258_v18, %v4691_v9  ;;  %v4716_v31 = vrot.slane %v258_v18, %v4693_v13 }
  0x56   :  { %150 = vst [vmem:[#allocation2 + $0xf0] sm:$0x1] %v4579_v0  ;;  %151 = vst [vmem:[#allocation2 + $0x100] sm:$0x1] %v4579_v0  ;;  %v260_v20 = vld [vmem:[#allocation6 + $0x8] sm:$0x7]  ;;  %v4701_v23 = vrot.slane %v259_v19, %v4687_v6  ;;  %4271 = vmatprep.subr.bf16.mxu0 %v4392_v8  ;;  %v4710_v29 = vrot.slane %v259_v19, %v4691_v9  ;;  %v4719_v32 = vrot.slane %v259_v19, %v4693_v13 }
  0x57   :  { %152 = vst [vmem:[#allocation2 + $0x110] sm:$0x1] %v4579_v0  ;;  %153 = vst [vmem:[#allocation2 + $0x120] sm:$0x1] %v4579_v0  ;;  %v4704_v24 = vrot.slane %v260_v20, %v4687_v6  ;;  %v173_v26 = vld [vmem:[#allocation3 + $0x18] sm:$0xff]  ;;  %v174_v27 = vld [vmem:[#allocation3 + $0x20] sm:$0xff]  ;;  %v4713_v30 = vrot.slane %v260_v20, %v4691_v9  ;;  %v399_v37 = vmul.f32 %v4707_v25, %v374_v21 }
  0x58   :  { %157 = vst [vmem:[#allocation2 + $0x49] sm:$0x1] %v4579_v0  ;;  %158 = vst [vmem:[#allocation2 + $0x59] sm:$0x1] %v4579_v0  ;;  %v4393_v28 = vld [vmem:[#allocation8 + $0x18] sm:$0xff]   ;;  %v176_v34 = vld [vmem:[#allocation3 + $0x30] sm:$0xff]  ;;  %v4729_v38 = vrot.slane %v260_v20, %v4693_v13  ;;  %v844_v41 = vmul.f32 %v4716_v31, %v374_v21 }
  0x59   :  { %159 = vst [vmem:[#allocation2 + $0x69] sm:$0x1] %v4579_v0  ;;  %160 = vst [vmem:[#allocation2 + $0x79] sm:$0x1] %v4579_v0  ;;  %v175_v33 = vld [vmem:[#allocation3 + $0x28] sm:$0xff]  ;;  %v4722_v35 = vmul.f32 0.0, %v4698_v22  ;;  %4272 = vmatpush3.bf16.msra.mxu0 %v4392_v8 }
  0x5a   :  { %161 = vst [vmem:[#allocation2 + $0x89] sm:$0x1] %v4579_v0  ;;  %162 = vst [vmem:[#allocation2 + $0xb9] sm:$0x1] %v4579_v0  ;;  %v4725_v36 = vmul.f32 0.0, %v4707_v25  ;;  %v177_v39 = vld [vmem:[#allocation3 + $0x38] sm:$0xff]  ;;  %4273 = vmatprep.subr.bf16.mxu0 %v4393_v28 }
  0x5b   :  { %163 = vst [vmem:[#allocation2 + $0xc9] sm:$0x1] %v4579_v0  ;;  %164 = vst [vmem:[#allocation2 + $0xd9] sm:$0x1] %v4579_v0  ;;  %v4732_v40 = vmul.f32 0.0, %v4716_v31  ;;  %v189_v42 = vmax.f32 %v173_v26, 0.0 }
  0x5c   :  { %165 = vst [vmem:[#allocation2 + $0xe9] sm:$0x1] %v4579_v0  ;;  %166 = vst [vmem:[#allocation2 + $0xf9] sm:$0x1] %v4579_v0  ;;  %v190_v43 = vmax.f32 %v174_v27, 0.0  ;;  %v463_v45 = vrot.slane %v4725_v36, 1 }
  0x5d   :  { %167 = vst [vmem:[#allocation2 + $0x109] sm:$0x1] %v4579_v0  ;;  %168 = vst [vmem:[#allocation2 + $0x119] sm:$0x1] %v4579_v0  ;;  %v237_v44 = vld [vmem:[#allocation2 + $0x98] sm:$0x3]  ;;  %4274 = vmatpush3.bf16.msra.mxu0 %v4393_v28 }
  0x5e   :  { %169 = vst [vmem:[#allocation2 + $0x129] sm:$0x1] %v4579_v0  ;;  %202 = vst [vmem:[#allocation2 + $0x11] sm:$0xff] %v186_v14  ;;  %v464_v46 = vrot.slane %v399_v37, 1  ;;  %v191_v47 = vmax.f32 %v175_v33, 0.0  ;;  %v192_v48 = vmax.f32 %v176_v34, 0.0  ;;  %v383_v56 = vsel %vm353_vm0, %v4689_v7, %v237_v44 }
  0x5f   :  { %203 = vst [vmem:[#allocation2 + $0x21] sm:$0xff] %v187_v15  ;;  %204 = vst [vmem:[#allocation2 + $0x31] sm:$0xff] %v188_v16  ;;  %v178_v49 = vld [vmem:[#allocation3 + $0x40] sm:$0xff]  ;;  %v908_v51 = vrot.slane %v4732_v40, 2  ;;  %v909_v52 = vrot.slane %v844_v41, 2  ;;  %v193_v53 = vmax.f32 %v177_v39, 0.0  ;;  %v4761_v63 = vmul.f32 %v4713_v30, %v383_v56 }
  0x60   :  { %v4394_v50 = vld [vmem:[#allocation8 + $0x10] sm:$0xff]   ;;  %205 = vst [vmem:[#allocation2 + $0x41] sm:$0xff] %v189_v42  ;;  %206 = vst [vmem:[#allocation2 + $0x51] sm:$0xff] %v190_v43  ;;  %v4738_v54 = vmul.f32 0.0, %v4704_v24  ;;  %v465_v55 = vsel %vm462_vm1, %v463_v45, %v464_v46  ;;  %v4746_v57 = vmul.f32 0.0, %v4713_v30  ;;  %v4749_v58 = vmul.f32 0.0, %v4729_v38 }
  0x61   :  { %207 = vst [vmem:[#allocation2 + $0x61] sm:$0xff] %v191_v47  ;;  %208 = vst [vmem:[#allocation2 + $0x71] sm:$0xff] %v192_v48  ;;  %v4758_v62 = vsel %vm907_vm2, %v908_v51, %v909_v52  ;;  %v4764_v0 = vmul.f32 %v4729_v38, %v383_v56  ;;  %v194_v1 = vmax.f32 %v178_v49, 0.0  ;;  %4275 = vmatprep.subr.bf16.mxu0 %v4394_v50  ;;  %v4395_v12 = vld [vmem:[#allocation8 + $0x8] sm:$0xff]   ;;  %v4396_v42 = vld [vmem:[#allocation8] sm:$0xff]  }
  0x62   :  { %209 = vst [vmem:[#allocation2 + $0x81] sm:$0xff] %v193_v53  ;;  %4276 = vmatpush3.bf16.msra.mxu0 %v4394_v50 }
  0x63   :  { %210 = vst [vmem:[#allocation2 + $0xb1] sm:$0xff] %v194_v1  ;;  %4277 = vmatprep.subr.bf16.mxu0 %v4395_v12 }
  0x65   :  { %v4751_v59 = vld [vmem:[#allocation2 + $0x10] sm:$0xff]  ;;  %v221_v60 = vld [vmem:[#allocation2 + $0x18] sm:$0x3] }
  0x66   :  { %v4753_v61 = vld [vmem:[#allocation2 + $0x20] sm:$0xff]  ;;  %v223_v2 = vld [vmem:[#allocation2 + $0x28] sm:$0x3]  ;;  %v4766_v3 = vld [vmem:[#allocation2 + $0x30] sm:$0xff]  ;;  %v266_v5 = vmul.f32 %v4698_v22, %v4751_v59  ;;  %v285_v8 = vmul.f32 %v4701_v23, %v4751_v59  ;;  %v355_v15 = vrot.slane %v4751_v59, 6  ;;  %v400_v20 = vmul.f32 %v4707_v25, %v4751_v59  ;;  %4278 = vmatpush3.bf16.msra.mxu0 %v4395_v12 }
  0x67   :  { %v225_v4 = vld [vmem:[#allocation2 + $0x38] sm:$0x3]  ;;  %v286_v10 = vmul.f32 %v4701_v23, %v4753_v61  ;;  %v321_v11 = vmul.f32 %v4704_v24, %v4753_v61  ;;  %v322_v14 = vmul.f32 %v4704_v24, %v4766_v3  ;;  %v356_v16 = vrot.slane %v4753_v61, 6  ;;  %4279 = vmatprep.subr.bf16.mxu0 %v4396_v42 }
  0x68   :  { %v357_v17 = vrot.slane %v4766_v3, 6  ;;  %v301_v18 = vadd.f32 %v285_v8, %v4722_v35  ;;  %v547_v21 = vmul.f32 %v4710_v29, %v4751_v59  ;;  %v375_v26 = vsel %vm353_vm0, %v355_v15, %v221_v60 }
  0x69   :  { %v302_v19 = vadd.f32 %v286_v10, %v266_v5  ;;  %v4788_v27 = vsel %vm353_vm0, %v356_v16, %v223_v2  ;;  %v549_v33 = vmul.f32 %v4710_v29, %v4753_v61  ;;  %v401_v39 = vmul.f32 %v4707_v25, %v375_v26 }
  0x6a   :  { %v4791_v28 = vsel %vm353_vm0, %v357_v17, %v225_v4  ;;  %v337_v34 = vadd.f32 %v321_v11, %v301_v18  ;;  %v466_v41 = vrot.slane %v400_v20, 1  ;;  %v548_v43 = vmul.f32 %v4710_v29, %v375_v26  ;;  %4280 = vmatpush3.bf16.msra.mxu0 %v4396_v42 }
  0x6b   :  { %v338_v37 = vadd.f32 %v322_v14, %v302_v19  ;;  %v550_v44 = vmul.f32 %v4710_v29, %v4788_v27  ;;  %v611_v46 = vrot.slane %v547_v21, 1  ;;  %v614_v47 = vrot.slane %v549_v33, 1 }
  0x6c   :  { %v467_v48 = vrot.slane %v401_v39, 1  ;;  %v527_v49 = vadd.f32 %v465_v55, %v337_v34  ;;  %v695_v52 = vmul.f32 %v4713_v30, %v4753_v61  ;;  %v696_v50 = vmul.f32 %v4713_v30, %v4788_v27 }
  0x6d   :  { %v612_v53 = vrot.slane %v548_v43, 1  ;;  %v615_v56 = vrot.slane %v550_v44, 1  ;;  %v697_v60 = vmul.f32 %v4713_v30, %v4766_v3  ;;  %v698_v1 = vmul.f32 %v4713_v30, %v4791_v28 }
  0x6e   :  { %v468_v2 = vsel %vm462_vm1, %v466_v41, %v467_v48  ;;  %v759_v4 = vrot.slane %v695_v52, 1  ;;  %v760_v5 = vrot.slane %v696_v50, 1  ;;  %v845_v55 = vmul.f32 %v4716_v31, %v4751_v59 }
  0x6f   :  { %v528_v8 = vadd.f32 %v468_v2, %v338_v37  ;;  %v613_v10 = vsel %vm462_vm1, %v611_v46, %v612_v53  ;;  %v616_v11 = vsel %vm462_vm1, %v614_v47, %v615_v56  ;;  %v762_v14 = vrot.slane %v697_v60, 1  ;;  %v4829_v53 = vld [vmem:[#allocation2 + $0x40] sm:$0xff]  ;;  %v4835_v2 = vld [vmem:[#allocation2 + $0x50] sm:$0xff] }
  0x70   :  { %v675_v15 = vadd.f32 %v613_v10, %v527_v49  ;;  %v761_v16 = vsel %vm462_vm1, %v759_v4, %v760_v5  ;;  %v763_v17 = vrot.slane %v698_v1, 1  ;;  %v846_v12 = vmul.f32 %v4716_v31, %v375_v26 }
  0x71   :  { %v676_v18 = vadd.f32 %v616_v11, %v528_v8  ;;  %v911_v19 = vrot.slane %v845_v55, 2  ;;  %v992_v20 = vmul.f32 %v4719_v32, %v4751_v59  ;;  %v993_v21 = vmul.f32 %v4719_v32, %v375_v26 }
  0x72   :  { %v764_v33 = vsel %vm462_vm1, %v762_v14, %v763_v17  ;;  %v823_v34 = vadd.f32 %v761_v16, %v675_v15  ;;  %v912_v37 = vrot.slane %v846_v12, 2  ;;  %v994_v39 = vmul.f32 %v4719_v32, %v4753_v61  ;;  %v227_v17 = vld [vmem:[#allocation2 + $0x48] sm:$0x3] }
  0x73   :  { %v824_v41 = vadd.f32 %v764_v33, %v676_v18  ;;  %v995_v43 = vmul.f32 %v4719_v32, %v4788_v27  ;;  %v1056_v44 = vrot.slane %v992_v20, 2  ;;  %v1057_v46 = vrot.slane %v993_v21, 2  ;;  %v229_v33 = vld [vmem:[#allocation2 + $0x58] sm:$0x3] }
  0x74   :  { %v913_v47 = vsel %vm907_vm2, %v911_v19, %v912_v37  ;;  %v972_v59 = vadd.f32 %v4758_v62, %v823_v34  ;;  %v1059_v48 = vrot.slane %v994_v39, 2  ;;  %v1140_v26 = vmul.f32 %v4729_v38, %v4753_v61 }
  0x75   :  { %v973_v42 = vadd.f32 %v913_v47, %v824_v41  ;;  %v1058_v49 = vsel %vm907_vm2, %v1056_v44, %v1057_v46  ;;  %v1060_v52 = vrot.slane %v995_v43, 2  ;;  %v1141_v50 = vmul.f32 %v4729_v38, %v4788_v27 }
  0x76   :  { %v1120_v56 = vadd.f32 %v1058_v49, %v972_v59  ;;  %v1142_v60 = vmul.f32 %v4729_v38, %v4766_v3  ;;  %v1143_v62 = vmul.f32 %v4729_v38, %v4791_v28  ;;  %v1204_v1 = vrot.slane %v1140_v26, 2 }
  0x77   :  { %v1061_v4 = vsel %vm907_vm2, %v1059_v48, %v1060_v52  ;;  %v1205_v5 = vrot.slane %v1141_v50, 2  ;;  %v267_v55 = vmul.f32 %v4698_v22, %v4753_v61  ;;  %v268_v8 = vmul.f32 %v4698_v22, %v4766_v3 }
  0x78   :  { %v1121_v10 = vadd.f32 %v1061_v4, %v973_v42  ;;  %v1207_v11 = vrot.slane %v1142_v60, 2  ;;  %v1208_v14 = vrot.slane %v1143_v62, 2  ;;  %v287_v15 = vmul.f32 %v4701_v23, %v4766_v3 }
  0x79   :  { %v1206_v16 = vsel %vm907_vm2, %v1204_v1, %v1205_v5  ;;  %v288_v12 = vmul.f32 %v4701_v23, %v4829_v53  ;;  %v323_v18 = vmul.f32 %v4704_v24, %v4829_v53  ;;  %v324_v19 = vmul.f32 %v4704_v24, %v4835_v2 }
  0x7a   :  { %v1209_v20 = vsel %vm907_vm2, %v1207_v11, %v1208_v14  ;;  %v1268_v21 = vadd.f32 %v1206_v16, %v1120_v56  ;;  %v303_v34 = vadd.f32 %v287_v15, %v267_v55  ;;  %v358_v37 = vrot.slane %v4829_v53, 6 }
  0x7b   :  { %v1269_v39 = vadd.f32 %v1209_v20, %v1121_v10  ;;  %v304_v41 = vadd.f32 %v288_v12, %v268_v8  ;;  %v359_v43 = vrot.slane %v4835_v2, 6  ;;  %v402_v44 = vmul.f32 %v4707_v25, %v4753_v61 }
  0x7c   :  { %v339_v46 = vadd.f32 %v323_v18, %v303_v34  ;;  %v4857_v47 = vsel %vm353_vm0, %v358_v37, %v227_v17  ;;  %v403_v59 = vmul.f32 %v4707_v25, %v4788_v27  ;;  %v404_v48 = vmul.f32 %v4707_v25, %v4766_v3 }
  0x7d   :  { %v1284_v26 = vpack.c.bf16 %v1269_v39, %v1268_v21  ;;  %v340_v42 = vadd.f32 %v324_v19, %v304_v41  ;;  %v4864_v49 = vsel %vm353_vm0, %v359_v43, %v229_v33  ;;  %v405_v52 = vmul.f32 %v4707_v25, %v4791_v28 }
  0x7e   :  { %v469_v50 = vrot.slane %v402_v44, 1  ;;  %v470_v56 = vrot.slane %v403_v59, 1  ;;  %v472_v60 = vrot.slane %v404_v48, 1  ;;  %v551_v62 = vmul.f32 %v4710_v29, %v4766_v3 }
  0x7f   :  { %4281 = vmatprep.mubr.bf16.mxu0 %v1284_v26  ;;  %v473_v1 = vrot.slane %v405_v52, 1  ;;  %v552_v4 = vmul.f32 %v4710_v29, %v4791_v28  ;;  %v553_v5 = vmul.f32 %v4710_v29, %v4829_v53  ;;  %v554_v55 = vmul.f32 %v4710_v29, %v4857_v47 }
  0x80   :  { %v471_v8 = vsel %vm462_vm1, %v469_v50, %v470_v56  ;;  %v617_v10 = vrot.slane %v551_v62, 1  ;;  %v699_v11 = vmul.f32 %v4713_v30, %v4829_v53  ;;  %v700_v14 = vmul.f32 %v4713_v30, %v4857_v47 }
  0x81   :  { %v474_v15 = vsel %vm462_vm1, %v472_v60, %v473_v1  ;;  %v529_v16 = vadd.f32 %v471_v8, %v339_v46  ;;  %v618_v17 = vrot.slane %v552_v4, 1  ;;  %v620_v12 = vrot.slane %v553_v5, 1 }
  0x82   :  { %v530_v18 = vadd.f32 %v474_v15, %v340_v42  ;;  %v621_v19 = vrot.slane %v554_v55, 1  ;;  %v701_v20 = vmul.f32 %v4713_v30, %v4835_v2  ;;  %v702_v21 = vmul.f32 %v4713_v30, %v4864_v49 }
  0x83   :  { %v619_v33 = vsel %vm462_vm1, %v617_v10, %v618_v17  ;;  %v765_v34 = vrot.slane %v699_v11, 1  ;;  %v766_v37 = vrot.slane %v700_v14, 1  ;;  %v847_v39 = vmul.f32 %v4716_v31, %v4753_v61 }
  0x84   :  { %v622_v41 = vsel %vm462_vm1, %v620_v12, %v621_v19  ;;  %v677_v43 = vadd.f32 %v619_v33, %v529_v16  ;;  %v768_v44 = vrot.slane %v701_v20, 1  ;;  %v769_v46 = vrot.slane %v702_v21, 1 }
  0x85   :  { %v678_v59 = vadd.f32 %v622_v41, %v530_v18  ;;  %v767_v48 = vsel %vm462_vm1, %v765_v34, %v766_v37  ;;  %v848_v26 = vmul.f32 %v4716_v31, %v4788_v27  ;;  %v849_v42 = vmul.f32 %v4716_v31, %v4766_v3  ;;  %v4917_v37 = vld [vmem:[#allocation2 + $0x60] sm:$0xff] }
  0x86   :  { %v770_v52 = vsel %vm462_vm1, %v768_v44, %v769_v46  ;;  %v825_v50 = vadd.f32 %v767_v48, %v677_v43  ;;  %v850_v61 = vmul.f32 %v4716_v31, %v4791_v28  ;;  %v914_v56 = vrot.slane %v847_v39, 2 }
  0x87   :  { %v826_v60 = vadd.f32 %v770_v52, %v678_v59  ;;  %v915_v62 = vrot.slane %v848_v26, 2  ;;  %v917_v1 = vrot.slane %v849_v42, 2  ;;  %v996_v4 = vmul.f32 %v4719_v32, %v4766_v3  ;;  %v4923_v26 = vld [vmem:[#allocation2 + $0x70] sm:$0xff] }
  0x88   :  { %v918_v5 = vrot.slane %v850_v61, 2  ;;  %v997_v27 = vmul.f32 %v4719_v32, %v4791_v28  ;;  %v998_v55 = vmul.f32 %v4719_v32, %v4829_v53  ;;  %v999_v8 = vmul.f32 %v4719_v32, %v4857_v47 }
  0x89   :  { %v916_v10 = vsel %vm907_vm2, %v914_v56, %v915_v62  ;;  %v1062_v11 = vrot.slane %v996_v4, 2  ;;  %v1144_v14 = vmul.f32 %v4729_v38, %v4829_v53  ;;  %v1145_v15 = vmul.f32 %v4729_v38, %v4857_v47  ;;  %v231_v56 = vld [vmem:[#allocation2 + $0x68] sm:$0x3]  ;;  %v233_v4 = vld [vmem:[#allocation2 + $0x78] sm:$0x3] }
  0x8a   :  { %v919_v3 = vsel %vm907_vm2, %v917_v1, %v918_v5  ;;  %v974_v16 = vadd.f32 %v916_v10, %v825_v50  ;;  %v1063_v17 = vrot.slane %v997_v27, 2  ;;  %v1065_v28 = vrot.slane %v998_v55, 2 }
  0x8b   :  { %v975_v12 = vadd.f32 %v919_v3, %v826_v60  ;;  %v1066_v18 = vrot.slane %v999_v8, 2  ;;  %v1146_v19 = vmul.f32 %v4729_v38, %v4835_v2  ;;  %v1147_v20 = vmul.f32 %v4729_v38, %v4864_v49 }
  0x8c   :  { %v1064_v21 = vsel %vm907_vm2, %v1062_v11, %v1063_v17  ;;  %v1210_v33 = vrot.slane %v1144_v14, 2  ;;  %v1211_v34 = vrot.slane %v1145_v15, 2  ;;  %v269_v39 = vmul.f32 %v4698_v22, %v4829_v53 }
  0x8d   :  { %v1067_v41 = vsel %vm907_vm2, %v1065_v28, %v1066_v18  ;;  %v1122_v43 = vadd.f32 %v1064_v21, %v974_v16  ;;  %v1213_v44 = vrot.slane %v1146_v19, 2  ;;  %v1214_v46 = vrot.slane %v1147_v20, 2 }
  0x8e   :  { %v1123_v59 = vadd.f32 %v1067_v41, %v975_v12  ;;  %v1212_v48 = vsel %vm907_vm2, %v1210_v33, %v1211_v34  ;;  %v270_v42 = vmul.f32 %v4698_v22, %v4835_v2  ;;  %v289_v52 = vmul.f32 %v4701_v23, %v4835_v2 }
  0x8f   :  { %v1215_v50 = vsel %vm907_vm2, %v1213_v44, %v1214_v46  ;;  %v1270_v61 = vadd.f32 %v1212_v48, %v1122_v43  ;;  %v290_v60 = vmul.f32 %v4701_v23, %v4917_v37  ;;  %v325_v62 = vmul.f32 %v4704_v24, %v4917_v37 }
  0x90   :  { %v1271_v1 = vadd.f32 %v1215_v50, %v1123_v59  ;;  %v305_v5 = vadd.f32 %v289_v52, %v269_v39  ;;  %v326_v27 = vmul.f32 %v4704_v24, %v4923_v26  ;;  %v360_v55 = vrot.slane %v4917_v37, 6 }
  0x91   :  { %v306_v8 = vadd.f32 %v290_v60, %v270_v42  ;;  %v361_v10 = vrot.slane %v4923_v26, 6  ;;  %v406_v11 = vmul.f32 %v4707_v25, %v4829_v53  ;;  %v407_v14 = vmul.f32 %v4707_v25, %v4857_v47 }
  0x92   :  { %v1285_v15 = vpack.c.bf16 %v1271_v1, %v1270_v61  ;;  %v341_v3 = vadd.f32 %v325_v62, %v305_v5  ;;  %v4943_v16 = vsel %vm353_vm0, %v360_v55, %v231_v56  ;;  %v408_v17 = vmul.f32 %v4707_v25, %v4835_v2 }
  0x93   :  { %v342_v28 = vadd.f32 %v326_v27, %v306_v8  ;;  %v4948_v12 = vsel %vm353_vm0, %v361_v10, %v233_v4  ;;  %v409_v18 = vmul.f32 %v4707_v25, %v4864_v49  ;;  %v475_v19 = vrot.slane %v406_v11, 1 }
  0x94   :  { %4282 = vmatmul.mubr.bf16.vlgmr.msra.gmra.mxu0 %v1285_v15  ;;  %v476_v20 = vrot.slane %v407_v14, 1  ;;  %v478_v21 = vrot.slane %v408_v17, 1  ;;  %v555_v33 = vmul.f32 %v4710_v29, %v4835_v2  ;;  %v556_v34 = vmul.f32 %v4710_v29, %v4864_v49 }
  0x95   :  { %v479_v39 = vrot.slane %v409_v18, 1  ;;  %v557_v41 = vmul.f32 %v4710_v29, %v4917_v37  ;;  %v558_v43 = vmul.f32 %v4710_v29, %v4943_v16  ;;  %v703_v44 = vmul.f32 %v4713_v30, %v4917_v37 }
  0x96   :  { %v477_v46 = vsel %vm462_vm1, %v475_v19, %v476_v20  ;;  %v623_v59 = vrot.slane %v555_v33, 1  ;;  %v624_v48 = vrot.slane %v556_v34, 1  ;;  %v704_v42 = vmul.f32 %v4713_v30, %v4943_v16 }
  0x97   :  { %v480_v52 = vsel %vm462_vm1, %v478_v21, %v479_v39  ;;  %v531_v50 = vadd.f32 %v477_v46, %v341_v3  ;;  %v626_v61 = vrot.slane %v557_v41, 1  ;;  %v627_v56 = vrot.slane %v558_v43, 1 }
  0x98   :  { %v532_v60 = vadd.f32 %v480_v52, %v342_v28  ;;  %v625_v62 = vsel %vm462_vm1, %v623_v59, %v624_v48  ;;  %v705_v1 = vmul.f32 %v4713_v30, %v4923_v26  ;;  %v706_v4 = vmul.f32 %v4713_v30, %v4948_v12 }
  0x99   :  { %v628_v5 = vsel %vm462_vm1, %v626_v61, %v627_v56  ;;  %v679_v27 = vadd.f32 %v625_v62, %v531_v50  ;;  %v771_v55 = vrot.slane %v703_v44, 1  ;;  %v772_v8 = vrot.slane %v704_v42, 1 }
  0x9a   :  { %v680_v10 = vadd.f32 %v628_v5, %v532_v60  ;;  %v774_v11 = vrot.slane %v705_v1, 1  ;;  %v775_v14 = vrot.slane %v706_v4, 1  ;;  %v851_v15 = vmul.f32 %v4716_v31, %v4829_v53  ;;  %v5000_v4 = vld [vmem:[#allocation2 + $0x80] sm:$0xff] }
  0x9b   :  { %v773_v3 = vsel %vm462_vm1, %v771_v55, %v772_v8  ;;  %v852_v17 = vmul.f32 %v4716_v31, %v4857_v47  ;;  %v853_v28 = vmul.f32 %v4716_v31, %v4835_v2  ;;  %v854_v18 = vmul.f32 %v4716_v31, %v4864_v49 }
  0x9c   :  { %v776_v19 = vsel %vm462_vm1, %v774_v11, %v775_v14  ;;  %v827_v20 = vadd.f32 %v773_v3, %v679_v27  ;;  %v920_v21 = vrot.slane %v851_v15, 2  ;;  %v1000_v33 = vmul.f32 %v4719_v32, %v4835_v2 }
  0x9d   :  { %v828_v34 = vadd.f32 %v776_v19, %v680_v10  ;;  %v921_v53 = vrot.slane %v852_v17, 2  ;;  %v923_v39 = vrot.slane %v853_v28, 2  ;;  %v924_v41 = vrot.slane %v854_v18, 2  ;;  %v235_v28 = vld [vmem:[#allocation2 + $0x88] sm:$0x3] }
  0x9e   :  { %v1001_v47 = vmul.f32 %v4719_v32, %v4864_v49  ;;  %v1002_v43 = vmul.f32 %v4719_v32, %v4917_v37  ;;  %v1003_v44 = vmul.f32 %v4719_v32, %v4943_v16  ;;  %v1068_v46 = vrot.slane %v1000_v33, 2 }
  0x9f   :  { %v922_v59 = vsel %vm907_vm2, %v920_v21, %v921_v53  ;;  %v925_v48 = vsel %vm907_vm2, %v923_v39, %v924_v41  ;;  %v1148_v2 = vmul.f32 %v4729_v38, %v4917_v37  ;;  %v1149_v42 = vmul.f32 %v4729_v38, %v4943_v16 }
  0xa0   :  { %v976_v52 = vadd.f32 %v922_v59, %v827_v20  ;;  %v977_v50 = vadd.f32 %v925_v48, %v828_v34  ;;  %v1069_v49 = vrot.slane %v1001_v47, 2  ;;  %v1071_v61 = vrot.slane %v1002_v43, 2 }
  0xa1   :  { %v1072_v56 = vrot.slane %v1003_v44, 2  ;;  %v1150_v60 = vmul.f32 %v4729_v38, %v4923_v26  ;;  %v1151_v62 = vmul.f32 %v4729_v38, %v4948_v12  ;;  %v1216_v1 = vrot.slane %v1148_v2, 2 }
  0xa2   :  { %v1070_v5 = vsel %vm907_vm2, %v1068_v46, %v1069_v49  ;;  %v1217_v27 = vrot.slane %v1149_v42, 2  ;;  %v271_v55 = vmul.f32 %v4698_v22, %v4917_v37  ;;  %v272_v8 = vmul.f32 %v4698_v22, %v4923_v26 }
  0xa3   :  { %v1073_v10 = vsel %vm907_vm2, %v1071_v61, %v1072_v56  ;;  %v1124_v11 = vadd.f32 %v1070_v5, %v976_v52  ;;  %v1219_v14 = vrot.slane %v1150_v60, 2  ;;  %v1220_v15 = vrot.slane %v1151_v62, 2 }
  0xa4   :  { %v1125_v3 = vadd.f32 %v1073_v10, %v977_v50  ;;  %v1218_v17 = vsel %vm907_vm2, %v1216_v1, %v1217_v27  ;;  %v291_v18 = vmul.f32 %v4701_v23, %v4923_v26  ;;  %v292_v19 = vmul.f32 %v4701_v23, %v5000_v4 }
  0xa5   :  { %v1221_v20 = vsel %vm907_vm2, %v1219_v14, %v1220_v15  ;;  %v1272_v21 = vadd.f32 %v1218_v17, %v1124_v11  ;;  %v327_v33 = vmul.f32 %v4704_v24, %v5000_v4  ;;  %v362_v34 = vrot.slane %v5000_v4, 6 }
  0xa6   :  { %v1273_v53 = vadd.f32 %v1221_v20, %v1125_v3  ;;  %v307_v39 = vadd.f32 %v291_v18, %v271_v55  ;;  %v308_v41 = vadd.f32 %v292_v19, %v272_v8  ;;  %v410_v47 = vmul.f32 %v4707_v25, %v4917_v37 }
  0xa7   :  { %v382_v43 = vsel %vm353_vm0, %v362_v34, %v235_v28  ;;  %v411_v44 = vmul.f32 %v4707_v25, %v4943_v16  ;;  %v412_v46 = vmul.f32 %v4707_v25, %v4923_v26  ;;  %v413_v59 = vmul.f32 %v4707_v25, %v4948_v12 }
  0xa8   :  { %v1286_v48 = vpack.c.bf16 %v1273_v53, %v1272_v21  ;;  %v343_v2 = vadd.f32 %v327_v33, %v307_v39  ;;  %v344_v42 = vadd.f32 %v4738_v54, %v308_v41  ;;  %v481_v52 = vrot.slane %v410_v47, 1 }
  0xa9   :  { %v482_v50 = vrot.slane %v411_v44, 1  ;;  %v484_v49 = vrot.slane %v412_v46, 1  ;;  %v485_v61 = vrot.slane %v413_v59, 1  ;;  %v559_v56 = vmul.f32 %v4710_v29, %v4923_v26 }
  0xaa   :  { %4285 = vmatprep.mubr.bf16.mxu0 %v1286_v48  ;;  %v560_v60 = vmul.f32 %v4710_v29, %v4948_v12  ;;  %v561_v62 = vmul.f32 %v4710_v29, %v5000_v4  ;;  %v562_v1 = vmul.f32 %v4710_v29, %v382_v43  ;;  %v707_v5 = vmul.f32 %v4713_v30, %v5000_v4 }
  0xab   :  { %v483_v27 = vsel %vm462_vm1, %v481_v52, %v482_v50  ;;  %v486_v55 = vsel %vm462_vm1, %v484_v49, %v485_v61  ;;  %v629_v8 = vrot.slane %v559_v56, 1  ;;  %v708_v10 = vmul.f32 %v4713_v30, %v382_v43 }
  0xac   :  { %v533_v11 = vadd.f32 %v483_v27, %v343_v2  ;;  %v534_v14 = vadd.f32 %v486_v55, %v344_v42  ;;  %v630_v15 = vrot.slane %v560_v60, 1  ;;  %v632_v3 = vrot.slane %v561_v62, 1 }
  0xad   :  { %v633_v17 = vrot.slane %v562_v1, 1  ;;  %v777_v28 = vrot.slane %v707_v5, 1  ;;  %v778_v18 = vrot.slane %v708_v10, 1  ;;  %v780_v19 = vrot.slane %v4746_v57, 1  ;;  %v179_v1 = vld [vmem:[#allocation3 + $0x48] sm:$0xff] }
  0xae   :  { %v631_v20 = vsel %vm462_vm1, %v629_v8, %v630_v15  ;;  %v781_v21 = vrot.slane %v4761_v63, 1  ;;  %v855_v33 = vmul.f32 %v4716_v31, %v4917_v37  ;;  %v856_v34 = vmul.f32 %v4716_v31, %v4943_v16  ;;  %v180_v8 = vld [vmem:[#allocation3 + $0x50] sm:$0xff] }
  0xaf   :  { %v634_v53 = vsel %vm462_vm1, %v632_v3, %v633_v17  ;;  %v681_v39 = vadd.f32 %v631_v20, %v533_v11  ;;  %v779_v41 = vsel %vm462_vm1, %v777_v28, %v778_v18  ;;  %v857_v47 = vmul.f32 %v4716_v31, %v4923_v26  ;;  %v240_v18 = vld [vmem:[#allocation2 + $0xb0] sm:$0xff] }
  0xb0   :  { %v682_v44 = vadd.f32 %v634_v53, %v534_v14  ;;  %v782_v46 = vsel %vm462_vm1, %v780_v19, %v781_v21  ;;  %v858_v63 = vmul.f32 %v4716_v31, %v4948_v12  ;;  %v926_v37 = vrot.slane %v855_v33, 2 }
  0xb1   :  { %v829_v59 = vadd.f32 %v779_v41, %v681_v39  ;;  %v927_v48 = vrot.slane %v856_v34, 2  ;;  %v929_v16 = vrot.slane %v857_v47, 2  ;;  %v1004_v2 = vmul.f32 %v4719_v32, %v4923_v26  ;;  %v241_v39 = vld [vmem:[#allocation2 + $0xb8] sm:$0x3] }
  0xb2   :  { %v830_v42 = vadd.f32 %v782_v46, %v682_v44  ;;  %v930_v52 = vrot.slane %v858_v63, 2  ;;  %v1005_v50 = vmul.f32 %v4719_v32, %v4948_v12  ;;  %v1006_v49 = vmul.f32 %v4719_v32, %v5000_v4 }
  0xb3   :  { %v928_v61 = vsel %vm907_vm2, %v926_v37, %v927_v48  ;;  %v1007_v56 = vmul.f32 %v4719_v32, %v382_v43  ;;  %v1074_v60 = vrot.slane %v1004_v2, 2  ;;  %v1152_v62 = vmul.f32 %v4729_v38, %v5000_v4  ;;  %v239_v4 = vld [vmem:[#allocation2 + $0xa8] sm:$0x3] }
  0xb4   :  { %v931_v5 = vsel %vm907_vm2, %v929_v16, %v930_v52  ;;  %v978_v26 = vadd.f32 %v928_v61, %v829_v59  ;;  %v1075_v27 = vrot.slane %v1005_v50, 2  ;;  %v1077_v55 = vrot.slane %v1006_v49, 2 }
  0xb5   :  { %v979_v10 = vadd.f32 %v931_v5, %v830_v42  ;;  %v1078_v12 = vrot.slane %v1007_v56, 2  ;;  %v1153_v11 = vmul.f32 %v4729_v38, %v382_v43  ;;  %v1222_v14 = vrot.slane %v1152_v62, 2 }
  0xb6   :  { %v1076_v15 = vsel %vm907_vm2, %v1074_v60, %v1075_v27  ;;  %v1225_v3 = vrot.slane %v4749_v58, 2  ;;  %v1226_v17 = vrot.slane %v4764_v0, 2  ;;  %v195_v28 = vmax.f32 %v179_v1, 0.0  ;;  %v1571_v58 = vld [vmem:[#allocation9] sm:$0x7] }
  0xb7   :  { %v1079_v20 = vsel %vm907_vm2, %v1077_v55, %v1078_v12  ;;  %v1126_v21 = vadd.f32 %v1076_v15, %v978_v26  ;;  %v1223_v33 = vrot.slane %v1153_v11, 2  ;;  %v196_v34 = vmax.f32 %v180_v8, 0.0 }
  0xb8   :  { %v1127_v53 = vadd.f32 %v1079_v20, %v979_v10  ;;  %v1227_v43 = vsel %vm907_vm2, %v1225_v3, %v1226_v17  ;;  %211 = vst [vmem:[#allocation2 + $0xc1] sm:$0xff] %v195_v28  ;;  %v274_v41 = vmul.f32 %v4698_v22, %v240_v18  ;;  %v293_v47 = vmul.f32 %v4701_v23, %v240_v18 }
  0xb9   :  { %v1224_v0 = vsel %vm907_vm2, %v1222_v14, %v1223_v33  ;;  %212 = vst [vmem:[#allocation2 + $0xd1] sm:$0xff] %v196_v34  ;;  %v365_v44 = vrot.slane %v240_v18, 6  ;;  %v384_v46 = vsel %vm353_vm0, %v4689_v7, %v239_v4  ;;  %v416_v63 = vmul.f32 %v4707_v25, %v240_v18 }
  0xba   :  { %v1274_v37 = vadd.f32 %v1224_v0, %v1126_v21  ;;  %v1275_v59 = vadd.f32 %v1227_v43, %v1127_v53  ;;  %v309_v48 = vadd.f32 %v293_v47, %v4722_v35  ;;  %v415_v16 = vmul.f32 %v4707_v25, %v384_v46 }
  0xbb   :  { %v385_v2 = vsel %vm353_vm0, %v365_v44, %v241_v39  ;;  %v490_v42 = vrot.slane %v416_v63, 1  ;;  %v563_v52 = vmul.f32 %v4710_v29, %v240_v18  ;;  %v860_v50 = vmul.f32 %v4716_v31, %v384_v46 }
  0xbc   :  { %v1287_v49 = vpack.c.bf16 %v1275_v59, %v1274_v37  ;;  %v417_v61 = vmul.f32 %v4707_v25, %v385_v2  ;;  %v488_v56 = vrot.slane %v415_v16, 1  ;;  %v564_v7 = vmul.f32 %v4710_v29, %v385_v2 }
  0xbd   :  { %v635_v60 = vrot.slane %v563_v52, 1  ;;  %v861_v62 = vmul.f32 %v4716_v31, %v240_v18  ;;  %v862_v35 = vmul.f32 %v4716_v31, %v385_v2  ;;  %v933_v1 = vrot.slane %v860_v50, 2 }
  0xbe   :  { %4286 = vmatmul.mubr.bf16.gmra.mxu0 %v1287_v49  ;;  %v489_v5 = vsel %vm462_vm1, %v463_v45, %v488_v56  ;;  %v491_v26 = vrot.slane %v417_v61, 1  ;;  %v636_v27 = vrot.slane %v564_v7, 1  ;;  %v1008_v55 = vmul.f32 %v4719_v32, %v240_v18 }
  0xbf   :  { %v5093_v8 = vld [vmem:[#allocation2 + $0xc0] sm:$0xff]  ;;  %v243_v10 = vld [vmem:[#allocation2 + $0xc8] sm:$0x3]  ;;  %v934_v12 = vsel %vm907_vm2, %v908_v51, %v933_v1  ;;  %v935_v11 = vrot.slane %v861_v62, 2  ;;  %v936_v14 = vrot.slane %v862_v35, 2  ;;  %v1009_v15 = vmul.f32 %v4719_v32, %v385_v2 }
  0xc0   :  { %v5099_v17 = vld [vmem:[#allocation2 + $0xd0] sm:$0xff]  ;;  %v245_v36 = vld [vmem:[#allocation2 + $0xd8] sm:$0x3]  ;;  %v294_v45 = vmul.f32 %v4701_v23, %v5093_v8  ;;  %v329_v28 = vmul.f32 %v4704_v24, %v5093_v8  ;;  %v366_v4 = vrot.slane %v5093_v8, 6  ;;  %v492_v18 = vsel %vm462_vm1, %v490_v42, %v491_v26 }
  0xc1   :  { %v330_v40 = vmul.f32 %v4704_v24, %v5099_v17  ;;  %v367_v51 = vrot.slane %v5099_v17, 6  ;;  %v565_v20 = vmul.f32 %v4710_v29, %v5093_v8  ;;  %v637_v21 = vsel %vm462_vm1, %v635_v60, %v636_v27 }
  0xc2   :  { %v310_v33 = vadd.f32 %v294_v45, %v274_v41  ;;  %v345_v34 = vadd.f32 %v329_v28, %v309_v48  ;;  %v5114_v53 = vsel %vm353_vm0, %v366_v4, %v243_v10  ;;  %v711_v43 = vmul.f32 %v4713_v30, %v5093_v8  ;;  %v181_v4 = vld [vmem:[#allocation3 + $0x58] sm:$0xff] }
  0xc3   :  { %v5119_v39 = vsel %vm353_vm0, %v367_v51, %v245_v36  ;;  %v566_v47 = vmul.f32 %v4710_v29, %v5114_v53  ;;  %v638_v0 = vrot.slane %v565_v20, 1  ;;  %v712_v44 = vmul.f32 %v4713_v30, %v5114_v53 }
  0xc4   :  { %v346_v46 = vadd.f32 %v330_v40, %v310_v33  ;;  %v535_v63 = vadd.f32 %v489_v5, %v345_v34  ;;  %v713_v41 = vmul.f32 %v4713_v30, %v5099_v17  ;;  %v714_v37 = vmul.f32 %v4713_v30, %v5119_v39 }
  0xc5   :  { %v639_v59 = vrot.slane %v566_v47, 1  ;;  %v783_v48 = vrot.slane %v711_v43, 1  ;;  %v784_v16 = vrot.slane %v712_v44, 1  ;;  %v937_v2 = vsel %vm907_vm2, %v935_v11, %v936_v14 }
  0xc6   :  { %v536_v42 = vadd.f32 %v492_v18, %v346_v46  ;;  %v683_v52 = vadd.f32 %v637_v21, %v535_v63  ;;  %v786_v50 = vrot.slane %v713_v41, 1  ;;  %v787_v49 = vrot.slane %v714_v37, 1  ;;  %v182_v18 = vld [vmem:[#allocation3 + $0x60] sm:$0xff] }
  0xc7   :  { %v640_v61 = vsel %vm462_vm1, %v638_v0, %v639_v59  ;;  %v785_v56 = vsel %vm462_vm1, %v783_v48, %v784_v16  ;;  %v1010_v7 = vmul.f32 %v4719_v32, %v5093_v8  ;;  %v1011_v60 = vmul.f32 %v4719_v32, %v5114_v53 }
  0xc8   :  { %v684_v62 = vadd.f32 %v640_v61, %v536_v42  ;;  %v788_v35 = vsel %vm462_vm1, %v786_v50, %v787_v49  ;;  %v831_v1 = vadd.f32 %v785_v56, %v683_v52  ;;  %v1080_v5 = vrot.slane %v1008_v55, 2 }
  0xc9   :  { %v1081_v26 = vrot.slane %v1009_v15, 2  ;;  %v1083_v27 = vrot.slane %v1010_v7, 2  ;;  %v1084_v10 = vrot.slane %v1011_v60, 2  ;;  %v1156_v11 = vmul.f32 %v4729_v38, %v5093_v8 }
  0xca   :  { %v832_v14 = vadd.f32 %v788_v35, %v684_v62  ;;  %v980_v36 = vadd.f32 %v934_v12, %v831_v1  ;;  %v1157_v45 = vmul.f32 %v4729_v38, %v5114_v53  ;;  %v1158_v28 = vmul.f32 %v4729_v38, %v5099_v17 }
  0xcb   :  { %v1082_v40 = vsel %vm907_vm2, %v1080_v5, %v1081_v26  ;;  %v1085_v55 = vsel %vm907_vm2, %v1083_v27, %v1084_v10  ;;  %v1159_v15 = vmul.f32 %v4729_v38, %v5119_v39  ;;  %v1228_v51 = vrot.slane %v1156_v11, 2 }
  0xcc   :  { %v981_v20 = vadd.f32 %v937_v2, %v832_v14  ;;  %v1128_v21 = vadd.f32 %v1082_v40, %v980_v36  ;;  %v1229_v33 = vrot.slane %v1157_v45, 2  ;;  %v1231_v12 = vrot.slane %v1158_v28, 2 }
  0xcd   :  { %v1232_v34 = vrot.slane %v1159_v15, 2  ;;  %v197_v43 = vmax.f32 %v181_v4, 0.0  ;;  %v198_v47 = vmax.f32 %v182_v18, 0.0  ;;  %v275_v46 = vmul.f32 %v4698_v22, %v5093_v8 }
  0xce   :  { %v1129_v0 = vadd.f32 %v1085_v55, %v981_v20  ;;  %v1230_v44 = vsel %vm907_vm2, %v1228_v51, %v1229_v33  ;;  %v418_v37 = vmul.f32 %v4707_v25, %v5093_v8  ;;  %v419_v59 = vmul.f32 %v4707_v25, %v5114_v53 }
  0xcf   :  { %v1233_v63 = vsel %vm907_vm2, %v1231_v12, %v1232_v34  ;;  %v1276_v41 = vadd.f32 %v1230_v44, %v1128_v21  ;;  %213 = vst [vmem:[#allocation2 + $0xe1] sm:$0xff] %v197_v43  ;;  %214 = vst [vmem:[#allocation2 + $0xf1] sm:$0xff] %v198_v47  ;;  %v295_v16 = vmul.f32 %v4701_v23, %v5099_v17 }
  0xd0   :  { %v1277_v48 = vadd.f32 %v1233_v63, %v1129_v0  ;;  %v420_v2 = vmul.f32 %v4707_v25, %v5099_v17  ;;  %v421_v42 = vmul.f32 %v4707_v25, %v5119_v39  ;;  %v493_v52 = vrot.slane %v418_v37, 1 }
  0xd1   :  { %v494_v50 = vrot.slane %v419_v59, 1  ;;  %v567_v49 = vmul.f32 %v4710_v29, %v5099_v17  ;;  %v568_v61 = vmul.f32 %v4710_v29, %v5119_v39  ;;  %v863_v62 = vmul.f32 %v4716_v31, %v5093_v8 }
  0xd2   :  { %v1288_v56 = vpack.c.bf16 %v1277_v48, %v1276_v41  ;;  %v496_v7 = vrot.slane %v420_v2, 1  ;;  %v497_v60 = vrot.slane %v421_v42, 1  ;;  %v276_v35 = vmul.f32 %v4698_v22, %v5099_v17 }
  0xd3   :  { %v641_v1 = vrot.slane %v567_v49, 1  ;;  %v642_v5 = vrot.slane %v568_v61, 1  ;;  %v864_v26 = vmul.f32 %v4716_v31, %v5114_v53  ;;  %v311_v27 = vadd.f32 %v295_v16, %v275_v46 }
  0xd4   :  { %4289 = vmatprep.mubr.bf16.mxu0 %v1288_v56  ;;  %v495_v10 = vsel %vm462_vm1, %v493_v52, %v494_v50  ;;  %v865_v11 = vmul.f32 %v4716_v31, %v5099_v17  ;;  %v866_v14 = vmul.f32 %v4716_v31, %v5119_v39  ;;  %v498_v8 = vsel %vm462_vm1, %v496_v7, %v497_v60 }
  0xd5   :  { %v643_v36 = vsel %vm462_vm1, %v641_v1, %v642_v5  ;;  %v938_v45 = vrot.slane %v863_v62, 2  ;;  %v939_v28 = vrot.slane %v864_v26, 2  ;;  %v1012_v15 = vmul.f32 %v4719_v32, %v5099_v17 }
  0xd6   :  { %v5178_v4 = vld [vmem:[#allocation2 + $0xe0] sm:$0xff]  ;;  %v247_v18 = vld [vmem:[#allocation2 + $0xe8] sm:$0x3]  ;;  %v5180_v53 = vld [vmem:[#allocation2 + $0xf0] sm:$0xff]  ;;  %v941_v40 = vrot.slane %v865_v11, 2  ;;  %v942_v55 = vrot.slane %v866_v14, 2  ;;  %v1013_v51 = vmul.f32 %v4719_v32, %v5119_v39 }
  0xd7   :  { %v249_v20 = vld [vmem:[#allocation2 + $0xf8] sm:$0x3]  ;;  %v296_v21 = vmul.f32 %v4701_v23, %v5178_v4  ;;  %v331_v33 = vmul.f32 %v4704_v24, %v5178_v4  ;;  %v332_v12 = vmul.f32 %v4704_v24, %v5180_v53  ;;  %v368_v34 = vrot.slane %v5178_v4, 6 }
  0xd8   :  { %v369_v43 = vrot.slane %v5180_v53, 6  ;;  %v569_v17 = vmul.f32 %v4710_v29, %v5178_v4  ;;  %v715_v39 = vmul.f32 %v4713_v30, %v5178_v4  ;;  %v717_v47 = vmul.f32 %v4713_v30, %v5180_v53 }
  0xd9   :  { %v312_v0 = vadd.f32 %v296_v21, %v276_v35  ;;  %v347_v44 = vadd.f32 %v331_v33, %v311_v27  ;;  %v5201_v46 = vsel %vm353_vm0, %v368_v34, %v247_v18  ;;  %v940_v63 = vsel %vm907_vm2, %v938_v45, %v939_v28  ;;  %v184_v33 = vld [vmem:[#allocation3 + $0x70] sm:$0xff] }
  0xda   :  { %v5205_v41 = vsel %vm353_vm0, %v369_v43, %v249_v20  ;;  %v570_v37 = vmul.f32 %v4710_v29, %v5201_v46  ;;  %v644_v59 = vrot.slane %v569_v17, 1  ;;  %v716_v48 = vmul.f32 %v4713_v30, %v5201_v46 }
  0xdb   :  { %v348_v16 = vadd.f32 %v332_v12, %v312_v0  ;;  %v537_v2 = vadd.f32 %v495_v10, %v347_v44  ;;  %v718_v42 = vmul.f32 %v4713_v30, %v5205_v41  ;;  %v789_v52 = vrot.slane %v715_v39, 1 }
  0xdc   :  { %v645_v50 = vrot.slane %v570_v37, 1  ;;  %v790_v49 = vrot.slane %v716_v48, 1  ;;  %v792_v61 = vrot.slane %v717_v47, 1  ;;  %v943_v56 = vsel %vm907_vm2, %v941_v40, %v942_v55  ;;  %v183_v40 = vld [vmem:[#allocation3 + $0x68] sm:$0xff] }
  0xdd   :  { %v538_v7 = vadd.f32 %v498_v8, %v348_v16  ;;  %v685_v60 = vadd.f32 %v643_v36, %v537_v2  ;;  %v793_v62 = vrot.slane %v718_v42, 1  ;;  %v1014_v35 = vmul.f32 %v4719_v32, %v5178_v4 }
  0xde   :  { %v646_v1 = vsel %vm462_vm1, %v644_v59, %v645_v50  ;;  %v791_v5 = vsel %vm462_vm1, %v789_v52, %v790_v49  ;;  %v1015_v26 = vmul.f32 %v4719_v32, %v5201_v46  ;;  %v1086_v27 = vrot.slane %v1012_v15, 2 }
  0xdf   :  { %v686_v10 = vadd.f32 %v646_v1, %v538_v7  ;;  %v794_v11 = vsel %vm462_vm1, %v792_v61, %v793_v62  ;;  %v833_v14 = vadd.f32 %v791_v5, %v685_v60  ;;  %v1087_v45 = vrot.slane %v1013_v51, 2 }
  0xe0   :  { %v1089_v28 = vrot.slane %v1014_v35, 2  ;;  %v1090_v8 = vrot.slane %v1015_v26, 2  ;;  %v1160_v36 = vmul.f32 %v4729_v38, %v5178_v4  ;;  %v1161_v18 = vmul.f32 %v4729_v38, %v5201_v46 }
  0xe1   :  { %v834_v55 = vadd.f32 %v794_v11, %v686_v10  ;;  %v982_v20 = vadd.f32 %v940_v63, %v833_v14  ;;  %v1088_v21 = vsel %vm907_vm2, %v1086_v27, %v1087_v45  ;;  %v1162_v15 = vmul.f32 %v4729_v38, %v5180_v53 }
  0xe2   :  { %v1091_v12 = vsel %vm907_vm2, %v1089_v28, %v1090_v8  ;;  %v1163_v51 = vmul.f32 %v4729_v38, %v5205_v41  ;;  %v1234_v34 = vrot.slane %v1160_v36, 2  ;;  %v1235_v43 = vrot.slane %v1161_v18, 2 }
  0xe3   :  { %v983_v17 = vadd.f32 %v943_v56, %v834_v55  ;;  %v1130_v39 = vadd.f32 %v1088_v21, %v982_v20  ;;  %v1237_v47 = vrot.slane %v1162_v15, 2  ;;  %v199_v0 = vmax.f32 %v183_v40, 0.0 }
  0xe4   :  { %v1236_v44 = vsel %vm907_vm2, %v1234_v34, %v1235_v43  ;;  %v1238_v63 = vrot.slane %v1163_v51, 2  ;;  %v200_v37 = vmax.f32 %v184_v33, 0.0  ;;  %v277_v59 = vmul.f32 %v4698_v22, %v5178_v4 }
  0xe5   :  { %v1131_v48 = vadd.f32 %v1091_v12, %v983_v17  ;;  %v1278_v16 = vadd.f32 %v1236_v44, %v1130_v39  ;;  %215 = vst [vmem:[#allocation2 + $0x101] sm:$0xff] %v199_v0  ;;  %v278_v2 = vmul.f32 %v4698_v22, %v5180_v53  ;;  %v297_v42 = vmul.f32 %v4701_v23, %v5180_v53 }
  0xe6   :  { %v1239_v52 = vsel %vm907_vm2, %v1237_v47, %v1238_v63  ;;  %216 = vst [vmem:[#allocation2 + $0x111] sm:$0xff] %v200_v37  ;;  %v422_v50 = vmul.f32 %v4707_v25, %v5178_v4  ;;  %v423_v49 = vmul.f32 %v4707_v25, %v5201_v46  ;;  %v424_v61 = vmul.f32 %v4707_v25, %v5180_v53 }
  0xe7   :  { %v1279_v56 = vadd.f32 %v1239_v52, %v1131_v48  ;;  %v313_v7 = vadd.f32 %v297_v42, %v277_v59  ;;  %v425_v60 = vmul.f32 %v4707_v25, %v5205_v41  ;;  %v571_v62 = vmul.f32 %v4710_v29, %v5180_v53 }
  0xe8   :  { %v499_v35 = vrot.slane %v422_v50, 1  ;;  %v500_v1 = vrot.slane %v423_v49, 1  ;;  %v502_v5 = vrot.slane %v424_v61, 1  ;;  %v572_v26 = vmul.f32 %v4710_v29, %v5205_v41 }
  0xe9   :  { %v1289_v27 = vpack.c.bf16 %v1279_v56, %v1278_v16  ;;  %v503_v10 = vrot.slane %v425_v60, 1  ;;  %v647_v11 = vrot.slane %v571_v62, 1  ;;  %v867_v14 = vmul.f32 %v4716_v31, %v5178_v4 }
  0xea   :  { %v501_v45 = vsel %vm462_vm1, %v499_v35, %v500_v1  ;;  %v648_v28 = vrot.slane %v572_v26, 1  ;;  %v868_v8 = vmul.f32 %v4716_v31, %v5201_v46  ;;  %v869_v36 = vmul.f32 %v4716_v31, %v5180_v53 }
  0xeb   :  { %4290 = vmatmul.mubr.bf16.gmra.mxu0 %v1289_v27  ;;  %v504_v18 = vsel %vm462_vm1, %v502_v5, %v503_v10  ;;  %v870_v40 = vmul.f32 %v4716_v31, %v5205_v41  ;;  %v944_v55 = vrot.slane %v867_v14, 2  ;;  %v1016_v20 = vmul.f32 %v4719_v32, %v5180_v53 }
  0xec   :  { %v5263_v4 = vld [vmem:[#allocation2 + $0x100] sm:$0xff]  ;;  %v251_v21 = vld [vmem:[#allocation2 + $0x108] sm:$0x3]  ;;  %v649_v15 = vsel %vm462_vm1, %v647_v11, %v648_v28  ;;  %v945_v33 = vrot.slane %v868_v8, 2  ;;  %v947_v46 = vrot.slane %v869_v36, 2  ;;  %v1017_v12 = vmul.f32 %v4719_v32, %v5205_v41 }
  0xed   :  { %v5268_v51 = vld [vmem:[#allocation2 + $0x110] sm:$0xff]  ;;  %v253_v34 = vld [vmem:[#allocation2 + $0x118] sm:$0x3]  ;;  %v298_v43 = vmul.f32 %v4701_v23, %v5263_v4  ;;  %v333_v17 = vmul.f32 %v4704_v24, %v5263_v4  ;;  %v370_v53 = vrot.slane %v5263_v4, 6  ;;  %v573_v39 = vmul.f32 %v4710_v29, %v5263_v4 }
  0xee   :  { %v334_v47 = vmul.f32 %v4704_v24, %v5268_v51  ;;  %v371_v0 = vrot.slane %v5268_v51, 6  ;;  %v719_v41 = vmul.f32 %v4713_v30, %v5263_v4  ;;  %v721_v44 = vmul.f32 %v4713_v30, %v5268_v51 }
  0xef   :  { %v314_v63 = vadd.f32 %v298_v43, %v278_v2  ;;  %v349_v37 = vadd.f32 %v333_v17, %v313_v7  ;;  %v5285_v59 = vsel %vm353_vm0, %v370_v53, %v251_v21  ;;  %v650_v48 = vrot.slane %v573_v39, 1  ;;  %v185_v17 = vld [vmem:[#allocation3 + $0x78] sm:$0xff] }
  0xf0   :  { %v5288_v16 = vsel %vm353_vm0, %v371_v0, %v253_v34  ;;  %v574_v42 = vmul.f32 %v4710_v29, %v5285_v59  ;;  %v720_v52 = vmul.f32 %v4713_v30, %v5285_v59  ;;  %v795_v50 = vrot.slane %v719_v41, 1 }
  0xf1   :  { %v350_v49 = vadd.f32 %v334_v47, %v314_v63  ;;  %v539_v61 = vadd.f32 %v501_v45, %v349_v37  ;;  %v722_v2 = vmul.f32 %v4713_v30, %v5288_v16  ;;  %v798_v56 = vrot.slane %v721_v44, 1 }
  0xf2   :  { %v651_v7 = vrot.slane %v574_v42, 1  ;;  %v796_v60 = vrot.slane %v720_v52, 1  ;;  %v946_v62 = vsel %vm907_vm2, %v944_v55, %v945_v33  ;;  %v948_v35 = vrot.slane %v870_v40, 2 }
  0xf3   :  { %v540_v1 = vadd.f32 %v504_v18, %v350_v49  ;;  %v687_v5 = vadd.f32 %v649_v15, %v539_v61  ;;  %v799_v26 = vrot.slane %v722_v2, 1  ;;  %v1018_v27 = vmul.f32 %v4719_v32, %v5263_v4  ;;  %v5318_v49 = vld [vmem:[#allocation2] sm:$0xff] }
  0xf4   :  { %v652_v10 = vsel %vm462_vm1, %v650_v48, %v651_v7  ;;  %v797_v11 = vsel %vm462_vm1, %v795_v50, %v796_v60  ;;  %v949_v14 = vsel %vm907_vm2, %v947_v46, %v948_v35  ;;  %v1019_v45 = vmul.f32 %v4719_v32, %v5285_v59  ;;  %v257_v48 = vld [vmem:[#allocation2 + $0x138] sm:$0x3] }
  0xf5   :  { %v688_v28 = vadd.f32 %v652_v10, %v540_v1  ;;  %v800_v8 = vsel %vm462_vm1, %v798_v56, %v799_v26  ;;  %v835_v36 = vadd.f32 %v797_v11, %v687_v5  ;;  %v1092_v40 = vrot.slane %v1016_v20, 2 }
  0xf6   :  { %v1093_v18 = vrot.slane %v1017_v12, 2  ;;  %v1095_v55 = vrot.slane %v1018_v27, 2  ;;  %v1096_v21 = vrot.slane %v1019_v45, 2  ;;  %v1164_v15 = vmul.f32 %v4729_v38, %v5263_v4 }
  0xf7   :  { %v836_v33 = vadd.f32 %v800_v8, %v688_v28  ;;  %v984_v34 = vadd.f32 %v946_v62, %v835_v36  ;;  %v1165_v43 = vmul.f32 %v4729_v38, %v5285_v59  ;;  %v1166_v46 = vmul.f32 %v4729_v38, %v5268_v51 }
  0xf8   :  { %v1094_v53 = vsel %vm907_vm2, %v1092_v40, %v1093_v18  ;;  %v1097_v39 = vsel %vm907_vm2, %v1095_v55, %v1096_v21  ;;  %v1167_v20 = vmul.f32 %v4729_v38, %v5288_v16  ;;  %v1240_v12 = vrot.slane %v1164_v15, 2 }
  0xf9   :  { %v985_v47 = vadd.f32 %v949_v14, %v836_v33  ;;  %v1132_v0 = vadd.f32 %v1094_v53, %v984_v34  ;;  %v1241_v41 = vrot.slane %v1165_v43, 2  ;;  %v1243_v44 = vrot.slane %v1166_v46, 2 }
  0xfa   :  { %v1244_v63 = vrot.slane %v1167_v20, 2  ;;  %v201_v37 = vmax.f32 %v185_v17, 0.0  ;;  %v279_v50 = vmul.f32 %v4698_v22, %v5263_v4  ;;  %v5321_v61 = vrot.slane %v5318_v49, 6 }
  0xfb   :  { %v1133_v42 = vadd.f32 %v1097_v39, %v985_v47  ;;  %v1242_v52 = vsel %vm907_vm2, %v1240_v12, %v1241_v41  ;;  %v426_v7 = vmul.f32 %v4707_v25, %v5263_v4  ;;  %v427_v60 = vmul.f32 %v4707_v25, %v5285_v59 }
  0xfc   :  { %v1245_v2 = vsel %vm907_vm2, %v1243_v44, %v1244_v63  ;;  %v1280_v56 = vadd.f32 %v1242_v52, %v1132_v0  ;;  %217 = vst [vmem:[#allocation2 + $0x121] sm:$0xff] %v201_v37  ;;  %v299_v35 = vmul.f32 %v4701_v23, %v5268_v51  ;;  %v5332_v1 = vsel %vm353_vm0, %v5321_v61, %v257_v48 }
  0xfd   :  { %v1281_v62 = vadd.f32 %v1245_v2, %v1133_v42  ;;  %v428_v5 = vmul.f32 %v4707_v25, %v5268_v51  ;;  %v429_v26 = vmul.f32 %v4707_v25, %v5288_v16  ;;  %v505_v27 = vrot.slane %v426_v7, 1 }
  0xfe   :  { %v506_v10 = vrot.slane %v427_v60, 1  ;;  %v575_v11 = vmul.f32 %v4710_v29, %v5268_v51  ;;  %v576_v28 = vmul.f32 %v4710_v29, %v5288_v16  ;;  %v726_v8 = vmul.f32 %v4713_v30, %v5332_v1 }
  0xff   :  { %v1290_v14 = vpack.c.bf16 %v1281_v62, %v1280_v56  ;;  %v508_v45 = vrot.slane %v428_v5, 1  ;;  %v280_v36 = vmul.f32 %v4698_v22, %v5268_v51  ;;  %v509_v40 = vrot.slane %v429_v26, 1 }
 0x100   :  { %v653_v18 = vrot.slane %v575_v11, 1  ;;  %v871_v25 = vmul.f32 %v4716_v31, %v5263_v4  ;;  %v654_v55 = vrot.slane %v576_v28, 1  ;;  %v805_v21 = vrot.slane %v726_v8, 1 }
 0x101   :  { %4293 = vmatprep.mubr.bf16.mxu0 %v1290_v14  ;;  %v872_v15 = vmul.f32 %v4716_v31, %v5285_v59  ;;  %v873_v33 = vmul.f32 %v4716_v31, %v5268_v51  ;;  %v315_v34 = vadd.f32 %v299_v35, %v279_v50  ;;  %v507_v43 = vsel %vm462_vm1, %v505_v27, %v506_v10  ;;  %v4397_v50 = vld [vmem:[#allocation11 + $0x38] sm:$0xff]  }
 0x102   :  { %v510_v46 = vsel %vm462_vm1, %v508_v45, %v509_v40  ;;  %v874_v22 = vmul.f32 %v4716_v31, %v5288_v16  ;;  %v655_v4 = vsel %vm462_vm1, %v653_v18, %v654_v55  ;;  %v806_v39 = vsel %vm462_vm1, %v780_v19, %v805_v21  ;;  %4297 = vmatprep.subr.bf16.mxu1 %v4397_v50  ;;  %v4398_v45 = vld [vmem:[#allocation11 + $0x30] sm:$0xff]  }
 0x103   :  { %v254_v17 = vld [vmem:[#allocation2 + $0x120] sm:$0xff]  ;;  %v255_v53 = vld [vmem:[#allocation2 + $0x128] sm:$0x3]  ;;  %v950_v59 = vrot.slane %v871_v25, 2  ;;  %v1020_v20 = vmul.f32 %v4719_v32, %v5268_v51  ;;  %v951_v44 = vrot.slane %v872_v15, 2  ;;  %v953_v63 = vrot.slane %v873_v33, 2  ;;  %4298 = vmatpush3.bf16.msra.mxu1 %v4397_v50 }
 0x104   :  { %v300_v12 = vmul.f32 %v4701_v23, %v254_v17  ;;  %v335_v47 = vmul.f32 %v4704_v24, %v254_v17  ;;  %v372_v0 = vrot.slane %v254_v17, 6  ;;  %v577_v41 = vmul.f32 %v4710_v29, %v254_v17  ;;  %4299 = vmatprep.subr.bf16.mxu1 %v4398_v45 }
 0x105   :  { %v723_v31 = vmul.f32 %v4713_v30, %v254_v17  ;;  %v1021_v57 = vmul.f32 %v4719_v32, %v5288_v16  ;;  %v954_v42 = vrot.slane %v874_v22, 2  ;;  %v1022_v7 = vmul.f32 %v4719_v32, %v254_v17 }
 0x106   :  { %v316_v37 = vadd.f32 %v300_v12, %v280_v36  ;;  %v351_v19 = vadd.f32 %v335_v47, %v315_v34  ;;  %v392_v48 = vsel %vm353_vm0, %v372_v0, %v255_v53  ;;  %v656_v23 = vrot.slane %v577_v41, 1  ;;  %v1532_v12 = vld [vmem:[#allocation2 + $0x8] sm:$0x3] }
 0x107   :  { %v578_v51 = vmul.f32 %v4710_v29, %v392_v48  ;;  %v724_v24 = vmul.f32 %v4713_v30, %v392_v48  ;;  %v801_v52 = vrot.slane %v723_v31, 1  ;;  %v1023_v60 = vmul.f32 %v4719_v32, %v392_v48  ;;  %4300 = vmatpush3.bf16.msra.mxu1 %v4398_v45  ;;  %v1550_v45 = vld [vmem:[#allocation2 + $0x98] sm:$0x3] }
 0x108   :  { %v352_v2 = vadd.f32 %v4738_v54, %v316_v37  ;;  %v541_v56 = vadd.f32 %v507_v43, %v351_v19  ;;  %v1098_v35 = vrot.slane %v1020_v20, 2  ;;  %v1099_v5 = vrot.slane %v1021_v57, 2  ;;  %v5391_v20 = vld [vmem:[%s7074_s3] ss:$0 sm:$0xff] }
 0x109   :  { %v657_v16 = vrot.slane %v578_v51, 1  ;;  %v802_v62 = vrot.slane %v724_v24, 1  ;;  %v952_v29 = vsel %vm907_vm2, %v950_v59, %v951_v44  ;;  %v1101_v10 = vrot.slane %v1022_v7, 2  ;;  %v4400_v59 = vld [vmem:[#allocation11 + $0x20] sm:$0xff]   ;;  %v4401_v24 = vld [vmem:[#allocation11 + $0x18] sm:$0xff]  }
 0x10a   :  { %v542_v26 = vadd.f32 %v510_v46, %v352_v2  ;;  %v689_v27 = vadd.f32 %v655_v4, %v541_v56  ;;  %v1102_v11 = vrot.slane %v1023_v60, 2  ;;  %v1168_v14 = vmul.f32 %v4729_v38, %v254_v17 }
 0x10b   :  { %v658_v30 = vsel %vm462_vm1, %v656_v23, %v657_v16  ;;  %v803_v54 = vsel %vm462_vm1, %v801_v52, %v802_v62  ;;  %v1169_v8 = vmul.f32 %v4729_v38, %v392_v48  ;;  %v955_v36 = vsel %vm907_vm2, %v953_v63, %v954_v42  ;;  %v1573_v62 = vld [vmem:[#allocation9 + $0x8] sm:$0x7] }
 0x10c   :  { %v690_v32 = vadd.f32 %v658_v30, %v542_v26  ;;  %v837_v28 = vadd.f32 %v803_v54, %v689_v27  ;;  %v1100_v40 = vsel %vm907_vm2, %v1098_v35, %v1099_v5  ;;  %v1171_v18 = vmul.f32 %v4729_v38, %v5332_v1  ;;  %v4402_v26 = vld [vmem:[#allocation11 + $0x10] sm:$0xff]   ;;  %v1572_v27 = vld [vmem:[#allocation9 + $0x4] sm:$0x7] }
 0x10d   :  { %v1246_v25 = vrot.slane %v1168_v14, 2  ;;  %v1247_v15 = vrot.slane %v1169_v8, 2  ;;  %v1103_v33 = vsel %vm907_vm2, %v1101_v10, %v1102_v11  ;;  %v1686_v31 = vsel %vm353_vm0, %v5321_v61, %v1532_v12 }
 0x10e   :  { %v838_v55 = vadd.f32 %v806_v39, %v690_v32  ;;  %v986_v21 = vadd.f32 %v952_v29, %v837_v28  ;;  %v1250_v34 = vrot.slane %v1171_v18, 2  ;;  %v4399_v39 = vld [vmem:[#allocation11 + $0x28] sm:$0xff]   ;;  %v5402_v44 = vrot.slane %v1571_v58, %v4691_v9 }
 0x10f   :  { %v1248_v22 = vsel %vm907_vm2, %v1246_v25, %v1247_v15  ;;  %4301 = vmatprep.subr.bf16.mxu1 %v4399_v39  ;;  %v5411_v48 = vrot.slane %v1571_v58, %v4693_v13  ;;  %v5426_v30 = vrot.slane %v1571_v58, %v4687_v6  ;;  %v5429_v54 = vrot.slane %v1573_v62, %v4691_v9 }
 0x110   :  { %v987_v43 = vadd.f32 %v955_v36, %v838_v55  ;;  %v1134_v46 = vadd.f32 %v1100_v40, %v986_v21  ;;  %v1251_v17 = vsel %vm907_vm2, %v1225_v3, %v1250_v34  ;;  %4302 = vmatpush3.bf16.msra.mxu1 %v4399_v39  ;;  %v5396_v3 = vld [vmem:[%s7075_s4] ss:$0 sm:$0xff]  ;;  %v5408_v19 = vmul.f32 %v5318_v49, %v5402_v44 }
 0x111   :  { %4303 = vmatprep.subr.bf16.mxu1 %v4400_v59  ;;  %v1711_v52 = vmul.f32 %v5402_v44, %v1686_v31  ;;  %v5418_v2 = vmul.f32 %v5318_v49, %v5411_v48  ;;  %v2155_v56 = vmul.f32 %v5411_v48, %v1686_v31  ;;  %v5433_v28 = vrot.slane %v1573_v62, %v4687_v6  ;;  %v4403_v21 = vld [vmem:[#allocation11 + $0x8] sm:$0xff]   ;;  %v4404_v31 = vld [vmem:[#allocation11] sm:$0xff]  }
 0x112   :  { %v1135_v53 = vadd.f32 %v1103_v33, %v987_v43  ;;  %v1282_v4 = vadd.f32 %v1248_v22, %v1134_v46  ;;  %v7086_v29 = vrot.slane %v5408_v19, 1  ;;  %v5436_v8 = vrot.slane %v1573_v62, %v4693_v13 }
 0x113   :  { %v1775_v10 = vrot.slane %v1711_v52, 1  ;;  %v7085_v11 = vrot.slane %v5418_v2, 2  ;;  %v2219_v14 = vrot.slane %v2155_v56, 2  ;;  %v5440_v36 = vsel %vm353_vm0, %v5321_v61, %v1550_v45 }
 0x114   :  { %v1283_v38 = vadd.f32 %v1251_v17, %v1135_v53  ;;  %4304 = vmatpush3.bf16.msra.mxu1 %v4400_v59  ;;  %v5443_v40 = vrot.slane %v1572_v27, %v4687_v6  ;;  %v5446_v18 = vrot.slane %v1572_v27, %v4691_v9  ;;  %v5450_v25 = vmul.f32 %v5318_v49, %v5429_v54 }
 0x115   :  { %4305 = vmatprep.subr.bf16.mxu1 %v4401_v24  ;;  %v5454_v55 = vmul.f32 %v5429_v54, %v5440_v36  ;;  %v5458_v15 = vmul.f32 %v5318_v49, %v5426_v30  ;;  %v1776_v33 = vsel %vm462_vm1, %v7086_v29, %v1775_v10  ;;  %v5464_v34 = vrot.slane %v1572_v27, %v4693_v13 }
 0x116   :  { %v1291_v1 = vpack.c.bf16 %v1283_v38, %v1282_v4  ;;  %v5468_v43 = vmul.f32 %v5318_v49, %v5433_v28  ;;  %v5475_v22 = vsel %vm907_vm2, %v7085_v11, %v2219_v14 }
 0x117   :  { %v2092_v53 = vrot.slane %v5454_v55, 1 }
 0x118   :  { %4294 = vmatmul.mubr.bf16.gmra.mxu0 %v1291_v1  ;;  %4306 = vmatpush3.bf16.msra.mxu1 %v4401_v24 }
 0x119   :  { %4307 = vmatprep.subr.bf16.mxu1 %v4402_v26 }
 0x11c   :  { %4308 = vmatpush3.bf16.msra.mxu1 %v4402_v26 }
 0x11d   :  { %4309 = vmatprep.subr.bf16.mxu1 %v4403_v21 }
 0x120   :  { %4310 = vmatpush3.bf16.msra.mxu1 %v4403_v21 }
 0x121   :  { %4311 = vmatprep.subr.bf16.mxu1 %v4404_v31 }
 0x124   :  { %4312 = vmatpush3.bf16.msra.mxu1 %v4404_v31 }
 0x154   :  { %v4283_v47 = vpop.f32.mrf.mxu0 }
 0x155   :  { %v1462_v0 = vmul.f32 %v4283_v47, %v5391_v20 }
 0x156   :  { %v1390_v41 = vpop.f32.mrf.mxu0 }
 0x157   :  { %v1485_v63 = vadd.f32 %v5396_v3, %v1462_v0  ;;  %v1460_v57 = vmul.f32 %v5391_v20, %v1390_v41 }
 0x158   :  { %v4284_v37 = vpop.f32.mrf.mxu0 }
 0x159   :  { %v1501_v42 = vmax.f32 %v1485_v63, 0.0  ;;  %v1483_v51 = vadd.f32 %v5396_v3, %v1460_v57  ;;  %v1463_v23 = vmul.f32 %v4284_v37, %v5391_v20 }
 0x15a   :  { %v1393_v50 = vpop.f32.mrf.mxu0 }
 0x15b   :  { %1517 = vst [vmem:[#allocation2 + $0x31] sm:$0xff] %v1501_v42  ;;  %v1499_v7 = vmax.f32 %v1483_v51, 0.0  ;;  %v1486_v60 = vadd.f32 %v5396_v3, %v1463_v23  ;;  %v1461_v16 = vmul.f32 %v5391_v20, %v1393_v50 }
 0x15d   :  { %1515 = vst [vmem:[#allocation2 + $0x11] sm:$0xff] %v1499_v7  ;;  %v1502_v35 = vmax.f32 %v1486_v60, 0.0  ;;  %v1484_v5 = vadd.f32 %v5396_v3, %v1461_v16 }
 0x15f   :  { %1518 = vst [vmem:[#allocation2 + $0x41] sm:$0xff] %v1502_v35  ;;  %v1500_v32 = vmax.f32 %v1484_v5, 0.0 }
 0x161   :  { %1516 = vst [vmem:[#allocation2 + $0x21] sm:$0xff] %v1500_v32 }
 0x162   :  { %v5470_v46 = vld [vmem:[#allocation2 + $0x30] sm:$0xff]  ;;  %v1538_v12 = vld [vmem:[#allocation2 + $0x38] sm:$0x3] }
 0x163   :  { %v1635_v4 = vmul.f32 %v5433_v28, %v5470_v46  ;;  %v1669_v38 = vrot.slane %v5470_v46, 6  ;;  %v2008_v1 = vmul.f32 %v5429_v54, %v5470_v46  ;;  %v5486_v39 = vmul.f32 %v5436_v8, %v5470_v46 }
 0x164   :  { %v1533_v59 = vld [vmem:[#allocation2 + $0x10] sm:$0xff]  ;;  %v5490_v58 = vmul.f32 %v5426_v30, %v5470_v46  ;;  %v5494_v47 = vmul.f32 %v5443_v40, %v5470_v46  ;;  %v5498_v0 = vmul.f32 %v5402_v44, %v5470_v46  ;;  %v5502_v41 = vmul.f32 %v5446_v18, %v5470_v46  ;;  %v1534_v51 = vld [vmem:[#allocation2 + $0x18] sm:$0x3] }
 0x165   :  { %v1579_v63 = vmul.f32 %v5426_v30, %v1533_v59  ;;  %v1598_v57 = vmul.f32 %v5443_v40, %v1533_v59  ;;  %v1667_v37 = vrot.slane %v1533_v59, 6  ;;  %v5507_v42 = vsel %vm353_vm0, %v1669_v38, %v1538_v12 }
 0x166   :  { %v1712_v23 = vmul.f32 %v5402_v44, %v1533_v59  ;;  %v1858_v24 = vmul.f32 %v5446_v18, %v1533_v59  ;;  %v2009_v52 = vmul.f32 %v5429_v54, %v5507_v42  ;;  %v2073_v50 = vrot.slane %v2008_v1, 1 }
 0x167   :  { %v1614_v56 = vadd.f32 %v1598_v57, %v5458_v15  ;;  %v1687_v7 = vsel %vm353_vm0, %v1667_v37, %v1534_v51  ;;  %v2156_v60 = vmul.f32 %v5411_v48, %v1533_v59  ;;  %v2302_v16 = vmul.f32 %v5464_v34, %v1533_v59 }
 0x168   :  { %v5517_v62 = vld [vmem:[#allocation2 + $0x20] sm:$0xff]  ;;  %v1713_v35 = vmul.f32 %v5402_v44, %v1687_v7  ;;  %v1777_v5 = vrot.slane %v1712_v23, 1  ;;  %v1859_v26 = vmul.f32 %v5446_v18, %v1687_v7  ;;  %v1922_v27 = vrot.slane %v1858_v24, 1  ;;  %v1536_v21 = vld [vmem:[#allocation2 + $0x28] sm:$0x3] }
 0x169   :  { %v1599_v10 = vmul.f32 %v5443_v40, %v5517_v62  ;;  %v1634_v14 = vmul.f32 %v5433_v28, %v5517_v62  ;;  %v1668_v45 = vrot.slane %v5517_v62, 6  ;;  %v1860_v32 = vmul.f32 %v5446_v18, %v5517_v62 }
 0x16a   :  { %v1778_v38 = vrot.slane %v1713_v35, 1  ;;  %v1923_v1 = vrot.slane %v1859_v26, 1  ;;  %v2006_v59 = vmul.f32 %v5429_v54, %v5517_v62  ;;  %v2074_v12 = vrot.slane %v2009_v52, 1 }
 0x16b   :  { %v1615_v31 = vadd.f32 %v1599_v10, %v1579_v63  ;;  %v1650_v57 = vadd.f32 %v1634_v14, %v1614_v56  ;;  %v5531_v37 = vsel %vm353_vm0, %v1668_v45, %v1536_v21  ;;  %v1925_v51 = vrot.slane %v1860_v32, 1 }
 0x16c   :  { %v1779_v23 = vsel %vm462_vm1, %v1777_v5, %v1778_v38  ;;  %v1861_v24 = vmul.f32 %v5446_v18, %v5531_v37  ;;  %v1924_v11 = vsel %vm462_vm1, %v1922_v27, %v1923_v1  ;;  %v2007_v35 = vmul.f32 %v5429_v54, %v5531_v37 }
 0x16d   :  { %v1651_v26 = vadd.f32 %v1635_v4, %v1615_v31  ;;  %v1838_v29 = vadd.f32 %v1776_v33, %v1650_v57  ;;  %v2070_v17 = vrot.slane %v2006_v59, 1  ;;  %v2075_v63 = vsel %vm462_vm1, %v2073_v50, %v2074_v12 }
 0x16e   :  { %v1926_v52 = vrot.slane %v1861_v24, 1  ;;  %v2071_v56 = vrot.slane %v2007_v35, 1  ;;  %v2157_v10 = vmul.f32 %v5411_v48, %v1687_v7  ;;  %v2221_v14 = vrot.slane %v2156_v60, 2 }
 0x16f   :  { %v1839_v45 = vadd.f32 %v1779_v23, %v1651_v26  ;;  %v1986_v5 = vadd.f32 %v1924_v11, %v1838_v29  ;;  %v2303_v32 = vmul.f32 %v5464_v34, %v1687_v7  ;;  %v2304_v27 = vmul.f32 %v5464_v34, %v5517_v62  ;;  %v5555_v23 = vld [vmem:[#allocation2 + $0x40] sm:$0xff] }
 0x170   :  { %v1927_v21 = vsel %vm462_vm1, %v1925_v51, %v1926_v52  ;;  %v2072_v4 = vsel %vm462_vm1, %v2070_v17, %v2071_v56  ;;  %v2222_v33 = vrot.slane %v2157_v10, 2  ;;  %v2305_v50 = vmul.f32 %v5464_v34, %v5531_v37 }
 0x171   :  { %v1987_v38 = vadd.f32 %v1927_v21, %v1839_v45  ;;  %v2134_v1 = vadd.f32 %v2072_v4, %v1986_v5  ;;  %v2366_v59 = vrot.slane %v2302_v16, 2  ;;  %v2367_v12 = vrot.slane %v2303_v32, 2  ;;  %v1540_v21 = vld [vmem:[#allocation2 + $0x48] sm:$0x3] }
 0x172   :  { %v2223_v60 = vsel %vm907_vm2, %v2221_v14, %v2222_v33  ;;  %v2369_v29 = vrot.slane %v2304_v27, 2  ;;  %v2370_v11 = vrot.slane %v2305_v50, 2  ;;  %v2450_v7 = vmul.f32 %v5436_v8, %v5517_v62 }
 0x173   :  { %v2135_v31 = vadd.f32 %v2075_v63, %v1987_v38  ;;  %v2282_v57 = vadd.f32 %v5475_v22, %v2134_v1  ;;  %v2368_v17 = vsel %vm907_vm2, %v2366_v59, %v2367_v12  ;;  %v2451_v51 = vmul.f32 %v5436_v8, %v5531_v37 }
 0x174   :  { %v2371_v16 = vsel %vm907_vm2, %v2369_v29, %v2370_v11  ;;  %v2453_v24 = vmul.f32 %v5436_v8, %v5507_v42  ;;  %v2514_v35 = vrot.slane %v2450_v7, 2  ;;  %v2517_v26 = vrot.slane %v5486_v39, 2 }
 0x175   :  { %v2283_v52 = vadd.f32 %v2223_v60, %v2135_v31  ;;  %v2430_v56 = vadd.f32 %v2368_v17, %v2282_v57  ;;  %v2515_v63 = vrot.slane %v2451_v51, 2  ;;  %v1580_v22 = vmul.f32 %v5426_v30, %v5517_v62 }
 0x176   :  { %v2518_v10 = vrot.slane %v2453_v24, 2  ;;  %v1601_v14 = vmul.f32 %v5443_v40, %v5555_v23  ;;  %v1636_v45 = vmul.f32 %v5433_v28, %v5555_v23  ;;  %v1670_v5 = vrot.slane %v5555_v23, 6 }
 0x177   :  { %v2431_v32 = vadd.f32 %v2371_v16, %v2283_v52  ;;  %v2516_v27 = vsel %vm907_vm2, %v2514_v35, %v2515_v63  ;;  %v1616_v39 = vadd.f32 %v5494_v47, %v1580_v22  ;;  %v1714_v4 = vmul.f32 %v5402_v44, %v5517_v62 }
 0x178   :  { %v2519_v33 = vsel %vm907_vm2, %v2517_v26, %v2518_v10  ;;  %v2578_v50 = vadd.f32 %v2516_v27, %v2430_v56  ;;  %v5574_v38 = vadd.f32 %v1601_v14, %v5490_v58  ;;  %v5577_v1 = vsel %vm353_vm0, %v1670_v5, %v1540_v21 }
 0x179   :  { %v2579_v59 = vadd.f32 %v2519_v33, %v2431_v32  ;;  %v1652_v12 = vadd.f32 %v1636_v45, %v1616_v39  ;;  %v1715_v60 = vmul.f32 %v5402_v44, %v5531_v37  ;;  %v1717_v47 = vmul.f32 %v5402_v44, %v5507_v42 }
 0x17a   :  { %v1780_v29 = vrot.slane %v1714_v4, 1  ;;  %v1783_v11 = vrot.slane %v5498_v0, 1  ;;  %v1863_v7 = vmul.f32 %v5446_v18, %v5507_v42  ;;  %v1864_v58 = vmul.f32 %v5446_v18, %v5555_v23 }
 0x17b   :  { %v2594_v31 = vpack.c.bf16 %v2579_v59, %v2578_v50  ;;  %v1781_v57 = vrot.slane %v1715_v60, 1  ;;  %v1784_v17 = vrot.slane %v1717_v47, 1  ;;  %v1865_v51 = vmul.f32 %v5446_v18, %v5577_v1 }
 0x17c   :  { %v1928_v16 = vrot.slane %v5502_v41, 1  ;;  %v1929_v24 = vrot.slane %v1863_v7, 1  ;;  %v1931_v35 = vrot.slane %v1864_v58, 1  ;;  %v2010_v26 = vmul.f32 %v5429_v54, %v5555_v23 }
 0x17d   :  { %4313 = vmatprep.mubr.bf16.mxu1 %v2594_v31  ;;  %v1782_v0 = vsel %vm462_vm1, %v1780_v29, %v1781_v57  ;;  %v5595_v52 = vsel %vm462_vm1, %v1783_v11, %v1784_v17  ;;  %v1932_v56 = vrot.slane %v1865_v51, 1  ;;  %v2011_v63 = vmul.f32 %v5429_v54, %v5577_v1 }
 0x17e   :  { %v4287_v22 = vpop.f32.mrf.mxu0  ;;  %v1840_v10 = vadd.f32 %v1782_v0, %v1652_v12  ;;  %v1930_v14 = vsel %vm462_vm1, %v1928_v16, %v1929_v24  ;;  %v2076_v41 = vrot.slane %v2010_v26, 1  ;;  %v2158_v45 = vmul.f32 %v5411_v48, %v5517_v62 }
 0x17f   :  { %v1466_v5 = vmul.f32 %v4287_v22, %v5391_v20  ;;  %v5604_v32 = vsel %vm462_vm1, %v1931_v35, %v1932_v56  ;;  %v2077_v27 = vrot.slane %v2011_v63, 1  ;;  %v2159_v21 = vmul.f32 %v5411_v48, %v5531_v37 }
 0x180   :  { %v1406_v39 = vpop.f32.mrf.mxu0  ;;  %v1988_v4 = vadd.f32 %v1930_v14, %v1840_v10  ;;  %v2160_v33 = vmul.f32 %v5411_v48, %v5470_v46  ;;  %v2161_v50 = vmul.f32 %v5411_v48, %v5507_v42  ;;  %v2224_v59 = vrot.slane %v2158_v45, 2 }
 0x181   :  { %v1489_v62 = vadd.f32 %v5396_v3, %v1466_v5  ;;  %v1464_v12 = vmul.f32 %v5391_v20, %v1406_v39  ;;  %v2078_v60 = vsel %vm462_vm1, %v2076_v41, %v2077_v27  ;;  %v2225_v47 = vrot.slane %v2159_v21, 2 }
 0x182   :  { %v4288_v29 = vpop.f32.mrf.mxu0  ;;  %v2136_v11 = vadd.f32 %v2078_v60, %v1988_v4  ;;  %v2227_v7 = vrot.slane %v2160_v33, 2  ;;  %v2228_v37 = vrot.slane %v2161_v50, 2  ;;  %v2306_v58 = vmul.f32 %v5464_v34, %v5470_v46 }
 0x183   :  { %v1505_v31 = vmax.f32 %v1489_v62, 0.0  ;;  %v1487_v57 = vadd.f32 %v5396_v3, %v1464_v12  ;;  %v1467_v17 = vmul.f32 %v4288_v29, %v5391_v20  ;;  %v2226_v51 = vsel %vm907_vm2, %v2224_v59, %v2225_v47 }
 0x184   :  { %v1409_v16 = vpop.f32.mrf.mxu0  ;;  %v5621_v24 = vsel %vm907_vm2, %v2227_v7, %v2228_v37  ;;  %v2284_v35 = vadd.f32 %v2226_v51, %v2136_v11  ;;  %v2307_v26 = vmul.f32 %v5464_v34, %v5507_v42  ;;  %v2308_v0 = vmul.f32 %v5464_v34, %v5555_v23 }
 0x185   :  { %1521 = vst [vmem:[#allocation2 + $0x71] sm:$0xff] %v1505_v31  ;;  %v1503_v46 = vmax.f32 %v1487_v57, 0.0  ;;  %v1490_v56 = vadd.f32 %v5396_v3, %v1467_v17  ;;  %v1465_v63 = vmul.f32 %v5391_v20, %v1409_v16  ;;  %v2309_v22 = vmul.f32 %v5464_v34, %v5577_v1 }
 0x186   :  { %v2372_v10 = vrot.slane %v2306_v58, 2  ;;  %v2373_v14 = vrot.slane %v2307_v26, 2  ;;  %v2375_v41 = vrot.slane %v2308_v0, 2  ;;  %v2454_v45 = vmul.f32 %v5436_v8, %v5555_v23 }
 0x187   :  { %1519 = vst [vmem:[#allocation2 + $0x51] sm:$0xff] %v1503_v46  ;;  %v1506_v42 = vmax.f32 %v1490_v56, 0.0  ;;  %v1488_v5 = vadd.f32 %v5396_v3, %v1465_v63  ;;  %v2376_v27 = vrot.slane %v2309_v22, 2  ;;  %v2455_v21 = vmul.f32 %v5436_v8, %v5577_v1 }
 0x188   :  { %v2374_v39 = vsel %vm907_vm2, %v2372_v10, %v2373_v14  ;;  %v2520_v4 = vrot.slane %v2454_v45, 2  ;;  %v1582_v33 = vmul.f32 %v5426_v30, %v5555_v23  ;;  %v1718_v50 = vmul.f32 %v5402_v44, %v5555_v23 }
 0x189   :  { %1522 = vst [vmem:[#allocation2 + $0x81] sm:$0xff] %v1506_v42  ;;  %v1504_v59 = vmax.f32 %v1488_v5, 0.0  ;;  %v5642_v62 = vsel %vm907_vm2, %v2375_v41, %v2376_v27  ;;  %v2432_v12 = vadd.f32 %v2374_v39, %v2284_v35  ;;  %v2521_v60 = vrot.slane %v2455_v21, 2 }
 0x18a   :  { %v1719_v47 = vmul.f32 %v5402_v44, %v5577_v1  ;;  %v1786_v29 = vrot.slane %v1718_v50, 1  ;;  %v2162_v11 = vmul.f32 %v5411_v48, %v5555_v23  ;;  %v2163_v7 = vmul.f32 %v5411_v48, %v5577_v1 }
 0x18b   :  { %1520 = vst [vmem:[#allocation2 + $0x61] sm:$0xff] %v1504_v59  ;;  %v2522_v37 = vsel %vm907_vm2, %v2520_v4, %v2521_v60  ;;  %v7090_v58 = vrot.slane %v5450_v25, 1  ;;  %v5660_v57 = vmul.f32 %v5318_v49, %v5436_v8  ;;  %v5664_v23 = vmul.f32 %v5436_v8, %v5440_v36 }
 0x18c   :  { %v5666_v17 = vadd.f32 %v2522_v37, %v2432_v12  ;;  %v5668_v1 = vld [vmem:[#allocation2 + $0x70] sm:$0xff]  ;;  %v1787_v51 = vrot.slane %v1719_v47, 1  ;;  %v2230_v16 = vrot.slane %v2162_v11, 2  ;;  %v2231_v55 = vrot.slane %v2163_v7, 2  ;;  %v1546_v45 = vld [vmem:[#allocation2 + $0x78] sm:$0x3] }
 0x18d   :  { %v5656_v31 = vsel %vm462_vm1, %v7090_v58, %v2092_v53  ;;  %v1639_v35 = vmul.f32 %v5433_v28, %v5668_v1  ;;  %v1673_v53 = vrot.slane %v5668_v1, 6  ;;  %v5675_v49 = vmul.f32 %v5429_v54, %v5668_v1 }
 0x18e   :  { %v5679_v36 = vmul.f32 %v5436_v8, %v5668_v1  ;;  %v5681_v26 = vld [vmem:[#allocation2 + $0x50] sm:$0xff]  ;;  %v1788_v0 = vsel %vm462_vm1, %v1786_v29, %v1787_v51  ;;  %v5685_v46 = vsel %vm907_vm2, %v2230_v16, %v2231_v55  ;;  %v5689_v56 = vmul.f32 %v5426_v30, %v5668_v1  ;;  %v1542_v42 = vld [vmem:[#allocation2 + $0x58] sm:$0x3] }
 0x18f   :  { %v5693_v63 = vmul.f32 %v5443_v40, %v5668_v1  ;;  %v1637_v22 = vmul.f32 %v5433_v28, %v5681_v26  ;;  %v1671_v10 = vrot.slane %v5681_v26, 6  ;;  %v2012_v14 = vmul.f32 %v5429_v54, %v5681_v26 }
 0x190   :  { %v2456_v41 = vmul.f32 %v5436_v8, %v5681_v26  ;;  %v1583_v5 = vmul.f32 %v5426_v30, %v5681_v26  ;;  %v1602_v27 = vmul.f32 %v5443_v40, %v5681_v26  ;;  %v5707_v21 = vsel %vm353_vm0, %v1673_v53, %v1546_v45 }
 0x191   :  { %v1720_v39 = vmul.f32 %v5402_v44, %v5681_v26  ;;  %v1653_v4 = vadd.f32 %v1637_v22, %v5574_v38  ;;  %v1691_v50 = vsel %vm353_vm0, %v1671_v10, %v1542_v42  ;;  %v2079_v59 = vrot.slane %v2012_v14, 1 }
 0x192   :  { %v2523_v12 = vrot.slane %v2456_v41, 2  ;;  %v2013_v60 = vmul.f32 %v5429_v54, %v1691_v50  ;;  %v2457_v47 = vmul.f32 %v5436_v8, %v1691_v50  ;;  %v5715_v29 = vld [vmem:[#allocation2 + $0x60] sm:$0xff]  ;;  %v1618_v11 = vadd.f32 %v1602_v27, %v1582_v33  ;;  %v1544_v53 = vld [vmem:[#allocation2 + $0x68] sm:$0x3] }
 0x193   :  { %v1721_v7 = vmul.f32 %v5402_v44, %v1691_v50  ;;  %v1841_v37 = vadd.f32 %v5595_v52, %v1653_v4  ;;  %v1603_v58 = vmul.f32 %v5443_v40, %v5715_v29  ;;  %v1638_v38 = vmul.f32 %v5433_v28, %v5715_v29 }
 0x194   :  { %v1672_v51 = vrot.slane %v5715_v29, 6  ;;  %v2080_v16 = vrot.slane %v2013_v60, 1  ;;  %v2524_v55 = vrot.slane %v2457_v47, 2  ;;  %v1789_v22 = vrot.slane %v1720_v39, 1 }
 0x195   :  { %v1790_v10 = vrot.slane %v1721_v7, 1  ;;  %v1989_v14 = vadd.f32 %v5604_v32, %v1841_v37  ;;  %v1619_v33 = vadd.f32 %v1603_v58, %v1583_v5  ;;  %v1654_v41 = vadd.f32 %v1638_v38, %v1618_v11 }
 0x196   :  { %v5726_v45 = vsel %vm353_vm0, %v1672_v51, %v1544_v53  ;;  %v2081_v52 = vsel %vm462_vm1, %v2079_v59, %v2080_v16  ;;  %v2525_v42 = vsel %vm907_vm2, %v2523_v12, %v2524_v55  ;;  %v1866_v4 = vmul.f32 %v5446_v18, %v5681_v26 }
 0x197   :  { %v1791_v27 = vsel %vm462_vm1, %v1789_v22, %v1790_v10  ;;  %v2137_v60 = vadd.f32 %v2081_v52, %v1989_v14  ;;  %v1655_v47 = vadd.f32 %v1639_v35, %v1619_v33  ;;  %v1842_v39 = vadd.f32 %v1788_v0, %v1654_v41 }
 0x198   :  { %v1867_v7 = vmul.f32 %v5446_v18, %v1691_v50  ;;  %v1868_v32 = vmul.f32 %v5446_v18, %v5715_v29  ;;  %v1869_v5 = vmul.f32 %v5446_v18, %v5726_v45  ;;  %v1934_v11 = vrot.slane %v1866_v4, 1 }
 0x199   :  { %v2014_v59 = vmul.f32 %v5429_v54, %v5715_v29  ;;  %v2285_v12 = vadd.f32 %v5621_v24, %v2137_v60  ;;  %v1843_v37 = vadd.f32 %v1791_v27, %v1655_v47  ;;  %v2015_v35 = vmul.f32 %v5429_v54, %v5726_v45 }
 0x19a   :  { %v1935_v58 = vrot.slane %v1867_v7, 1  ;;  %v1937_v0 = vrot.slane %v1868_v32, 1  ;;  %v1938_v38 = vrot.slane %v1869_v5, 1  ;;  %v2017_v51 = vmul.f32 %v5429_v54, %v5707_v21 }
 0x19b   :  { %v2082_v16 = vrot.slane %v2014_v59, 1  ;;  %v2433_v55 = vadd.f32 %v5642_v62, %v2285_v12  ;;  %v2083_v22 = vrot.slane %v2015_v35, 1  ;;  %v2085_v10 = vrot.slane %v5675_v49, 1 }
 0x19c   :  { %v1936_v53 = vsel %vm462_vm1, %v1934_v11, %v1935_v58  ;;  %v1939_v24 = vsel %vm462_vm1, %v1937_v0, %v1938_v38  ;;  %v2086_v33 = vrot.slane %v2017_v51, 1  ;;  %v2164_v41 = vmul.f32 %v5411_v48, %v5681_v26  ;;  %v5770_v51 = vld [vmem:[#allocation2 + $0x80] sm:$0xff] }
 0x19d   :  { %v1990_v14 = vadd.f32 %v1936_v53, %v1842_v39  ;;  %v2581_v52 = vadd.f32 %v2525_v42, %v2433_v55  ;;  %v1991_v27 = vadd.f32 %v1939_v24, %v1843_v37  ;;  %v2084_v4 = vsel %vm462_vm1, %v2082_v16, %v2083_v22 }
 0x19e   :  { %v2165_v60 = vmul.f32 %v5411_v48, %v1691_v50  ;;  %v2087_v62 = vsel %vm462_vm1, %v2085_v10, %v2086_v33  ;;  %v2233_v7 = vrot.slane %v2164_v41, 2  ;;  %v2310_v49 = vmul.f32 %v5464_v34, %v5681_v26 }
 0x19f   :  { %v2138_v47 = vadd.f32 %v2084_v4, %v1990_v14  ;;  %v2595_v32 = vpack.c.bf16 %v2581_v52, %v5666_v17  ;;  %v2139_v39 = vadd.f32 %v2087_v62, %v1991_v27  ;;  %v2311_v11 = vmul.f32 %v5464_v34, %v1691_v50 }
 0x1a0   :  { %v2234_v5 = vrot.slane %v2165_v60, 2  ;;  %v2312_v59 = vmul.f32 %v5464_v34, %v5715_v29  ;;  %v2313_v12 = vmul.f32 %v5464_v34, %v5726_v45  ;;  %v2378_v37 = vrot.slane %v2310_v49, 2  ;;  %v1548_v49 = vld [vmem:[#allocation2 + $0x88] sm:$0x3] }
 0x1a1   :  { %v2286_v42 = vadd.f32 %v5685_v46, %v2138_v47  ;;  %4314 = vmatmul.mubr.bf16.vlgmr.msra.gmra.mxu1 %v2595_v32  ;;  %v2379_v35 = vrot.slane %v2311_v11, 2  ;;  %v2458_v17 = vmul.f32 %v5436_v8, %v5715_v29  ;;  %v2459_v26 = vmul.f32 %v5436_v8, %v5726_v45 }
 0x1a2   :  { %v2235_v58 = vsel %vm907_vm2, %v2233_v7, %v2234_v5  ;;  %v2381_v0 = vrot.slane %v2312_v59, 2  ;;  %v2382_v46 = vrot.slane %v2313_v12, 2  ;;  %v2461_v38 = vmul.f32 %v5436_v8, %v5707_v21 }
 0x1a3   :  { %v2287_v50 = vadd.f32 %v2235_v58, %v2139_v39  ;;  %v2380_v16 = vsel %vm907_vm2, %v2378_v37, %v2379_v35  ;;  %v2526_v55 = vrot.slane %v2458_v17, 2  ;;  %v2527_v53 = vrot.slane %v2459_v26, 2 }
 0x1a4   :  { %v2529_v22 = vrot.slane %v5679_v36, 2  ;;  %v2383_v10 = vsel %vm907_vm2, %v2381_v0, %v2382_v46  ;;  %v2434_v24 = vadd.f32 %v2380_v16, %v2286_v42  ;;  %v2530_v14 = vrot.slane %v2461_v38, 2 }
 0x1a5   :  { %v1584_v33 = vmul.f32 %v5426_v30, %v5715_v29  ;;  %v2435_v41 = vadd.f32 %v2383_v10, %v2287_v50  ;;  %v2528_v52 = vsel %vm907_vm2, %v2526_v55, %v2527_v53  ;;  %v1605_v27 = vmul.f32 %v5443_v40, %v5770_v51 }
 0x1a6   :  { %v1640_v4 = vmul.f32 %v5433_v28, %v5770_v51  ;;  %v2531_v60 = vsel %vm907_vm2, %v2529_v22, %v2530_v14  ;;  %v2582_v62 = vadd.f32 %v2528_v52, %v2434_v24  ;;  %v1674_v47 = vrot.slane %v5770_v51, 6 }
 0x1a7   :  { %v1620_v36 = vadd.f32 %v5693_v63, %v1584_v33  ;;  %v2583_v7 = vadd.f32 %v2531_v60, %v2435_v41  ;;  %v1621_v32 = vadd.f32 %v1605_v27, %v5689_v56  ;;  %v1722_v39 = vmul.f32 %v5402_v44, %v5715_v29 }
 0x1a8   :  { %v1723_v5 = vmul.f32 %v5402_v44, %v5726_v45  ;;  %v5791_v42 = vsel %vm353_vm0, %v1674_v47, %v1548_v49  ;;  %v1724_v59 = vmul.f32 %v5402_v44, %v5668_v1  ;;  %v1725_v63 = vmul.f32 %v5402_v44, %v5707_v21 }
 0x1a9   :  { %v1656_v11 = vadd.f32 %v1640_v4, %v1620_v36  ;;  %v2596_v12 = vpack.c.bf16 %v2583_v7, %v2582_v62  ;;  %v1657_v37 = vadd.f32 %v5468_v43, %v1621_v32  ;;  %v1792_v56 = vrot.slane %v1722_v39, 1 }
 0x1aa   :  { %v1793_v58 = vrot.slane %v1723_v5, 1  ;;  %v1795_v35 = vrot.slane %v1724_v59, 1  ;;  %v1796_v17 = vrot.slane %v1725_v63, 1  ;;  %v1870_v26 = vmul.f32 %v5446_v18, %v5668_v1 }
 0x1ab   :  { %v1871_v50 = vmul.f32 %v5446_v18, %v5707_v21  ;;  %v4291_v0 = vpop.f32.mrf.mxu0  ;;  %4317 = vmatprep.mubr.bf16.mxu1 %v2596_v12  ;;  %v1872_v38 = vmul.f32 %v5446_v18, %v5770_v51  ;;  %v1873_v16 = vmul.f32 %v5446_v18, %v5791_v42  ;;  %v2018_v55 = vmul.f32 %v5429_v54, %v5770_v51 }
 0x1ac   :  { %v1794_v46 = vsel %vm462_vm1, %v1792_v56, %v1793_v58  ;;  %v1470_v53 = vmul.f32 %v4291_v0, %v5391_v20  ;;  %v1797_v22 = vsel %vm462_vm1, %v1795_v35, %v1796_v17  ;;  %v1940_v24 = vrot.slane %v1870_v26, 1 }
 0x1ad   :  { %v1844_v10 = vadd.f32 %v1794_v46, %v1656_v11  ;;  %v1422_v14 = vpop.f32.mrf.mxu0  ;;  %v1845_v33 = vadd.f32 %v1797_v22, %v1657_v37  ;;  %v1941_v41 = vrot.slane %v1871_v50, 1  ;;  %v1943_v52 = vrot.slane %v1872_v38, 1 }
 0x1ae   :  { %v1944_v27 = vrot.slane %v1873_v16, 1  ;;  %v1493_v4 = vadd.f32 %v5396_v3, %v1470_v53  ;;  %v1468_v60 = vmul.f32 %v5391_v20, %v1422_v14  ;;  %v2019_v62 = vmul.f32 %v5429_v54, %v5791_v42 }
 0x1af   :  { %v2088_v36 = vrot.slane %v2018_v55, 1  ;;  %v4292_v47 = vpop.f32.mrf.mxu0  ;;  %v1942_v7 = vsel %vm462_vm1, %v1940_v24, %v1941_v41  ;;  %v2166_v32 = vmul.f32 %v5411_v48, %v5715_v29  ;;  %v2167_v39 = vmul.f32 %v5411_v48, %v5726_v45 }
 0x1b0   :  { %v1945_v49 = vsel %vm462_vm1, %v1943_v52, %v1944_v27  ;;  %v1509_v5 = vmax.f32 %v1493_v4, 0.0  ;;  %v1491_v11 = vadd.f32 %v5396_v3, %v1468_v60  ;;  %v1471_v59 = vmul.f32 %v4292_v47, %v5391_v20  ;;  %v1552_v52 = vld [vmem:[#allocation2 + $0xa8] sm:$0x3]  ;;  %v1570_v27 = vld [vmem:[#allocation2 + $0x138] sm:$0x3] }
 0x1b1   :  { %v1992_v63 = vadd.f32 %v1942_v7, %v1844_v10  ;;  %v1425_v12 = vpop.f32.mrf.mxu0  ;;  %v1993_v37 = vadd.f32 %v1945_v49, %v1845_v33  ;;  %v2089_v56 = vrot.slane %v2019_v62, 1  ;;  %v2168_v58 = vmul.f32 %v5411_v48, %v5668_v1 }
 0x1b2   :  { %v2169_v35 = vmul.f32 %v5411_v48, %v5707_v21  ;;  %1525 = vst [vmem:[#allocation2 + $0xd1] sm:$0xff] %v1509_v5  ;;  %v1507_v29 = vmax.f32 %v1491_v11, 0.0  ;;  %v1494_v17 = vadd.f32 %v5396_v3, %v1471_v59  ;;  %v1469_v45 = vmul.f32 %v5391_v20, %v1425_v12 }
 0x1b3   :  { %v2236_v26 = vrot.slane %v2166_v32, 2  ;;  %v2090_v50 = vsel %vm462_vm1, %v2088_v36, %v2089_v56  ;;  %v2141_v0 = vadd.f32 %v5656_v31, %v1993_v37  ;;  %v2237_v46 = vrot.slane %v2167_v39, 2 }
 0x1b4   :  { %v2239_v38 = vrot.slane %v2168_v58, 2  ;;  %1523 = vst [vmem:[#allocation2 + $0xb1] sm:$0xff] %v1507_v29  ;;  %v1510_v16 = vmax.f32 %v1494_v17, 0.0  ;;  %v1492_v55 = vadd.f32 %v5396_v3, %v1469_v45  ;;  %v2140_v53 = vadd.f32 %v2090_v50, %v1992_v63 }
 0x1b5   :  { %v2240_v22 = vrot.slane %v2169_v35, 2  ;;  %v2238_v10 = vsel %vm907_vm2, %v2236_v26, %v2237_v46  ;;  %v2314_v24 = vmul.f32 %v5464_v34, %v5668_v1  ;;  %v2315_v20 = vmul.f32 %v5464_v34, %v5707_v21 }
 0x1b6   :  { %v2316_v14 = vmul.f32 %v5464_v34, %v5770_v51  ;;  %1526 = vst [vmem:[#allocation2 + $0xe1] sm:$0xff] %v1510_v16  ;;  %v1508_v31 = vmax.f32 %v1492_v55, 0.0  ;;  %v2288_v41 = vadd.f32 %v2238_v10, %v2140_v53  ;;  %v2317_v3 = vmul.f32 %v5464_v34, %v5791_v42 }
 0x1b7   :  { %v2241_v33 = vsel %vm907_vm2, %v2239_v38, %v2240_v22  ;;  %v2384_v60 = vrot.slane %v2314_v24, 2  ;;  %v2385_v62 = vrot.slane %v2315_v20, 2  ;;  %v2462_v21 = vmul.f32 %v5436_v8, %v5770_v51 }
 0x1b8   :  { %v2289_v4 = vadd.f32 %v2241_v33, %v2141_v0  ;;  %v2387_v1 = vrot.slane %v2316_v14, 2  ;;  %1524 = vst [vmem:[#allocation2 + $0xc1] sm:$0xff] %v1508_v31  ;;  %v2388_v36 = vrot.slane %v2317_v3, 2  ;;  %v2463_v47 = vmul.f32 %v5436_v8, %v5791_v42 }
 0x1b9   :  { %v2535_v7 = vrot.slane %v5660_v57, 2  ;;  %v2386_v49 = vsel %vm907_vm2, %v2384_v60, %v2385_v62  ;;  %v2536_v32 = vrot.slane %v5664_v23, 2  ;;  %v5849_v39 = vld [vmem:[#allocation2 + $0xd0] sm:$0xff]  ;;  %v1696_v5 = vsel %vm353_vm0, %v5321_v61, %v1552_v52  ;;  %v1558_v29 = vld [vmem:[#allocation2 + $0xd8] sm:$0x3] }
 0x1ba   :  { %v5855_v11 = vsel %vm353_vm0, %v5321_v61, %v1570_v27  ;;  %v2389_v51 = vsel %vm907_vm2, %v2387_v1, %v2388_v36  ;;  %v2436_v59 = vadd.f32 %v2386_v49, %v2288_v41  ;;  %v2532_v63 = vrot.slane %v2462_v21, 2  ;;  %v6227_v57 = vld [vmem:[%s7078_s7] ss:$0 sm:$0xff] }
 0x1bb   :  { %v2533_v42 = vrot.slane %v2463_v47, 2  ;;  %v2437_v12 = vadd.f32 %v2389_v51, %v2289_v4  ;;  %v2537_v37 = vsel %vm907_vm2, %v2535_v7, %v2536_v32  ;;  %v5861_v23 = vld [vmem:[#allocation2 + $0xb0] sm:$0xff]  ;;  %v1643_v56 = vmul.f32 %v5433_v28, %v5849_v39  ;;  %v1554_v46 = vld [vmem:[#allocation2 + $0xb8] sm:$0x3] }
 0x1bc   :  { %v1679_v58 = vrot.slane %v5849_v39, 6  ;;  %v1587_v17 = vmul.f32 %v5426_v30, %v5861_v23  ;;  %v1606_v45 = vmul.f32 %v5443_v40, %v5861_v23  ;;  %v1677_v26 = vrot.slane %v5861_v23, 6 }
 0x1bd   :  { %v2534_v35 = vsel %vm907_vm2, %v2532_v63, %v2533_v42  ;;  %v2585_v0 = vadd.f32 %v2537_v37, %v2437_v12  ;;  %v1727_v16 = vmul.f32 %v5402_v44, %v1696_v5  ;;  %v1728_v22 = vmul.f32 %v5402_v44, %v5861_v23 }
 0x1be   :  { %v2584_v50 = vadd.f32 %v2534_v35, %v2436_v59  ;;  %v5873_v38 = vsel %vm353_vm0, %v1679_v58, %v1558_v29  ;;  %v1622_v55 = vadd.f32 %v1606_v45, %v5458_v15  ;;  %v1697_v53 = vsel %vm353_vm0, %v1677_v26, %v1554_v46 }
 0x1bf   :  { %v1874_v10 = vmul.f32 %v5446_v18, %v5861_v23  ;;  %v5882_v20 = vld [vmem:[#allocation2 + $0xc0] sm:$0xff]  ;;  %v1729_v14 = vmul.f32 %v5402_v44, %v1697_v53  ;;  %v1799_v31 = vrot.slane %v1727_v16, 1  ;;  %v1875_v33 = vmul.f32 %v5446_v18, %v1697_v53  ;;  %v1556_v27 = vld [vmem:[#allocation2 + $0xc8] sm:$0x3] }
 0x1c0   :  { %v2597_v24 = vpack.c.bf16 %v2585_v0, %v2584_v50  ;;  %v1607_v41 = vmul.f32 %v5443_v40, %v5882_v20  ;;  %v1642_v15 = vmul.f32 %v5433_v28, %v5882_v20  ;;  %v1678_v3 = vrot.slane %v5882_v20, 6 }
 0x1c1   :  { %v1801_v52 = vrot.slane %v1728_v22, 1  ;;  %v7091_v4 = vrot.slane %v5408_v19, 1  ;;  %v1802_v62 = vrot.slane %v1729_v14, 1  ;;  %v1876_v1 = vmul.f32 %v5446_v18, %v5882_v20 }
 0x1c2   :  { %4318 = vmatmul.mubr.bf16.gmra.mxu1 %v2597_v24  ;;  %v1946_v36 = vrot.slane %v1874_v10, 1  ;;  %v1623_v21 = vadd.f32 %v1607_v41, %v1587_v17  ;;  %v1658_v47 = vadd.f32 %v1642_v15, %v1622_v55  ;;  %v5897_v49 = vsel %vm353_vm0, %v1678_v3, %v1556_v27 }
 0x1c3   :  { %v1800_v60 = vsel %vm462_vm1, %v7091_v4, %v1799_v31  ;;  %v1947_v32 = vrot.slane %v1875_v33, 1  ;;  %v1803_v51 = vsel %vm462_vm1, %v1801_v52, %v1802_v62  ;;  %v1877_v59 = vmul.f32 %v5446_v18, %v5897_v49 }
 0x1c4   :  { %v1949_v63 = vrot.slane %v1876_v1, 1  ;;  %v2022_v19 = vmul.f32 %v5429_v54, %v5882_v20  ;;  %v1659_v42 = vadd.f32 %v1643_v56, %v1623_v21  ;;  %v1846_v12 = vadd.f32 %v1800_v60, %v1658_v47 }
 0x1c5   :  { %v1948_v37 = vsel %vm462_vm1, %v1946_v36, %v1947_v32  ;;  %v2023_v58 = vmul.f32 %v5429_v54, %v5897_v49  ;;  %v1950_v35 = vrot.slane %v1877_v59, 1  ;;  %v2024_v29 = vmul.f32 %v5429_v54, %v5849_v39 }
 0x1c6   :  { %v2025_v17 = vmul.f32 %v5429_v54, %v5873_v38  ;;  %v2094_v45 = vrot.slane %v2022_v19, 1  ;;  %v1847_v26 = vadd.f32 %v1803_v51, %v1659_v42  ;;  %v1994_v50 = vadd.f32 %v1948_v37, %v1846_v12 }
 0x1c7   :  { %v2095_v0 = vrot.slane %v2023_v58, 1  ;;  %v2171_v46 = vmul.f32 %v5411_v48, %v1696_v5  ;;  %v1951_v56 = vsel %vm462_vm1, %v1949_v63, %v1950_v35  ;;  %v2097_v16 = vrot.slane %v2024_v29, 1  ;;  %v5938_v58 = vld [vmem:[#allocation2 + $0xe0] sm:$0xff] }
 0x1c8   :  { %v2098_v55 = vrot.slane %v2025_v17, 1  ;;  %v2172_v22 = vmul.f32 %v5411_v48, %v5861_v23  ;;  %v1995_v10 = vadd.f32 %v1951_v56, %v1847_v26  ;;  %v2173_v14 = vmul.f32 %v5411_v48, %v1697_v53 }
 0x1c9   :  { %v2096_v24 = vsel %vm462_vm1, %v2094_v45, %v2095_v0  ;;  %v2243_v31 = vrot.slane %v2171_v46, 2  ;;  %v2318_v5 = vmul.f32 %v5464_v34, %v5861_v23  ;;  %v7092_v52 = vrot.slane %v5418_v2, 2 }
 0x1ca   :  { %v2099_v33 = vsel %vm462_vm1, %v2097_v16, %v2098_v55  ;;  %v2142_v41 = vadd.f32 %v2096_v24, %v1994_v50  ;;  %v2245_v15 = vrot.slane %v2172_v22, 2  ;;  %v2246_v4 = vrot.slane %v2173_v14, 2 }
 0x1cb   :  { %v2143_v3 = vadd.f32 %v2099_v33, %v1995_v10  ;;  %v2244_v27 = vsel %vm907_vm2, %v7092_v52, %v2243_v31  ;;  %v2319_v60 = vmul.f32 %v5464_v34, %v1697_v53  ;;  %v2320_v1 = vmul.f32 %v5464_v34, %v5882_v20 }
 0x1cc   :  { %v2290_v62 = vadd.f32 %v2244_v27, %v2142_v41  ;;  %v2321_v36 = vmul.f32 %v5464_v34, %v5897_v49  ;;  %v2390_v21 = vrot.slane %v2318_v5, 2  ;;  %v2247_v47 = vsel %vm907_vm2, %v2245_v15, %v2246_v4  ;;  %v1560_v41 = vld [vmem:[#allocation2 + $0xe8] sm:$0x3] }
 0x1cd   :  { %v2391_v32 = vrot.slane %v2319_v60, 2  ;;  %v2466_v23 = vmul.f32 %v5436_v8, %v5882_v20  ;;  %v2467_v2 = vmul.f32 %v5436_v8, %v5897_v49  ;;  %v2291_v51 = vadd.f32 %v2247_v47, %v2143_v3 }
 0x1ce   :  { %v2393_v59 = vrot.slane %v2320_v1, 2  ;;  %v2394_v53 = vrot.slane %v2321_v36, 2  ;;  %v2468_v63 = vmul.f32 %v5436_v8, %v5849_v39  ;;  %v2469_v42 = vmul.f32 %v5436_v8, %v5873_v38 }
 0x1cf   :  { %v2392_v19 = vsel %vm907_vm2, %v2390_v21, %v2391_v32  ;;  %v2538_v12 = vrot.slane %v2466_v23, 2  ;;  %v2539_v37 = vrot.slane %v2467_v2, 2  ;;  %v1588_v45 = vmul.f32 %v5426_v30, %v5882_v20 }
 0x1d0   :  { %v2395_v35 = vsel %vm907_vm2, %v2393_v59, %v2394_v53  ;;  %v2438_v29 = vadd.f32 %v2392_v19, %v2290_v62  ;;  %v2541_v17 = vrot.slane %v2468_v63, 2  ;;  %v2542_v0 = vrot.slane %v2469_v42, 2 }
 0x1d1   :  { %v2439_v26 = vadd.f32 %v2395_v35, %v2291_v51  ;;  %v2540_v50 = vsel %vm907_vm2, %v2538_v12, %v2539_v37  ;;  %v1589_v46 = vmul.f32 %v5426_v30, %v5849_v39  ;;  %v1608_v16 = vmul.f32 %v5443_v40, %v5849_v39 }
 0x1d2   :  { %v2586_v56 = vadd.f32 %v2540_v50, %v2438_v29  ;;  %v1609_v55 = vmul.f32 %v5443_v40, %v5938_v58  ;;  %v1644_v22 = vmul.f32 %v5433_v28, %v5938_v58  ;;  %v2543_v10 = vsel %vm907_vm2, %v2541_v17, %v2542_v0  ;;  %v4414_v29 = vld [vmem:[%s7074_s3] ss:$0 sm:$0xff] }
 0x1d3   :  { %v1680_v24 = vrot.slane %v5938_v58, 6  ;;  %v1730_v14 = vmul.f32 %v5402_v44, %v5882_v20  ;;  %v1731_v31 = vmul.f32 %v5402_v44, %v5897_v49  ;;  %v2587_v33 = vadd.f32 %v2543_v10, %v2439_v26 }
 0x1d4   :  { %v1624_v15 = vadd.f32 %v1608_v16, %v1588_v45  ;;  %v5958_v5 = vadd.f32 %v1609_v55, %v1589_v46  ;;  %v1732_v3 = vmul.f32 %v5402_v44, %v5849_v39  ;;  %v1733_v27 = vmul.f32 %v5402_v44, %v5873_v38 }
 0x1d5   :  { %v5963_v52 = vsel %vm353_vm0, %v1680_v24, %v1560_v41  ;;  %v1804_v4 = vrot.slane %v1730_v14, 1  ;;  %v1805_v60 = vrot.slane %v1731_v31, 1  ;;  %v2598_v62 = vpack.c.bf16 %v2587_v33, %v2586_v56 }
 0x1d6   :  { %v1660_v1 = vadd.f32 %v1644_v22, %v1624_v15  ;;  %v1807_v36 = vrot.slane %v1732_v3, 1  ;;  %v1878_v21 = vmul.f32 %v5446_v18, %v5849_v39  ;;  %v1808_v32 = vrot.slane %v1733_v27, 1  ;;  %v4415_v22 = vld [vmem:[%s7075_s4] ss:$0 sm:$0xff] }
 0x1d7   :  { %v1806_v47 = vsel %vm462_vm1, %v1804_v4, %v1805_v60  ;;  %v1879_v23 = vmul.f32 %v5446_v18, %v5873_v38  ;;  %v1880_v2 = vmul.f32 %v5446_v18, %v5938_v58  ;;  %4321 = vmatprep.mubr.bf16.mxu1 %v2598_v62  ;;  %v1881_v59 = vmul.f32 %v5446_v18, %v5963_v52 }
 0x1d8   :  { %v1848_v51 = vadd.f32 %v1806_v47, %v1660_v1  ;;  %v1952_v53 = vrot.slane %v1878_v21, 1  ;;  %v2026_v63 = vmul.f32 %v5429_v54, %v5938_v58  ;;  %v4295_v19 = vpop.f32.mrf.mxu0  ;;  %v5979_v42 = vsel %vm462_vm1, %v1807_v36, %v1808_v32 }
 0x1d9   :  { %v1953_v12 = vrot.slane %v1879_v23, 1  ;;  %v1955_v37 = vrot.slane %v1880_v2, 1  ;;  %v2027_v35 = vmul.f32 %v5429_v54, %v5963_v52  ;;  %v1474_v17 = vmul.f32 %v4414_v29, %v4295_v19 }
 0x1da   :  { %v1956_v45 = vrot.slane %v1881_v59, 1  ;;  %v2100_v26 = vrot.slane %v2026_v63, 1  ;;  %v2174_v50 = vmul.f32 %v5411_v48, %v5882_v20  ;;  %v1438_v0 = vpop.f32.mrf.mxu0  ;;  %v2175_v16 = vmul.f32 %v5411_v48, %v5897_v49 }
 0x1db   :  { %v1954_v46 = vsel %vm462_vm1, %v1952_v53, %v1953_v12  ;;  %v2101_v56 = vrot.slane %v2027_v35, 1  ;;  %v2176_v55 = vmul.f32 %v5411_v48, %v5849_v39  ;;  %v1497_v10 = vadd.f32 %v4415_v22, %v1474_v17 }
 0x1dc   :  { %v1472_v24 = vmul.f32 %v4414_v29, %v1438_v0  ;;  %v5997_v14 = vsel %vm462_vm1, %v1955_v37, %v1956_v45  ;;  %v1996_v20 = vadd.f32 %v1954_v46, %v1848_v51  ;;  %v4296_v31 = vpop.f32.mrf.mxu0  ;;  %v2177_v41 = vmul.f32 %v5411_v48, %v5873_v38 }
 0x1dd   :  { %v2102_v33 = vsel %vm462_vm1, %v2100_v26, %v2101_v56  ;;  %v2248_v49 = vrot.slane %v2174_v50, 2  ;;  %v2249_v15 = vrot.slane %v2175_v16, 2  ;;  %v1513_v3 = vmax.f32 %v1497_v10, 0.0 }
 0x1de   :  { %v1495_v27 = vadd.f32 %v4415_v22, %v1472_v24  ;;  %v1475_v4 = vmul.f32 %v4414_v29, %v4296_v31  ;;  %v2144_v60 = vadd.f32 %v2102_v33, %v1996_v20  ;;  %v1441_v62 = vpop.f32.mrf.mxu0  ;;  %v2251_v36 = vrot.slane %v2176_v55, 2 }
 0x1df   :  { %v2250_v1 = vsel %vm907_vm2, %v2248_v49, %v2249_v15  ;;  %v2252_v21 = vrot.slane %v2177_v41, 2  ;;  %v2322_v47 = vmul.f32 %v5464_v34, %v5849_v39  ;;  %1529 = vst [vmem:[#allocation2 + $0x111] sm:$0xff] %v1513_v3  ;;  %v1473_v2 = vmul.f32 %v4414_v29, %v1441_v62 }
 0x1e0   :  { %v1511_v32 = vmax.f32 %v1495_v27, 0.0  ;;  %v1498_v23 = vadd.f32 %v4415_v22, %v1475_v4  ;;  %v2292_v51 = vadd.f32 %v2250_v1, %v2144_v60  ;;  %v2323_v53 = vmul.f32 %v5464_v34, %v5873_v38 }
 0x1e1   :  { %v6006_v59 = vsel %vm907_vm2, %v2251_v36, %v2252_v21  ;;  %v2324_v63 = vmul.f32 %v5464_v34, %v5938_v58  ;;  %v2325_v19 = vmul.f32 %v5464_v34, %v5963_v52  ;;  %v1496_v39 = vadd.f32 %v4415_v22, %v1473_v2 }
 0x1e2   :  { %1527 = vst [vmem:[#allocation2 + $0xf1] sm:$0xff] %v1511_v32  ;;  %v1514_v12 = vmax.f32 %v1498_v23, 0.0  ;;  %v2396_v37 = vrot.slane %v2322_v47, 2  ;;  %v2470_v35 = vmul.f32 %v5436_v8, %v5938_v58  ;;  %v2397_v29 = vrot.slane %v2323_v53, 2 }
 0x1e3   :  { %v2399_v17 = vrot.slane %v2324_v63, 2  ;;  %v2400_v45 = vrot.slane %v2325_v19, 2  ;;  %v2471_v26 = vmul.f32 %v5436_v8, %v5963_v52  ;;  %v1512_v38 = vmax.f32 %v1496_v39, 0.0 }
 0x1e4   :  { %1530 = vst [vmem:[#allocation2 + $0x121] sm:$0xff] %v1514_v12  ;;  %v2544_v50 = vrot.slane %v2470_v35, 2  ;;  %v1590_v0 = vmul.f32 %v5426_v30, %v5938_v58  ;;  %v1734_v46 = vmul.f32 %v5402_v44, %v5938_v58  ;;  %v2398_v56 = vsel %vm907_vm2, %v2396_v37, %v2397_v29 }
 0x1e5   :  { %v6024_v16 = vsel %vm907_vm2, %v2399_v17, %v2400_v45  ;;  %v2545_v55 = vrot.slane %v2471_v26, 2  ;;  %v1735_v22 = vmul.f32 %v5402_v44, %v5963_v52  ;;  %1528 = vst [vmem:[#allocation2 + $0x101] sm:$0xff] %v1512_v38  ;;  %v2440_v10 = vadd.f32 %v2398_v56, %v2292_v51 }
 0x1e6   :  { %v1810_v24 = vrot.slane %v1734_v46, 1  ;;  %v6030_v20 = vmul.f32 %v5411_v48, %v5938_v58  ;;  %v6034_v31 = vmul.f32 %v5411_v48, %v5963_v52  ;;  %v6037_v41 = vld [vmem:[#allocation2 + $0x110] sm:$0xff]  ;;  %v6041_v15 = vmul.f32 %v5429_v54, %v5855_v11  ;;  %v1566_v2 = vld [vmem:[#allocation2 + $0x118] sm:$0x3] }
 0x1e7   :  { %v2546_v33 = vsel %vm907_vm2, %v2544_v50, %v2545_v55  ;;  %v1811_v49 = vrot.slane %v1735_v22, 1  ;;  %v6045_v3 = vmul.f32 %v5436_v8, %v5855_v11  ;;  %v1647_v58 = vmul.f32 %v5433_v28, %v6037_v41 }
 0x1e8   :  { %v6047_v27 = vadd.f32 %v2546_v33, %v2440_v10  ;;  %v1683_v52 = vrot.slane %v6037_v41, 6  ;;  %v6054_v4 = vmul.f32 %v5429_v54, %v6037_v41  ;;  %v2254_v1 = vrot.slane %v6030_v20, 2 }
 0x1e9   :  { %v6056_v60 = vld [vmem:[#allocation2 + $0xf0] sm:$0xff]  ;;  %v1812_v62 = vsel %vm462_vm1, %v1810_v24, %v1811_v49  ;;  %v2255_v11 = vrot.slane %v6034_v31, 2  ;;  %v6063_v36 = vmul.f32 %v5436_v8, %v6037_v41  ;;  %v1562_v51 = vld [vmem:[#allocation2 + $0xf8] sm:$0x3] }
 0x1ea   :  { %v1645_v21 = vmul.f32 %v5433_v28, %v6056_v60  ;;  %v1681_v47 = vrot.slane %v6056_v60, 6  ;;  %v2028_v32 = vmul.f32 %v5429_v54, %v6056_v60  ;;  %v2472_v23 = vmul.f32 %v5436_v8, %v6056_v60 }
 0x1eb   :  { %v1591_v53 = vmul.f32 %v5426_v30, %v6056_v60  ;;  %v1610_v63 = vmul.f32 %v5443_v40, %v6056_v60  ;;  %v6077_v19 = vsel %vm353_vm0, %v1683_v52, %v1566_v2  ;;  %v1736_v12 = vmul.f32 %v5402_v44, %v6056_v60 }
 0x1ec   :  { %v1661_v39 = vadd.f32 %v1645_v21, %v5958_v5  ;;  %v1701_v37 = vsel %vm353_vm0, %v1681_v47, %v1562_v51  ;;  %v2103_v35 = vrot.slane %v2028_v32, 1  ;;  %v2547_v29 = vrot.slane %v2472_v23, 2  ;;  %v6085_v26 = vld [vmem:[#allocation2 + $0x100] sm:$0xff]  ;;  %v1564_v24 = vld [vmem:[#allocation2 + $0x108] sm:$0x3] }
 0x1ed   :  { %v2029_v17 = vmul.f32 %v5429_v54, %v1701_v37  ;;  %v2473_v45 = vmul.f32 %v5436_v8, %v1701_v37  ;;  %v1626_v38 = vadd.f32 %v1610_v63, %v1590_v0  ;;  %v1737_v50 = vmul.f32 %v5402_v44, %v1701_v37 }
 0x1ee   :  { %v1849_v46 = vadd.f32 %v5979_v42, %v1661_v39  ;;  %v1611_v56 = vmul.f32 %v5443_v40, %v6085_v26  ;;  %v1646_v5 = vmul.f32 %v5433_v28, %v6085_v26  ;;  %v1682_v55 = vrot.slane %v6085_v26, 6 }
 0x1ef   :  { %v2104_v22 = vrot.slane %v2029_v17, 1  ;;  %v2548_v10 = vrot.slane %v2473_v45, 2  ;;  %v1813_v33 = vrot.slane %v1736_v12, 1  ;;  %v1814_v49 = vrot.slane %v1737_v50, 1 }
 0x1f0   :  { %v1997_v52 = vadd.f32 %v5997_v14, %v1849_v46  ;;  %v1627_v0 = vadd.f32 %v1611_v56, %v1591_v53  ;;  %v1662_v21 = vadd.f32 %v1646_v5, %v1626_v38  ;;  %v6096_v47 = vsel %vm353_vm0, %v1682_v55, %v1564_v24 }
 0x1f1   :  { %v2105_v42 = vsel %vm462_vm1, %v2103_v35, %v2104_v22  ;;  %v2549_v32 = vsel %vm907_vm2, %v2547_v29, %v2548_v10  ;;  %v1815_v23 = vsel %vm462_vm1, %v1813_v33, %v1814_v49  ;;  %v1882_v2 = vmul.f32 %v5446_v18, %v6056_v60 }
 0x1f2   :  { %v2145_v51 = vadd.f32 %v2105_v42, %v1997_v52  ;;  %v1663_v63 = vadd.f32 %v1647_v58, %v1627_v0  ;;  %v1850_v12 = vadd.f32 %v1812_v62, %v1662_v21  ;;  %v1883_v39 = vmul.f32 %v5446_v18, %v1701_v37 }
 0x1f3   :  { %v1884_v14 = vmul.f32 %v5446_v18, %v6085_v26  ;;  %v1885_v53 = vmul.f32 %v5446_v18, %v6096_v47  ;;  %v1958_v17 = vrot.slane %v1882_v2, 1  ;;  %v2030_v35 = vmul.f32 %v5429_v54, %v6085_v26 }
 0x1f4   :  { %v2293_v29 = vadd.f32 %v6006_v59, %v2145_v51  ;;  %v1851_v45 = vadd.f32 %v1815_v23, %v1663_v63  ;;  %v1959_v38 = vrot.slane %v1883_v39, 1  ;;  %v2031_v58 = vmul.f32 %v5429_v54, %v6096_v47 }
 0x1f5   :  { %v1961_v62 = vrot.slane %v1884_v14, 1  ;;  %v1962_v50 = vrot.slane %v1885_v53, 1  ;;  %v2033_v46 = vmul.f32 %v5429_v54, %v6077_v19  ;;  %v2106_v56 = vrot.slane %v2030_v35, 1 }
 0x1f6   :  { %v2441_v5 = vadd.f32 %v6024_v16, %v2293_v29  ;;  %v1960_v55 = vsel %vm462_vm1, %v1958_v17, %v1959_v38  ;;  %v2107_v22 = vrot.slane %v2031_v58, 1  ;;  %v2109_v10 = vrot.slane %v6054_v4, 1 }
 0x1f7   :  { %v1963_v59 = vsel %vm462_vm1, %v1961_v62, %v1962_v50  ;;  %v1998_v24 = vadd.f32 %v1960_v55, %v1850_v12  ;;  %v2110_v33 = vrot.slane %v2033_v46, 1  ;;  %v2180_v49 = vmul.f32 %v5411_v48, %v6056_v60  ;;  %v6145_v62 = vld [vmem:[#allocation2 + $0x120] sm:$0xff] }
 0x1f8   :  { %v2589_v52 = vadd.f32 %v2549_v32, %v2441_v5  ;;  %v1999_v0 = vadd.f32 %v1963_v59, %v1851_v45  ;;  %v2108_v21 = vsel %vm462_vm1, %v2106_v56, %v2107_v22  ;;  %v2181_v42 = vmul.f32 %v5411_v48, %v1701_v37 }
 0x1f9   :  { %v2111_v16 = vsel %vm462_vm1, %v2109_v10, %v2110_v33  ;;  %v2146_v23 = vadd.f32 %v2108_v21, %v1998_v24  ;;  %v2256_v4 = vsel %vm907_vm2, %v2254_v1, %v2255_v11  ;;  %v2257_v2 = vrot.slane %v2180_v49, 2 }
 0x1fa   :  { %v2599_v51 = vpack.c.bf16 %v2589_v52, %v6047_v27  ;;  %v2147_v63 = vadd.f32 %v2111_v16, %v1999_v0  ;;  %v2258_v12 = vrot.slane %v2181_v42, 2  ;;  %v2326_v32 = vmul.f32 %v5464_v34, %v6056_v60 }
 0x1fb   :  { %v2294_v39 = vadd.f32 %v2256_v4, %v2146_v23  ;;  %v2327_v14 = vmul.f32 %v5464_v34, %v1701_v37  ;;  %v2328_v53 = vmul.f32 %v5464_v34, %v6085_v26  ;;  %v2329_v31 = vmul.f32 %v5464_v34, %v6096_v47 }
 0x1fc   :  { %4322 = vmatmul.mubr.bf16.gmra.mxu1 %v2599_v51  ;;  %v2259_v20 = vsel %vm907_vm2, %v2257_v2, %v2258_v12  ;;  %v2402_v1 = vrot.slane %v2326_v32, 2  ;;  %v2474_v27 = vmul.f32 %v5436_v8, %v6085_v26  ;;  %v2475_v11 = vmul.f32 %v5436_v8, %v6096_v47 }
 0x1fd   :  { %v2295_v60 = vadd.f32 %v2259_v20, %v2147_v63  ;;  %v2403_v17 = vrot.slane %v2327_v14, 2  ;;  %v2405_v35 = vrot.slane %v2328_v53, 2  ;;  %v2406_v37 = vrot.slane %v2329_v31, 2 }
 0x1fe   :  { %v2477_v29 = vmul.f32 %v5436_v8, %v6077_v19  ;;  %v2550_v45 = vrot.slane %v2474_v27, 2  ;;  %v2551_v38 = vrot.slane %v2475_v11, 2  ;;  %v2553_v58 = vrot.slane %v6063_v36, 2 }
 0x1ff   :  { %v2404_v50 = vsel %vm907_vm2, %v2402_v1, %v2403_v17  ;;  %v2407_v46 = vsel %vm907_vm2, %v2405_v35, %v2406_v37  ;;  %v1592_v56 = vmul.f32 %v5426_v30, %v6085_v26  ;;  %v1593_v5 = vmul.f32 %v5426_v30, %v6037_v41  ;;  %v1568_v30 = vld [vmem:[#allocation2 + $0x128] sm:$0x3] }
 0x200   :  { %v2442_v55 = vadd.f32 %v2404_v50, %v2294_v39  ;;  %v2443_v22 = vadd.f32 %v2407_v46, %v2295_v60  ;;  %v2552_v10 = vsel %vm907_vm2, %v2550_v45, %v2551_v38  ;;  %v2554_v59 = vrot.slane %v2477_v29, 2 }
 0x201   :  { %v1612_v36 = vmul.f32 %v5443_v40, %v6037_v41  ;;  %v1613_v24 = vmul.f32 %v5443_v40, %v6145_v62  ;;  %v1648_v33 = vmul.f32 %v5433_v28, %v6145_v62  ;;  %v1684_v49 = vrot.slane %v6145_v62, 6 }
 0x202   :  { %v2555_v52 = vsel %vm907_vm2, %v2553_v58, %v2554_v59  ;;  %v2590_v0 = vadd.f32 %v2552_v10, %v2442_v55  ;;  %v1738_v21 = vmul.f32 %v5402_v44, %v6085_v26  ;;  %v1739_v42 = vmul.f32 %v5402_v44, %v6096_v47  ;;  %v4405_v59 = vld [vmem:[#allocation12 + $0x38] sm:$0xff]  }
 0x203   :  { %v2591_v16 = vadd.f32 %v2555_v52, %v2443_v22  ;;  %v1628_v23 = vadd.f32 %v1612_v36, %v1592_v56  ;;  %v1629_v4 = vadd.f32 %v1613_v24, %v1593_v5  ;;  %v6167_v40 = vsel %vm353_vm0, %v1684_v49, %v1568_v30  ;;  %4329 = vmatprep.subr.bf16.mxu0 %v4405_v59 }
 0x204   :  { %v1740_v28 = vmul.f32 %v5402_v44, %v6037_v41  ;;  %v1741_v2 = vmul.f32 %v5402_v44, %v6077_v19  ;;  %v1816_v51 = vrot.slane %v1738_v21, 1  ;;  %v1817_v63 = vrot.slane %v1739_v42, 1  ;;  %4361 = vmatprep.subr.bf16.mxu1 %v4405_v59  ;;  %4330 = vmatpush3.bf16.msra.mxu0 %v4405_v59 }
 0x205   :  { %v2600_v12 = vpack.c.bf16 %v2591_v16, %v2590_v0  ;;  %v1664_v32 = vadd.f32 %v1648_v33, %v1628_v23  ;;  %v1665_v39 = vadd.f32 %v5468_v43, %v1629_v4  ;;  %v1886_v14 = vmul.f32 %v5446_v18, %v6037_v41  ;;  %4369 = vmatpush3.bf16.msra.mxu1 %v4405_v59 }
 0x206   :  { %v1818_v53 = vsel %vm462_vm1, %v1816_v51, %v1817_v63  ;;  %v1819_v31 = vrot.slane %v1740_v28, 1  ;;  %v1820_v20 = vrot.slane %v1741_v2, 1  ;;  %v1887_v1 = vmul.f32 %v5446_v18, %v6077_v19 }
 0x207   :  { %4325 = vmatprep.mubr.bf16.mxu1 %v2600_v12  ;;  %v1852_v27 = vadd.f32 %v1818_v53, %v1664_v32  ;;  %v1888_v44 = vmul.f32 %v5446_v18, %v6145_v62  ;;  %v1889_v11 = vmul.f32 %v5446_v18, %v6167_v40  ;;  %v1964_v60 = vrot.slane %v1886_v14, 1 }
 0x208   :  { %v1821_v43 = vsel %vm462_vm1, %v1819_v31, %v1820_v20  ;;  %v1965_v17 = vrot.slane %v1887_v1, 1  ;;  %v2034_v35 = vmul.f32 %v5429_v54, %v6145_v62  ;;  %v2035_v37 = vmul.f32 %v5429_v54, %v6167_v40 }
 0x209   :  { %v1853_v29 = vadd.f32 %v1821_v43, %v1665_v39  ;;  %v1967_v45 = vrot.slane %v1888_v44, 1  ;;  %v1968_v38 = vrot.slane %v1889_v11, 1  ;;  %v2116_v58 = vrot.slane %v6041_v15, 1  ;;  %v4407_v11 = vld [vmem:[#allocation12 + $0x28] sm:$0xff]  }
 0x20a   :  { %v1966_v50 = vsel %vm462_vm1, %v1964_v60, %v1965_v17  ;;  %v2112_v46 = vrot.slane %v2034_v35, 1  ;;  %v2113_v56 = vrot.slane %v2035_v37, 1  ;;  %v2182_v18 = vmul.f32 %v5411_v48, %v6085_v26  ;;  %v6235_v43 = vld [vmem:[%s7079_s8] ss:$0 sm:$0xff]  ;;  %v4409_v35 = vld [vmem:[#allocation12 + $0x18] sm:$0xff]  }
 0x20b   :  { %v1969_v5 = vsel %vm462_vm1, %v1967_v45, %v1968_v38  ;;  %v2000_v55 = vadd.f32 %v1966_v50, %v1852_v27  ;;  %v7093_v22 = vrot.slane %v5450_v25, 1  ;;  %v2183_v54 = vmul.f32 %v5411_v48, %v6096_v47  ;;  %v2842_v37 = vld [vmem:[#allocation2 + $0x8] sm:$0x3] }
 0x20c   :  { %v2001_v36 = vadd.f32 %v1969_v5, %v1853_v29  ;;  %v2114_v15 = vsel %vm462_vm1, %v2112_v46, %v2113_v56  ;;  %v2184_v24 = vmul.f32 %v5411_v48, %v6037_v41  ;;  %v2185_v26 = vmul.f32 %v5411_v48, %v6077_v19  ;;  %v2883_v38 = vld [vmem:[%s7080_s9 + $0x8] sm:$0x7]  ;;  %v6248_v56 = vld [vmem:[#allocation2] sm:$0xff] }
 0x20d   :  { %v2117_v10 = vsel %vm462_vm1, %v7093_v22, %v2116_v58  ;;  %v2148_v33 = vadd.f32 %v2114_v15, %v2000_v55  ;;  %v2260_v49 = vrot.slane %v2182_v18, 2  ;;  %v2261_v52 = vrot.slane %v2183_v54, 2  ;;  %v4411_v15 = vld [vmem:[#allocation12 + $0x8] sm:$0xff]  }
 0x20e   :  { %v2330_v25 = vmul.f32 %v5464_v34, %v6037_v41  ;;  %v2149_v0 = vadd.f32 %v2117_v10, %v2001_v36  ;;  %v2263_v47 = vrot.slane %v2184_v24, 2  ;;  %v2264_v30 = vrot.slane %v2185_v26, 2  ;;  %v4406_v41 = vld [vmem:[#allocation12 + $0x30] sm:$0xff]  }
 0x20f   :  { %v2331_v21 = vmul.f32 %v5464_v34, %v6077_v19  ;;  %v2262_v42 = vsel %vm907_vm2, %v2260_v49, %v2261_v52  ;;  %v2332_v48 = vmul.f32 %v5464_v34, %v6145_v62  ;;  %v2333_v16 = vmul.f32 %v5464_v34, %v6167_v40  ;;  %4331 = vmatprep.subr.bf16.mxu0 %v4406_v41  ;;  %v4410_v36 = vld [vmem:[#allocation12 + $0x10] sm:$0xff]  }
 0x210   :  { %v2408_v23 = vrot.slane %v2330_v25, 2  ;;  %v2265_v4 = vsel %vm907_vm2, %v2263_v47, %v2264_v30  ;;  %v2296_v28 = vadd.f32 %v2262_v42, %v2148_v33  ;;  %v2478_v51 = vmul.f32 %v5436_v8, %v6145_v62  ;;  %4362 = vmatprep.subr.bf16.mxu1 %v4406_v41  ;;  %4332 = vmatpush3.bf16.msra.mxu0 %v4406_v41  ;;  %v2882_v42 = vld [vmem:[%s7080_s9 + $0x4] sm:$0x7] }
 0x211   :  { %v2409_v2 = vrot.slane %v2331_v21, 2  ;;  %v2297_v19 = vadd.f32 %v2265_v4, %v2149_v0  ;;  %v2411_v63 = vrot.slane %v2332_v48, 2  ;;  %v2412_v12 = vrot.slane %v2333_v16, 2  ;;  %4370 = vmatpush3.bf16.msra.mxu1 %v4406_v41  ;;  %4333 = vmatprep.subr.bf16.mxu0 %v4407_v11  ;;  %v2860_v0 = vld [vmem:[#allocation2 + $0x98] sm:$0x3] }
 0x212   :  { %v2479_v32 = vmul.f32 %v5436_v8, %v6167_v40  ;;  %v2560_v34 = vrot.slane %v6045_v3, 2  ;;  %v2556_v31 = vrot.slane %v2478_v51, 2  ;;  %4363 = vmatprep.subr.bf16.mxu1 %v4407_v11  ;;  %v4408_v3 = vld [vmem:[#allocation12 + $0x20] sm:$0xff]   ;;  %v2996_v58 = vsel %vm353_vm0, %v5321_v61, %v2842_v37 }
 0x213   :  { %v2410_v39 = vsel %vm907_vm2, %v2408_v23, %v2409_v2  ;;  %v2413_v14 = vsel %vm907_vm2, %v2411_v63, %v2412_v12  ;;  %v6264_v24 = vrot.slane %v2883_v38, %v4691_v9  ;;  %v6273_v25 = vrot.slane %v2883_v38, %v4693_v13 }
 0x214   :  { %v2444_v53 = vadd.f32 %v2410_v39, %v2296_v28  ;;  %v2557_v20 = vrot.slane %v2479_v32, 2  ;;  %v2445_v62 = vadd.f32 %v2413_v14, %v2297_v19  ;;  %v2561_v1 = vsel %vm907_vm2, %v2535_v7, %v2560_v34  ;;  %4334 = vmatpush3.bf16.msra.mxu0 %v4407_v11  ;;  %v2881_v7 = vld [vmem:[%s7080_s9] sm:$0x7]  ;;  %v2862_v28 = vld [vmem:[#allocation2 + $0xa8] sm:$0x3]  ;;  %v4412_v19 = vld [vmem:[#allocation12] sm:$0xff]  }
 0x215   :  { %4371 = vmatpush3.bf16.msra.mxu1 %v4407_v11  ;;  %4335 = vmatprep.subr.bf16.mxu0 %v4408_v3  ;;  %v6239_v29 = vrot.slane %v2881_v7, %v4691_v9  ;;  %v6255_v55 = vrot.slane %v2881_v7, %v4687_v6  ;;  %v6259_v61 = vrot.slane %v2881_v7, %v4693_v13  ;;  %v6281_v48 = vrot.slane %v6248_v56, 6 }
 0x216   :  { %v2558_v8 = vsel %vm907_vm2, %v2556_v31, %v2557_v20  ;;  %v2593_v27 = vadd.f32 %v2561_v1, %v2445_v62  ;;  %4364 = vmatprep.subr.bf16.mxu1 %v4408_v3  ;;  %v6286_v4 = vmul.f32 %v6248_v56, %v6264_v24  ;;  %v6293_v12 = vmul.f32 %v6248_v56, %v6273_v25 }
 0x217   :  { %v2592_v40 = vadd.f32 %v2558_v8, %v2444_v53  ;;  %v6252_v18 = vmul.f32 %v6248_v56, %v6239_v29  ;;  %v3021_v22 = vmul.f32 %v6239_v29, %v2996_v58  ;;  %v6269_v49 = vmul.f32 %v6248_v56, %v6259_v61 }
 0x218   :  { %4336 = vmatpush3.bf16.msra.mxu0 %v4408_v3  ;;  %v3465_v52 = vmul.f32 %v6259_v61, %v2996_v58  ;;  %v3005_v63 = vsel %vm353_vm0, %v6281_v48, %v2860_v0  ;;  %v6296_v32 = vrot.slane %v2882_v42, %v4687_v6  ;;  %v7087_v34 = vrot.slane %v6286_v4, 1 }
 0x219   :  { %v2601_v44 = vpack.c.bf16 %v2593_v27, %v2592_v40  ;;  %4372 = vmatpush3.bf16.msra.mxu1 %v4408_v3  ;;  %4337 = vmatprep.subr.bf16.mxu0 %v4409_v35  ;;  %v7089_v33 = vrot.slane %v6252_v18, 1  ;;  %v3085_v16 = vrot.slane %v3021_v22, 1  ;;  %v7088_v23 = vrot.slane %v6269_v49, 2 }
 0x21a   :  { %4365 = vmatprep.subr.bf16.mxu1 %v4409_v35  ;;  %v3529_v41 = vrot.slane %v3465_v52, 2  ;;  %v3331_v39 = vmul.f32 %v6264_v24, %v3005_v63  ;;  %v6301_v14 = vmul.f32 %v6273_v25, %v3005_v63  ;;  %v6304_v31 = vrot.slane %v2883_v38, %v4687_v6 }
 0x21b   :  { %4326 = vmatmul.mubr.bf16.gmra.mxu1 %v2601_v44  ;;  %v6307_v20 = vrot.slane %v2882_v42, %v4691_v9  ;;  %v3006_v62 = vsel %vm353_vm0, %v6281_v48, %v2862_v28  ;;  %v6313_v1 = vmul.f32 %v6248_v56, %v6255_v55  ;;  %v6316_v8 = vrot.slane %v2882_v42, %v4693_v13 }
 0x21c   :  { %4338 = vmatpush3.bf16.msra.mxu0 %v4409_v35  ;;  %v3402_v40 = vrot.slane %v3331_v39, 1  ;;  %v6319_v27 = vmul.f32 %v6239_v29, %v3006_v62  ;;  %v3086_v6 = vsel %vm462_vm1, %v7089_v33, %v3085_v16  ;;  %v6327_v9 = vsel %vm907_vm2, %v7088_v23, %v3529_v41 }
 0x21d   :  { %4373 = vmatpush3.bf16.msra.mxu1 %v4409_v35  ;;  %4339 = vmatprep.subr.bf16.mxu0 %v4410_v36  ;;  %v6331_v13 = vmul.f32 %v6248_v56, %v6304_v31  ;;  %v3845_v44 = vrot.slane %v6293_v12, 2  ;;  %v3846_v7 = vrot.slane %v6301_v14, 2 }
 0x21e   :  { %4366 = vmatprep.subr.bf16.mxu1 %v4410_v36  ;;  %v6339_v3 = vsel %vm462_vm1, %v7087_v34, %v3402_v40 }
 0x220   :  { %4340 = vmatpush3.bf16.msra.mxu0 %v4410_v36 }
 0x221   :  { %4341 = vmatprep.subr.bf16.mxu0 %v4411_v15  ;;  %4374 = vmatpush3.bf16.msra.mxu1 %v4410_v36 }
 0x222   :  { %4367 = vmatprep.subr.bf16.mxu1 %v4411_v15 }
 0x224   :  { %4342 = vmatpush3.bf16.msra.mxu0 %v4411_v15 }
 0x225   :  { %4343 = vmatprep.subr.bf16.mxu0 %v4412_v19  ;;  %4375 = vmatpush3.bf16.msra.mxu1 %v4411_v15 }
 0x226   :  { %4368 = vmatprep.subr.bf16.mxu1 %v4412_v19 }
 0x228   :  { %4344 = vmatpush3.bf16.msra.mxu0 %v4412_v19 }
 0x229   :  { %4376 = vmatpush3.bf16.msra.mxu1 %v4412_v19 }
 0x261   :  { %v4315_v60 = vpop.f32.mrf.mxu1 }
 0x262   :  { %v2772_v17 = vmul.f32 %v4315_v60, %v6227_v57 }
 0x263   :  { %v2700_v45 = vpop.f32.mrf.mxu1 }
 0x264   :  { %v2795_v50 = vadd.f32 %v6235_v43, %v2772_v17  ;;  %v2770_v46 = vmul.f32 %v6227_v57, %v2700_v45  ;;  %v6344_v17 = vmul.f32 %v6259_v61, %v3006_v62 }
 0x265   :  { %v4316_v5 = vpop.f32.mrf.mxu1 }
 0x266   :  { %v2811_v10 = vmax.f32 %v2795_v50, 0.0  ;;  %v2793_v54 = vadd.f32 %v6235_v43, %v2770_v46  ;;  %v2773_v59 = vmul.f32 %v4316_v5, %v6227_v57 }
 0x267   :  { %v2703_v26 = vpop.f32.mrf.mxu1 }
 0x268   :  { %2827 = vst [vmem:[#allocation2 + $0x31] sm:$0xff] %v2811_v10  ;;  %v2809_v47 = vmax.f32 %v2793_v54, 0.0  ;;  %v2796_v30 = vadd.f32 %v6235_v43, %v2773_v59  ;;  %v2771_v21 = vmul.f32 %v6227_v57, %v2703_v26 }
 0x26a   :  { %2825 = vst [vmem:[#allocation2 + $0x11] sm:$0xff] %v2809_v47  ;;  %v2812_v2 = vmax.f32 %v2796_v30, 0.0  ;;  %v2794_v51 = vadd.f32 %v6235_v43, %v2771_v21 }
 0x26c   :  { %2828 = vst [vmem:[#allocation2 + $0x41] sm:$0xff] %v2812_v2  ;;  %v2810_v53 = vmax.f32 %v2794_v51, 0.0 }
 0x26e   :  { %2826 = vst [vmem:[#allocation2 + $0x21] sm:$0xff] %v2810_v53 }
 0x26f   :  { %v6334_v11 = vld [vmem:[#allocation2 + $0x30] sm:$0xff]  ;;  %v2848_v50 = vld [vmem:[#allocation2 + $0x38] sm:$0x3] }
 0x270   :  { %v2945_v35 = vmul.f32 %v6304_v31, %v6334_v11  ;;  %v2979_v37 = vrot.slane %v6334_v11, 6  ;;  %v3318_v45 = vmul.f32 %v6264_v24, %v6334_v11  ;;  %v6353_v38 = vmul.f32 %v6273_v25, %v6334_v11 }
 0x271   :  { %v2843_v58 = vld [vmem:[#allocation2 + $0x10] sm:$0xff]  ;;  %v6357_v46 = vmul.f32 %v6255_v55, %v6334_v11  ;;  %v6361_v56 = vmul.f32 %v6296_v32, %v6334_v11  ;;  %v6365_v5 = vmul.f32 %v6239_v29, %v6334_v11  ;;  %v6369_v22 = vmul.f32 %v6307_v20, %v6334_v11  ;;  %v2844_v15 = vld [vmem:[#allocation2 + $0x18] sm:$0x3] }
 0x272   :  { %v2889_v10 = vmul.f32 %v6255_v55, %v2843_v58  ;;  %v2908_v54 = vmul.f32 %v6296_v32, %v2843_v58  ;;  %v2977_v59 = vrot.slane %v2843_v58, 6  ;;  %v6374_v36 = vsel %vm353_vm0, %v2979_v37, %v2848_v50 }
 0x273   :  { %v3022_v26 = vmul.f32 %v6239_v29, %v2843_v58  ;;  %v3168_v52 = vmul.f32 %v6307_v20, %v2843_v58  ;;  %v3319_v0 = vmul.f32 %v6264_v24, %v6374_v36  ;;  %v3383_v47 = vrot.slane %v3318_v45, 1 }
 0x274   :  { %v2924_v30 = vadd.f32 %v2908_v54, %v6313_v1  ;;  %v2997_v21 = vsel %vm353_vm0, %v2977_v59, %v2844_v15  ;;  %v3466_v42 = vmul.f32 %v6259_v61, %v2843_v58  ;;  %v3612_v16 = vmul.f32 %v6316_v8, %v2843_v58 }
 0x275   :  { %v6384_v41 = vld [vmem:[#allocation2 + $0x20] sm:$0xff]  ;;  %v3023_v28 = vmul.f32 %v6239_v29, %v2997_v21  ;;  %v3087_v2 = vrot.slane %v3022_v26, 1  ;;  %v3169_v51 = vmul.f32 %v6307_v20, %v2997_v21  ;;  %v3232_v19 = vrot.slane %v3168_v52, 1  ;;  %v2846_v40 = vld [vmem:[#allocation2 + $0x28] sm:$0x3] }
 0x276   :  { %v2909_v63 = vmul.f32 %v6296_v32, %v6384_v41  ;;  %v2944_v39 = vmul.f32 %v6304_v31, %v6384_v41  ;;  %v2978_v53 = vrot.slane %v6384_v41, 6  ;;  %v3170_v62 = vmul.f32 %v6307_v20, %v6384_v41 }
 0x277   :  { %v3088_v37 = vrot.slane %v3023_v28, 1  ;;  %v3233_v45 = vrot.slane %v3169_v51, 1  ;;  %v3316_v58 = vmul.f32 %v6264_v24, %v6384_v41  ;;  %v3384_v50 = vrot.slane %v3319_v0, 1 }
 0x278   :  { %v2925_v54 = vadd.f32 %v2909_v63, %v2889_v10  ;;  %v2960_v59 = vadd.f32 %v2944_v39, %v2924_v30  ;;  %v6398_v15 = vsel %vm353_vm0, %v2978_v53, %v2846_v40  ;;  %v3235_v26 = vrot.slane %v3170_v62, 1 }
 0x279   :  { %v3089_v52 = vsel %vm462_vm1, %v3087_v2, %v3088_v37  ;;  %v3171_v34 = vmul.f32 %v6307_v20, %v6398_v15  ;;  %v3234_v23 = vsel %vm462_vm1, %v3232_v19, %v3233_v45  ;;  %v3317_v28 = vmul.f32 %v6264_v24, %v6398_v15 }
 0x27a   :  { %v2961_v51 = vadd.f32 %v2945_v35, %v2925_v54  ;;  %v3148_v33 = vadd.f32 %v3086_v6, %v2960_v59  ;;  %v3380_v60 = vrot.slane %v3316_v58, 1  ;;  %v3385_v10 = vsel %vm462_vm1, %v3383_v47, %v3384_v50 }
 0x27b   :  { %v3236_v0 = vrot.slane %v3171_v34, 1  ;;  %v3381_v30 = vrot.slane %v3317_v28, 1  ;;  %v3467_v63 = vmul.f32 %v6259_v61, %v2997_v21  ;;  %v3531_v39 = vrot.slane %v3466_v42, 2 }
 0x27c   :  { %v3149_v53 = vadd.f32 %v3089_v52, %v2961_v51  ;;  %v3296_v2 = vadd.f32 %v3234_v23, %v3148_v33  ;;  %v3613_v62 = vmul.f32 %v6316_v8, %v2997_v21  ;;  %v3614_v19 = vmul.f32 %v6316_v8, %v6384_v41 }
 0x27d   :  { %v3237_v40 = vsel %vm462_vm1, %v3235_v26, %v3236_v0  ;;  %v3382_v35 = vsel %vm462_vm1, %v3380_v60, %v3381_v30  ;;  %v3532_v6 = vrot.slane %v3467_v63, 2  ;;  %v3615_v47 = vmul.f32 %v6316_v8, %v6398_v15  ;;  %v6422_v26 = vld [vmem:[#allocation2 + $0x40] sm:$0xff] }
 0x27e   :  { %v3297_v34 = vadd.f32 %v3237_v40, %v3149_v53  ;;  %v3444_v37 = vadd.f32 %v3382_v35, %v3296_v2  ;;  %v3676_v45 = vrot.slane %v3612_v16, 2  ;;  %v3677_v58 = vrot.slane %v3613_v62, 2 }
 0x27f   :  { %v3533_v42 = vsel %vm907_vm2, %v3531_v39, %v3532_v6  ;;  %v3679_v33 = vrot.slane %v3614_v19, 2  ;;  %v3680_v23 = vrot.slane %v3615_v47, 2  ;;  %v3760_v21 = vmul.f32 %v6273_v25, %v6384_v41 }
 0x280   :  { %v3445_v50 = vadd.f32 %v3385_v10, %v3297_v34  ;;  %v3592_v54 = vadd.f32 %v6327_v9, %v3444_v37  ;;  %v3678_v60 = vsel %vm907_vm2, %v3676_v45, %v3677_v58  ;;  %v3761_v59 = vmul.f32 %v6273_v25, %v6398_v15 }
 0x281   :  { %v3681_v16 = vsel %vm907_vm2, %v3679_v33, %v3680_v23  ;;  %v3763_v28 = vmul.f32 %v6273_v25, %v6374_v36  ;;  %v3824_v51 = vrot.slane %v3760_v21, 2  ;;  %v3827_v0 = vrot.slane %v6353_v38, 2 }
 0x282   :  { %v4319_v52 = vpop.f32.mrf.mxu1  ;;  %v3593_v30 = vadd.f32 %v3533_v42, %v3445_v50  ;;  %v3740_v9 = vadd.f32 %v3678_v60, %v3592_v54  ;;  %v3825_v63 = vrot.slane %v3761_v59, 2  ;;  %v2890_v2 = vmul.f32 %v6255_v55, %v6384_v41 }
 0x283   :  { %v2776_v10 = vmul.f32 %v4319_v52, %v6227_v57  ;;  %v3828_v53 = vrot.slane %v3763_v28, 2  ;;  %v2911_v62 = vmul.f32 %v6296_v32, %v6422_v26  ;;  %v2946_v19 = vmul.f32 %v6304_v31, %v6422_v26 }
 0x284   :  { %v2716_v39 = vpop.f32.mrf.mxu1  ;;  %v3741_v35 = vadd.f32 %v3681_v16, %v3593_v30  ;;  %v3826_v6 = vsel %vm907_vm2, %v3824_v51, %v3825_v63  ;;  %v2926_v45 = vadd.f32 %v6361_v56, %v2890_v2  ;;  %v2980_v60 = vrot.slane %v6422_v26, 6  ;;  %v2850_v51 = vld [vmem:[#allocation2 + $0x48] sm:$0x3] }
 0x285   :  { %v2799_v40 = vadd.f32 %v6235_v43, %v2776_v10  ;;  %v2774_v38 = vmul.f32 %v6227_v57, %v2716_v39  ;;  %v3829_v34 = vsel %vm907_vm2, %v3827_v0, %v3828_v53  ;;  %v3888_v37 = vadd.f32 %v3826_v6, %v3740_v9 }
 0x286   :  { %v4320_v47 = vpop.f32.mrf.mxu1  ;;  %v6441_v58 = vadd.f32 %v2911_v62, %v6357_v46  ;;  %v3889_v21 = vadd.f32 %v3829_v34, %v3741_v35  ;;  %v2962_v54 = vadd.f32 %v2946_v19, %v2926_v45  ;;  %v3024_v59 = vmul.f32 %v6239_v29, %v6384_v41 }
 0x287   :  { %v2815_v42 = vmax.f32 %v2799_v40, 0.0  ;;  %v2797_v33 = vadd.f32 %v6235_v43, %v2774_v38  ;;  %v2777_v23 = vmul.f32 %v4320_v47, %v6227_v57  ;;  %v3025_v52 = vmul.f32 %v6239_v29, %v6398_v15 }
 0x288   :  { %v2719_v50 = vpop.f32.mrf.mxu1  ;;  %v3904_v28 = vpack.c.bf16 %v3889_v21, %v3888_v37  ;;  %v6453_v0 = vsel %vm353_vm0, %v2980_v60, %v2850_v51  ;;  %v3027_v10 = vmul.f32 %v6239_v29, %v6374_v36  ;;  %v3090_v30 = vrot.slane %v3024_v59, 1 }
 0x289   :  { %2831 = vst [vmem:[#allocation2 + $0x71] sm:$0xff] %v2815_v42  ;;  %v2813_v56 = vmax.f32 %v2797_v33, 0.0  ;;  %v2800_v46 = vadd.f32 %v6235_v43, %v2777_v23  ;;  %v2775_v16 = vmul.f32 %v6227_v57, %v2719_v50  ;;  %v3091_v9 = vrot.slane %v3025_v52, 1 }
 0x28a   :  { %4345 = vmatprep.mubr.bf16.mxu0 %v3904_v28  ;;  %v3093_v53 = vrot.slane %v6365_v5, 1  ;;  %v3173_v2 = vmul.f32 %v6307_v20, %v6374_v36  ;;  %v3094_v19 = vrot.slane %v3027_v10, 1  ;;  %v3174_v40 = vmul.f32 %v6307_v20, %v6422_v26 }
 0x28b   :  { %2829 = vst [vmem:[#allocation2 + $0x51] sm:$0xff] %v2813_v56  ;;  %v2816_v63 = vmax.f32 %v2800_v46, 0.0  ;;  %v2798_v39 = vadd.f32 %v6235_v43, %v2775_v16  ;;  %v3092_v62 = vsel %vm462_vm1, %v3090_v30, %v3091_v9  ;;  %v3175_v38 = vmul.f32 %v6307_v20, %v6453_v0 }
 0x28c   :  { %v3150_v6 = vadd.f32 %v3092_v62, %v2962_v54  ;;  %v3238_v47 = vrot.slane %v6369_v22, 1  ;;  %v3239_v34 = vrot.slane %v3173_v2, 1  ;;  %v3095_v5 = vsel %vm462_vm1, %v3093_v53, %v3094_v19 }
 0x28d   :  { %2832 = vst [vmem:[#allocation2 + $0x81] sm:$0xff] %v2816_v63  ;;  %v2814_v35 = vmax.f32 %v2798_v39, 0.0  ;;  %v3241_v37 = vrot.slane %v3174_v40, 1  ;;  %v3242_v45 = vrot.slane %v3175_v38, 1  ;;  %v3320_v42 = vmul.f32 %v6264_v24, %v6422_v26 }
 0x28e   :  { %v3240_v33 = vsel %vm462_vm1, %v3238_v47, %v3239_v34  ;;  %v3321_v23 = vmul.f32 %v6264_v24, %v6453_v0  ;;  %v3468_v21 = vmul.f32 %v6259_v61, %v6384_v41  ;;  %v3469_v22 = vmul.f32 %v6259_v61, %v6398_v15 }
 0x28f   :  { %2830 = vst [vmem:[#allocation2 + $0x61] sm:$0xff] %v2814_v35  ;;  %v3243_v50 = vsel %vm462_vm1, %v3241_v37, %v3242_v45  ;;  %v3298_v54 = vadd.f32 %v3240_v33, %v3150_v6  ;;  %v3386_v60 = vrot.slane %v3320_v42, 1  ;;  %v3470_v59 = vmul.f32 %v6259_v61, %v6334_v11 }
 0x290   :  { %v3387_v52 = vrot.slane %v3321_v23, 1  ;;  %v3471_v56 = vmul.f32 %v6259_v61, %v6374_v36  ;;  %v3534_v46 = vrot.slane %v3468_v21, 2  ;;  %v3535_v16 = vrot.slane %v3469_v22, 2 }
 0x291   :  { %v3537_v51 = vrot.slane %v3470_v59, 2  ;;  %v3616_v41 = vmul.f32 %v6316_v8, %v6334_v11  ;;  %v3617_v15 = vmul.f32 %v6316_v8, %v6374_v36  ;;  %v3618_v10 = vmul.f32 %v6316_v8, %v6422_v26 }
 0x292   :  { %v6482_v28 = vld [vmem:[#allocation2 + $0x50] sm:$0xff]  ;;  %v3388_v39 = vsel %vm462_vm1, %v3386_v60, %v3387_v52  ;;  %v2852_v53 = vld [vmem:[#allocation2 + $0x58] sm:$0x3]  ;;  %v3536_v11 = vsel %vm907_vm2, %v3534_v46, %v3535_v16  ;;  %v3538_v62 = vrot.slane %v3471_v56, 2  ;;  %v3619_v36 = vmul.f32 %v6316_v8, %v6453_v0 }
 0x293   :  { %v2947_v30 = vmul.f32 %v6304_v31, %v6482_v28  ;;  %v2981_v9 = vrot.slane %v6482_v28, 6  ;;  %v3322_v63 = vmul.f32 %v6264_v24, %v6482_v28  ;;  %v3446_v2 = vadd.f32 %v3388_v39, %v3298_v54 }
 0x294   :  { %v3682_v35 = vrot.slane %v3616_v41, 2  ;;  %v3539_v47 = vsel %vm907_vm2, %v3537_v51, %v3538_v62  ;;  %v3683_v37 = vrot.slane %v3617_v15, 2  ;;  %v3685_v42 = vrot.slane %v3618_v10, 2  ;;  %v6519_v15 = vld [vmem:[#allocation2 + $0x70] sm:$0xff] }
 0x295   :  { %v2963_v19 = vadd.f32 %v2947_v30, %v6441_v58  ;;  %v6501_v40 = vsel %vm353_vm0, %v2981_v9, %v2852_v53  ;;  %v3389_v38 = vrot.slane %v3322_v63, 1  ;;  %v3594_v34 = vadd.f32 %v3536_v11, %v3446_v2 }
 0x296   :  { %v3323_v6 = vmul.f32 %v6264_v24, %v6501_v40  ;;  %v3686_v33 = vrot.slane %v3619_v36, 2  ;;  %v3764_v23 = vmul.f32 %v6273_v25, %v6422_v26  ;;  %v3684_v58 = vsel %vm907_vm2, %v3682_v35, %v3683_v37  ;;  %v6516_v56 = vld [vmem:[#allocation2 + $0x60] sm:$0xff] }
 0x297   :  { %v3151_v45 = vadd.f32 %v3095_v5, %v2963_v19  ;;  %v3765_v22 = vmul.f32 %v6273_v25, %v6453_v0  ;;  %v3766_v54 = vmul.f32 %v6273_v25, %v6482_v28  ;;  %v3742_v52 = vadd.f32 %v3684_v58, %v3594_v34 }
 0x298   :  { %v3390_v21 = vrot.slane %v3323_v6, 1  ;;  %v3687_v59 = vsel %vm907_vm2, %v3685_v42, %v3686_v33  ;;  %v3767_v5 = vmul.f32 %v6273_v25, %v6501_v40  ;;  %v3830_v16 = vrot.slane %v3764_v23, 2  ;;  %v2856_v42 = vld [vmem:[#allocation2 + $0x78] sm:$0x3] }
 0x299   :  { %v3299_v60 = vadd.f32 %v3243_v50, %v3151_v45  ;;  %v3831_v51 = vrot.slane %v3765_v22, 2  ;;  %v3833_v41 = vrot.slane %v3766_v54, 2  ;;  %v2892_v50 = vmul.f32 %v6255_v55, %v6422_v26  ;;  %v2854_v45 = vld [vmem:[#allocation2 + $0x68] sm:$0x3] }
 0x29a   :  { %v3391_v46 = vsel %vm462_vm1, %v3389_v38, %v3390_v21  ;;  %v3834_v30 = vrot.slane %v3767_v5, 2  ;;  %v2893_v9 = vmul.f32 %v6255_v55, %v6482_v28  ;;  %v2912_v39 = vmul.f32 %v6296_v32, %v6482_v28 }
 0x29b   :  { %v3447_v10 = vadd.f32 %v3391_v46, %v3299_v60  ;;  %v3832_v63 = vsel %vm907_vm2, %v3830_v16, %v3831_v51  ;;  %v2913_v53 = vmul.f32 %v6296_v32, %v6516_v56  ;;  %v2948_v2 = vmul.f32 %v6304_v31, %v6516_v56 }
 0x29c   :  { %v3835_v62 = vsel %vm907_vm2, %v3833_v41, %v3834_v30  ;;  %v3890_v36 = vadd.f32 %v3832_v63, %v3742_v52  ;;  %v2949_v19 = vmul.f32 %v6304_v31, %v6519_v15  ;;  %v2928_v38 = vadd.f32 %v2912_v39, %v2892_v50 }
 0x29d   :  { %v3595_v11 = vadd.f32 %v3539_v47, %v3447_v10  ;;  %v2929_v35 = vadd.f32 %v2913_v53, %v2893_v9  ;;  %v2982_v6 = vrot.slane %v6516_v56, 6  ;;  %v2983_v34 = vrot.slane %v6519_v15, 6 }
 0x29e   :  { %v3028_v33 = vmul.f32 %v6239_v29, %v6422_v26  ;;  %v3029_v47 = vmul.f32 %v6239_v29, %v6453_v0  ;;  %v3030_v23 = vmul.f32 %v6239_v29, %v6482_v28  ;;  %v2964_v21 = vadd.f32 %v2948_v2, %v2928_v38 }
 0x29f   :  { %v3743_v37 = vadd.f32 %v3687_v59, %v3595_v11  ;;  %v2965_v58 = vadd.f32 %v2949_v19, %v2929_v35  ;;  %v6544_v22 = vsel %vm353_vm0, %v2982_v6, %v2854_v45  ;;  %v6547_v54 = vsel %vm353_vm0, %v2983_v34, %v2856_v42 }
 0x2a0   :  { %v3031_v59 = vmul.f32 %v6239_v29, %v6501_v40  ;;  %v3096_v52 = vrot.slane %v3028_v33, 1  ;;  %v3097_v5 = vrot.slane %v3029_v47, 1  ;;  %v3099_v46 = vrot.slane %v3030_v23, 1 }
 0x2a1   :  { %v3891_v60 = vadd.f32 %v3835_v62, %v3743_v37  ;;  %v3176_v16 = vmul.f32 %v6307_v20, %v6482_v28  ;;  %v3177_v51 = vmul.f32 %v6307_v20, %v6501_v40  ;;  %v3178_v41 = vmul.f32 %v6307_v20, %v6516_v56 }
 0x2a2   :  { %v3098_v30 = vsel %vm462_vm1, %v3096_v52, %v3097_v5  ;;  %v3100_v50 = vrot.slane %v3031_v59, 1  ;;  %v3179_v9 = vmul.f32 %v6307_v20, %v6544_v22  ;;  %v3324_v19 = vmul.f32 %v6264_v24, %v6516_v56 }
 0x2a3   :  { %v3905_v10 = vpack.c.bf16 %v3891_v60, %v3890_v36  ;;  %v3152_v63 = vadd.f32 %v3098_v30, %v2964_v21  ;;  %v3244_v39 = vrot.slane %v3176_v16, 1  ;;  %v3245_v53 = vrot.slane %v3177_v51, 1 }
 0x2a4   :  { %v3247_v2 = vrot.slane %v3178_v41, 1  ;;  %v3101_v11 = vsel %vm462_vm1, %v3099_v46, %v3100_v50  ;;  %v3248_v62 = vrot.slane %v3179_v9, 1  ;;  %v3325_v36 = vmul.f32 %v6264_v24, %v6544_v22 }
 0x2a5   :  { %4346 = vmatmul.mubr.bf16.vlgmr.msra.gmra.mxu0 %v3905_v10  ;;  %v3153_v38 = vadd.f32 %v3101_v11, %v2965_v58  ;;  %v3246_v35 = vsel %vm462_vm1, %v3244_v39, %v3245_v53  ;;  %v3326_v6 = vmul.f32 %v6264_v24, %v6519_v15  ;;  %v3327_v34 = vmul.f32 %v6264_v24, %v6547_v54 }
 0x2a6   :  { %v3249_v37 = vsel %vm462_vm1, %v3247_v2, %v3248_v62  ;;  %v3300_v45 = vadd.f32 %v3246_v35, %v3152_v63  ;;  %v3392_v42 = vrot.slane %v3324_v19, 1  ;;  %v3393_v33 = vrot.slane %v3325_v36, 1 }
 0x2a7   :  { %v3301_v47 = vadd.f32 %v3249_v37, %v3153_v38  ;;  %v3395_v23 = vrot.slane %v3326_v6, 1  ;;  %v3396_v21 = vrot.slane %v3327_v34, 1  ;;  %v3472_v60 = vmul.f32 %v6259_v61, %v6422_v26  ;;  %v6599_v37 = vld [vmem:[#allocation2 + $0x80] sm:$0xff] }
 0x2a8   :  { %v3394_v58 = vsel %vm462_vm1, %v3392_v42, %v3393_v33  ;;  %v3473_v59 = vmul.f32 %v6259_v61, %v6453_v0  ;;  %v3474_v52 = vmul.f32 %v6259_v61, %v6482_v28  ;;  %v3475_v5 = vmul.f32 %v6259_v61, %v6501_v40 }
 0x2a9   :  { %v3397_v46 = vsel %vm462_vm1, %v3395_v23, %v3396_v21  ;;  %v3448_v16 = vadd.f32 %v3394_v58, %v3300_v45  ;;  %v3540_v51 = vrot.slane %v3472_v60, 2  ;;  %v3620_v41 = vmul.f32 %v6316_v8, %v6482_v28 }
 0x2aa   :  { %v3449_v10 = vadd.f32 %v3397_v46, %v3301_v47  ;;  %v3541_v26 = vrot.slane %v3473_v59, 2  ;;  %v3543_v30 = vrot.slane %v3474_v52, 2  ;;  %v3544_v50 = vrot.slane %v3475_v5, 2 }
 0x2ab   :  { %v3621_v0 = vmul.f32 %v6316_v8, %v6501_v40  ;;  %v3622_v9 = vmul.f32 %v6316_v8, %v6516_v56  ;;  %v3623_v63 = vmul.f32 %v6316_v8, %v6544_v22  ;;  %v3688_v39 = vrot.slane %v3620_v41, 2 }
 0x2ac   :  { %v3542_v53 = vsel %vm907_vm2, %v3540_v51, %v3541_v26  ;;  %v3545_v2 = vsel %vm907_vm2, %v3543_v30, %v3544_v50  ;;  %v3768_v28 = vmul.f32 %v6273_v25, %v6516_v56  ;;  %v3769_v11 = vmul.f32 %v6273_v25, %v6544_v22  ;;  %v2858_v30 = vld [vmem:[#allocation2 + $0x88] sm:$0x3] }
 0x2ad   :  { %v3596_v62 = vadd.f32 %v3542_v53, %v3448_v16  ;;  %v3597_v19 = vadd.f32 %v3545_v2, %v3449_v10  ;;  %v3689_v40 = vrot.slane %v3621_v0, 2  ;;  %v3691_v36 = vrot.slane %v3622_v9, 2 }
 0x2ae   :  { %v3692_v38 = vrot.slane %v3623_v63, 2  ;;  %v3770_v35 = vmul.f32 %v6273_v25, %v6519_v15  ;;  %v3771_v6 = vmul.f32 %v6273_v25, %v6547_v54  ;;  %v3836_v34 = vrot.slane %v3768_v28, 2 }
 0x2af   :  { %v3690_v45 = vsel %vm907_vm2, %v3688_v39, %v3689_v40  ;;  %v3837_v42 = vrot.slane %v3769_v11, 2  ;;  %v2894_v33 = vmul.f32 %v6255_v55, %v6516_v56  ;;  %v2895_v47 = vmul.f32 %v6255_v55, %v6519_v15 }
 0x2b0   :  { %v3693_v23 = vsel %vm907_vm2, %v3691_v36, %v3692_v38  ;;  %v3744_v21 = vadd.f32 %v3690_v45, %v3596_v62  ;;  %v3839_v60 = vrot.slane %v3770_v35, 2  ;;  %v3840_v58 = vrot.slane %v3771_v6, 2 }
 0x2b1   :  { %v3745_v59 = vadd.f32 %v3693_v23, %v3597_v19  ;;  %v3838_v52 = vsel %vm907_vm2, %v3836_v34, %v3837_v42  ;;  %v2914_v5 = vmul.f32 %v6296_v32, %v6519_v15  ;;  %v2915_v46 = vmul.f32 %v6296_v32, %v6599_v37 }
 0x2b2   :  { %v3841_v16 = vsel %vm907_vm2, %v3839_v60, %v3840_v58  ;;  %v3892_v51 = vadd.f32 %v3838_v52, %v3744_v21  ;;  %v2950_v41 = vmul.f32 %v6304_v31, %v6599_v37  ;;  %v2984_v10 = vrot.slane %v6599_v37, 6 }
 0x2b3   :  { %v3893_v26 = vadd.f32 %v3841_v16, %v3745_v59  ;;  %v2930_v50 = vadd.f32 %v2914_v5, %v2894_v33  ;;  %v2931_v0 = vadd.f32 %v2915_v46, %v2895_v47  ;;  %v3032_v9 = vmul.f32 %v6239_v29, %v6516_v56 }
 0x2b4   :  { %v6619_v63 = vsel %vm353_vm0, %v2984_v10, %v2858_v30  ;;  %v3033_v39 = vmul.f32 %v6239_v29, %v6544_v22  ;;  %v3034_v53 = vmul.f32 %v6239_v29, %v6519_v15  ;;  %v3035_v2 = vmul.f32 %v6239_v29, %v6547_v54 }
 0x2b5   :  { %v3906_v28 = vpack.c.bf16 %v3893_v26, %v3892_v51  ;;  %v2966_v11 = vadd.f32 %v2950_v41, %v2930_v50  ;;  %v2967_v62 = vadd.f32 %v6331_v13, %v2931_v0  ;;  %v3102_v19 = vrot.slane %v3032_v9, 1 }
 0x2b6   :  { %v3103_v40 = vrot.slane %v3033_v39, 1  ;;  %v3105_v36 = vrot.slane %v3034_v53, 1  ;;  %v3106_v38 = vrot.slane %v3035_v2, 1  ;;  %v3180_v35 = vmul.f32 %v6307_v20, %v6519_v15 }
 0x2b7   :  { %4349 = vmatprep.mubr.bf16.mxu0 %v3906_v28  ;;  %v3181_v6 = vmul.f32 %v6307_v20, %v6547_v54  ;;  %v3182_v34 = vmul.f32 %v6307_v20, %v6599_v37  ;;  %v3183_v45 = vmul.f32 %v6307_v20, %v6619_v63  ;;  %v3328_v42 = vmul.f32 %v6264_v24, %v6599_v37 }
 0x2b8   :  { %v3104_v33 = vsel %vm462_vm1, %v3102_v19, %v3103_v40  ;;  %v3107_v47 = vsel %vm462_vm1, %v3105_v36, %v3106_v38  ;;  %v3250_v23 = vrot.slane %v3180_v35, 1  ;;  %v3329_v21 = vmul.f32 %v6264_v24, %v6619_v63 }
 0x2b9   :  { %v3154_v60 = vadd.f32 %v3104_v33, %v2966_v11  ;;  %v3155_v58 = vadd.f32 %v3107_v47, %v2967_v62  ;;  %v3251_v59 = vrot.slane %v3181_v6, 1  ;;  %v3253_v52 = vrot.slane %v3182_v34, 1 }
 0x2ba   :  { %v3254_v5 = vrot.slane %v3183_v45, 1  ;;  %v3398_v46 = vrot.slane %v3328_v42, 1  ;;  %v3399_v16 = vrot.slane %v3329_v21, 1  ;;  %v3476_v51 = vmul.f32 %v6259_v61, %v6516_v56 }
 0x2bb   :  { %v3252_v10 = vsel %vm462_vm1, %v3250_v23, %v3251_v59  ;;  %v3477_v26 = vmul.f32 %v6259_v61, %v6544_v22  ;;  %v3478_v30 = vmul.f32 %v6259_v61, %v6519_v15  ;;  %v3479_v50 = vmul.f32 %v6259_v61, %v6547_v54 }
 0x2bc   :  { %v4323_v41 = vpop.f32.mrf.mxu1  ;;  %v3255_v9 = vsel %vm462_vm1, %v3253_v52, %v3254_v5  ;;  %v3302_v39 = vadd.f32 %v3252_v10, %v3154_v60  ;;  %v3400_v53 = vsel %vm462_vm1, %v3398_v46, %v3399_v16  ;;  %v3546_v28 = vrot.slane %v3476_v51, 2 }
 0x2bd   :  { %v2780_v0 = vmul.f32 %v4323_v41, %v6227_v57  ;;  %v3303_v2 = vadd.f32 %v3255_v9, %v3155_v58  ;;  %v3547_v11 = vrot.slane %v3477_v26, 2  ;;  %v3549_v62 = vrot.slane %v3478_v30, 2 }
 0x2be   :  { %v2732_v56 = vpop.f32.mrf.mxu1  ;;  %v3450_v40 = vadd.f32 %v3400_v53, %v3302_v39  ;;  %v3550_v36 = vrot.slane %v3479_v50, 2  ;;  %v3624_v34 = vmul.f32 %v6316_v8, %v6519_v15  ;;  %v3625_v45 = vmul.f32 %v6316_v8, %v6547_v54 }
 0x2bf   :  { %v2803_v22 = vadd.f32 %v6235_v43, %v2780_v0  ;;  %v2778_v19 = vmul.f32 %v6227_v57, %v2732_v56  ;;  %v3451_v35 = vadd.f32 %v6339_v3, %v3303_v2  ;;  %v3548_v6 = vsel %vm907_vm2, %v3546_v28, %v3547_v11  ;;  %v2880_v0 = vld [vmem:[#allocation2 + $0x138] sm:$0x3] }
 0x2c0   :  { %v4324_v38 = vpop.f32.mrf.mxu1  ;;  %v3551_v23 = vsel %vm907_vm2, %v3549_v62, %v3550_v36  ;;  %v3598_v60 = vadd.f32 %v3548_v6, %v3450_v40  ;;  %v3626_v3 = vmul.f32 %v6316_v8, %v6599_v37  ;;  %v3627_v59 = vmul.f32 %v6316_v8, %v6619_v63 }
 0x2c1   :  { %v2819_v42 = vmax.f32 %v2803_v22, 0.0  ;;  %v2801_v33 = vadd.f32 %v6235_v43, %v2778_v19  ;;  %v2781_v47 = vmul.f32 %v4324_v38, %v6227_v57  ;;  %v3599_v58 = vadd.f32 %v3551_v23, %v3451_v35 }
 0x2c2   :  { %v2735_v21 = vpop.f32.mrf.mxu1  ;;  %v3694_v5 = vrot.slane %v3624_v34, 2  ;;  %v3695_v46 = vrot.slane %v3625_v45, 2  ;;  %v3697_v16 = vrot.slane %v3626_v3, 2  ;;  %v3698_v51 = vrot.slane %v3627_v59, 2 }
 0x2c3   :  { %2835 = vst [vmem:[#allocation2 + $0xd1] sm:$0xff] %v2819_v42  ;;  %v2817_v15 = vmax.f32 %v2801_v33, 0.0  ;;  %v2804_v54 = vadd.f32 %v6235_v43, %v2781_v47  ;;  %v2779_v52 = vmul.f32 %v6227_v57, %v2735_v21  ;;  %v3772_v41 = vmul.f32 %v6273_v25, %v6599_v37 }
 0x2c4   :  { %v3773_v30 = vmul.f32 %v6273_v25, %v6619_v63  ;;  %v3553_v50 = vrot.slane %v6344_v17, 2  ;;  %v3696_v9 = vsel %vm907_vm2, %v3694_v5, %v3695_v46  ;;  %v3699_v57 = vsel %vm907_vm2, %v3697_v16, %v3698_v51 }
 0x2c5   :  { %2833 = vst [vmem:[#allocation2 + $0xb1] sm:$0xff] %v2817_v15  ;;  %v2820_v10 = vmax.f32 %v2804_v54, 0.0  ;;  %v2802_v26 = vadd.f32 %v6235_v43, %v2779_v52  ;;  %v3842_v39 = vrot.slane %v3772_v41, 2  ;;  %v3847_v37 = vsel %vm907_vm2, %v3845_v44, %v3846_v7 }
 0x2c6   :  { %v3746_v43 = vadd.f32 %v3696_v9, %v3598_v60  ;;  %v3747_v56 = vadd.f32 %v3699_v57, %v3599_v58  ;;  %v3843_v2 = vrot.slane %v3773_v30, 2  ;;  %v3015_v17 = vsel %vm353_vm0, %v6281_v48, %v2880_v0 }
 0x2c7   :  { %2836 = vst [vmem:[#allocation2 + $0xe1] sm:$0xff] %v2820_v10  ;;  %v2818_v53 = vmax.f32 %v2802_v26, 0.0  ;;  %v7094_v28 = vrot.slane %v6319_v27, 1  ;;  %v7095_v11 = vrot.slane %v6252_v18, 1  ;;  %v7096_v62 = vrot.slane %v6269_v49, 2 }
 0x2c8   :  { %v3844_v63 = vsel %vm907_vm2, %v3842_v39, %v3843_v2  ;;  %v3895_v19 = vadd.f32 %v3847_v37, %v3747_v56  ;;  %v6700_v48 = vmul.f32 %v6264_v24, %v3015_v17  ;;  %v6703_v36 = vmul.f32 %v6273_v25, %v3015_v17 }
 0x2c9   :  { %2834 = vst [vmem:[#allocation2 + $0xc1] sm:$0xff] %v2818_v53  ;;  %v3110_v14 = vsel %vm462_vm1, %v7095_v11, %v7094_v28  ;;  %v6695_v7 = vsel %vm907_vm2, %v7096_v62, %v3553_v50  ;;  %v3894_v22 = vadd.f32 %v3844_v63, %v3746_v43 }
 0x2ca   :  { %v6697_v40 = vld [vmem:[#allocation2 + $0xd0] sm:$0xff]  ;;  %v2868_v34 = vld [vmem:[#allocation2 + $0xd8] sm:$0x3] }
 0x2cb   :  { %v2953_v18 = vmul.f32 %v6304_v31, %v6697_v40  ;;  %v2989_v27 = vrot.slane %v6697_v40, 6  ;;  %v3334_v49 = vmul.f32 %v6264_v24, %v6697_v40  ;;  %v6712_v38 = vmul.f32 %v6273_v25, %v6697_v40 }
 0x2cc   :  { %v3907_v35 = vpack.c.bf16 %v3895_v19, %v3894_v22  ;;  %v2863_v6 = vld [vmem:[#allocation2 + $0xb0] sm:$0xff]  ;;  %v6716_v45 = vmul.f32 %v6255_v55, %v6697_v40  ;;  %v6720_v42 = vmul.f32 %v6296_v32, %v6697_v40  ;;  %v6724_v33 = vmul.f32 %v6239_v29, %v6697_v40  ;;  %v2864_v58 = vld [vmem:[#allocation2 + $0xb8] sm:$0x3] }
 0x2cd   :  { %v2897_v47 = vmul.f32 %v6255_v55, %v2863_v6  ;;  %v2916_v23 = vmul.f32 %v6296_v32, %v2863_v6  ;;  %v2987_v21 = vrot.slane %v2863_v6, 6  ;;  %v6729_v60 = vsel %vm353_vm0, %v2989_v27, %v2868_v34 }
 0x2ce   :  { %4350 = vmatmul.mubr.bf16.gmra.mxu0 %v3907_v35  ;;  %v3038_v3 = vmul.f32 %v6239_v29, %v2863_v6  ;;  %v3184_v59 = vmul.f32 %v6307_v20, %v2863_v6  ;;  %v3335_v15 = vmul.f32 %v6264_v24, %v6729_v60  ;;  %v3407_v54 = vrot.slane %v3334_v49, 1 }
 0x2cf   :  { %v2932_v52 = vadd.f32 %v2916_v23, %v6313_v1  ;;  %v3007_v5 = vsel %vm353_vm0, %v2987_v21, %v2864_v58  ;;  %v3482_v46 = vmul.f32 %v6259_v61, %v2863_v6  ;;  %v3628_v16 = vmul.f32 %v6316_v8, %v2863_v6 }
 0x2d0   :  { %v6739_v51 = vld [vmem:[#allocation2 + $0xc0] sm:$0xff]  ;;  %v3039_v41 = vmul.f32 %v6239_v29, %v3007_v5  ;;  %v3111_v10 = vrot.slane %v3038_v3, 1  ;;  %v3185_v26 = vmul.f32 %v6307_v20, %v3007_v5  ;;  %v3256_v30 = vrot.slane %v3184_v59, 1  ;;  %v2866_v57 = vld [vmem:[#allocation2 + $0xc8] sm:$0x3] }
 0x2d1   :  { %v2917_v50 = vmul.f32 %v6296_v32, %v6739_v51  ;;  %v2952_v1 = vmul.f32 %v6304_v31, %v6739_v51  ;;  %v2988_v0 = vrot.slane %v6739_v51, 6  ;;  %v3186_v9 = vmul.f32 %v6307_v20, %v6739_v51 }
 0x2d2   :  { %v3112_v39 = vrot.slane %v3039_v41, 1  ;;  %v3257_v37 = vrot.slane %v3185_v26, 1  ;;  %v3332_v53 = vmul.f32 %v6264_v24, %v6739_v51  ;;  %v3408_v43 = vrot.slane %v3335_v15, 1 }
 0x2d3   :  { %v2933_v56 = vadd.f32 %v2917_v50, %v2897_v47  ;;  %v2968_v2 = vadd.f32 %v2952_v1, %v2932_v52  ;;  %v6753_v17 = vsel %vm353_vm0, %v2988_v0, %v2866_v57  ;;  %v3259_v63 = vrot.slane %v3186_v9, 1  ;;  %v4417_v0 = vld [vmem:[%s7078_s7] ss:$0 sm:$0xff] }
 0x2d4   :  { %v3113_v28 = vsel %vm462_vm1, %v3111_v10, %v3112_v39  ;;  %v3187_v11 = vmul.f32 %v6307_v20, %v6753_v17  ;;  %v3258_v62 = vsel %vm462_vm1, %v3256_v30, %v3257_v37  ;;  %v3333_v22 = vmul.f32 %v6264_v24, %v6753_v17 }
 0x2d5   :  { %v2969_v19 = vadd.f32 %v2953_v18, %v2933_v56  ;;  %v3156_v27 = vadd.f32 %v3110_v14, %v2968_v2  ;;  %v3404_v49 = vrot.slane %v3332_v53, 1  ;;  %v3409_v35 = vsel %vm462_vm1, %v3407_v54, %v3408_v43 }
 0x2d6   :  { %v3260_v6 = vrot.slane %v3187_v11, 1  ;;  %v3405_v34 = vrot.slane %v3333_v22, 1  ;;  %v3483_v47 = vmul.f32 %v6259_v61, %v3007_v5  ;;  %v3555_v23 = vrot.slane %v3482_v46, 2  ;;  %v6786_v22 = vld [vmem:[#allocation2 + $0xe0] sm:$0xff] }
 0x2d7   :  { %v3157_v21 = vadd.f32 %v3113_v28, %v2969_v19  ;;  %v3304_v58 = vadd.f32 %v3258_v62, %v3156_v27  ;;  %v3629_v3 = vmul.f32 %v6316_v8, %v3007_v5  ;;  %v3630_v59 = vmul.f32 %v6316_v8, %v6739_v51 }
 0x2d8   :  { %v3261_v15 = vsel %vm462_vm1, %v3259_v63, %v3260_v6  ;;  %v3406_v18 = vsel %vm462_vm1, %v3404_v49, %v3405_v34  ;;  %v3556_v14 = vrot.slane %v3483_v47, 2  ;;  %v3631_v54 = vmul.f32 %v6316_v8, %v6753_v17  ;;  %v4418_v63 = vld [vmem:[%s7079_s8] ss:$0 sm:$0xff] }
 0x2d9   :  { %v3305_v52 = vadd.f32 %v3261_v15, %v3157_v21  ;;  %v3452_v41 = vadd.f32 %v3406_v18, %v3304_v58  ;;  %v3700_v10 = vrot.slane %v3628_v16, 2  ;;  %v3701_v26 = vrot.slane %v3629_v3, 2 }
 0x2da   :  { %v3557_v30 = vsel %vm907_vm2, %v3555_v23, %v3556_v14  ;;  %v3703_v50 = vrot.slane %v3630_v59, 2  ;;  %v3704_v5 = vrot.slane %v3631_v54, 2  ;;  %v3776_v1 = vmul.f32 %v6273_v25, %v6739_v51 }
 0x2db   :  { %v4327_v46 = vpop.f32.mrf.mxu1  ;;  %v3453_v57 = vadd.f32 %v3409_v35, %v3305_v52  ;;  %v3600_v39 = vadd.f32 %v6695_v7, %v3452_v41  ;;  %v3702_v37 = vsel %vm907_vm2, %v3700_v10, %v3701_v26  ;;  %v3777_v43 = vmul.f32 %v6273_v25, %v6753_v17 }
 0x2dc   :  { %v2784_v9 = vmul.f32 %v4417_v0, %v4327_v46  ;;  %v3705_v53 = vsel %vm907_vm2, %v3703_v50, %v3704_v5  ;;  %v3779_v56 = vmul.f32 %v6273_v25, %v6729_v60  ;;  %v3848_v2 = vrot.slane %v3776_v1, 2  ;;  %v2870_v5 = vld [vmem:[#allocation2 + $0xe8] sm:$0x3] }
 0x2dd   :  { %v2748_v16 = vpop.f32.mrf.mxu1  ;;  %v3601_v62 = vadd.f32 %v3557_v30, %v3453_v57  ;;  %v3748_v7 = vadd.f32 %v3702_v37, %v3600_v39  ;;  %v3849_v27 = vrot.slane %v3777_v43, 2  ;;  %v3851_v49 = vrot.slane %v6712_v38, 2 }
 0x2de   :  { %v2807_v28 = vadd.f32 %v4418_v63, %v2784_v9  ;;  %v2782_v11 = vmul.f32 %v4417_v0, %v2748_v16  ;;  %v3852_v35 = vrot.slane %v3779_v56, 2  ;;  %v2898_v6 = vmul.f32 %v6255_v55, %v6739_v51 }
 0x2df   :  { %v4328_v19 = vpop.f32.mrf.mxu1  ;;  %v3749_v21 = vadd.f32 %v3705_v53, %v3601_v62  ;;  %v3850_v3 = vsel %vm907_vm2, %v3848_v2, %v3849_v27  ;;  %v2919_v15 = vmul.f32 %v6296_v32, %v6786_v22  ;;  %v2954_v26 = vmul.f32 %v6304_v31, %v6786_v22 }
 0x2e0   :  { %v2823_v34 = vmax.f32 %v2807_v28, 0.0  ;;  %v2805_v47 = vadd.f32 %v4418_v63, %v2782_v11  ;;  %v2785_v23 = vmul.f32 %v4417_v0, %v4328_v19  ;;  %v3853_v59 = vsel %vm907_vm2, %v3851_v49, %v3852_v35 }
 0x2e1   :  { %v2751_v58 = vpop.f32.mrf.mxu1  ;;  %v2934_v18 = vadd.f32 %v6720_v42, %v2898_v6  ;;  %v3896_v52 = vadd.f32 %v3850_v3, %v3748_v7  ;;  %v3897_v41 = vadd.f32 %v3853_v59, %v3749_v21  ;;  %v2935_v10 = vadd.f32 %v2919_v15, %v6716_v45 }
 0x2e2   :  { %2839 = vst [vmem:[#allocation2 + $0x111] sm:$0xff] %v2823_v34  ;;  %v2821_v38 = vmax.f32 %v2805_v47, 0.0  ;;  %v2808_v14 = vadd.f32 %v4418_v63, %v2785_v23  ;;  %v2783_v54 = vmul.f32 %v4417_v0, %v2751_v58  ;;  %v2990_v46 = vrot.slane %v6786_v22, 6 }
 0x2e3   :  { %v3040_v42 = vmul.f32 %v6239_v29, %v6739_v51  ;;  %v3041_v1 = vmul.f32 %v6239_v29, %v6753_v17  ;;  %v3908_v0 = vpack.c.bf16 %v3897_v41, %v3896_v52  ;;  %v2970_v9 = vadd.f32 %v2954_v26, %v2934_v18 }
 0x2e4   :  { %2837 = vst [vmem:[#allocation2 + $0xf1] sm:$0xff] %v2821_v38  ;;  %v2824_v30 = vmax.f32 %v2808_v14, 0.0  ;;  %v2806_v50 = vadd.f32 %v4418_v63, %v2783_v54  ;;  %v6805_v57 = vsel %vm353_vm0, %v2990_v46, %v2870_v5  ;;  %v3043_v45 = vmul.f32 %v6239_v29, %v6729_v60 }
 0x2e5   :  { %v3114_v37 = vrot.slane %v3040_v42, 1  ;;  %v3115_v16 = vrot.slane %v3041_v1, 1  ;;  %v3117_v53 = vrot.slane %v6724_v33, 1  ;;  %4353 = vmatprep.mubr.bf16.mxu1 %v3908_v0  ;;  %v3188_v56 = vmul.f32 %v6307_v20, %v6697_v40 }
 0x2e6   :  { %2840 = vst [vmem:[#allocation2 + $0x121] sm:$0xff] %v2824_v30  ;;  %v2822_v39 = vmax.f32 %v2806_v50, 0.0  ;;  %v3118_v43 = vrot.slane %v3043_v45, 1  ;;  %v3189_v2 = vmul.f32 %v6307_v20, %v6729_v60  ;;  %v3190_v63 = vmul.f32 %v6307_v20, %v6786_v22 }
 0x2e7   :  { %v3116_v28 = vsel %vm462_vm1, %v3114_v37, %v3115_v16  ;;  %v3191_v11 = vmul.f32 %v6307_v20, %v6805_v57  ;;  %v3336_v33 = vmul.f32 %v6264_v24, %v6786_v22  ;;  %v3337_v62 = vmul.f32 %v6264_v24, %v6805_v57 }
 0x2e8   :  { %2838 = vst [vmem:[#allocation2 + $0x101] sm:$0xff] %v2822_v39  ;;  %v3119_v7 = vsel %vm462_vm1, %v3117_v53, %v3118_v43  ;;  %v3158_v19 = vadd.f32 %v3116_v28, %v2970_v9  ;;  %v3262_v27 = vrot.slane %v3188_v56, 1  ;;  %v3263_v49 = vrot.slane %v3189_v2, 1 }
 0x2e9   :  { %v3265_v35 = vrot.slane %v3190_v63, 1  ;;  %v3266_v6 = vrot.slane %v3191_v11, 1  ;;  %v3410_v34 = vrot.slane %v3336_v33, 1  ;;  %v3411_v47 = vrot.slane %v3337_v62, 1 }
 0x2ea   :  { %v3264_v21 = vsel %vm462_vm1, %v3262_v27, %v3263_v49  ;;  %v3484_v58 = vmul.f32 %v6259_v61, %v6739_v51  ;;  %v3485_v3 = vmul.f32 %v6259_v61, %v6753_v17  ;;  %v3486_v59 = vmul.f32 %v6259_v61, %v6697_v40 }
 0x2eb   :  { %v6824_v23 = vld [vmem:[#allocation2 + $0xf0] sm:$0xff]  ;;  %v3267_v38 = vsel %vm462_vm1, %v3265_v35, %v3266_v6  ;;  %v3306_v14 = vadd.f32 %v3264_v21, %v3158_v19  ;;  %v2872_v54 = vld [vmem:[#allocation2 + $0xf8] sm:$0x3]  ;;  %v3412_v51 = vsel %vm462_vm1, %v3410_v34, %v3411_v47  ;;  %v3487_v17 = vmul.f32 %v6259_v61, %v6729_v60 }
 0x2ec   :  { %v2955_v15 = vmul.f32 %v6304_v31, %v6824_v23  ;;  %v2991_v18 = vrot.slane %v6824_v23, 6  ;;  %v3338_v52 = vmul.f32 %v6264_v24, %v6824_v23  ;;  %v3558_v41 = vrot.slane %v3484_v58, 2 }
 0x2ed   :  { %v3454_v30 = vadd.f32 %v3412_v51, %v3306_v14  ;;  %v3559_v50 = vrot.slane %v3485_v3, 2  ;;  %v3561_v1 = vrot.slane %v3486_v59, 2  ;;  %v3562_v0 = vrot.slane %v3487_v17, 2  ;;  %v6870_v59 = vld [vmem:[#allocation2 + $0x110] sm:$0xff] }
 0x2ee   :  { %v2971_v26 = vadd.f32 %v2955_v15, %v2935_v10  ;;  %v6843_v46 = vsel %vm353_vm0, %v2991_v18, %v2872_v54  ;;  %v3413_v42 = vrot.slane %v3338_v52, 1  ;;  %v3632_v39 = vmul.f32 %v6316_v8, %v6697_v40 }
 0x2ef   :  { %v3339_v5 = vmul.f32 %v6264_v24, %v6843_v46  ;;  %v3560_v45 = vsel %vm907_vm2, %v3558_v41, %v3559_v50  ;;  %v3633_v10 = vmul.f32 %v6316_v8, %v6729_v60  ;;  %v3563_v16 = vsel %vm907_vm2, %v3561_v1, %v3562_v0  ;;  %v6867_v47 = vld [vmem:[#allocation2 + $0x100] sm:$0xff]  ;;  %v2874_v1 = vld [vmem:[#allocation2 + $0x108] sm:$0x3] }
 0x2f0   :  { %v3159_v9 = vadd.f32 %v3119_v7, %v2971_v26  ;;  %v3602_v53 = vadd.f32 %v3560_v45, %v3454_v30  ;;  %v3634_v43 = vmul.f32 %v6316_v8, %v6786_v22  ;;  %v3635_v2 = vmul.f32 %v6316_v8, %v6805_v57 }
 0x2f1   :  { %v3414_v37 = vrot.slane %v3339_v5, 1  ;;  %v3706_v63 = vrot.slane %v3632_v39, 2  ;;  %v3707_v28 = vrot.slane %v3633_v10, 2  ;;  %v3780_v40 = vmul.f32 %v6273_v25, %v6786_v22  ;;  %v2876_v39 = vld [vmem:[#allocation2 + $0x118] sm:$0x3] }
 0x2f2   :  { %v3307_v56 = vadd.f32 %v3267_v38, %v3159_v9  ;;  %v3709_v33 = vrot.slane %v3634_v43, 2  ;;  %v3781_v60 = vmul.f32 %v6273_v25, %v6805_v57  ;;  %v3710_v19 = vrot.slane %v3635_v2, 2 }
 0x2f3   :  { %v3415_v11 = vsel %vm462_vm1, %v3413_v42, %v3414_v37  ;;  %v3708_v7 = vsel %vm907_vm2, %v3706_v63, %v3707_v28  ;;  %v3782_v27 = vmul.f32 %v6273_v25, %v6824_v23  ;;  %v3783_v35 = vmul.f32 %v6273_v25, %v6843_v46 }
 0x2f4   :  { %v3455_v62 = vadd.f32 %v3415_v11, %v3307_v56  ;;  %v3750_v49 = vadd.f32 %v3708_v7, %v3602_v53  ;;  %v3854_v6 = vrot.slane %v3780_v40, 2  ;;  %v3855_v34 = vrot.slane %v3781_v60, 2 }
 0x2f5   :  { %v3711_v58 = vsel %vm907_vm2, %v3709_v33, %v3710_v19  ;;  %v3857_v3 = vrot.slane %v3782_v27, 2  ;;  %v2900_v15 = vmul.f32 %v6255_v55, %v6786_v22  ;;  %v3858_v38 = vrot.slane %v3783_v35, 2 }
 0x2f6   :  { %v3603_v21 = vadd.f32 %v3563_v16, %v3455_v62  ;;  %v3856_v18 = vsel %vm907_vm2, %v3854_v6, %v3855_v34  ;;  %v2901_v14 = vmul.f32 %v6255_v55, %v6824_v23  ;;  %v2920_v54 = vmul.f32 %v6296_v32, %v6824_v23 }
 0x2f7   :  { %v3898_v51 = vadd.f32 %v3856_v18, %v3750_v49  ;;  %v2921_v17 = vmul.f32 %v6296_v32, %v6867_v47  ;;  %v2956_v41 = vmul.f32 %v6304_v31, %v6867_v47  ;;  %v3859_v26 = vsel %vm907_vm2, %v3857_v3, %v3858_v38 }
 0x2f8   :  { %v3751_v52 = vadd.f32 %v3711_v58, %v3603_v21  ;;  %v2936_v30 = vadd.f32 %v2920_v54, %v2900_v15  ;;  %v2957_v50 = vmul.f32 %v6304_v31, %v6870_v59  ;;  %v2992_v5 = vrot.slane %v6867_v47, 6 }
 0x2f9   :  { %v2937_v0 = vadd.f32 %v2921_v17, %v2901_v14  ;;  %v2993_v9 = vrot.slane %v6870_v59, 6  ;;  %v3044_v45 = vmul.f32 %v6239_v29, %v6786_v22  ;;  %v3045_v16 = vmul.f32 %v6239_v29, %v6805_v57 }
 0x2fa   :  { %v3899_v42 = vadd.f32 %v3859_v26, %v3751_v52  ;;  %v2972_v10 = vadd.f32 %v2956_v41, %v2936_v30  ;;  %v6891_v37 = vsel %vm353_vm0, %v2992_v5, %v2874_v1  ;;  %v3046_v53 = vmul.f32 %v6239_v29, %v6824_v23 }
 0x2fb   :  { %v2973_v56 = vadd.f32 %v2957_v50, %v2937_v0  ;;  %v6898_v2 = vsel %vm353_vm0, %v2993_v9, %v2876_v39  ;;  %v3047_v63 = vmul.f32 %v6239_v29, %v6843_v46  ;;  %v3120_v28 = vrot.slane %v3044_v45, 1 }
 0x2fc   :  { %v3909_v43 = vpack.c.bf16 %v3899_v42, %v3898_v51  ;;  %v3121_v11 = vrot.slane %v3045_v16, 1  ;;  %v3123_v33 = vrot.slane %v3046_v53, 1  ;;  %v3192_v40 = vmul.f32 %v6307_v20, %v6824_v23 }
 0x2fd   :  { %v3124_v60 = vrot.slane %v3047_v63, 1  ;;  %v3193_v62 = vmul.f32 %v6307_v20, %v6843_v46  ;;  %v3194_v7 = vmul.f32 %v6307_v20, %v6867_v47  ;;  %v3195_v19 = vmul.f32 %v6307_v20, %v6891_v37 }
 0x2fe   :  { %4354 = vmatmul.mubr.bf16.vlgmr.msra.gmra.mxu1 %v3909_v43  ;;  %v3122_v27 = vsel %vm462_vm1, %v3120_v28, %v3121_v11  ;;  %v3268_v49 = vrot.slane %v3192_v40, 1  ;;  %v3340_v35 = vmul.f32 %v6264_v24, %v6867_v47  ;;  %v3341_v6 = vmul.f32 %v6264_v24, %v6891_v37 }
 0x2ff   :  { %v3125_v34 = vsel %vm462_vm1, %v3123_v33, %v3124_v60  ;;  %v3160_v21 = vadd.f32 %v3122_v27, %v2972_v10  ;;  %v3269_v58 = vrot.slane %v3193_v62, 1  ;;  %v3271_v3 = vrot.slane %v3194_v7, 1 }
 0x300   :  { %v3161_v15 = vadd.f32 %v3125_v34, %v2973_v56  ;;  %v3272_v18 = vrot.slane %v3195_v19, 1  ;;  %v3342_v38 = vmul.f32 %v6264_v24, %v6870_v59  ;;  %v3343_v14 = vmul.f32 %v6264_v24, %v6898_v2 }
 0x301   :  { %v3270_v54 = vsel %vm462_vm1, %v3268_v49, %v3269_v58  ;;  %v3416_v52 = vrot.slane %v3340_v35, 1  ;;  %v3417_v51 = vrot.slane %v3341_v6, 1  ;;  %v3488_v17 = vmul.f32 %v6259_v61, %v6786_v22  ;;  %v6951_v58 = vld [vmem:[#allocation2 + $0x120] sm:$0xff] }
 0x302   :  { %v3273_v41 = vsel %vm462_vm1, %v3271_v3, %v3272_v18  ;;  %v3308_v26 = vadd.f32 %v3270_v54, %v3160_v21  ;;  %v3419_v30 = vrot.slane %v3342_v38, 1  ;;  %v3420_v50 = vrot.slane %v3343_v14, 1 }
 0x303   :  { %v3309_v5 = vadd.f32 %v3273_v41, %v3161_v15  ;;  %v3418_v42 = vsel %vm462_vm1, %v3416_v52, %v3417_v51  ;;  %v3489_v1 = vmul.f32 %v6259_v61, %v6805_v57  ;;  %v3490_v0 = vmul.f32 %v6259_v61, %v6824_v23 }
 0x304   :  { %v3421_v9 = vsel %vm462_vm1, %v3419_v30, %v3420_v50  ;;  %v3456_v45 = vadd.f32 %v3418_v42, %v3308_v26  ;;  %v3491_v22 = vmul.f32 %v6259_v61, %v6843_v46  ;;  %v3564_v39 = vrot.slane %v3488_v17, 2 }
 0x305   :  { %v3457_v10 = vadd.f32 %v3421_v9, %v3309_v5  ;;  %v3565_v16 = vrot.slane %v3489_v1, 2  ;;  %v3567_v53 = vrot.slane %v3490_v0, 2  ;;  %v3636_v43 = vmul.f32 %v6316_v8, %v6824_v23 }
 0x306   :  { %v3568_v56 = vrot.slane %v3491_v22, 2  ;;  %v3637_v57 = vmul.f32 %v6316_v8, %v6843_v46  ;;  %v3638_v63 = vmul.f32 %v6316_v8, %v6867_v47  ;;  %v3639_v28 = vmul.f32 %v6316_v8, %v6891_v37 }
 0x307   :  { %v3566_v11 = vsel %vm907_vm2, %v3564_v39, %v3565_v16  ;;  %v3712_v33 = vrot.slane %v3636_v43, 2  ;;  %v3784_v40 = vmul.f32 %v6273_v25, %v6867_v47  ;;  %v3785_v60 = vmul.f32 %v6273_v25, %v6891_v37 }
 0x308   :  { %v3569_v23 = vsel %vm907_vm2, %v3567_v53, %v3568_v56  ;;  %v3604_v62 = vadd.f32 %v3566_v11, %v3456_v45  ;;  %v3713_v7 = vrot.slane %v3637_v57, 2  ;;  %v3715_v46 = vrot.slane %v3638_v63, 2 }
 0x309   :  { %v3605_v19 = vadd.f32 %v3569_v23, %v3457_v10  ;;  %v3716_v27 = vrot.slane %v3639_v28, 2  ;;  %v3786_v49 = vmul.f32 %v6273_v25, %v6870_v59  ;;  %v3787_v35 = vmul.f32 %v6273_v25, %v6898_v2 }
 0x30a   :  { %v3714_v6 = vsel %vm907_vm2, %v3712_v33, %v3713_v7  ;;  %v3860_v34 = vrot.slane %v3784_v40, 2  ;;  %v3861_v21 = vrot.slane %v3785_v60, 2  ;;  %v2902_v3 = vmul.f32 %v6255_v55, %v6867_v47 }
 0x30b   :  { %v3717_v15 = vsel %vm907_vm2, %v3715_v46, %v3716_v27  ;;  %v3752_v18 = vadd.f32 %v3714_v6, %v3604_v62  ;;  %v3863_v38 = vrot.slane %v3786_v49, 2  ;;  %v3864_v14 = vrot.slane %v3787_v35, 2 }
 0x30c   :  { %v3753_v54 = vadd.f32 %v3717_v15, %v3605_v19  ;;  %v3862_v52 = vsel %vm907_vm2, %v3860_v34, %v3861_v21  ;;  %v2903_v51 = vmul.f32 %v6255_v55, %v6870_v59  ;;  %v2922_v17 = vmul.f32 %v6296_v32, %v6870_v59  ;;  %v2878_v55 = vld [vmem:[#allocation2 + $0x128] sm:$0x3] }
 0x30d   :  { %v3865_v41 = vsel %vm907_vm2, %v3863_v38, %v3864_v14  ;;  %v3900_v26 = vadd.f32 %v3862_v52, %v3752_v18  ;;  %v2923_v30 = vmul.f32 %v6296_v32, %v6951_v58  ;;  %v2958_v50 = vmul.f32 %v6304_v31, %v6951_v58 }
 0x30e   :  { %v3901_v5 = vadd.f32 %v3865_v41, %v3753_v54  ;;  %v2938_v42 = vadd.f32 %v2922_v17, %v2902_v3  ;;  %v2994_v1 = vrot.slane %v6951_v58, 6  ;;  %v3048_v0 = vmul.f32 %v6239_v29, %v6867_v47 }
 0x30f   :  { %v2939_v9 = vadd.f32 %v2923_v30, %v2903_v51  ;;  %v3049_v45 = vmul.f32 %v6239_v29, %v6891_v37  ;;  %v3050_v22 = vmul.f32 %v6239_v29, %v6870_v59  ;;  %v3051_v32 = vmul.f32 %v6239_v29, %v6898_v2 }
 0x310   :  { %v3910_v39 = vpack.c.bf16 %v3901_v5, %v3900_v26  ;;  %v2974_v31 = vadd.f32 %v2958_v50, %v2938_v42  ;;  %v3014_v10 = vsel %vm353_vm0, %v2994_v1, %v2878_v55  ;;  %v3126_v16 = vrot.slane %v3048_v0, 1 }
 0x311   :  { %v2975_v53 = vadd.f32 %v6331_v13, %v2939_v9  ;;  %v3127_v43 = vrot.slane %v3049_v45, 1  ;;  %v3129_v56 = vrot.slane %v3050_v22, 1  ;;  %v3130_v57 = vrot.slane %v3051_v32, 1 }
 0x312   :  { %4357 = vmatprep.mubr.bf16.mxu1 %v3910_v39  ;;  %v3196_v63 = vmul.f32 %v6307_v20, %v6870_v59  ;;  %v3197_v28 = vmul.f32 %v6307_v20, %v6898_v2  ;;  %v3198_v29 = vmul.f32 %v6307_v20, %v6951_v58  ;;  %v3199_v11 = vmul.f32 %v6307_v20, %v3014_v10 }
 0x313   :  { %v3128_v33 = vsel %vm462_vm1, %v3126_v16, %v3127_v43  ;;  %v3131_v40 = vsel %vm462_vm1, %v3129_v56, %v3130_v57  ;;  %v3344_v13 = vmul.f32 %v6264_v24, %v6951_v58  ;;  %v3345_v60 = vmul.f32 %v6264_v24, %v3014_v10 }
 0x314   :  { %v3162_v23 = vadd.f32 %v3128_v33, %v2974_v31  ;;  %v3163_v62 = vadd.f32 %v3131_v40, %v2975_v53  ;;  %v3274_v7 = vrot.slane %v3196_v63, 1  ;;  %v3275_v46 = vrot.slane %v3197_v28, 1  ;;  %v4119_v33 = vld [vmem:[#allocation3] sm:$0xff] }
 0x315   :  { %v3277_v19 = vrot.slane %v3198_v29, 1  ;;  %v3278_v27 = vrot.slane %v3199_v11, 1  ;;  %v3422_v49 = vrot.slane %v3344_v13, 1  ;;  %v3423_v35 = vrot.slane %v3345_v60, 1 }
 0x316   :  { %v3276_v6 = vsel %vm462_vm1, %v3274_v7, %v3275_v46  ;;  %v3426_v20 = vrot.slane %v6700_v48, 1  ;;  %v3492_v34 = vmul.f32 %v6259_v61, %v6867_v47  ;;  %v3493_v21 = vmul.f32 %v6259_v61, %v6891_v37 }
 0x317   :  { %v3279_v24 = vsel %vm462_vm1, %v3277_v19, %v3278_v27  ;;  %v3310_v3 = vadd.f32 %v3276_v6, %v3162_v23  ;;  %v3424_v15 = vsel %vm462_vm1, %v3422_v49, %v3423_v35  ;;  %v3494_v18 = vmul.f32 %v6259_v61, %v6870_v59  ;;  %v4120_v49 = vld [vmem:[#allocation3 + $0x8] sm:$0xff] }
 0x318   :  { %v3311_v38 = vadd.f32 %v3279_v24, %v3163_v62  ;;  %v7097_v14 = vrot.slane %v6286_v4, 1  ;;  %v3495_v48 = vmul.f32 %v6259_v61, %v6898_v2  ;;  %v3570_v47 = vrot.slane %v3492_v34, 2  ;;  %v4122_v62 = vld [vmem:[#allocation3 + $0x18] sm:$0xff]  ;;  %v4125_v24 = vld [vmem:[#allocation3 + $0x30] sm:$0xff] }
 0x319   :  { %v3458_v52 = vadd.f32 %v3424_v15, %v3310_v3  ;;  %v3571_v51 = vrot.slane %v3493_v21, 2  ;;  %v3573_v37 = vrot.slane %v3494_v18, 2  ;;  %v3640_v17 = vmul.f32 %v6316_v8, %v6870_v59 }
 0x31a   :  { %v3427_v54 = vsel %vm462_vm1, %v7097_v14, %v3426_v20  ;;  %v3574_v26 = vrot.slane %v3495_v48, 2  ;;  %v3641_v30 = vmul.f32 %v6316_v8, %v6898_v2  ;;  %v3642_v4 = vmul.f32 %v6316_v8, %v6951_v58 }
 0x31b   :  { %v3459_v41 = vadd.f32 %v3427_v54, %v3311_v38  ;;  %v3572_v50 = vsel %vm907_vm2, %v3570_v47, %v3571_v51  ;;  %v3643_v5 = vmul.f32 %v6316_v8, %v3014_v10  ;;  %v3788_v61 = vmul.f32 %v6273_v25, %v6951_v58  ;;  %v4123_v38 = vld [vmem:[#allocation3 + $0x20] sm:$0xff] }
 0x31c   :  { %v3575_v42 = vsel %vm907_vm2, %v3573_v37, %v3574_v26  ;;  %v3606_v1 = vadd.f32 %v3572_v50, %v3458_v52  ;;  %v3718_v0 = vrot.slane %v3640_v17, 2  ;;  %v3719_v59 = vrot.slane %v3641_v30, 2  ;;  %v4126_v52 = vld [vmem:[#allocation3 + $0x38] sm:$0xff]  ;;  %v4124_v26 = vld [vmem:[#allocation3 + $0x28] sm:$0xff] }
 0x31d   :  { %v3607_v55 = vadd.f32 %v3575_v42, %v3459_v41  ;;  %v3721_v9 = vrot.slane %v3642_v4, 2  ;;  %v3722_v45 = vrot.slane %v3643_v5, 2  ;;  %v3789_v2 = vmul.f32 %v6273_v25, %v3014_v10  ;;  %v7026_v25 = vld [vmem:[%s7082_s11] ss:$0 sm:$0xff]  ;;  %v4129_v42 = vld [vmem:[#allocation3 + $0x50] sm:$0xff]  ;;  %s4580_s11 = smov [#allocation14]  }
 0x31e   :  { %v3720_v22 = vsel %vm907_vm2, %v3718_v0, %v3719_v59  ;;  %v3870_v32 = vrot.slane %v6703_v36, 2  ;;  %v3866_v31 = vrot.slane %v3788_v61, 2  ;;  %v7031_v10 = vld [vmem:[%s7083_s12] ss:$0 sm:$0xff]  ;;  %s4172_s12 = sshll.u32 %s4580_s11, 4  ;;  %s4173_s12 = int_to_ptr.vmem [resolvable:$true] %s4172_s12 }
 0x31f   :  { %v3723_v39 = vsel %vm907_vm2, %v3721_v9, %v3722_v45  ;;  %v3754_v8 = vadd.f32 %v3720_v22, %v3606_v1  ;;  %v3867_v16 = vrot.slane %v3789_v2, 2  ;;  %s4539_s6 = scalar_lea.vmem %s4173_s12, 2048  ;;  %p4544_p3 = scmp.lt.s32.totalorder %s4173_s12, %s4173_s12 }
 0x320   :  { %v3755_v58 = vadd.f32 %v3723_v39, %v3607_v55  ;;  %v3871_v53 = vsel %vm907_vm2, %v3845_v44, %v3870_v32  ;;  %v4121_v44 = vld [vmem:[#allocation3 + $0x10] sm:$0xff]  ;;  %v4127_v55 = vld [vmem:[#allocation3 + $0x40] sm:$0xff]  ;;  %v4130_v32 = vld [vmem:[#allocation3 + $0x58] sm:$0xff]  ;;  %p4540_p2 = scmp.ne.s32.totalorder %s4173_s12, %s4539_s6  ;;  %p4545_p4 = scmp.lt.s32.totalorder %s4539_s6, %s4539_s6 }
 0x321   :  { %v3868_v43 = vsel %vm907_vm2, %v3866_v31, %v3867_v16 }
 0x322   :  { %v3902_v56 = vadd.f32 %v3868_v43, %v3754_v8  ;;  %v3903_v57 = vadd.f32 %v3871_v53, %v3755_v58  ;;  %v4128_v58 = vld [vmem:[#allocation3 + $0x48] sm:$0xff]  ;;  %p4546_p5 = por %p4545_p4, %p4544_p3 }
 0x324   :  { %v3911_v63 = vpack.c.bf16 %v3903_v57, %v3902_v56  ;;  %p4547_p6 = pnand %p4546_p5, %p4540_p2 }
 0x326   :  { %4358 = vmatmul.mubr.bf16.gmra.mxu1 %v3911_v63 }
 0x365   :  { %v4347_v36 = vpop.f32.mrf.mxu0 }
 0x366   :  { %v4082_v12 = vmul.f32 %v4347_v36, %v7026_v25  ;;  %v4133_v36 = vld [vmem:[#allocation3 + $0x70] sm:$0xff] }
 0x367   :  { %v4010_v28 = vpop.f32.mrf.mxu0 }
 0x368   :  { %v4105_v29 = vadd.f32 %v7031_v10, %v4082_v12  ;;  %v4080_v11 = vmul.f32 %v7026_v25, %v4010_v28 }
 0x369   :  { %v4348_v40 = vpop.f32.mrf.mxu0 }
 0x36a   :  { %v4137_v13 = vadd.f32 %v4121_v44, %v4105_v29  ;;  %v4103_v60 = vadd.f32 %v7031_v10, %v4080_v11  ;;  %v4083_v23 = vmul.f32 %v4348_v40, %v7026_v25  ;;  %v4131_v29 = vld [vmem:[#allocation3 + $0x60] sm:$0xff] }
 0x36b   :  { %v4013_v7 = vpop.f32.mrf.mxu0 }
 0x36c   :  { %4153 = vst [vmem:[#allocation14 + $0x10] sm:$0xff] %v4137_v13  ;;  %v4135_v46 = vadd.f32 %v4119_v33, %v4103_v60  ;;  %v4106_v19 = vadd.f32 %v7031_v10, %v4083_v23  ;;  %v4081_v27 = vmul.f32 %v7026_v25, %v4013_v7  ;;  %v4134_v60 = vld [vmem:[#allocation3 + $0x78] sm:$0xff] }
 0x36e   :  { %4151 = vst [vmem:[#allocation14] sm:$0xff] %v4135_v46  ;;  %v4138_v35 = vadd.f32 %v4122_v62, %v4106_v19  ;;  %v4104_v6 = vadd.f32 %v7031_v10, %v4081_v27  ;;  %v4132_v19 = vld [vmem:[#allocation3 + $0x68] sm:$0xff] }
 0x370   :  { %4154 = vst [vmem:[#allocation14 + $0x18] sm:$0xff] %v4138_v35  ;;  %v4136_v20 = vadd.f32 %v4120_v49, %v4104_v6 }
 0x372   :  { %4152 = vst [vmem:[#allocation14 + $0x8] sm:$0xff] %v4136_v20 }
 0x38e   :  { %v4351_v34 = vpop.f32.mrf.mxu0 }
 0x38f   :  { %v4086_v21 = vmul.f32 %v4351_v34, %v7026_v25 }
 0x390   :  { %v4026_v3 = vpop.f32.mrf.mxu0 }
 0x391   :  { %v4109_v15 = vadd.f32 %v7031_v10, %v4086_v21  ;;  %v4084_v18 = vmul.f32 %v7026_v25, %v4026_v3 }
 0x392   :  { %v4352_v14 = vpop.f32.mrf.mxu0 }
 0x393   :  { %v4141_v54 = vadd.f32 %v4125_v24, %v4109_v15  ;;  %v4107_v48 = vadd.f32 %v7031_v10, %v4084_v18  ;;  %v4087_v47 = vmul.f32 %v4352_v14, %v7026_v25 }
 0x394   :  { %v4029_v51 = vpop.f32.mrf.mxu0 }
 0x395   :  { %4157 = vst [vmem:[#allocation14 + $0x30] sm:$0xff] %v4141_v54  ;;  %v4139_v37 = vadd.f32 %v4123_v38, %v4107_v48  ;;  %v4110_v17 = vadd.f32 %v7031_v10, %v4087_v47  ;;  %v4085_v41 = vmul.f32 %v7026_v25, %v4029_v51 }
 0x397   :  { %4155 = vst [vmem:[#allocation14 + $0x20] sm:$0xff] %v4139_v37  ;;  %v4142_v30 = vadd.f32 %v4126_v52, %v4110_v17  ;;  %v4108_v4 = vadd.f32 %v7031_v10, %v4085_v41 }
 0x399   :  { %4158 = vst [vmem:[#allocation14 + $0x38] sm:$0xff] %v4142_v30  ;;  %v4140_v50 = vadd.f32 %v4124_v26, %v4108_v4 }
 0x39b   :  { %4156 = vst [vmem:[#allocation14 + $0x28] sm:$0xff] %v4140_v50 }
 0x3be   :  { %v4355_v5 = vpop.f32.mrf.mxu1 }
 0x3bf   :  { %v4090_v61 = vmul.f32 %v4355_v5, %v7026_v25 }
 0x3c0   :  { %v4042_v1 = vpop.f32.mrf.mxu1 }
 0x3c1   :  { %v4113_v0 = vadd.f32 %v7031_v10, %v4090_v61  ;;  %v4088_v59 = vmul.f32 %v7026_v25, %v4042_v1 }
 0x3c2   :  { %v4356_v9 = vpop.f32.mrf.mxu1 }
 0x3c3   :  { %v4145_v45 = vadd.f32 %v4129_v42, %v4113_v0  ;;  %v4111_v2 = vadd.f32 %v7031_v10, %v4088_v59  ;;  %v4091_v22 = vmul.f32 %v4356_v9, %v7026_v25 }
 0x3c4   :  { %v4045_v39 = vpop.f32.mrf.mxu1 }
 0x3c5   :  { %4161 = vst [vmem:[#allocation14 + $0x50] sm:$0xff] %v4145_v45  ;;  %v4143_v8 = vadd.f32 %v4127_v55, %v4111_v2  ;;  %v4114_v31 = vadd.f32 %v7031_v10, %v4091_v22  ;;  %v4089_v16 = vmul.f32 %v7026_v25, %v4045_v39 }
 0x3c7   :  { %4159 = vst [vmem:[#allocation14 + $0x40] sm:$0xff] %v4143_v8  ;;  %v4146_v53 = vadd.f32 %v4130_v32, %v4114_v31  ;;  %v4112_v43 = vadd.f32 %v7031_v10, %v4089_v16 }
 0x3c9   :  { %4162 = vst [vmem:[#allocation14 + $0x58] sm:$0xff] %v4146_v53  ;;  %v4144_v56 = vadd.f32 %v4128_v58, %v4112_v43 }
 0x3cb   :  { %4160 = vst [vmem:[#allocation14 + $0x48] sm:$0xff] %v4144_v56 }
 0x3e6   :  { %v4359_v57 = vpop.f32.mrf.mxu1 }
 0x3e7   :  { %v4094_v63 = vmul.f32 %v4359_v57, %v7026_v25 }
 0x3e8   :  { %v4058_v12 = vpop.f32.mrf.mxu1 }
 0x3e9   :  { %v4117_v44 = vadd.f32 %v7031_v10, %v4094_v63  ;;  %v4092_v28 = vmul.f32 %v7026_v25, %v4058_v12 }
 0x3ea   :  { %v4360_v11 = vpop.f32.mrf.mxu1 }
 0x3eb   :  { %v4149_v33 = vadd.f32 %v4133_v36, %v4117_v44  ;;  %v4115_v40 = vadd.f32 %v7031_v10, %v4092_v28  ;;  %v4095_v13 = vmul.f32 %v4360_v11, %v7026_v25 }
 0x3ec   :  { %v4061_v23 = vpop.f32.mrf.mxu1 }
 0x3ed   :  { %4165 = vst [vmem:[#allocation14 + $0x70] sm:$0xff] %v4149_v33  ;;  %v4147_v62 = vadd.f32 %v4131_v29, %v4115_v40  ;;  %v4118_v7 = vadd.f32 %v7031_v10, %v4095_v13  ;;  %v4093_v46 = vmul.f32 %v7026_v25, %v4061_v23 }
 0x3ef   :  { %4163 = vst [vmem:[#allocation14 + $0x60] sm:$0xff] %v4147_v62  ;;  %v4150_v27 = vadd.f32 %v4134_v60, %v4118_v7  ;;  %v4116_v49 = vadd.f32 %v7031_v10, %v4093_v46 }
 0x3f1   :  { %4166 = vst [vmem:[#allocation14 + $0x78] sm:$0xff] %v4150_v27  ;;  %v4148_v35 = vadd.f32 %v4132_v19, %v4116_v49 }
 0x3f3   :  { %4164 = vst [vmem:[#allocation14 + $0x68] sm:$0xff] %v4148_v35 }
 0x3f4   :  { %4550 = shalt.err (!%p4547_p6)
}
 0x3f5   :  { %4178 = dma.vmem_to_hbm [thread:$0]  %s4173_s12, 2048, %s7084_s13, [#allocation5], %s4574_s22, %s4574_s22, %s4575_s23  }
 0x3f6   :  { %4567 = dma.done.wait [#allocation5], 2048  }
 0x3f7   :  { %4568 = vsyncadd [#allocation5], 4294965248 }
 0x3f8   :  { %4182 = vsyncpa [#allocation4], 1 }
 0x3f9   :  { %4183 = vsyncpa [#allocation7], 1 }
 0x3fa   :  { %4184 = vsyncpa [#allocation10], 1 }
 0x3fb   :  { %4185 = vsyncpa [#allocation13], 1 }
 0x3fc   :  { %4186 = vsyncpa [#allocation5], 1 }

// kernel: middle_flow_block.1
= control target key start
LH: loop header
LB: loop body
LE: loop exit
PB: predicated region body
PF: predicated region fallthrough
CT: control target
= control target key end

     0   :  { %18 = vsyncpa [#allocation4], 0  ;;  %s6792_s0 = inlined_call_operand.hbm [shape: f32[2,8,8,128], index: 0, kind: input, shape index: {}]   ;;  %s6793_s1 = inlined_call_operand.hbm [shape: f32[3,3,128], index: 1, kind: input, shape index: {}]   ;;  %s6794_s2 = inlined_call_operand.hbm [shape: bf16[128,128], index: 2, kind: input, shape index: {}]   ;;  %s6795_s3 = inlined_call_operand.vmem [shape: f32[1,128], index: 3, kind: input, shape index: {}]   ;;  %s6796_s4 = inlined_call_operand.vmem [shape: f32[1,128], index: 4, kind: input, shape index: {}]   ;;  %s6797_s5 = inlined_call_operand.hbm [shape: f32[3,3,128], index: 5, kind: input, shape index: {}]   ;;  %s6798_s6 = inlined_call_operand.hbm [shape: bf16[128,128], index: 6, kind: input, shape index: {}]   ;;  %s6799_s7 = inlined_call_operand.vmem [shape: f32[1,128], index: 7, kind: input, shape index: {}]   ;;  %s6800_s8 = inlined_call_operand.vmem [shape: f32[1,128], index: 8, kind: input, shape index: {}]   ;;  %s6801_s9 = inlined_call_operand.vmem [shape: f32[3,3,128], index: 9, kind: input, shape index: {}]   ;;  %s6802_s10 = inlined_call_operand.hbm [shape: bf16[128,128], index: 10, kind: input, shape index: {}]   ;;  %s6803_s11 = inlined_call_operand.vmem [shape: f32[1,128], index: 11, kind: input, shape index: {}]   ;;  %s6804_s12 = inlined_call_operand.vmem [shape: f32[1,128], index: 12, kind: input, shape index: {}]   ;;  %s6805_s13 = inlined_call_operand.hbm [shape: f32[2,8,8,128], index: 13, kind: output, shape index: {}]  }
   0x1   :  { %19 = vsyncpa [#allocation7], 0 }
   0x2   :  { %20 = vsyncpa [#allocation10], 0 }
   0x3   :  { %21 = vsyncpa [#allocation13], 0 }
   0x4   :  { %22 = vsyncpa [#allocation5], 0  ;;  %s4448_s25 = smov [#allocation6]  }
   0x5   :  { %s40_s26 = sshll.u32 %s4448_s25, 4  ;;  %s41_s26 = int_to_ptr.vmem [resolvable:$true] %s40_s26 }
   0x6   :  { %s4306_s27 = scalar_lea.vmem %s41_s26, 192  ;;  %p4311_p1 = scmp.lt.s32.totalorder %s41_s26, %s41_s26 }
   0x7   :  { %p4307_p0 = scmp.ne.s32.totalorder %s41_s26, %s4306_s27  ;;  %p4312_p2 = scmp.lt.s32.totalorder %s4306_s27, %s4306_s27 }
   0x9   :  { %p4313_p3 = por %p4312_p2, %p4311_p1 }
   0xb   :  { %p4314_p4 = pnand %p4313_p3, %p4307_p0 }
   0xd   :  { %4317 = shalt.err (!%p4314_p4)
}
   0xe   :  { %s4449_s28 = smov 64   ;;  %s4450_s29 = smov 4  }
   0xf   :  { %46 = dma.hbm_to_vmem [thread:$0]  %s6793_s1, 192, %s41_s26, [#allocation7], %s4449_s28, %s4449_s28, %s4450_s29  }
  0x10   :  { %s4451_s15 = smov [#allocation9]   ;;  %s4452_s17 = smov [#allocation3]  }
  0x11   :  { %s68_s16 = sshll.u32 %s4451_s15, 4  ;;  %s28_s18 = sshll.u32 %s4452_s17, 4  ;;  %s69_s16 = int_to_ptr.vmem [resolvable:$true] %s68_s16  ;;  %s29_s18 = int_to_ptr.vmem [resolvable:$true] %s28_s18 }
  0x12   :  { %s4326_s19 = scalar_lea.vmem %s69_s16, 192  ;;  %p4331_p6 = scmp.lt.s32.totalorder %s69_s16, %s69_s16 }
  0x13   :  { %p4327_p5 = scmp.ne.s32.totalorder %s69_s16, %s4326_s19  ;;  %p4332_p7 = scmp.lt.s32.totalorder %s4326_s19, %s4326_s19 }
  0x15   :  { %p4333_p8 = por %p4332_p7, %p4331_p6 }
  0x17   :  { %p4334_p9 = pnand %p4333_p8, %p4327_p5 }
  0x19   :  { %4337 = shalt.err (!%p4334_p9)
}
  0x1a   :  { %74 = dma.hbm_to_vmem [thread:$0]  %s6797_s5, 192, %s69_s16, [#allocation10], %s4449_s28, %s4449_s28, %s4450_s29  }
  0x1b   :  { %s4346_s1 = scalar_lea.vmem %s29_s18, 2048  ;;  %p4351_p11 = scmp.lt.s32.totalorder %s29_s18, %s29_s18 }
  0x1c   :  { %p4347_p10 = scmp.ne.s32.totalorder %s29_s18, %s4346_s1  ;;  %p4352_p12 = scmp.lt.s32.totalorder %s4346_s1, %s4346_s1 }
  0x1e   :  { %p4353_p13 = por %p4352_p12, %p4351_p11 }
  0x20   :  { %p4354_p0 = pnand %p4353_p13, %p4347_p10 }
  0x22   :  { %4357 = shalt.err (!%p4354_p0)
}
  0x23   :  { %s4453_s22 = smov 128   ;;  %s4454_s23 = smov 8  }
  0x24   :  { %34 = dma.hbm_to_vmem [thread:$0]  %s6792_s0, 2048, %s29_s18, [#allocation4], %s4453_s22, %s4453_s22, %s4454_s23  }
  0x25   :  { %s4455_s26 = smov [#allocation8]   ;;  %s4456_s5 = smov [#allocation11]  }
  0x26   :  { %s52_s27 = sshll.u32 %s4455_s26, 4  ;;  %s80_s30 = sshll.u32 %s4456_s5, 4  ;;  %s53_s27 = int_to_ptr.vmem [resolvable:$true] %s52_s27  ;;  %s81_s30 = int_to_ptr.vmem [resolvable:$true] %s80_s30 }
  0x27   :  { %s4366_s14 = scalar_lea.vmem %s53_s27, 1024  ;;  %p4371_p2 = scmp.lt.s32.totalorder %s53_s27, %s53_s27 }
  0x28   :  { %p4367_p1 = scmp.ne.s32.totalorder %s53_s27, %s4366_s14  ;;  %p4372_p3 = scmp.lt.s32.totalorder %s4366_s14, %s4366_s14 }
  0x2a   :  { %p4373_p4 = por %p4372_p3, %p4371_p2 }
  0x2c   :  { %p4374_p5 = pnand %p4373_p4, %p4367_p1 }
  0x2e   :  { %4377 = shalt.err (!%p4374_p5)
}
  0x2f   :  { %58 = dma.hbm_to_vmem [thread:$0]  %s6794_s2, 1024, %s53_s27, [#allocation7], %s4449_s28, %s4449_s28, %s4450_s29  }
  0x30   :  { %s4386_s0 = scalar_lea.vmem %s81_s30, 1024  ;;  %p4391_p7 = scmp.lt.s32.totalorder %s81_s30, %s81_s30 }
  0x31   :  { %p4387_p6 = scmp.ne.s32.totalorder %s81_s30, %s4386_s0  ;;  %p4392_p8 = scmp.lt.s32.totalorder %s4386_s0, %s4386_s0 }
  0x33   :  { %p4393_p9 = por %p4392_p8, %p4391_p7 }
  0x35   :  { %p4394_p10 = pnand %p4393_p9, %p4387_p6 }
  0x37   :  { %4397 = shalt.err (!%p4394_p10)
}
  0x38   :  { %86 = dma.hbm_to_vmem [thread:$0]  %s6798_s6, 1024, %s81_s30, [#allocation10], %s4449_s28, %s4449_s28, %s4450_s29  }
  0x39   :  { %s4457_s19 = smov [#allocation12]  }
  0x3a   :  { %s98_s20 = sshll.u32 %s4457_s19, 4  ;;  %s99_s20 = int_to_ptr.vmem [resolvable:$true] %s98_s20 }
  0x3b   :  { %s4406_s21 = scalar_lea.vmem %s99_s20, 1024  ;;  %p4411_p12 = scmp.lt.s32.totalorder %s99_s20, %s99_s20 }
  0x3c   :  { %p4407_p11 = scmp.ne.s32.totalorder %s99_s20, %s4406_s21  ;;  %p4412_p13 = scmp.lt.s32.totalorder %s4406_s21, %s4406_s21 }
  0x3e   :  { %p4413_p0 = por %p4412_p13, %p4411_p12 }
  0x40   :  { %p4414_p1 = pnand %p4413_p0, %p4407_p11 }
  0x42   :  { %4417 = shalt.err (!%p4414_p1)
}
  0x43   :  { %104 = dma.hbm_to_vmem [thread:$0]  %s6802_s10, 1024, %s99_s20, [#allocation13], %s4449_s28, %s4449_s28, %s4450_s29  }
  0x44   :  { %4438 = dma.done.wait [#allocation4], 2048  }
  0x45   :  { %4439 = vsyncadd [#allocation4], 4294965248 }
  0x46   :  { %4440 = dma.done.wait [#allocation7], 1216  }
  0x47   :  { %4441 = vsyncadd [#allocation7], 4294966080 }
  0x48   :  { %4442 = dma.done.wait [#allocation10], 1216  }
  0x49   :  { %4443 = vsyncadd [#allocation10], 4294966080 }
  0x4a   :  { %4444 = dma.done.wait [#allocation13], 1024  }
  0x4b   :  { %4445 = vsyncadd [#allocation13], 4294966272  ;;  %v4458_v0 = vmov 0.0   ;;  %v261_v1 = vlaneseq  ;;  %v4268_v2 = vld [vmem:[#allocation8 + $0x38] sm:$0xff]   ;;  %v4269_v3 = vld [vmem:[#allocation8 + $0x30] sm:$0xff]   ;;  %vm421_vm0 = vcmask 1046528  }
  0x4c   :  { %128 = vst [vmem:[#allocation2] sm:$0xff] %v4458_v0  ;;  %129 = vst [vmem:[#allocation2 + $0x8] sm:$0x3] %v4458_v0  ;;  %4144 = vmatprep.subr.bf16.mxu0 %v4268_v2  ;;  %v4270_v5 = vld [vmem:[#allocation8 + $0x28] sm:$0xff]   ;;  %v4271_v7 = vld [vmem:[#allocation8 + $0x20] sm:$0xff]   ;;  %vm866_vm1 = vcmask 1045504  }
  0x4d   :  { %138 = vst [vmem:[#allocation2 + $0x10] sm:$0x1] %v4458_v0  ;;  %139 = vst [vmem:[#allocation2 + $0x20] sm:$0x1] %v4458_v0  ;;  %v262_v4 = vshrl.u32 %v261_v1, 7  ;;  %4145 = vmatpush3.bf16.msra.mxu0 %v4268_v2  ;;  %v170_v9 = vld [vmem:[#allocation3] sm:$0xff] }
  0x4e   :  { %140 = vst [vmem:[#allocation2 + $0x30] sm:$0x1] %v4458_v0  ;;  %154 = vst [vmem:[#allocation2 + $0x19] sm:$0x1] %v4458_v0  ;;  %4146 = vmatprep.subr.bf16.mxu0 %v4269_v3  ;;  %v171_v10 = vld [vmem:[#allocation3 + $0x8] sm:$0xff]  ;;  %v172_v11 = vld [vmem:[#allocation3 + $0x10] sm:$0xff] }
  0x4f   :  { %155 = vst [vmem:[#allocation2 + $0x29] sm:$0x1] %v4458_v0  ;;  %156 = vst [vmem:[#allocation2 + $0x39] sm:$0x1] %v4458_v0  ;;  %v4566_v6 = vsub.s32 0, %v262_v4  ;;  %v4568_v8 = vsub.s32 1, %v262_v4 }
  0x50   :  { %131 = vst [vmem:[#allocation2 + $0xa8] sm:$0x3] %v4458_v0  ;;  %134 = vst [vmem:[#allocation2 + $0x98] sm:$0x3] %v4458_v0  ;;  %v4570_v12 = vsub.s32 2, %v262_v4  ;;  %v186_v13 = vmax.f32 %v170_v9, 0.0 }
  0x51   :  { %136 = vst [vmem:[#allocation2 + $0x138] sm:$0x3] %v4458_v0  ;;  %141 = vst [vmem:[#allocation2 + $0x40] sm:$0x1] %v4458_v0  ;;  %4147 = vmatpush3.bf16.msra.mxu0 %v4269_v3  ;;  %v187_v14 = vmax.f32 %v171_v10, 0.0  ;;  %v188_v15 = vmax.f32 %v172_v11, 0.0 }
  0x52   :  { %142 = vst [vmem:[#allocation2 + $0x50] sm:$0x1] %v4458_v0  ;;  %143 = vst [vmem:[#allocation2 + $0x60] sm:$0x1] %v4458_v0  ;;  %4148 = vmatprep.subr.bf16.mxu0 %v4270_v5  ;;  %v258_v17 = vld [vmem:[#allocation6] sm:$0x7] }
  0x53   :  { %144 = vst [vmem:[#allocation2 + $0x70] sm:$0x1] %v4458_v0  ;;  %145 = vst [vmem:[#allocation2 + $0x80] sm:$0x1] %v4458_v0  ;;  %v219_v16 = vld [vmem:[#allocation2 + $0x8] sm:$0x3]  ;;  %v4573_v20 = vrot.slane %v258_v17, %v4566_v6  ;;  %v4582_v23 = vrot.slane %v258_v17, %v4568_v8  ;;  %v4591_v29 = vrot.slane %v258_v17, %v4570_v12 }
  0x54   :  { %146 = vst [vmem:[#allocation2 + $0xb0] sm:$0x1] %v4458_v0  ;;  %147 = vst [vmem:[#allocation2 + $0xc0] sm:$0x1] %v4458_v0  ;;  %v259_v18 = vld [vmem:[#allocation6 + $0x4] sm:$0x7] }
  0x55   :  { %148 = vst [vmem:[#allocation2 + $0xd0] sm:$0x1] %v4458_v0  ;;  %149 = vst [vmem:[#allocation2 + $0xe0] sm:$0x1] %v4458_v0  ;;  %v260_v19 = vld [vmem:[#allocation6 + $0x8] sm:$0x7]  ;;  %4149 = vmatpush3.bf16.msra.mxu0 %v4270_v5  ;;  %v4576_v21 = vrot.slane %v259_v18, %v4566_v6  ;;  %v4585_v27 = vrot.slane %v259_v18, %v4568_v8  ;;  %v4594_v30 = vrot.slane %v259_v18, %v4570_v12 }
  0x56   :  { %150 = vst [vmem:[#allocation2 + $0xf0] sm:$0x1] %v4458_v0  ;;  %151 = vst [vmem:[#allocation2 + $0x100] sm:$0x1] %v4458_v0  ;;  %v4579_v22 = vrot.slane %v260_v19, %v4566_v6  ;;  %v173_v24 = vld [vmem:[#allocation3 + $0x18] sm:$0xff]  ;;  %v174_v25 = vld [vmem:[#allocation3 + $0x20] sm:$0xff]  ;;  %4150 = vmatprep.subr.bf16.mxu0 %v4271_v7  ;;  %v4588_v28 = vrot.slane %v260_v19, %v4568_v8  ;;  %v358_v35 = vmul.f32 %v4582_v23, %v219_v16 }
  0x57   :  { %152 = vst [vmem:[#allocation2 + $0x110] sm:$0x1] %v4458_v0  ;;  %153 = vst [vmem:[#allocation2 + $0x120] sm:$0x1] %v4458_v0  ;;  %v4272_v26 = vld [vmem:[#allocation8 + $0x18] sm:$0xff]   ;;  %v176_v32 = vld [vmem:[#allocation3 + $0x30] sm:$0xff]  ;;  %v4604_v36 = vrot.slane %v260_v19, %v4570_v12  ;;  %v803_v39 = vmul.f32 %v4591_v29, %v219_v16 }
  0x58   :  { %157 = vst [vmem:[#allocation2 + $0x49] sm:$0x1] %v4458_v0  ;;  %158 = vst [vmem:[#allocation2 + $0x59] sm:$0x1] %v4458_v0  ;;  %v175_v31 = vld [vmem:[#allocation3 + $0x28] sm:$0xff]  ;;  %v4597_v33 = vmul.f32 0.0, %v4573_v20 }
  0x59   :  { %159 = vst [vmem:[#allocation2 + $0x69] sm:$0x1] %v4458_v0  ;;  %160 = vst [vmem:[#allocation2 + $0x79] sm:$0x1] %v4458_v0  ;;  %v4600_v34 = vmul.f32 0.0, %v4582_v23  ;;  %v177_v37 = vld [vmem:[#allocation3 + $0x38] sm:$0xff]  ;;  %4151 = vmatpush3.bf16.msra.mxu0 %v4271_v7 }
  0x5a   :  { %161 = vst [vmem:[#allocation2 + $0x89] sm:$0x1] %v4458_v0  ;;  %162 = vst [vmem:[#allocation2 + $0xb9] sm:$0x1] %v4458_v0  ;;  %v4607_v38 = vmul.f32 0.0, %v4591_v29  ;;  %v189_v40 = vmax.f32 %v173_v24, 0.0  ;;  %4152 = vmatprep.subr.bf16.mxu0 %v4272_v26 }
  0x5b   :  { %163 = vst [vmem:[#allocation2 + $0xc9] sm:$0x1] %v4458_v0  ;;  %164 = vst [vmem:[#allocation2 + $0xd9] sm:$0x1] %v4458_v0  ;;  %v190_v41 = vmax.f32 %v174_v25, 0.0  ;;  %v422_v43 = vrot.slane %v4600_v34, 1 }
  0x5c   :  { %165 = vst [vmem:[#allocation2 + $0xe9] sm:$0x1] %v4458_v0  ;;  %166 = vst [vmem:[#allocation2 + $0xf9] sm:$0x1] %v4458_v0  ;;  %v237_v42 = vld [vmem:[#allocation2 + $0x98] sm:$0x3] }
  0x5d   :  { %167 = vst [vmem:[#allocation2 + $0x109] sm:$0x1] %v4458_v0  ;;  %168 = vst [vmem:[#allocation2 + $0x119] sm:$0x1] %v4458_v0  ;;  %v423_v44 = vrot.slane %v358_v35, 1  ;;  %v191_v45 = vmax.f32 %v175_v31, 0.0  ;;  %v4622_v56 = vmul.f32 %v4588_v28, %v237_v42  ;;  %v4635_v62 = vmul.f32 %v4604_v36, %v237_v42  ;;  %4153 = vmatpush3.bf16.msra.mxu0 %v4272_v26 }
  0x5e   :  { %169 = vst [vmem:[#allocation2 + $0x129] sm:$0x1] %v4458_v0  ;;  %6817 = vst [vmem:[#allocation20_spill] sm:$0xff] %v4566_v6  ;;  %v192_v46 = vmax.f32 %v176_v32, 0.0  ;;  %v178_v47 = vld [vmem:[#allocation3 + $0x40] sm:$0xff]  ;;  %v179_v48 = vld [vmem:[#allocation3 + $0x48] sm:$0xff] }
  0x5f   :  { %6818 = vst [vmem:[#allocation21_spill] sm:$0xff] %v4570_v12  ;;  %202 = vst [vmem:[#allocation2 + $0x11] sm:$0xff] %v186_v13  ;;  %v4273_v49 = vld [vmem:[#allocation8 + $0x10] sm:$0xff]   ;;  %v867_v50 = vrot.slane %v4607_v38, 2  ;;  %v868_v51 = vrot.slane %v803_v39, 2  ;;  %v193_v52 = vmax.f32 %v177_v37, 0.0  ;;  %v424_v54 = vsel %vm421_vm0, %v422_v43, %v423_v44 }
  0x60   :  { %203 = vst [vmem:[#allocation2 + $0x21] sm:$0xff] %v187_v14  ;;  %204 = vst [vmem:[#allocation2 + $0x31] sm:$0xff] %v188_v15  ;;  %v4613_v53 = vmul.f32 0.0, %v4579_v22  ;;  %v4619_v55 = vmul.f32 0.0, %v4588_v28  ;;  %v4625_v57 = vmul.f32 0.0, %v4604_v36  ;;  %v194_v63 = vmax.f32 %v178_v47, 0.0  ;;  %4154 = vmatprep.subr.bf16.mxu0 %v4273_v49 }
  0x61   :  { %205 = vst [vmem:[#allocation2 + $0x41] sm:$0xff] %v189_v40  ;;  %206 = vst [vmem:[#allocation2 + $0x51] sm:$0xff] %v190_v41  ;;  %v4632_v61 = vsel %vm866_vm1, %v867_v50, %v868_v51  ;;  %v195_v0 = vmax.f32 %v179_v48, 0.0  ;;  %v4274_v1 = vld [vmem:[#allocation8 + $0x8] sm:$0xff]   ;;  %4155 = vmatpush3.bf16.msra.mxu0 %v4273_v49  ;;  %v4275_v39 = vld [vmem:[#allocation8] sm:$0xff]  }
  0x62   :  { %207 = vst [vmem:[#allocation2 + $0x61] sm:$0xff] %v191_v45  ;;  %208 = vst [vmem:[#allocation2 + $0x71] sm:$0xff] %v192_v46  ;;  %4156 = vmatprep.subr.bf16.mxu0 %v4274_v1 }
  0x63   :  { %209 = vst [vmem:[#allocation2 + $0x81] sm:$0xff] %v193_v52  ;;  %210 = vst [vmem:[#allocation2 + $0xb1] sm:$0xff] %v194_v63 }
  0x64   :  { %211 = vst [vmem:[#allocation2 + $0xc1] sm:$0xff] %v195_v0 }
  0x65   :  { %4157 = vmatpush3.bf16.msra.mxu0 %v4274_v1 }
  0x66   :  { %v220_v58 = vld [vmem:[#allocation2 + $0x10] sm:$0xff]  ;;  %v221_v59 = vld [vmem:[#allocation2 + $0x18] sm:$0x3]  ;;  %4158 = vmatprep.subr.bf16.mxu0 %v4275_v39 }
  0x67   :  { %v4627_v60 = vld [vmem:[#allocation2 + $0x20] sm:$0xff]  ;;  %v4637_v2 = vld [vmem:[#allocation2 + $0x28] sm:$0x3]  ;;  %v4639_v3 = vld [vmem:[#allocation2 + $0x30] sm:$0xff]  ;;  %v266_v4 = vmul.f32 %v4573_v20, %v220_v58  ;;  %v285_v5 = vmul.f32 %v4576_v21, %v220_v58  ;;  %v359_v11 = vmul.f32 %v4582_v23, %v220_v58  ;;  %v360_v13 = vmul.f32 %v4582_v23, %v221_v59 }
  0x68   :  { %v286_v7 = vmul.f32 %v4576_v21, %v4627_v60  ;;  %v321_v9 = vmul.f32 %v4579_v22, %v4627_v60  ;;  %v322_v10 = vmul.f32 %v4579_v22, %v4639_v3  ;;  %v506_v14 = vmul.f32 %v4585_v27, %v220_v58  ;;  %v4663_v45 = vld [vmem:[#allocation2 + $0x38] sm:$0x3] }
  0x69   :  { %v301_v15 = vadd.f32 %v285_v5, %v4597_v33  ;;  %v507_v17 = vmul.f32 %v4585_v27, %v221_v59  ;;  %v508_v18 = vmul.f32 %v4585_v27, %v4627_v60  ;;  %v425_v19 = vrot.slane %v359_v11, 1  ;;  %4159 = vmatpush3.bf16.msra.mxu0 %v4275_v39 }
  0x6a   :  { %v302_v16 = vadd.f32 %v286_v7, %v266_v4  ;;  %v426_v24 = vrot.slane %v360_v13, 1  ;;  %v509_v25 = vmul.f32 %v4585_v27, %v4637_v2  ;;  %v570_v26 = vrot.slane %v506_v14, 1 }
  0x6b   :  { %v337_v31 = vadd.f32 %v321_v9, %v301_v15  ;;  %v571_v35 = vrot.slane %v507_v17, 1  ;;  %v573_v37 = vrot.slane %v508_v18, 1  ;;  %v654_v42 = vmul.f32 %v4588_v28, %v4627_v60 }
  0x6c   :  { %v338_v32 = vadd.f32 %v322_v10, %v302_v16  ;;  %v427_v40 = vsel %vm421_vm0, %v425_v19, %v426_v24  ;;  %v574_v41 = vrot.slane %v509_v25, 1  ;;  %v655_v44 = vmul.f32 %v4588_v28, %v4637_v2 }
  0x6d   :  { %v486_v46 = vadd.f32 %v424_v54, %v337_v31  ;;  %v572_v48 = vsel %vm421_vm0, %v570_v26, %v571_v35  ;;  %v656_v49 = vmul.f32 %v4588_v28, %v4639_v3  ;;  %v657_v52 = vmul.f32 %v4588_v28, %v4663_v45 }
  0x6e   :  { %v487_v47 = vadd.f32 %v427_v40, %v338_v32  ;;  %v575_v51 = vsel %vm421_vm0, %v573_v37, %v574_v41  ;;  %v718_v63 = vrot.slane %v654_v42, 1  ;;  %v719_v0 = vrot.slane %v655_v44, 1  ;;  %v4682_v32 = vld [vmem:[#allocation2 + $0x40] sm:$0xff]  ;;  %v4689_v41 = vld [vmem:[#allocation2 + $0x50] sm:$0xff] }
  0x6f   :  { %v634_v4 = vadd.f32 %v572_v48, %v486_v46  ;;  %v721_v7 = vrot.slane %v656_v49, 1  ;;  %v804_v9 = vmul.f32 %v4591_v29, %v220_v58  ;;  %v722_v10 = vrot.slane %v657_v52, 1 }
  0x70   :  { %v635_v5 = vadd.f32 %v575_v51, %v487_v47  ;;  %v720_v54 = vsel %vm421_vm0, %v718_v63, %v719_v0  ;;  %v805_v11 = vmul.f32 %v4591_v29, %v221_v59  ;;  %v951_v13 = vmul.f32 %v4594_v30, %v220_v58 }
  0x71   :  { %v782_v14 = vadd.f32 %v720_v54, %v634_v4  ;;  %v870_v15 = vrot.slane %v804_v9, 2  ;;  %v952_v16 = vmul.f32 %v4594_v30, %v221_v59  ;;  %v953_v1 = vmul.f32 %v4594_v30, %v4627_v60 }
  0x72   :  { %v723_v17 = vsel %vm421_vm0, %v721_v7, %v722_v10  ;;  %v871_v18 = vrot.slane %v805_v11, 2  ;;  %v954_v19 = vmul.f32 %v4594_v30, %v4637_v2  ;;  %v1015_v24 = vrot.slane %v951_v13, 2 }
  0x73   :  { %v783_v25 = vadd.f32 %v723_v17, %v635_v5  ;;  %v931_v26 = vadd.f32 %v4632_v61, %v782_v14  ;;  %v1016_v31 = vrot.slane %v952_v16, 2  ;;  %v1018_v58 = vrot.slane %v953_v1, 2  ;;  %v4713_v17 = vld [vmem:[#allocation2 + $0x48] sm:$0x3] }
  0x74   :  { %v872_v59 = vsel %vm866_vm1, %v870_v15, %v871_v18  ;;  %v1019_v35 = vrot.slane %v954_v19, 2  ;;  %v1099_v37 = vmul.f32 %v4604_v36, %v4627_v60  ;;  %v1100_v40 = vmul.f32 %v4604_v36, %v4637_v2 }
  0x75   :  { %v932_v42 = vadd.f32 %v872_v59, %v783_v25  ;;  %v1017_v39 = vsel %vm866_vm1, %v1015_v24, %v1016_v31  ;;  %v1101_v61 = vmul.f32 %v4604_v36, %v4639_v3  ;;  %v1102_v44 = vmul.f32 %v4604_v36, %v4663_v45 }
  0x76   :  { %v1020_v46 = vsel %vm866_vm1, %v1018_v58, %v1019_v35  ;;  %v1079_v47 = vadd.f32 %v1017_v39, %v931_v26  ;;  %v1163_v48 = vrot.slane %v1099_v37, 2  ;;  %v1164_v49 = vrot.slane %v1100_v40, 2  ;;  %v4725_v39 = vld [vmem:[#allocation2 + $0x58] sm:$0x3] }
  0x77   :  { %v1080_v51 = vadd.f32 %v1020_v46, %v932_v42  ;;  %v1166_v52 = vrot.slane %v1101_v61, 2  ;;  %v1167_v63 = vrot.slane %v1102_v44, 2  ;;  %v267_v0 = vmul.f32 %v4573_v20, %v4627_v60 }
  0x78   :  { %v1165_v4 = vsel %vm866_vm1, %v1163_v48, %v1164_v49  ;;  %v268_v5 = vmul.f32 %v4573_v20, %v4639_v3  ;;  %v287_v7 = vmul.f32 %v4576_v21, %v4639_v3  ;;  %v288_v9 = vmul.f32 %v4576_v21, %v4682_v32 }
  0x79   :  { %v1168_v54 = vsel %vm866_vm1, %v1166_v52, %v1167_v63  ;;  %v1227_v10 = vadd.f32 %v1165_v4, %v1079_v47  ;;  %v323_v11 = vmul.f32 %v4579_v22, %v4682_v32  ;;  %v324_v13 = vmul.f32 %v4579_v22, %v4689_v41 }
  0x7a   :  { %v1228_v14 = vadd.f32 %v1168_v54, %v1080_v51  ;;  %v303_v15 = vadd.f32 %v287_v7, %v267_v0  ;;  %v304_v16 = vadd.f32 %v288_v9, %v268_v5  ;;  %v361_v1 = vmul.f32 %v4582_v23, %v4627_v60 }
  0x7b   :  { %v362_v18 = vmul.f32 %v4582_v23, %v4637_v2  ;;  %v363_v19 = vmul.f32 %v4582_v23, %v4639_v3  ;;  %v364_v24 = vmul.f32 %v4582_v23, %v4663_v45  ;;  %v510_v25 = vmul.f32 %v4585_v27, %v4639_v3 }
  0x7c   :  { %v1243_v26 = vpack.c.bf16 %v1228_v14, %v1227_v10  ;;  %v339_v31 = vadd.f32 %v323_v11, %v303_v15  ;;  %v340_v58 = vadd.f32 %v324_v13, %v304_v16  ;;  %v428_v59 = vrot.slane %v361_v1, 1 }
  0x7d   :  { %v429_v35 = vrot.slane %v362_v18, 1  ;;  %v431_v37 = vrot.slane %v363_v19, 1  ;;  %v432_v40 = vrot.slane %v364_v24, 1  ;;  %v511_v42 = vmul.f32 %v4585_v27, %v4663_v45 }
  0x7e   :  { %4160 = vmatprep.mubr.bf16.mxu0 %v1243_v26  ;;  %v512_v61 = vmul.f32 %v4585_v27, %v4682_v32  ;;  %v513_v44 = vmul.f32 %v4585_v27, %v4713_v17  ;;  %v576_v46 = vrot.slane %v510_v25, 1  ;;  %v658_v47 = vmul.f32 %v4588_v28, %v4682_v32 }
  0x7f   :  { %v430_v48 = vsel %vm421_vm0, %v428_v59, %v429_v35  ;;  %v433_v49 = vsel %vm421_vm0, %v431_v37, %v432_v40  ;;  %v577_v51 = vrot.slane %v511_v42, 1  ;;  %v659_v52 = vmul.f32 %v4588_v28, %v4713_v17 }
  0x80   :  { %v488_v63 = vadd.f32 %v430_v48, %v339_v31  ;;  %v489_v0 = vadd.f32 %v433_v49, %v340_v58  ;;  %v579_v4 = vrot.slane %v512_v61, 1  ;;  %v580_v5 = vrot.slane %v513_v44, 1 }
  0x81   :  { %v578_v7 = vsel %vm421_vm0, %v576_v46, %v577_v51  ;;  %v660_v9 = vmul.f32 %v4588_v28, %v4689_v41  ;;  %v661_v54 = vmul.f32 %v4588_v28, %v4725_v39  ;;  %v724_v10 = vrot.slane %v658_v47, 1 }
  0x82   :  { %v581_v11 = vsel %vm421_vm0, %v579_v4, %v580_v5  ;;  %v636_v13 = vadd.f32 %v578_v7, %v488_v63  ;;  %v725_v14 = vrot.slane %v659_v52, 1  ;;  %v806_v15 = vmul.f32 %v4591_v29, %v4627_v60 }
  0x83   :  { %v637_v16 = vadd.f32 %v581_v11, %v489_v0  ;;  %v727_v1 = vrot.slane %v660_v9, 1  ;;  %v728_v18 = vrot.slane %v661_v54, 1  ;;  %v807_v19 = vmul.f32 %v4591_v29, %v4637_v2  ;;  %v4772_v54 = vld [vmem:[#allocation2 + $0x60] sm:$0xff] }
  0x84   :  { %v726_v24 = vsel %vm421_vm0, %v724_v10, %v725_v14  ;;  %v808_v25 = vmul.f32 %v4591_v29, %v4639_v3  ;;  %v809_v26 = vmul.f32 %v4591_v29, %v4663_v45  ;;  %v873_v31 = vrot.slane %v806_v15, 2  ;;  %v4775_v14 = vld [vmem:[#allocation2 + $0x70] sm:$0xff] }
  0x85   :  { %v729_v58 = vsel %vm421_vm0, %v727_v1, %v728_v18  ;;  %v784_v59 = vadd.f32 %v726_v24, %v636_v13  ;;  %v874_v35 = vrot.slane %v807_v19, 2  ;;  %v955_v60 = vmul.f32 %v4594_v30, %v4639_v3 }
  0x86   :  { %v785_v37 = vadd.f32 %v729_v58, %v637_v16  ;;  %v876_v40 = vrot.slane %v808_v25, 2  ;;  %v877_v42 = vrot.slane %v809_v26, 2  ;;  %v956_v2 = vmul.f32 %v4594_v30, %v4663_v45 }
  0x87   :  { %v875_v61 = vsel %vm866_vm1, %v873_v31, %v874_v35  ;;  %v957_v44 = vmul.f32 %v4594_v30, %v4682_v32  ;;  %v958_v46 = vmul.f32 %v4594_v30, %v4713_v17  ;;  %v1021_v47 = vrot.slane %v955_v60, 2 }
  0x88   :  { %v878_v48 = vsel %vm866_vm1, %v876_v40, %v877_v42  ;;  %v933_v49 = vadd.f32 %v875_v61, %v784_v59  ;;  %v1022_v51 = vrot.slane %v956_v2, 2  ;;  %v1103_v3 = vmul.f32 %v4604_v36, %v4682_v32  ;;  %v4795_v61 = vld [vmem:[#allocation2 + $0x68] sm:$0x3] }
  0x89   :  { %v934_v52 = vadd.f32 %v878_v48, %v785_v37  ;;  %v1024_v63 = vrot.slane %v957_v44, 2  ;;  %v1025_v0 = vrot.slane %v958_v46, 2  ;;  %v1104_v45 = vmul.f32 %v4604_v36, %v4713_v17 }
  0x8a   :  { %v1023_v4 = vsel %vm866_vm1, %v1021_v47, %v1022_v51  ;;  %v1105_v5 = vmul.f32 %v4604_v36, %v4689_v41  ;;  %v1106_v7 = vmul.f32 %v4604_v36, %v4725_v39  ;;  %v1169_v9 = vrot.slane %v1103_v3, 2 }
  0x8b   :  { %v1026_v10 = vsel %vm866_vm1, %v1024_v63, %v1025_v0  ;;  %v1081_v11 = vadd.f32 %v1023_v4, %v933_v49  ;;  %v1170_v13 = vrot.slane %v1104_v45, 2  ;;  %v269_v15 = vmul.f32 %v4573_v20, %v4682_v32 }
  0x8c   :  { %v1082_v16 = vadd.f32 %v1026_v10, %v934_v52  ;;  %v1172_v1 = vrot.slane %v1105_v5, 2  ;;  %v1173_v18 = vrot.slane %v1106_v7, 2  ;;  %v270_v19 = vmul.f32 %v4573_v20, %v4689_v41 }
  0x8d   :  { %v1171_v24 = vsel %vm866_vm1, %v1169_v9, %v1170_v13  ;;  %v289_v25 = vmul.f32 %v4576_v21, %v4689_v41  ;;  %v290_v26 = vmul.f32 %v4576_v21, %v4772_v54  ;;  %v325_v31 = vmul.f32 %v4579_v22, %v4772_v54 }
  0x8e   :  { %v1174_v58 = vsel %vm866_vm1, %v1172_v1, %v1173_v18  ;;  %v1229_v59 = vadd.f32 %v1171_v24, %v1081_v11  ;;  %v326_v35 = vmul.f32 %v4579_v22, %v4775_v14  ;;  %v365_v60 = vmul.f32 %v4582_v23, %v4682_v32  ;;  %v4813_v1 = vld [vmem:[#allocation2 + $0x78] sm:$0x3] }
  0x8f   :  { %v1230_v37 = vadd.f32 %v1174_v58, %v1082_v16  ;;  %v305_v40 = vadd.f32 %v289_v25, %v269_v15  ;;  %v306_v42 = vadd.f32 %v290_v26, %v270_v19  ;;  %v366_v2 = vmul.f32 %v4582_v23, %v4713_v17 }
  0x90   :  { %v367_v44 = vmul.f32 %v4582_v23, %v4689_v41  ;;  %v368_v46 = vmul.f32 %v4582_v23, %v4725_v39  ;;  %v434_v47 = vrot.slane %v365_v60, 1  ;;  %v514_v48 = vmul.f32 %v4585_v27, %v4689_v41 }
  0x91   :  { %v1244_v49 = vpack.c.bf16 %v1230_v37, %v1229_v59  ;;  %v341_v51 = vadd.f32 %v325_v31, %v305_v40  ;;  %v342_v3 = vadd.f32 %v326_v35, %v306_v42  ;;  %v435_v52 = vrot.slane %v366_v2, 1 }
  0x92   :  { %v437_v63 = vrot.slane %v367_v44, 1  ;;  %v438_v0 = vrot.slane %v368_v46, 1  ;;  %v515_v45 = vmul.f32 %v4585_v27, %v4725_v39  ;;  %v516_v4 = vmul.f32 %v4585_v27, %v4772_v54 }
  0x93   :  { %4161 = vmatmul.mubr.bf16.vlgmr.msra.gmra.mxu0 %v1244_v49  ;;  %v436_v5 = vsel %vm421_vm0, %v434_v47, %v435_v52  ;;  %v517_v7 = vmul.f32 %v4585_v27, %v4795_v61  ;;  %v582_v9 = vrot.slane %v514_v48, 1  ;;  %v662_v10 = vmul.f32 %v4588_v28, %v4772_v54 }
  0x94   :  { %v439_v11 = vsel %vm421_vm0, %v437_v63, %v438_v0  ;;  %v490_v13 = vadd.f32 %v436_v5, %v341_v51  ;;  %v583_v15 = vrot.slane %v515_v45, 1  ;;  %v585_v16 = vrot.slane %v516_v4, 1 }
  0x95   :  { %v491_v18 = vadd.f32 %v439_v11, %v342_v3  ;;  %v586_v19 = vrot.slane %v517_v7, 1  ;;  %v663_v24 = vmul.f32 %v4588_v28, %v4795_v61  ;;  %v664_v25 = vmul.f32 %v4588_v28, %v4775_v14 }
  0x96   :  { %v584_v26 = vsel %vm421_vm0, %v582_v9, %v583_v15  ;;  %v665_v31 = vmul.f32 %v4588_v28, %v4813_v1  ;;  %v730_v58 = vrot.slane %v662_v10, 1  ;;  %v810_v59 = vmul.f32 %v4591_v29, %v4682_v32 }
  0x97   :  { %v587_v35 = vsel %vm421_vm0, %v585_v16, %v586_v19  ;;  %v638_v60 = vadd.f32 %v584_v26, %v490_v13  ;;  %v731_v37 = vrot.slane %v663_v24, 1  ;;  %v733_v40 = vrot.slane %v664_v25, 1 }
  0x98   :  { %v639_v42 = vadd.f32 %v587_v35, %v491_v18  ;;  %v734_v2 = vrot.slane %v665_v31, 1  ;;  %v811_v44 = vmul.f32 %v4591_v29, %v4713_v17  ;;  %v812_v46 = vmul.f32 %v4591_v29, %v4689_v41  ;;  %v4852_v31 = vld [vmem:[#allocation2 + $0x80] sm:$0xff] }
  0x99   :  { %v732_v47 = vsel %vm421_vm0, %v730_v58, %v731_v37  ;;  %v813_v48 = vmul.f32 %v4591_v29, %v4725_v39  ;;  %v879_v49 = vrot.slane %v810_v59, 2  ;;  %v959_v32 = vmul.f32 %v4594_v30, %v4689_v41 }
  0x9a   :  { %v735_v51 = vsel %vm421_vm0, %v733_v40, %v734_v2  ;;  %v786_v3 = vadd.f32 %v732_v47, %v638_v60  ;;  %v880_v52 = vrot.slane %v811_v44, 2  ;;  %v882_v63 = vrot.slane %v812_v46, 2 }
  0x9b   :  { %v787_v0 = vadd.f32 %v735_v51, %v639_v42  ;;  %v883_v45 = vrot.slane %v813_v48, 2  ;;  %v960_v17 = vmul.f32 %v4594_v30, %v4725_v39  ;;  %v961_v4 = vmul.f32 %v4594_v30, %v4772_v54 }
  0x9c   :  { %v881_v5 = vsel %vm866_vm1, %v879_v49, %v880_v52  ;;  %v962_v7 = vmul.f32 %v4594_v30, %v4795_v61  ;;  %v1027_v9 = vrot.slane %v959_v32, 2  ;;  %v1107_v41 = vmul.f32 %v4604_v36, %v4772_v54 }
  0x9d   :  { %v884_v10 = vsel %vm866_vm1, %v882_v63, %v883_v45  ;;  %v935_v11 = vadd.f32 %v881_v5, %v786_v3  ;;  %v1028_v13 = vrot.slane %v960_v17, 2  ;;  %v1030_v15 = vrot.slane %v961_v4, 2 }
  0x9e   :  { %v936_v16 = vadd.f32 %v884_v10, %v787_v0  ;;  %v1031_v18 = vrot.slane %v962_v7, 2  ;;  %v1108_v39 = vmul.f32 %v4604_v36, %v4795_v61  ;;  %v1109_v19 = vmul.f32 %v4604_v36, %v4775_v14  ;;  %v235_v0 = vld [vmem:[#allocation2 + $0x88] sm:$0x3] }
  0x9f   :  { %v1029_v24 = vsel %vm866_vm1, %v1027_v9, %v1028_v13  ;;  %v1110_v25 = vmul.f32 %v4604_v36, %v4813_v1  ;;  %v1175_v26 = vrot.slane %v1107_v41, 2  ;;  %v271_v58 = vmul.f32 %v4573_v20, %v4772_v54 }
  0xa0   :  { %v1032_v59 = vsel %vm866_vm1, %v1030_v15, %v1031_v18  ;;  %v1083_v35 = vadd.f32 %v1029_v24, %v935_v11  ;;  %v1176_v60 = vrot.slane %v1108_v39, 2  ;;  %v1178_v37 = vrot.slane %v1109_v19, 2 }
  0xa1   :  { %v1084_v40 = vadd.f32 %v1032_v59, %v936_v16  ;;  %v1179_v42 = vrot.slane %v1110_v25, 2  ;;  %v272_v2 = vmul.f32 %v4573_v20, %v4775_v14  ;;  %v291_v44 = vmul.f32 %v4576_v21, %v4775_v14 }
  0xa2   :  { %v1177_v46 = vsel %vm866_vm1, %v1175_v26, %v1176_v60  ;;  %v292_v47 = vmul.f32 %v4576_v21, %v4852_v31  ;;  %v327_v48 = vmul.f32 %v4579_v22, %v4852_v31  ;;  %v369_v49 = vmul.f32 %v4582_v23, %v4772_v54 }
  0xa3   :  { %v1180_v32 = vsel %vm866_vm1, %v1178_v37, %v1179_v42  ;;  %v1231_v51 = vadd.f32 %v1177_v46, %v1083_v35  ;;  %v307_v3 = vadd.f32 %v291_v44, %v271_v58  ;;  %v370_v52 = vmul.f32 %v4582_v23, %v4795_v61 }
  0xa4   :  { %v1232_v63 = vadd.f32 %v1180_v32, %v1084_v40  ;;  %v308_v45 = vadd.f32 %v292_v47, %v272_v2  ;;  %v371_v17 = vmul.f32 %v4582_v23, %v4775_v14  ;;  %v372_v4 = vmul.f32 %v4582_v23, %v4813_v1 }
  0xa5   :  { %v343_v5 = vadd.f32 %v327_v48, %v307_v3  ;;  %v440_v7 = vrot.slane %v369_v49, 1  ;;  %v441_v9 = vrot.slane %v370_v52, 1  ;;  %v518_v41 = vmul.f32 %v4585_v27, %v4775_v14 }
  0xa6   :  { %v1245_v10 = vpack.c.bf16 %v1232_v63, %v1231_v51  ;;  %v344_v11 = vadd.f32 %v4613_v53, %v308_v45  ;;  %v443_v13 = vrot.slane %v371_v17, 1  ;;  %v444_v15 = vrot.slane %v372_v4, 1 }
  0xa7   :  { %v442_v16 = vsel %vm421_vm0, %v440_v7, %v441_v9  ;;  %v519_v18 = vmul.f32 %v4585_v27, %v4813_v1  ;;  %v520_v39 = vmul.f32 %v4585_v27, %v4852_v31  ;;  %v521_v19 = vmul.f32 %v4585_v27, %v235_v0 }
  0xa8   :  { %4164 = vmatprep.mubr.bf16.mxu0 %v1245_v10  ;;  %v445_v24 = vsel %vm421_vm0, %v443_v13, %v444_v15  ;;  %v492_v25 = vadd.f32 %v442_v16, %v343_v5  ;;  %v588_v26 = vrot.slane %v518_v41, 1  ;;  %v666_v58 = vmul.f32 %v4588_v28, %v4852_v31 }
  0xa9   :  { %v493_v59 = vadd.f32 %v445_v24, %v344_v11  ;;  %v589_v35 = vrot.slane %v519_v18, 1  ;;  %v591_v60 = vrot.slane %v520_v39, 1  ;;  %v592_v37 = vrot.slane %v521_v19, 1  ;;  %v180_v19 = vld [vmem:[#allocation3 + $0x50] sm:$0xff] }
  0xaa   :  { %v667_v40 = vmul.f32 %v4588_v28, %v235_v0  ;;  %v736_v42 = vrot.slane %v666_v58, 1  ;;  %v739_v2 = vrot.slane %v4619_v55, 1  ;;  %v740_v44 = vrot.slane %v4622_v56, 1  ;;  %v4916_v24 = vld [vmem:[#allocation2 + $0xb0] sm:$0xff] }
  0xab   :  { %v590_v46 = vsel %vm421_vm0, %v588_v26, %v589_v35  ;;  %v593_v47 = vsel %vm421_vm0, %v591_v60, %v592_v37  ;;  %v814_v48 = vmul.f32 %v4591_v29, %v4772_v54  ;;  %v815_v49 = vmul.f32 %v4591_v29, %v4795_v61  ;;  %v4919_v35 = vld [vmem:[#allocation2 + $0xc0] sm:$0xff] }
  0xac   :  { %v640_v32 = vadd.f32 %v590_v46, %v492_v25  ;;  %v641_v51 = vadd.f32 %v593_v47, %v493_v59  ;;  %v737_v3 = vrot.slane %v667_v40, 1  ;;  %v741_v52 = vsel %vm421_vm0, %v739_v2, %v740_v44  ;;  %v239_v44 = vld [vmem:[#allocation2 + $0xa8] sm:$0x3] }
  0xad   :  { %v816_v56 = vmul.f32 %v4591_v29, %v4775_v14  ;;  %v817_v63 = vmul.f32 %v4591_v29, %v4813_v1  ;;  %v885_v45 = vrot.slane %v814_v48, 2  ;;  %v886_v17 = vrot.slane %v815_v49, 2 }
  0xae   :  { %v738_v54 = vsel %vm421_vm0, %v736_v42, %v737_v3  ;;  %v789_v4 = vadd.f32 %v741_v52, %v641_v51  ;;  %v963_v61 = vmul.f32 %v4594_v30, %v4775_v14  ;;  %v964_v5 = vmul.f32 %v4594_v30, %v4813_v1 }
  0xaf   :  { %v788_v7 = vadd.f32 %v738_v54, %v640_v32  ;;  %v887_v9 = vsel %vm866_vm1, %v885_v45, %v886_v17  ;;  %v888_v41 = vrot.slane %v816_v56, 2  ;;  %v889_v10 = vrot.slane %v817_v63, 2  ;;  %v241_v32 = vld [vmem:[#allocation2 + $0xb8] sm:$0x3]  ;;  %v4937_v17 = vld [vmem:[#allocation2 + $0xc8] sm:$0x3] }
  0xb0   :  { %v965_v11 = vmul.f32 %v4594_v30, %v4852_v31  ;;  %v966_v13 = vmul.f32 %v4594_v30, %v235_v0  ;;  %v1033_v15 = vrot.slane %v963_v61, 2  ;;  %v1034_v16 = vrot.slane %v964_v5, 2 }
  0xb1   :  { %v890_v18 = vsel %vm866_vm1, %v888_v41, %v889_v10  ;;  %v937_v39 = vadd.f32 %v887_v9, %v788_v7  ;;  %v1111_v14 = vmul.f32 %v4604_v36, %v4852_v31  ;;  %v1112_v1 = vmul.f32 %v4604_v36, %v235_v0 }
  0xb2   :  { %v938_v25 = vadd.f32 %v890_v18, %v789_v4  ;;  %v1035_v26 = vsel %vm866_vm1, %v1033_v15, %v1034_v16  ;;  %v1036_v58 = vrot.slane %v965_v11, 2  ;;  %v1037_v59 = vrot.slane %v966_v13, 2 }
  0xb3   :  { %v1085_v60 = vadd.f32 %v1035_v26, %v937_v39  ;;  %v1181_v37 = vrot.slane %v1111_v14, 2  ;;  %v1182_v40 = vrot.slane %v1112_v1, 2  ;;  %v1184_v42 = vrot.slane %v4625_v57, 2  ;;  %v4280_v57 = vld [vmem:[#allocation11 + $0x18] sm:$0xff]  }
  0xb4   :  { %v1038_v31 = vsel %vm866_vm1, %v1036_v58, %v1037_v59  ;;  %v1185_v0 = vrot.slane %v4635_v62, 2  ;;  %v196_v46 = vmax.f32 %v180_v19, 0.0  ;;  %v274_v47 = vmul.f32 %v4573_v20, %v4916_v24 }
  0xb5   :  { %v1086_v48 = vadd.f32 %v1038_v31, %v938_v25  ;;  %v1183_v49 = vsel %vm866_vm1, %v1181_v37, %v1182_v40  ;;  %v293_v51 = vmul.f32 %v4576_v21, %v4916_v24  ;;  %v294_v3 = vmul.f32 %v4576_v21, %v4919_v35 }
  0xb6   :  { %v1186_v52 = vsel %vm866_vm1, %v1184_v42, %v1185_v0  ;;  %v1233_v56 = vadd.f32 %v1183_v49, %v1085_v60  ;;  %212 = vst [vmem:[#allocation2 + $0xd1] sm:$0xff] %v196_v46  ;;  %v329_v62 = vmul.f32 %v4579_v22, %v4919_v35  ;;  %v374_v63 = vmul.f32 %v4582_v23, %v239_v44 }
  0xb7   :  { %v1234_v45 = vadd.f32 %v1186_v52, %v1086_v48  ;;  %v309_v54 = vadd.f32 %v293_v51, %v4597_v33  ;;  %v310_v4 = vadd.f32 %v294_v3, %v274_v47  ;;  %v375_v61 = vmul.f32 %v4582_v23, %v4916_v24 }
  0xb8   :  { %v376_v5 = vmul.f32 %v4582_v23, %v241_v32  ;;  %v447_v7 = vrot.slane %v374_v63, 1  ;;  %v522_v9 = vmul.f32 %v4585_v27, %v4916_v24  ;;  %v523_v41 = vmul.f32 %v4585_v27, %v241_v32 }
  0xb9   :  { %v1246_v10 = vpack.c.bf16 %v1234_v45, %v1233_v56  ;;  %v345_v11 = vadd.f32 %v329_v62, %v309_v54  ;;  %v449_v13 = vrot.slane %v375_v61, 1  ;;  %v524_v15 = vmul.f32 %v4585_v27, %v4919_v35 }
  0xba   :  { %v448_v33 = vsel %vm421_vm0, %v422_v43, %v447_v7  ;;  %v450_v16 = vrot.slane %v376_v5, 1  ;;  %v525_v18 = vmul.f32 %v4585_v27, %v4937_v17  ;;  %v594_v39 = vrot.slane %v522_v9, 1 }
  0xbb   :  { %4165 = vmatmul.mubr.bf16.gmra.mxu0 %v1246_v10  ;;  %v494_v14 = vadd.f32 %v448_v33, %v345_v11  ;;  %v595_v1 = vrot.slane %v523_v41, 1  ;;  %v597_v19 = vrot.slane %v524_v15, 1  ;;  %v670_v25 = vmul.f32 %v4588_v28, %v4919_v35 }
  0xbc   :  { %v451_v26 = vsel %vm421_vm0, %v449_v13, %v450_v16  ;;  %v598_v58 = vrot.slane %v525_v18, 1  ;;  %v671_v34 = vmul.f32 %v4588_v28, %v4937_v17  ;;  %v819_v43 = vmul.f32 %v4591_v29, %v239_v44 }
  0xbd   :  { %v4959_v59 = vld [vmem:[#allocation2 + $0xd0] sm:$0xff]  ;;  %v596_v60 = vsel %vm421_vm0, %v594_v39, %v595_v1  ;;  %v742_v37 = vrot.slane %v670_v25, 1  ;;  %v820_v40 = vmul.f32 %v4591_v29, %v4916_v24  ;;  %v821_v31 = vmul.f32 %v4591_v29, %v241_v32  ;;  %v4965_v0 = vld [vmem:[#allocation2 + $0xd8] sm:$0x3] }
  0xbe   :  { %v330_v46 = vmul.f32 %v4579_v22, %v4959_v59  ;;  %v599_v47 = vsel %vm421_vm0, %v597_v19, %v598_v58  ;;  %v642_v48 = vadd.f32 %v596_v60, %v494_v14  ;;  %v672_v44 = vmul.f32 %v4588_v28, %v4959_v59  ;;  %v182_v19 = vld [vmem:[#allocation3 + $0x60] sm:$0xff] }
  0xbf   :  { %v673_v49 = vmul.f32 %v4588_v28, %v4965_v0  ;;  %v743_v51 = vrot.slane %v671_v34, 1  ;;  %v892_v3 = vrot.slane %v819_v43, 2  ;;  %v894_v52 = vrot.slane %v820_v40, 2 }
  0xc0   :  { %v346_v56 = vadd.f32 %v330_v46, %v310_v4  ;;  %v745_v62 = vrot.slane %v672_v44, 1  ;;  %v895_v63 = vrot.slane %v821_v31, 2  ;;  %v967_v45 = vmul.f32 %v4594_v30, %v4916_v24 }
  0xc1   :  { %v744_v54 = vsel %vm421_vm0, %v742_v37, %v743_v51  ;;  %v746_v61 = vrot.slane %v673_v49, 1  ;;  %v893_v5 = vsel %vm866_vm1, %v867_v50, %v892_v3  ;;  %v968_v7 = vmul.f32 %v4594_v30, %v241_v32  ;;  %v181_v32 = vld [vmem:[#allocation3 + $0x58] sm:$0xff] }
  0xc2   :  { %v495_v9 = vadd.f32 %v451_v26, %v346_v56  ;;  %v790_v41 = vadd.f32 %v744_v54, %v642_v48  ;;  %v896_v10 = vsel %vm866_vm1, %v894_v52, %v895_v63  ;;  %v969_v4 = vmul.f32 %v4594_v30, %v4919_v35 }
  0xc3   :  { %v747_v11 = vsel %vm421_vm0, %v745_v62, %v746_v61  ;;  %v970_v24 = vmul.f32 %v4594_v30, %v4937_v17  ;;  %v1039_v13 = vrot.slane %v967_v45, 2  ;;  %v1040_v15 = vrot.slane %v968_v7, 2 }
  0xc4   :  { %v643_v33 = vadd.f32 %v599_v47, %v495_v9  ;;  %v939_v38 = vadd.f32 %v893_v5, %v790_v41  ;;  %v1042_v16 = vrot.slane %v969_v4, 2  ;;  %v1115_v50 = vmul.f32 %v4604_v36, %v4919_v35 }
  0xc5   :  { %v1041_v18 = vsel %vm866_vm1, %v1039_v13, %v1040_v15  ;;  %v1043_v39 = vrot.slane %v970_v24, 2  ;;  %v1116_v14 = vmul.f32 %v4604_v36, %v4937_v17  ;;  %v1117_v1 = vmul.f32 %v4604_v36, %v4959_v59 }
  0xc6   :  { %v791_v25 = vadd.f32 %v747_v11, %v643_v33  ;;  %v1087_v26 = vadd.f32 %v1041_v18, %v939_v38  ;;  %v1118_v58 = vmul.f32 %v4604_v36, %v4965_v0  ;;  %v1187_v34 = vrot.slane %v1115_v50, 2 }
  0xc7   :  { %v1044_v43 = vsel %vm866_vm1, %v1042_v16, %v1043_v39  ;;  %v1188_v60 = vrot.slane %v1116_v14, 2  ;;  %v1190_v37 = vrot.slane %v1117_v1, 2  ;;  %v197_v40 = vmax.f32 %v181_v32, 0.0 }
  0xc8   :  { %v940_v31 = vadd.f32 %v896_v10, %v791_v25  ;;  %v1191_v46 = vrot.slane %v1118_v58, 2  ;;  %v198_v47 = vmax.f32 %v182_v19, 0.0  ;;  %v275_v48 = vmul.f32 %v4573_v20, %v4919_v35 }
  0xc9   :  { %v1189_v44 = vsel %vm866_vm1, %v1187_v34, %v1188_v60  ;;  %213 = vst [vmem:[#allocation2 + $0xe1] sm:$0xff] %v197_v40  ;;  %v276_v49 = vmul.f32 %v4573_v20, %v4959_v59  ;;  %v295_v51 = vmul.f32 %v4576_v21, %v4959_v59  ;;  %v377_v3 = vmul.f32 %v4582_v23, %v4919_v35 }
  0xca   :  { %v1088_v52 = vadd.f32 %v1044_v43, %v940_v31  ;;  %v1192_v56 = vsel %vm866_vm1, %v1190_v37, %v1191_v46  ;;  %v1235_v62 = vadd.f32 %v1189_v44, %v1087_v26  ;;  %214 = vst [vmem:[#allocation2 + $0xf1] sm:$0xff] %v198_v47  ;;  %v378_v63 = vmul.f32 %v4582_v23, %v4937_v17 }
  0xcb   :  { %v311_v45 = vadd.f32 %v295_v51, %v275_v48  ;;  %v379_v54 = vmul.f32 %v4582_v23, %v4959_v59  ;;  %v380_v61 = vmul.f32 %v4582_v23, %v4965_v0  ;;  %v452_v5 = vrot.slane %v377_v3, 1 }
  0xcc   :  { %v1236_v7 = vadd.f32 %v1192_v56, %v1088_v52  ;;  %v453_v9 = vrot.slane %v378_v63, 1  ;;  %v526_v41 = vmul.f32 %v4585_v27, %v4959_v59  ;;  %v527_v10 = vmul.f32 %v4585_v27, %v4965_v0 }
  0xcd   :  { %v455_v4 = vrot.slane %v379_v54, 1  ;;  %v456_v11 = vrot.slane %v380_v61, 1  ;;  %v822_v24 = vmul.f32 %v4591_v29, %v4919_v35  ;;  %v823_v13 = vmul.f32 %v4591_v29, %v4937_v17 }
  0xce   :  { %v1247_v15 = vpack.c.bf16 %v1236_v7, %v1235_v62  ;;  %v454_v33 = vsel %vm421_vm0, %v452_v5, %v453_v9  ;;  %v600_v38 = vrot.slane %v526_v41, 1  ;;  %v601_v16 = vrot.slane %v527_v10, 1 }
  0xcf   :  { %v457_v50 = vsel %vm421_vm0, %v455_v4, %v456_v11  ;;  %v824_v32 = vmul.f32 %v4591_v29, %v4959_v59  ;;  %v825_v18 = vmul.f32 %v4591_v29, %v4965_v0  ;;  %v897_v39 = vrot.slane %v822_v24, 2 }
  0xd0   :  { %4168 = vmatprep.mubr.bf16.mxu0 %v1247_v15  ;;  %v5027_v14 = vld [vmem:[#allocation2 + $0xe0] sm:$0xff]  ;;  %v5029_v35 = vld [vmem:[#allocation2 + $0xe8] sm:$0x3]  ;;  %v602_v17 = vsel %vm421_vm0, %v600_v38, %v601_v16  ;;  %v898_v1 = vrot.slane %v823_v13, 2  ;;  %v971_v19 = vmul.f32 %v4594_v30, %v4959_v59  ;;  %v972_v25 = vmul.f32 %v4594_v30, %v4965_v0 }
  0xd1   :  { %v5036_v26 = vld [vmem:[#allocation2 + $0xf0] sm:$0xff]  ;;  %v5038_v58 = vld [vmem:[#allocation2 + $0xf8] sm:$0x3]  ;;  %v296_v34 = vmul.f32 %v4576_v21, %v5027_v14  ;;  %v331_v43 = vmul.f32 %v4579_v22, %v5027_v14  ;;  %v528_v60 = vmul.f32 %v4585_v27, %v5027_v14  ;;  %v529_v37 = vmul.f32 %v4585_v27, %v5029_v35 }
  0xd2   :  { %v332_v59 = vmul.f32 %v4579_v22, %v5036_v26  ;;  %v674_v0 = vmul.f32 %v4588_v28, %v5027_v14  ;;  %v675_v40 = vmul.f32 %v4588_v28, %v5029_v35  ;;  %v676_v31 = vmul.f32 %v4588_v28, %v5036_v26 }
  0xd3   :  { %v312_v46 = vadd.f32 %v296_v34, %v276_v49  ;;  %v347_v47 = vadd.f32 %v331_v43, %v311_v45  ;;  %v603_v48 = vrot.slane %v528_v60, 1  ;;  %v604_v44 = vrot.slane %v529_v37, 1  ;;  %v184_v34 = vld [vmem:[#allocation3 + $0x70] sm:$0xff] }
  0xd4   :  { %v677_v51 = vmul.f32 %v4588_v28, %v5038_v58  ;;  %v748_v3 = vrot.slane %v674_v0, 1  ;;  %v749_v52 = vrot.slane %v675_v40, 1  ;;  %v751_v56 = vrot.slane %v676_v31, 1 }
  0xd5   :  { %v348_v62 = vadd.f32 %v332_v59, %v312_v46  ;;  %v496_v63 = vadd.f32 %v454_v33, %v347_v47  ;;  %v605_v54 = vsel %vm421_vm0, %v603_v48, %v604_v44  ;;  %v899_v61 = vsel %vm866_vm1, %v897_v39, %v898_v1 }
  0xd6   :  { %v750_v5 = vsel %vm421_vm0, %v748_v3, %v749_v52  ;;  %v752_v7 = vrot.slane %v677_v51, 1  ;;  %v900_v9 = vrot.slane %v824_v32, 2  ;;  %v901_v49 = vrot.slane %v825_v18, 2  ;;  %v183_v32 = vld [vmem:[#allocation3 + $0x68] sm:$0xff] }
  0xd7   :  { %v497_v45 = vadd.f32 %v457_v50, %v348_v62  ;;  %v644_v41 = vadd.f32 %v602_v17, %v496_v63  ;;  %v973_v10 = vmul.f32 %v4594_v30, %v5027_v14  ;;  %v974_v4 = vmul.f32 %v4594_v30, %v5029_v35 }
  0xd8   :  { %v753_v11 = vsel %vm421_vm0, %v751_v56, %v752_v7  ;;  %v902_v24 = vsel %vm866_vm1, %v900_v9, %v901_v49  ;;  %v1045_v13 = vrot.slane %v971_v19, 2  ;;  %v1046_v15 = vrot.slane %v972_v25, 2 }
  0xd9   :  { %v645_v33 = vadd.f32 %v605_v54, %v497_v45  ;;  %v792_v38 = vadd.f32 %v750_v5, %v644_v41  ;;  %v1048_v16 = vrot.slane %v973_v10, 2  ;;  %v1049_v39 = vrot.slane %v974_v4, 2 }
  0xda   :  { %v1047_v50 = vsel %vm866_vm1, %v1045_v13, %v1046_v15  ;;  %v1119_v18 = vmul.f32 %v4604_v36, %v5027_v14  ;;  %v1120_v17 = vmul.f32 %v4604_v36, %v5029_v35  ;;  %v1121_v1 = vmul.f32 %v4604_v36, %v5036_v26 }
  0xdb   :  { %v793_v43 = vadd.f32 %v753_v11, %v645_v33  ;;  %v941_v19 = vadd.f32 %v899_v61, %v792_v38  ;;  %v1050_v25 = vsel %vm866_vm1, %v1048_v16, %v1049_v39  ;;  %v1122_v60 = vmul.f32 %v4604_v36, %v5038_v58 }
  0xdc   :  { %v1193_v37 = vrot.slane %v1119_v18, 2  ;;  %v1194_v59 = vrot.slane %v1120_v17, 2  ;;  %v1196_v0 = vrot.slane %v1121_v1, 2  ;;  %v199_v40 = vmax.f32 %v183_v32, 0.0 }
  0xdd   :  { %v942_v31 = vadd.f32 %v902_v24, %v793_v43  ;;  %v1089_v46 = vadd.f32 %v1047_v50, %v941_v19  ;;  %v1197_v47 = vrot.slane %v1122_v60, 2  ;;  %v200_v48 = vmax.f32 %v184_v34, 0.0 }
  0xde   :  { %v1195_v44 = vsel %vm866_vm1, %v1193_v37, %v1194_v59  ;;  %215 = vst [vmem:[#allocation2 + $0x101] sm:$0xff] %v199_v40  ;;  %v277_v51 = vmul.f32 %v4573_v20, %v5027_v14  ;;  %v278_v3 = vmul.f32 %v4573_v20, %v5036_v26  ;;  %v297_v52 = vmul.f32 %v4576_v21, %v5036_v26 }
  0xdf   :  { %v1090_v56 = vadd.f32 %v1050_v25, %v942_v31  ;;  %v1198_v62 = vsel %vm866_vm1, %v1196_v0, %v1197_v47  ;;  %v1237_v63 = vadd.f32 %v1195_v44, %v1089_v46  ;;  %216 = vst [vmem:[#allocation2 + $0x111] sm:$0xff] %v200_v48  ;;  %v381_v54 = vmul.f32 %v4582_v23, %v5027_v14 }
  0xe0   :  { %v313_v61 = vadd.f32 %v297_v52, %v277_v51  ;;  %v382_v5 = vmul.f32 %v4582_v23, %v5029_v35  ;;  %v383_v7 = vmul.f32 %v4582_v23, %v5036_v26  ;;  %v384_v9 = vmul.f32 %v4582_v23, %v5038_v58 }
  0xe1   :  { %v1238_v49 = vadd.f32 %v1198_v62, %v1090_v56  ;;  %v458_v45 = vrot.slane %v381_v54, 1  ;;  %v530_v41 = vmul.f32 %v4585_v27, %v5036_v26  ;;  %v531_v10 = vmul.f32 %v4585_v27, %v5038_v58 }
  0xe2   :  { %v459_v4 = vrot.slane %v382_v5, 1  ;;  %v461_v11 = vrot.slane %v383_v7, 1  ;;  %v462_v24 = vrot.slane %v384_v9, 1  ;;  %v826_v13 = vmul.f32 %v4591_v29, %v5027_v14 }
  0xe3   :  { %v1248_v15 = vpack.c.bf16 %v1238_v49, %v1237_v63  ;;  %v606_v33 = vrot.slane %v530_v41, 1  ;;  %v607_v38 = vrot.slane %v531_v10, 1  ;;  %v827_v16 = vmul.f32 %v4591_v29, %v5029_v35 }
  0xe4   :  { %v460_v39 = vsel %vm421_vm0, %v458_v45, %v459_v4  ;;  %v463_v32 = vsel %vm421_vm0, %v461_v11, %v462_v24  ;;  %v828_v50 = vmul.f32 %v4591_v29, %v5036_v26  ;;  %v829_v18 = vmul.f32 %v4591_v29, %v5038_v58 }
  0xe5   :  { %4169 = vmatmul.mubr.bf16.gmra.mxu0 %v1248_v15  ;;  %v5107_v17 = vld [vmem:[#allocation2 + $0x100] sm:$0xff]  ;;  %v5109_v14 = vld [vmem:[#allocation2 + $0x108] sm:$0x3]  ;;  %v608_v1 = vsel %vm421_vm0, %v606_v33, %v607_v38  ;;  %v903_v34 = vrot.slane %v826_v13, 2  ;;  %v904_v43 = vrot.slane %v827_v16, 2  ;;  %v975_v35 = vmul.f32 %v4594_v30, %v5036_v26 }
  0xe6   :  { %v5114_v19 = vld [vmem:[#allocation2 + $0x110] sm:$0xff]  ;;  %v298_v25 = vmul.f32 %v4576_v21, %v5107_v17  ;;  %v333_v60 = vmul.f32 %v4579_v22, %v5107_v17  ;;  %v532_v37 = vmul.f32 %v4585_v27, %v5107_v17  ;;  %v533_v59 = vmul.f32 %v4585_v27, %v5109_v14  ;;  %v5132_v46 = vld [vmem:[#allocation2 + $0x118] sm:$0x3] }
  0xe7   :  { %v334_v0 = vmul.f32 %v4579_v22, %v5114_v19  ;;  %v678_v26 = vmul.f32 %v4588_v28, %v5107_v17  ;;  %v679_v40 = vmul.f32 %v4588_v28, %v5109_v14  ;;  %v680_v31 = vmul.f32 %v4588_v28, %v5114_v19 }
  0xe8   :  { %v314_v47 = vadd.f32 %v298_v25, %v278_v3  ;;  %v349_v48 = vadd.f32 %v333_v60, %v313_v61  ;;  %v609_v44 = vrot.slane %v532_v37, 1  ;;  %v610_v51 = vrot.slane %v533_v59, 1 }
  0xe9   :  { %v681_v52 = vmul.f32 %v4588_v28, %v5132_v46  ;;  %v754_v56 = vrot.slane %v678_v26, 1  ;;  %v755_v62 = vrot.slane %v679_v40, 1  ;;  %v757_v63 = vrot.slane %v680_v31, 1 }
  0xea   :  { %v350_v54 = vadd.f32 %v334_v0, %v314_v47  ;;  %v498_v5 = vadd.f32 %v460_v39, %v349_v48  ;;  %v611_v7 = vsel %vm421_vm0, %v609_v44, %v610_v51  ;;  %v905_v9 = vsel %vm866_vm1, %v903_v34, %v904_v43  ;;  %v185_v34 = vld [vmem:[#allocation3 + $0x78] sm:$0xff] }
  0xeb   :  { %v756_v49 = vsel %vm421_vm0, %v754_v56, %v755_v62  ;;  %v758_v45 = vrot.slane %v681_v52, 1  ;;  %v906_v41 = vrot.slane %v828_v50, 2  ;;  %v907_v3 = vrot.slane %v829_v18, 2 }
  0xec   :  { %v499_v61 = vadd.f32 %v463_v32, %v350_v54  ;;  %v646_v10 = vadd.f32 %v608_v1, %v498_v5  ;;  %v976_v4 = vmul.f32 %v4594_v30, %v5038_v58  ;;  %v977_v11 = vmul.f32 %v4594_v30, %v5107_v17 }
  0xed   :  { %v759_v24 = vsel %vm421_vm0, %v757_v63, %v758_v45  ;;  %v908_v13 = vsel %vm866_vm1, %v906_v41, %v907_v3  ;;  %v978_v15 = vmul.f32 %v4594_v30, %v5109_v14  ;;  %v1051_v33 = vrot.slane %v975_v35, 2  ;;  %v5161_v63 = vld [vmem:[#allocation2 + $0x138] sm:$0x3] }
  0xee   :  { %v647_v38 = vadd.f32 %v611_v7, %v499_v61  ;;  %v794_v16 = vadd.f32 %v756_v49, %v646_v10  ;;  %v1052_v39 = vrot.slane %v976_v4, 2  ;;  %v1054_v50 = vrot.slane %v977_v11, 2 }
  0xef   :  { %v1055_v32 = vrot.slane %v978_v15, 2  ;;  %v1123_v18 = vmul.f32 %v4604_v36, %v5107_v17  ;;  %v1124_v58 = vmul.f32 %v4604_v36, %v5109_v14  ;;  %v1125_v1 = vmul.f32 %v4604_v36, %v5114_v19 }
  0xf0   :  { %v795_v43 = vadd.f32 %v759_v24, %v647_v38  ;;  %v943_v25 = vadd.f32 %v905_v9, %v794_v16  ;;  %v1053_v60 = vsel %vm866_vm1, %v1051_v33, %v1052_v39  ;;  %v1126_v35 = vmul.f32 %v4604_v36, %v5132_v46 }
  0xf1   :  { %v1056_v37 = vsel %vm866_vm1, %v1054_v50, %v1055_v32  ;;  %v1199_v59 = vrot.slane %v1123_v18, 2  ;;  %v1200_v0 = vrot.slane %v1124_v58, 2  ;;  %v1202_v26 = vrot.slane %v1125_v1, 2 }
  0xf2   :  { %v944_v40 = vadd.f32 %v908_v13, %v795_v43  ;;  %v1091_v31 = vadd.f32 %v1053_v60, %v943_v25  ;;  %v1203_v47 = vrot.slane %v1126_v35, 2  ;;  %v201_v48 = vmax.f32 %v185_v34, 0.0 }
  0xf3   :  { %v1201_v44 = vsel %vm866_vm1, %v1199_v59, %v1200_v0  ;;  %v279_v51 = vmul.f32 %v4573_v20, %v5107_v17  ;;  %v385_v54 = vmul.f32 %v4582_v23, %v5107_v17  ;;  %v299_v5 = vmul.f32 %v4576_v21, %v5114_v19 }
  0xf4   :  { %v1092_v52 = vadd.f32 %v1056_v37, %v944_v40  ;;  %v1204_v56 = vsel %vm866_vm1, %v1202_v26, %v1203_v47  ;;  %v1239_v62 = vadd.f32 %v1201_v44, %v1091_v31  ;;  %217 = vst [vmem:[#allocation2 + $0x121] sm:$0xff] %v201_v48  ;;  %v386_v7 = vmul.f32 %v4582_v23, %v5109_v14 }
  0xf5   :  { %v387_v9 = vmul.f32 %v4582_v23, %v5114_v19  ;;  %v388_v49 = vmul.f32 %v4582_v23, %v5132_v46  ;;  %v464_v41 = vrot.slane %v385_v54, 1  ;;  %v534_v3 = vmul.f32 %v4585_v27, %v5114_v19 }
  0xf6   :  { %v1240_v45 = vadd.f32 %v1204_v56, %v1092_v52  ;;  %v535_v61 = vmul.f32 %v4585_v27, %v5132_v46  ;;  %v465_v10 = vrot.slane %v386_v7, 1  ;;  %v685_v24 = vmul.f32 %v4588_v28, %v5161_v63 }
  0xf7   :  { %v467_v4 = vrot.slane %v387_v9, 1  ;;  %v468_v11 = vrot.slane %v388_v49, 1  ;;  %v612_v15 = vrot.slane %v534_v3, 1  ;;  %v830_v23 = vmul.f32 %v4591_v29, %v5107_v17 }
  0xf8   :  { %v1249_v13 = vpack.c.bf16 %v1240_v45, %v1239_v62  ;;  %v613_v33 = vrot.slane %v535_v61, 1  ;;  %v280_v38 = vmul.f32 %v4573_v20, %v5114_v19  ;;  %v315_v16 = vadd.f32 %v299_v5, %v279_v51 }
  0xf9   :  { %v764_v39 = vrot.slane %v685_v24, 1  ;;  %v831_v50 = vmul.f32 %v4591_v29, %v5109_v14  ;;  %v466_v32 = vsel %vm421_vm0, %v464_v41, %v465_v10  ;;  %v469_v18 = vsel %vm421_vm0, %v467_v4, %v468_v11  ;;  %v4276_v10 = vld [vmem:[#allocation11 + $0x38] sm:$0xff]  }
  0xfa   :  { %4172 = vmatprep.mubr.bf16.mxu0 %v1249_v13  ;;  %v614_v58 = vsel %vm421_vm0, %v612_v15, %v613_v33  ;;  %v832_v1 = vmul.f32 %v4591_v29, %v5114_v19  ;;  %v833_v43 = vmul.f32 %v4591_v29, %v5132_v46  ;;  %v909_v14 = vrot.slane %v830_v23, 2  ;;  %4176 = vmatprep.subr.bf16.mxu1 %v4276_v10 }
  0xfb   :  { %v254_v34 = vld [vmem:[#allocation2 + $0x120] sm:$0xff]  ;;  %v255_v17 = vld [vmem:[#allocation2 + $0x128] sm:$0x3]  ;;  %v765_v20 = vsel %vm421_vm0, %v739_v2, %v764_v39  ;;  %v910_v25 = vrot.slane %v831_v50, 2  ;;  %v979_v55 = vmul.f32 %v4594_v30, %v5114_v19  ;;  %v980_v29 = vmul.f32 %v4594_v30, %v5132_v46  ;;  %4177 = vmatpush3.bf16.msra.mxu1 %v4276_v10  ;;  %v1531_v10 = vld [vmem:[#allocation9 + $0x4] sm:$0x7] }
  0xfc   :  { %v300_v60 = vmul.f32 %v4576_v21, %v254_v34  ;;  %v335_v35 = vmul.f32 %v4579_v22, %v254_v34  ;;  %v536_v37 = vmul.f32 %v4585_v27, %v254_v34  ;;  %v537_v59 = vmul.f32 %v4585_v27, %v255_v17 }
  0xfd   :  { %v682_v0 = vmul.f32 %v4588_v28, %v254_v34  ;;  %v683_v26 = vmul.f32 %v4588_v28, %v255_v17  ;;  %v912_v48 = vrot.slane %v832_v1, 2  ;;  %v981_v44 = vmul.f32 %v4594_v30, %v254_v34  ;;  %v4278_v1 = vld [vmem:[#allocation11 + $0x28] sm:$0xff]  }
  0xfe   :  { %v316_v2 = vadd.f32 %v300_v60, %v280_v38  ;;  %v351_v40 = vadd.f32 %v335_v35, %v315_v16  ;;  %v615_v31 = vrot.slane %v536_v37, 1  ;;  %v616_v21 = vrot.slane %v537_v59, 1  ;;  %v1532_v60 = vld [vmem:[#allocation9 + $0x8] sm:$0x7]  ;;  %v4281_v37 = vld [vmem:[#allocation11 + $0x10] sm:$0xff]  }
  0xff   :  { %v760_v47 = vrot.slane %v682_v0, 1  ;;  %v761_v22 = vrot.slane %v683_v26, 1  ;;  %v913_v52 = vrot.slane %v833_v43, 2  ;;  %v982_v28 = vmul.f32 %v4594_v30, %v255_v17  ;;  %v5230_v43 = vld [vmem:[%s6796_s4] ss:$0 sm:$0xff] }
 0x100   :  { %v352_v27 = vadd.f32 %v4613_v53, %v316_v2  ;;  %v500_v51 = vadd.f32 %v466_v32, %v351_v40  ;;  %v617_v19 = vsel %vm421_vm0, %v615_v31, %v616_v21  ;;  %v1057_v46 = vrot.slane %v979_v55, 2  ;;  %v4292_v2 = vld [vmem:[#allocation2] sm:$0xff] }
 0x101   :  { %v762_v56 = vsel %vm421_vm0, %v760_v47, %v761_v22  ;;  %v1058_v62 = vrot.slane %v980_v29, 2  ;;  %v911_v7 = vsel %vm866_vm1, %v909_v14, %v910_v25  ;;  %v1060_v9 = vrot.slane %v981_v44, 2  ;;  %v1491_v25 = vld [vmem:[#allocation2 + $0x8] sm:$0x3]  ;;  %v1509_v22 = vld [vmem:[#allocation2 + $0x98] sm:$0x3] }
 0x102   :  { %v501_v54 = vadd.f32 %v469_v18, %v352_v27  ;;  %v648_v5 = vadd.f32 %v614_v58, %v500_v51  ;;  %v1061_v49 = vrot.slane %v982_v28, 2  ;;  %v1127_v45 = vmul.f32 %v4604_v36, %v254_v34  ;;  %v4279_v34 = vld [vmem:[#allocation11 + $0x20] sm:$0xff]   ;;  %v4282_v28 = vld [vmem:[#allocation11 + $0x8] sm:$0xff]  }
 0x103   :  { %v1128_v53 = vmul.f32 %v4604_v36, %v255_v17  ;;  %v1130_v41 = vmul.f32 %v4604_v36, %v5161_v63  ;;  %v914_v61 = vsel %vm866_vm1, %v912_v48, %v913_v52  ;;  %v1059_v4 = vsel %vm866_vm1, %v1057_v46, %v1058_v62  ;;  %v4277_v63 = vld [vmem:[#allocation11 + $0x30] sm:$0xff]   ;;  %v5225_v17 = vld [vmem:[%s6795_s3] ss:$0 sm:$0xff] }
 0x104   :  { %v649_v30 = vadd.f32 %v617_v19, %v501_v54  ;;  %v796_v3 = vadd.f32 %v762_v56, %v648_v5  ;;  %v1205_v11 = vrot.slane %v1127_v45, 2  ;;  %v1062_v23 = vsel %vm866_vm1, %v1060_v9, %v1061_v49  ;;  %4178 = vmatprep.subr.bf16.mxu1 %v4277_v63  ;;  %v1511_v45 = vld [vmem:[#allocation2 + $0xa8] sm:$0x3] }
 0x105   :  { %v1206_v24 = vrot.slane %v1128_v53, 2  ;;  %v1209_v13 = vrot.slane %v1130_v41, 2  ;;  %4179 = vmatpush3.bf16.msra.mxu1 %v4277_v63  ;;  %v5244_v21 = vrot.slane %v1532_v60, %v4568_v8  ;;  %v5260_v49 = vrot.slane %v1532_v60, %v4570_v12 }
 0x106   :  { %v797_v15 = vadd.f32 %v765_v20, %v649_v30  ;;  %v945_v33 = vadd.f32 %v911_v7, %v796_v3  ;;  %4180 = vmatprep.subr.bf16.mxu1 %v4278_v1 }
 0x107   :  { %v1207_v38 = vsel %vm866_vm1, %v1205_v11, %v1206_v24  ;;  %v1210_v39 = vsel %vm866_vm1, %v1184_v42, %v1209_v13  ;;  %v1530_v42 = vld [vmem:[#allocation9] sm:$0x7]  ;;  %v5253_v19 = vmul.f32 %v4292_v2, %v5244_v21  ;;  %v1940_v56 = vmul.f32 %v5244_v21, %v1509_v22 }
 0x108   :  { %v946_v16 = vadd.f32 %v914_v61, %v797_v15  ;;  %v1093_v36 = vadd.f32 %v1059_v4, %v945_v33  ;;  %v5234_v59 = vrot.slane %v1530_v42, %v4568_v8  ;;  %v5237_v0 = vrot.slane %v1530_v42, %v4570_v12  ;;  %v4283_v61 = vld [vmem:[#allocation11] sm:$0xff]  }
 0x109   :  { %4181 = vmatpush3.bf16.msra.mxu1 %v4278_v1  ;;  %v6807_v4 = vrot.slane %v5253_v19, 1  ;;  %v2011_v11 = vrot.slane %v1940_v56, 1  ;;  %v5266_v24 = vmul.f32 %v4292_v2, %v5260_v49  ;;  %v2384_v13 = vmul.f32 %v5260_v49, %v1509_v22 }
 0x10a   :  { %v1094_v50 = vadd.f32 %v1062_v23, %v946_v16  ;;  %v1241_v32 = vadd.f32 %v1207_v38, %v1093_v36  ;;  %4182 = vmatprep.subr.bf16.mxu1 %v4279_v34  ;;  %v1629_v40 = vmul.f32 %v4292_v2, %v5234_v59  ;;  %v1630_v31 = vmul.f32 %v5234_v59, %v1491_v25 }
 0x10b   :  { %v5247_v47 = vmul.f32 %v4292_v2, %v5237_v0  ;;  %v2074_v51 = vmul.f32 %v5237_v0, %v1491_v25  ;;  %v1646_v3 = vmul.f32 %v5234_v59, %v1511_v45  ;;  %v5270_v33 = vrot.slane %v1530_v42, %v4566_v6 }
 0x10c   :  { %v1242_v18 = vadd.f32 %v1210_v39, %v1094_v50  ;;  %v1693_v5 = vrot.slane %v1629_v40, 1  ;;  %v1694_v7 = vrot.slane %v1630_v31, 1  ;;  %v5273_v38 = vmul.f32 %v5237_v0, %v1511_v45 }
 0x10d   :  { %4183 = vmatpush3.bf16.msra.mxu1 %v4279_v34  ;;  %v6808_v9 = vrot.slane %v5247_v47, 2  ;;  %v2138_v30 = vrot.slane %v2074_v51, 2  ;;  %v1718_v23 = vrot.slane %v1646_v3, 1  ;;  %v5276_v16 = vrot.slane %v1532_v60, %v4566_v6 }
 0x10e   :  { %v1250_v58 = vpack.c.bf16 %v1242_v18, %v1241_v32  ;;  %4184 = vmatprep.subr.bf16.mxu1 %v4280_v57  ;;  %v6806_v36 = vrot.slane %v5266_v24, 2  ;;  %v2455_v63 = vrot.slane %v2384_v13, 2  ;;  %v5280_v39 = vmul.f32 %v4292_v2, %v5270_v33 }
 0x10f   :  { %v5283_v50 = vrot.slane %v1531_v10, %v4566_v6  ;;  %v5286_v32 = vrot.slane %v1531_v10, %v4568_v8  ;;  %v5289_v18 = vrot.slane %v1531_v10, %v4570_v12  ;;  %v1695_v34 = vsel %vm421_vm0, %v1693_v5, %v1694_v7 }
 0x110   :  { %4173 = vmatmul.mubr.bf16.gmra.mxu0 %v1250_v58  ;;  %v5302_v42 = vmul.f32 %v4292_v2, %v5276_v16  ;;  %v5314_v60 = vsel %vm421_vm0, %v1693_v5, %v1718_v23  ;;  %v5330_v40 = vsel %vm866_vm1, %v6806_v36, %v2455_v63 }
 0x111   :  { %4185 = vmatpush3.bf16.msra.mxu1 %v4280_v57  ;;  %v5299_v57 = vsel %vm866_vm1, %v6808_v9, %v2138_v30 }
 0x112   :  { %4186 = vmatprep.subr.bf16.mxu1 %v4281_v37 }
 0x115   :  { %4187 = vmatpush3.bf16.msra.mxu1 %v4281_v37 }
 0x116   :  { %4188 = vmatprep.subr.bf16.mxu1 %v4282_v28 }
 0x119   :  { %4189 = vmatpush3.bf16.msra.mxu1 %v4282_v28 }
 0x11a   :  { %4190 = vmatprep.subr.bf16.mxu1 %v4283_v61 }
 0x11d   :  { %4191 = vmatpush3.bf16.msra.mxu1 %v4283_v61 }
 0x153   :  { %v4162_v20 = vpop.f32.mrf.mxu0 }
 0x154   :  { %v1421_v14 = vmul.f32 %v4162_v20, %v5225_v17  ;;  %v5307_v20 = vsel %vm421_vm0, %v6807_v4, %v2011_v11 }
 0x155   :  { %v1349_v35 = vpop.f32.mrf.mxu0 }
 0x156   :  { %v1444_v26 = vadd.f32 %v5230_v43, %v1421_v14  ;;  %v1419_v55 = vmul.f32 %v5225_v17, %v1349_v35 }
 0x157   :  { %v4163_v29 = vpop.f32.mrf.mxu0 }
 0x158   :  { %v1460_v48 = vmax.f32 %v1444_v26, 0.0  ;;  %v1442_v44 = vadd.f32 %v5230_v43, %v1419_v55  ;;  %v1422_v27 = vmul.f32 %v4163_v29, %v5225_v17 }
 0x159   :  { %v1352_v52 = vpop.f32.mrf.mxu0 }
 0x15a   :  { %1476 = vst [vmem:[#allocation2 + $0x31] sm:$0xff] %v1460_v48  ;;  %v1458_v46 = vmax.f32 %v1442_v44, 0.0  ;;  %v1445_v62 = vadd.f32 %v5230_v43, %v1422_v27  ;;  %v1420_v54 = vmul.f32 %v5225_v17, %v1352_v52 }
 0x15c   :  { %1474 = vst [vmem:[#allocation2 + $0x11] sm:$0xff] %v1458_v46  ;;  %v1461_v53 = vmax.f32 %v1445_v62, 0.0  ;;  %v1443_v41 = vadd.f32 %v5230_v43, %v1420_v54 }
 0x15e   :  { %1477 = vst [vmem:[#allocation2 + $0x41] sm:$0xff] %v1461_v53  ;;  %v1459_v15 = vmax.f32 %v1443_v41, 0.0 }
 0x160   :  { %1475 = vst [vmem:[#allocation2 + $0x21] sm:$0xff] %v1459_v15 }
 0x161   :  { %v5291_v58 = vld [vmem:[#allocation2 + $0x30] sm:$0xff]  ;;  %v5293_v1 = vld [vmem:[#allocation2 + $0x38] sm:$0x3] }
 0x162   :  { %v1927_v14 = vmul.f32 %v5244_v21, %v5291_v58  ;;  %v1928_v25 = vmul.f32 %v5244_v21, %v5293_v1  ;;  %v1594_v55 = vmul.f32 %v5276_v16, %v5291_v58  ;;  %v5321_v29 = vmul.f32 %v5260_v49, %v5291_v58 }
 0x163   :  { %v1492_v37 = vld [vmem:[#allocation2 + $0x10] sm:$0xff]  ;;  %v1493_v26 = vld [vmem:[#allocation2 + $0x18] sm:$0x3]  ;;  %v5325_v2 = vmul.f32 %v5260_v49, %v5293_v1  ;;  %v5337_v44 = vmul.f32 %v5270_v33, %v5291_v58  ;;  %v1559_v54 = vmul.f32 %v5283_v50, %v5291_v58 }
 0x164   :  { %v1557_v31 = vmul.f32 %v5283_v50, %v1492_v37  ;;  %v1631_v22 = vmul.f32 %v5234_v59, %v1492_v37  ;;  %v1632_v48 = vmul.f32 %v5234_v59, %v1493_v26  ;;  %v1777_v27 = vmul.f32 %v5286_v32, %v1492_v37 }
 0x165   :  { %v1778_v51 = vmul.f32 %v5286_v32, %v1493_v26  ;;  %v1992_v52 = vrot.slane %v1927_v14, 1  ;;  %v1993_v28 = vrot.slane %v1928_v25, 1  ;;  %v1538_v56 = vmul.f32 %v5270_v33, %v1492_v37 }
 0x166   :  { %v1696_v46 = vrot.slane %v1631_v22, 1  ;;  %v1697_v62 = vrot.slane %v1632_v48, 1  ;;  %v1573_v45 = vadd.f32 %v1557_v31, %v5280_v39  ;;  %v1841_v53 = vrot.slane %v1777_v27, 1 }
 0x167   :  { %v5344_v5 = vld [vmem:[#allocation2 + $0x20] sm:$0xff]  ;;  %v5346_v7 = vld [vmem:[#allocation2 + $0x28] sm:$0x3]  ;;  %v1842_v41 = vrot.slane %v1778_v51, 1  ;;  %v2075_v30 = vmul.f32 %v5237_v0, %v1492_v37  ;;  %v1994_v11 = vsel %vm421_vm0, %v1992_v52, %v1993_v28  ;;  %v2076_v63 = vmul.f32 %v5237_v0, %v1493_v26 }
 0x168   :  { %v1558_v3 = vmul.f32 %v5283_v50, %v5344_v5  ;;  %v1593_v61 = vmul.f32 %v5276_v16, %v5344_v5  ;;  %v1779_v10 = vmul.f32 %v5286_v32, %v5344_v5  ;;  %v1780_v13 = vmul.f32 %v5286_v32, %v5346_v7 }
 0x169   :  { %v1925_v15 = vmul.f32 %v5244_v21, %v5344_v5  ;;  %v1926_v23 = vmul.f32 %v5244_v21, %v5346_v7  ;;  %v1698_v31 = vsel %vm421_vm0, %v1696_v46, %v1697_v62  ;;  %v1843_v48 = vsel %vm421_vm0, %v1841_v53, %v1842_v41 }
 0x16a   :  { %v1574_v14 = vadd.f32 %v1558_v3, %v1538_v56  ;;  %v1609_v25 = vadd.f32 %v1593_v61, %v1573_v45  ;;  %v1844_v22 = vrot.slane %v1779_v10, 1  ;;  %v1845_v27 = vrot.slane %v1780_v13, 1  ;;  %v5378_v10 = vld [vmem:[#allocation2 + $0x40] sm:$0xff] }
 0x16b   :  { %v1989_v51 = vrot.slane %v1925_v15, 1  ;;  %v1990_v52 = vrot.slane %v1926_v23, 1  ;;  %v2221_v4 = vmul.f32 %v5289_v18, %v1492_v37  ;;  %v2222_v9 = vmul.f32 %v5289_v18, %v1493_v26 }
 0x16c   :  { %v1610_v28 = vadd.f32 %v1594_v55, %v1574_v14  ;;  %v1757_v36 = vadd.f32 %v1695_v34, %v1609_v25  ;;  %v1846_v35 = vsel %vm421_vm0, %v1844_v22, %v1845_v27  ;;  %v2140_v6 = vrot.slane %v2075_v30, 2 }
 0x16d   :  { %v2141_v12 = vrot.slane %v2076_v63, 2  ;;  %v2223_v56 = vmul.f32 %v5289_v18, %v5344_v5  ;;  %v1991_v45 = vsel %vm421_vm0, %v1989_v51, %v1990_v52  ;;  %v2224_v53 = vmul.f32 %v5289_v18, %v5346_v7 }
 0x16e   :  { %v1758_v46 = vadd.f32 %v1698_v31, %v1610_v28  ;;  %v1905_v62 = vadd.f32 %v1843_v48, %v1757_v36  ;;  %v2285_v55 = vrot.slane %v2221_v4, 2  ;;  %v2286_v34 = vrot.slane %v2222_v9, 2 }
 0x16f   :  { %v2369_v37 = vmul.f32 %v5260_v49, %v5344_v5  ;;  %v2370_v26 = vmul.f32 %v5260_v49, %v5346_v7  ;;  %v2288_v3 = vrot.slane %v2223_v56, 2  ;;  %v2289_v61 = vrot.slane %v2224_v53, 2 }
 0x170   :  { %v1906_v41 = vadd.f32 %v1846_v35, %v1758_v46  ;;  %v2053_v30 = vadd.f32 %v1991_v45, %v1905_v62  ;;  %v2436_v15 = vrot.slane %v5321_v29, 2  ;;  %v2437_v23 = vrot.slane %v5325_v2, 2 }
 0x171   :  { %v2433_v36 = vrot.slane %v2369_v37, 2  ;;  %v2434_v13 = vrot.slane %v2370_v26, 2  ;;  %v1539_v63 = vmul.f32 %v5270_v33, %v5344_v5  ;;  %v5387_v35 = vmul.f32 %v5234_v59, %v5291_v58 }
 0x172   :  { %v2054_v4 = vadd.f32 %v1994_v11, %v1906_v41  ;;  %v2201_v9 = vadd.f32 %v5299_v57, %v2053_v30  ;;  %v2142_v14 = vsel %vm866_vm1, %v2140_v6, %v2141_v12  ;;  %v2287_v25 = vsel %vm866_vm1, %v2285_v55, %v2286_v34 }
 0x173   :  { %v1560_v31 = vmul.f32 %v5283_v50, %v5378_v10  ;;  %v1595_v29 = vmul.f32 %v5276_v16, %v5378_v10  ;;  %v1575_v57 = vadd.f32 %v1559_v54, %v1539_v63  ;;  %v1633_v22 = vmul.f32 %v5234_v59, %v5344_v5  ;;  %v5406_v54 = vld [vmem:[#allocation2 + $0x48] sm:$0x3] }
 0x174   :  { %v2202_v2 = vadd.f32 %v2142_v14, %v2054_v4  ;;  %v2349_v11 = vadd.f32 %v2287_v25, %v2201_v9  ;;  %v2290_v48 = vsel %vm866_vm1, %v2288_v3, %v2289_v61  ;;  %v2435_v27 = vsel %vm866_vm1, %v2433_v36, %v2434_v13 }
 0x175   :  { %v2438_v6 = vsel %vm866_vm1, %v2436_v15, %v2437_v23  ;;  %v1634_v12 = vmul.f32 %v5234_v59, %v5346_v7  ;;  %v1611_v52 = vadd.f32 %v1595_v29, %v1575_v57  ;;  %v5404_v28 = vmul.f32 %v5234_v59, %v5293_v1 }
 0x176   :  { %v2350_v51 = vadd.f32 %v2290_v48, %v2202_v2  ;;  %v1699_v56 = vrot.slane %v1633_v22, 1  ;;  %v5409_v46 = vadd.f32 %v1560_v31, %v5337_v44  ;;  %v1781_v45 = vmul.f32 %v5286_v32, %v5291_v58 }
 0x177   :  { %v1700_v62 = vrot.slane %v1634_v12, 1  ;;  %v1782_v53 = vmul.f32 %v5286_v32, %v5293_v1  ;;  %v2497_v55 = vadd.f32 %v2435_v27, %v2349_v11  ;;  %v1783_v37 = vmul.f32 %v5286_v32, %v5378_v10 }
 0x178   :  { %v2498_v34 = vadd.f32 %v2438_v6, %v2350_v51  ;;  %v1929_v26 = vmul.f32 %v5244_v21, %v5378_v10  ;;  %v1702_v44 = vrot.slane %v5387_v35, 1  ;;  %v1847_v30 = vrot.slane %v1781_v45, 1 }
 0x179   :  { %v1701_v41 = vsel %vm421_vm0, %v1699_v56, %v1700_v62  ;;  %v1848_v3 = vrot.slane %v1782_v53, 1  ;;  %v1703_v36 = vrot.slane %v5404_v28, 1  ;;  %v1784_v15 = vmul.f32 %v5286_v32, %v5406_v54 }
 0x17a   :  { %v2513_v61 = vpack.c.bf16 %v2498_v34, %v2497_v55  ;;  %v1759_v13 = vadd.f32 %v1701_v41, %v1611_v52  ;;  %v1930_v9 = vmul.f32 %v5244_v21, %v5406_v54  ;;  %v1995_v63 = vrot.slane %v1929_v26, 1 }
 0x17b   :  { %v4166_v23 = vpop.f32.mrf.mxu0  ;;  %v1849_v4 = vsel %vm421_vm0, %v1847_v30, %v1848_v3  ;;  %v2077_v14 = vmul.f32 %v5237_v0, %v5344_v5  ;;  %v1850_v25 = vrot.slane %v1783_v37, 1  ;;  %v2078_v29 = vmul.f32 %v5237_v0, %v5346_v7 }
 0x17c   :  { %v1425_v35 = vmul.f32 %v4166_v23, %v5225_v17  ;;  %4192 = vmatprep.mubr.bf16.mxu1 %v2513_v61  ;;  %v1907_v31 = vadd.f32 %v1849_v4, %v1759_v13  ;;  %v1996_v11 = vrot.slane %v1930_v9, 1  ;;  %v2079_v57 = vmul.f32 %v5237_v0, %v5291_v58 }
 0x17d   :  { %v1365_v2 = vpop.f32.mrf.mxu0  ;;  %v2080_v22 = vmul.f32 %v5237_v0, %v5293_v1  ;;  %v2143_v48 = vrot.slane %v2077_v14, 2  ;;  %v1851_v6 = vrot.slane %v1784_v15, 1  ;;  %v2144_v12 = vrot.slane %v2078_v29, 2 }
 0x17e   :  { %v1448_v27 = vadd.f32 %v5230_v43, %v1425_v35  ;;  %v1423_v5 = vmul.f32 %v5225_v17, %v1365_v2  ;;  %v1997_v52 = vsel %vm421_vm0, %v1995_v63, %v1996_v11  ;;  %v2146_v28 = vrot.slane %v2079_v57, 2 }
 0x17f   :  { %v4167_v51 = vpop.f32.mrf.mxu0  ;;  %v2225_v7 = vmul.f32 %v5289_v18, %v5291_v58  ;;  %v2226_v56 = vmul.f32 %v5289_v18, %v5293_v1  ;;  %v2055_v55 = vadd.f32 %v1997_v52, %v1907_v31  ;;  %v2145_v37 = vsel %vm866_vm1, %v2143_v48, %v2144_v12 }
 0x180   :  { %v1464_v62 = vmax.f32 %v1448_v27, 0.0  ;;  %v1446_v45 = vadd.f32 %v5230_v43, %v1423_v5  ;;  %v1426_v53 = vmul.f32 %v4167_v51, %v5225_v17  ;;  %v2147_v26 = vrot.slane %v2080_v22, 2 }
 0x181   :  { %v1368_v34 = vpop.f32.mrf.mxu0  ;;  %v2227_v41 = vmul.f32 %v5289_v18, %v5378_v10  ;;  %v2228_v30 = vmul.f32 %v5289_v18, %v5406_v54  ;;  %v2203_v61 = vadd.f32 %v2145_v37, %v2055_v55  ;;  %v2291_v13 = vrot.slane %v2225_v7, 2 }
 0x182   :  { %1480 = vst [vmem:[#allocation2 + $0x71] sm:$0xff] %v1464_v62  ;;  %v1462_v58 = vmax.f32 %v1446_v45, 0.0  ;;  %v1449_v1 = vadd.f32 %v5230_v43, %v1426_v53  ;;  %v1424_v3 = vmul.f32 %v5225_v17, %v1368_v34  ;;  %v2292_v15 = vrot.slane %v2226_v56, 2 }
 0x183   :  { %v2294_v23 = vrot.slane %v2227_v41, 2  ;;  %v2295_v4 = vrot.slane %v2228_v30, 2  ;;  %v2373_v14 = vmul.f32 %v5260_v49, %v5378_v10  ;;  %v2374_v35 = vmul.f32 %v5260_v49, %v5406_v54 }
 0x184   :  { %1478 = vst [vmem:[#allocation2 + $0x51] sm:$0xff] %v1462_v58  ;;  %v1465_v9 = vmax.f32 %v1449_v1, 0.0  ;;  %v1447_v63 = vadd.f32 %v5230_v43, %v1424_v3  ;;  %v1704_v31 = vsel %vm421_vm0, %v1702_v44, %v1703_v36  ;;  %v1852_v29 = vsel %vm421_vm0, %v1850_v25, %v1851_v6 }
 0x185   :  { %v2293_v2 = vsel %vm866_vm1, %v2291_v13, %v2292_v15  ;;  %v1637_v11 = vmul.f32 %v5234_v59, %v5378_v10  ;;  %v2439_v48 = vrot.slane %v2373_v14, 2  ;;  %v2440_v27 = vrot.slane %v2374_v35, 2 }
 0x186   :  { %1481 = vst [vmem:[#allocation2 + $0x81] sm:$0xff] %v1465_v9  ;;  %v1463_v57 = vmax.f32 %v1447_v63, 0.0  ;;  %v2351_v22 = vadd.f32 %v2293_v2, %v2203_v61  ;;  %v1638_v5 = vmul.f32 %v5234_v59, %v5406_v54  ;;  %v2081_v51 = vmul.f32 %v5237_v0, %v5378_v10 }
 0x187   :  { %v1705_v12 = vrot.slane %v1637_v11, 1  ;;  %v2082_v44 = vmul.f32 %v5237_v0, %v5406_v54  ;;  %v2148_v36 = vsel %vm866_vm1, %v2146_v28, %v2147_v26  ;;  %v5470_v25 = vsel %vm866_vm1, %v2294_v23, %v2295_v4 }
 0x188   :  { %1479 = vst [vmem:[#allocation2 + $0x61] sm:$0xff] %v1463_v57  ;;  %v2441_v6 = vsel %vm866_vm1, %v2439_v48, %v2440_v27  ;;  %v1541_v52 = vmul.f32 %v5270_v33, %v5378_v10  ;;  %v1706_v45 = vrot.slane %v1638_v5, 1  ;;  %v2149_v53 = vrot.slane %v2081_v51, 2 }
 0x189   :  { %v5475_v7 = vadd.f32 %v2441_v6, %v2351_v22  ;;  %v5477_v56 = vld [vmem:[#allocation2 + $0x70] sm:$0xff]  ;;  %v5479_v62 = vld [vmem:[#allocation2 + $0x78] sm:$0x3]  ;;  %v2150_v54 = vrot.slane %v2082_v44, 2 }
 0x18a   :  { %v1598_v28 = vmul.f32 %v5276_v16, %v5477_v56  ;;  %v5485_v55 = vmul.f32 %v5244_v21, %v5477_v56  ;;  %v5489_v34 = vmul.f32 %v5244_v21, %v5479_v62  ;;  %v5493_v10 = vmul.f32 %v5260_v49, %v5477_v56 }
 0x18b   :  { %v5495_v37 = vld [vmem:[#allocation2 + $0x50] sm:$0xff]  ;;  %v1501_v26 = vld [vmem:[#allocation2 + $0x58] sm:$0x3]  ;;  %v1707_v41 = vsel %vm421_vm0, %v1705_v12, %v1706_v45  ;;  %v5499_v30 = vsel %vm866_vm1, %v2149_v53, %v2150_v54  ;;  %v5503_v58 = vmul.f32 %v5260_v49, %v5479_v62  ;;  %v5507_v1 = vmul.f32 %v5270_v33, %v5477_v56 }
 0x18c   :  { %v1596_v3 = vmul.f32 %v5276_v16, %v5495_v37  ;;  %v1931_v61 = vmul.f32 %v5244_v21, %v5495_v37  ;;  %v1932_v13 = vmul.f32 %v5244_v21, %v1501_v26  ;;  %v2375_v15 = vmul.f32 %v5260_v49, %v5495_v37 }
 0x18d   :  { %v2376_v23 = vmul.f32 %v5260_v49, %v1501_v26  ;;  %v1542_v4 = vmul.f32 %v5270_v33, %v5495_v37  ;;  %v1561_v9 = vmul.f32 %v5283_v50, %v5495_v37  ;;  %v1639_v63 = vmul.f32 %v5234_v59, %v5495_v37 }
 0x18e   :  { %v1612_v14 = vadd.f32 %v1596_v3, %v5409_v46  ;;  %v1998_v35 = vrot.slane %v1931_v61, 1  ;;  %v1999_v2 = vrot.slane %v1932_v13, 1  ;;  %v2442_v11 = vrot.slane %v2375_v15, 2 }
 0x18f   :  { %v2443_v57 = vrot.slane %v2376_v23, 2  ;;  %v5524_v22 = vld [vmem:[#allocation2 + $0x60] sm:$0xff]  ;;  %v1577_v48 = vadd.f32 %v1561_v9, %v1541_v52  ;;  %v1640_v27 = vmul.f32 %v5234_v59, %v1501_v26  ;;  %v1708_v5 = vrot.slane %v1639_v63, 1  ;;  %v5528_v44 = vld [vmem:[#allocation2 + $0x68] sm:$0x3] }
 0x190   :  { %v1760_v12 = vadd.f32 %v1704_v31, %v1612_v14  ;;  %v2000_v51 = vsel %vm421_vm0, %v1998_v35, %v1999_v2  ;;  %v1562_v6 = vmul.f32 %v5283_v50, %v5524_v22  ;;  %v1597_v46 = vmul.f32 %v5276_v16, %v5524_v22 }
 0x191   :  { %v2444_v45 = vsel %vm866_vm1, %v2442_v11, %v2443_v57  ;;  %v1709_v53 = vrot.slane %v1640_v27, 1  ;;  %v1785_v52 = vmul.f32 %v5286_v32, %v5495_v37  ;;  %v1786_v54 = vmul.f32 %v5286_v32, %v1501_v26 }
 0x192   :  { %v1908_v3 = vadd.f32 %v1852_v29, %v1760_v12  ;;  %v1578_v31 = vadd.f32 %v1562_v6, %v1542_v4  ;;  %v1613_v61 = vadd.f32 %v1597_v46, %v1577_v48  ;;  %v1787_v13 = vmul.f32 %v5286_v32, %v5524_v22 }
 0x193   :  { %v1710_v15 = vsel %vm421_vm0, %v1708_v5, %v1709_v53  ;;  %v1788_v23 = vmul.f32 %v5286_v32, %v5528_v44  ;;  %v1853_v9 = vrot.slane %v1785_v52, 1  ;;  %v1854_v63 = vrot.slane %v1786_v54, 1 }
 0x194   :  { %v2056_v14 = vadd.f32 %v2000_v51, %v1908_v3  ;;  %v1614_v35 = vadd.f32 %v1598_v28, %v1578_v31  ;;  %v1761_v2 = vadd.f32 %v1707_v41, %v1613_v61  ;;  %v1856_v11 = vrot.slane %v1787_v13, 1 }
 0x195   :  { %v1855_v57 = vsel %vm421_vm0, %v1853_v9, %v1854_v63  ;;  %v1857_v27 = vrot.slane %v1788_v23, 1  ;;  %v1933_v29 = vmul.f32 %v5244_v21, %v5524_v22  ;;  %v1934_v4 = vmul.f32 %v5244_v21, %v5528_v44 }
 0x196   :  { %v2204_v48 = vadd.f32 %v2148_v36, %v2056_v14  ;;  %v1762_v5 = vadd.f32 %v1710_v15, %v1614_v35  ;;  %v1909_v12 = vadd.f32 %v1855_v57, %v1761_v2  ;;  %v2004_v6 = vrot.slane %v5485_v55, 1 }
 0x197   :  { %v1858_v46 = vsel %vm421_vm0, %v1856_v11, %v1857_v27  ;;  %v2001_v51 = vrot.slane %v1933_v29, 1  ;;  %v2002_v28 = vrot.slane %v1934_v4, 1  ;;  %v2005_v41 = vrot.slane %v5489_v34, 1  ;;  %v5571_v29 = vld [vmem:[#allocation2 + $0x80] sm:$0xff] }
 0x198   :  { %v2352_v53 = vadd.f32 %v5470_v25, %v2204_v48  ;;  %v1910_v52 = vadd.f32 %v1858_v46, %v1762_v5  ;;  %v2083_v54 = vmul.f32 %v5237_v0, %v5495_v37  ;;  %v2084_v3 = vmul.f32 %v5237_v0, %v1501_v26 }
 0x199   :  { %v2003_v36 = vsel %vm421_vm0, %v2001_v51, %v2002_v28  ;;  %v2006_v31 = vsel %vm421_vm0, %v2004_v6, %v2005_v41  ;;  %v2229_v55 = vmul.f32 %v5289_v18, %v5495_v37  ;;  %v2230_v61 = vmul.f32 %v5289_v18, %v1501_v26 }
 0x19a   :  { %v2500_v13 = vadd.f32 %v2444_v45, %v2352_v53  ;;  %v2057_v15 = vadd.f32 %v2003_v36, %v1909_v12  ;;  %v2058_v34 = vadd.f32 %v2006_v31, %v1910_v52  ;;  %v2152_v23 = vrot.slane %v2083_v54, 2 }
 0x19b   :  { %v2153_v25 = vrot.slane %v2084_v3, 2  ;;  %v2231_v9 = vmul.f32 %v5289_v18, %v5524_v22  ;;  %v2232_v63 = vmul.f32 %v5289_v18, %v5528_v44  ;;  %v2297_v14 = vrot.slane %v2229_v55, 2 }
 0x19c   :  { %v2514_v35 = vpack.c.bf16 %v2500_v13, %v5475_v7  ;;  %v2205_v2 = vadd.f32 %v5499_v30, %v2057_v15  ;;  %v2298_v11 = vrot.slane %v2230_v61, 2  ;;  %v2377_v37 = vmul.f32 %v5260_v49, %v5524_v22  ;;  %v5590_v61 = vld [vmem:[#allocation2 + $0x88] sm:$0x3] }
 0x19d   :  { %v2154_v26 = vsel %vm866_vm1, %v2152_v23, %v2153_v25  ;;  %v2300_v45 = vrot.slane %v2231_v9, 2  ;;  %v2301_v57 = vrot.slane %v2232_v63, 2  ;;  %v2378_v27 = vmul.f32 %v5260_v49, %v5528_v44 }
 0x19e   :  { %4193 = vmatmul.mubr.bf16.vlgmr.msra.gmra.mxu1 %v2514_v35  ;;  %v2206_v4 = vadd.f32 %v2154_v26, %v2058_v34  ;;  %v2299_v48 = vsel %vm866_vm1, %v2297_v14, %v2298_v11  ;;  %v2445_v7 = vrot.slane %v2377_v37, 2  ;;  %v2448_v30 = vrot.slane %v5493_v10, 2 }
 0x19f   :  { %v2302_v5 = vsel %vm866_vm1, %v2300_v45, %v2301_v57  ;;  %v2353_v12 = vadd.f32 %v2299_v48, %v2205_v2  ;;  %v2446_v6 = vrot.slane %v2378_v27, 2  ;;  %v2449_v46 = vrot.slane %v5503_v58, 2 }
 0x1a0   :  { %v2354_v51 = vadd.f32 %v2302_v5, %v2206_v4  ;;  %v1543_v28 = vmul.f32 %v5270_v33, %v5524_v22  ;;  %v1563_v41 = vmul.f32 %v5283_v50, %v5477_v56  ;;  %v1564_v53 = vmul.f32 %v5283_v50, %v5571_v29 }
 0x1a1   :  { %v2447_v52 = vsel %vm866_vm1, %v2445_v7, %v2446_v6  ;;  %v2450_v10 = vsel %vm866_vm1, %v2448_v30, %v2449_v46  ;;  %v1599_v54 = vmul.f32 %v5276_v16, %v5571_v29  ;;  %v1641_v58 = vmul.f32 %v5234_v59, %v5524_v22 }
 0x1a2   :  { %v2501_v3 = vadd.f32 %v2447_v52, %v2353_v12  ;;  %v2502_v36 = vadd.f32 %v2450_v10, %v2354_v51  ;;  %v1579_v31 = vadd.f32 %v1563_v41, %v1543_v28  ;;  %v1580_v55 = vadd.f32 %v1564_v53, %v5507_v1 }
 0x1a3   :  { %v1642_v13 = vmul.f32 %v5234_v59, %v5528_v44  ;;  %v1643_v15 = vmul.f32 %v5234_v59, %v5477_v56  ;;  %v1644_v34 = vmul.f32 %v5234_v59, %v5479_v62  ;;  %v1711_v23 = vrot.slane %v1641_v58, 1 }
 0x1a4   :  { %v2515_v25 = vpack.c.bf16 %v2502_v36, %v2501_v3  ;;  %v1615_v9 = vadd.f32 %v1599_v54, %v1579_v31  ;;  %v1616_v63 = vadd.f32 %v5302_v42, %v1580_v55  ;;  %v1789_v14 = vmul.f32 %v5286_v32, %v5477_v56 }
 0x1a5   :  { %v4170_v1 = vpop.f32.mrf.mxu0  ;;  %v1712_v35 = vrot.slane %v1642_v13, 1  ;;  %v1714_v2 = vrot.slane %v1643_v15, 1  ;;  %v1715_v11 = vrot.slane %v1644_v34, 1  ;;  %v1790_v37 = vmul.f32 %v5286_v32, %v5479_v62 }
 0x1a6   :  { %v1429_v26 = vmul.f32 %v4170_v1, %v5225_v17  ;;  %4196 = vmatprep.mubr.bf16.mxu1 %v2515_v25  ;;  %v1791_v45 = vmul.f32 %v5286_v32, %v5571_v29  ;;  %v1792_v57 = vmul.f32 %v5286_v32, %v5590_v61  ;;  %v1859_v27 = vrot.slane %v1789_v14, 1 }
 0x1a7   :  { %v1381_v4 = vpop.f32.mrf.mxu0  ;;  %v1713_v48 = vsel %vm421_vm0, %v1711_v23, %v1712_v35  ;;  %v1716_v7 = vsel %vm421_vm0, %v1714_v2, %v1715_v11  ;;  %v1860_v30 = vrot.slane %v1790_v37, 1  ;;  %v1937_v5 = vmul.f32 %v5244_v21, %v5571_v29 }
 0x1a8   :  { %v1452_v12 = vadd.f32 %v5230_v43, %v1429_v26  ;;  %v1427_v6 = vmul.f32 %v5225_v17, %v1381_v4  ;;  %v1763_v46 = vadd.f32 %v1713_v48, %v1615_v9  ;;  %v1764_v51 = vadd.f32 %v1716_v7, %v1616_v63 }
 0x1a9   :  { %v4171_v28 = vpop.f32.mrf.mxu0  ;;  %v1861_v41 = vsel %vm421_vm0, %v1859_v27, %v1860_v30  ;;  %v1862_v53 = vrot.slane %v1791_v45, 1  ;;  %v1863_v52 = vrot.slane %v1792_v57, 1  ;;  %v1938_v10 = vmul.f32 %v5244_v21, %v5590_v61 }
 0x1aa   :  { %v1468_v54 = vmax.f32 %v1452_v12, 0.0  ;;  %v1450_v58 = vadd.f32 %v5230_v43, %v1427_v6  ;;  %v1430_v3 = vmul.f32 %v4171_v28, %v5225_v17  ;;  %v1911_v36 = vadd.f32 %v1861_v41, %v1763_v46 }
 0x1ab   :  { %v1384_v31 = vpop.f32.mrf.mxu0  ;;  %v1864_v55 = vsel %vm421_vm0, %v1862_v53, %v1863_v52  ;;  %v2007_v13 = vrot.slane %v1937_v5, 1  ;;  %v2008_v15 = vrot.slane %v1938_v10, 1  ;;  %v2085_v34 = vmul.f32 %v5237_v0, %v5524_v22 }
 0x1ac   :  { %1484 = vst [vmem:[#allocation2 + $0xd1] sm:$0xff] %v1468_v54  ;;  %v1466_v23 = vmax.f32 %v1450_v58, 0.0  ;;  %v1453_v25 = vadd.f32 %v5230_v43, %v1430_v3  ;;  %v1428_v9 = vmul.f32 %v5225_v17, %v1384_v31  ;;  %v1912_v63 = vadd.f32 %v1864_v55, %v1764_v51 }
 0x1ad   :  { %v2009_v14 = vsel %vm421_vm0, %v2007_v13, %v2008_v15  ;;  %v2086_v1 = vmul.f32 %v5237_v0, %v5528_v44  ;;  %v2087_v35 = vmul.f32 %v5237_v0, %v5477_v56  ;;  %v2088_v2 = vmul.f32 %v5237_v0, %v5479_v62 }
 0x1ae   :  { %1482 = vst [vmem:[#allocation2 + $0xb1] sm:$0xff] %v1466_v23  ;;  %v1469_v22 = vmax.f32 %v1453_v25, 0.0  ;;  %v1451_v11 = vadd.f32 %v5230_v43, %v1428_v9  ;;  %v2059_v37 = vadd.f32 %v2009_v14, %v1911_v36  ;;  %v2060_v26 = vadd.f32 %v5307_v20, %v1912_v63 }
 0x1af   :  { %v2155_v17 = vrot.slane %v2085_v34, 2  ;;  %v2156_v45 = vrot.slane %v2086_v1, 2  ;;  %v2158_v57 = vrot.slane %v2087_v35, 2  ;;  %v2159_v27 = vrot.slane %v2088_v2, 2 }
 0x1b0   :  { %1485 = vst [vmem:[#allocation2 + $0xe1] sm:$0xff] %v1469_v22  ;;  %v1467_v4 = vmax.f32 %v1451_v11, 0.0  ;;  %v2233_v44 = vmul.f32 %v5289_v18, %v5477_v56  ;;  %v2234_v48 = vmul.f32 %v5289_v18, %v5479_v62  ;;  %v2235_v7 = vmul.f32 %v5289_v18, %v5571_v29 }
 0x1b1   :  { %v2157_v43 = vsel %vm866_vm1, %v2155_v17, %v2156_v45  ;;  %v2160_v30 = vsel %vm866_vm1, %v2158_v57, %v2159_v27  ;;  %v2236_v20 = vmul.f32 %v5289_v18, %v5590_v61  ;;  %v2381_v5 = vmul.f32 %v5260_v49, %v5571_v29 }
 0x1b2   :  { %1483 = vst [vmem:[#allocation2 + $0xc1] sm:$0xff] %v1467_v4  ;;  %v2207_v12 = vadd.f32 %v2157_v43, %v2059_v37  ;;  %v2208_v6 = vadd.f32 %v2160_v30, %v2060_v26  ;;  %v2303_v56 = vrot.slane %v2233_v44, 2  ;;  %v2304_v46 = vrot.slane %v2234_v48, 2 }
 0x1b3   :  { %v2306_v51 = vrot.slane %v2235_v7, 2  ;;  %v2307_v62 = vrot.slane %v2236_v20, 2  ;;  %v2382_v28 = vmul.f32 %v5260_v49, %v5590_v61  ;;  %v2451_v41 = vrot.slane %v2381_v5, 2  ;;  %v5647_v53 = vld [vmem:[#allocation2 + $0xd0] sm:$0xff]  ;;  %v5649_v52 = vld [vmem:[#allocation2 + $0xd8] sm:$0x3] }
 0x1b4   :  { %v2305_v10 = vsel %vm866_vm1, %v2303_v56, %v2304_v46  ;;  %v1602_v29 = vmul.f32 %v5276_v16, %v5647_v53  ;;  %v1943_v54 = vmul.f32 %v5244_v21, %v5647_v53  ;;  %v6819_v58 = vrot.slane %v5273_v38, 2 }
 0x1b5   :  { %v6820_v3 = vrot.slane %v5247_v47, 2  ;;  %v2308_v61 = vsel %vm866_vm1, %v2306_v51, %v2307_v62  ;;  %v2355_v31 = vadd.f32 %v2305_v10, %v2207_v12  ;;  %v2452_v55 = vrot.slane %v2382_v28, 2  ;;  %v1512_v13 = vld [vmem:[#allocation2 + $0xb0] sm:$0xff]  ;;  %v1513_v15 = vld [vmem:[#allocation2 + $0xb8] sm:$0x3] }
 0x1b6   :  { %v1944_v34 = vmul.f32 %v5244_v21, %v5649_v52  ;;  %v2356_v23 = vadd.f32 %v2308_v61, %v2208_v6  ;;  %v1565_v25 = vmul.f32 %v5283_v50, %v1512_v13  ;;  %v1647_v9 = vmul.f32 %v5234_v59, %v1512_v13 }
 0x1b7   :  { %v5661_v36 = vsel %vm866_vm1, %v6820_v3, %v6819_v58  ;;  %v5670_v47 = vmul.f32 %v5260_v49, %v5647_v53  ;;  %v2453_v38 = vsel %vm866_vm1, %v2451_v41, %v2452_v55  ;;  %v1648_v63 = vmul.f32 %v5234_v59, %v1513_v15 }
 0x1b8   :  { %v1793_v14 = vmul.f32 %v5286_v32, %v1512_v13  ;;  %v1794_v1 = vmul.f32 %v5286_v32, %v1513_v15  ;;  %v2503_v35 = vadd.f32 %v2453_v38, %v2355_v31  ;;  %v2504_v2 = vadd.f32 %v5330_v40, %v2356_v23 }
 0x1b9   :  { %v1546_v22 = vmul.f32 %v5270_v33, %v1512_v13  ;;  %v1720_v11 = vrot.slane %v1647_v9, 1  ;;  %v5678_v37 = vld [vmem:[#allocation2 + $0xc0] sm:$0xff]  ;;  %v5680_v26 = vld [vmem:[#allocation2 + $0xc8] sm:$0x3]  ;;  %v1581_v17 = vadd.f32 %v1565_v25, %v5280_v39  ;;  %v1721_v45 = vrot.slane %v1648_v63, 1 }
 0x1ba   :  { %v1865_v57 = vrot.slane %v1793_v14, 1  ;;  %v1866_v27 = vrot.slane %v1794_v1, 1  ;;  %v2516_v4 = vpack.c.bf16 %v2504_v2, %v2503_v35  ;;  %v1566_v44 = vmul.f32 %v5283_v50, %v5678_v37 }
 0x1bb   :  { %v1601_v48 = vmul.f32 %v5276_v16, %v5678_v37  ;;  %v1795_v40 = vmul.f32 %v5286_v32, %v5678_v37  ;;  %v1722_v7 = vsel %vm421_vm0, %v1720_v11, %v1721_v45  ;;  %v1796_v43 = vmul.f32 %v5286_v32, %v5680_v26 }
 0x1bc   :  { %v1941_v39 = vmul.f32 %v5244_v21, %v5678_v37  ;;  %v2091_v30 = vmul.f32 %v5237_v0, %v1512_v13  ;;  %4197 = vmatmul.mubr.bf16.gmra.mxu1 %v2516_v4  ;;  %v1582_v20 = vadd.f32 %v1566_v44, %v1546_v22  ;;  %v1942_v6 = vmul.f32 %v5244_v21, %v5680_v26 }
 0x1bd   :  { %v1617_v5 = vadd.f32 %v1601_v48, %v1581_v17  ;;  %v1868_v12 = vrot.slane %v1795_v40, 1  ;;  %v1869_v56 = vrot.slane %v1796_v43, 1  ;;  %v2016_v51 = vrot.slane %v1943_v54, 1 }
 0x1be   :  { %v2013_v46 = vrot.slane %v1941_v39, 1  ;;  %v2017_v62 = vrot.slane %v1944_v34, 1  ;;  %v1618_v28 = vadd.f32 %v1602_v29, %v1582_v20  ;;  %v2014_v10 = vrot.slane %v1942_v6, 1 }
 0x1bf   :  { %v1765_v41 = vadd.f32 %v5314_v60, %v1617_v5  ;;  %v2092_v58 = vmul.f32 %v5237_v0, %v1513_v15  ;;  %v1867_v3 = vsel %vm421_vm0, %v1865_v57, %v1866_v27  ;;  %v1870_v61 = vsel %vm421_vm0, %v1868_v12, %v1869_v56  ;;  %v1529_v27 = vld [vmem:[#allocation2 + $0x138] sm:$0x3] }
 0x1c0   :  { %v2164_v31 = vrot.slane %v2091_v30, 2  ;;  %v2237_v55 = vmul.f32 %v5289_v18, %v1512_v13  ;;  %v1766_v23 = vadd.f32 %v1722_v7, %v1618_v28  ;;  %v2015_v9 = vsel %vm421_vm0, %v2013_v46, %v2014_v10  ;;  %v5719_v7 = vld [vmem:[#allocation2 + $0xe0] sm:$0xff] }
 0x1c1   :  { %v1913_v25 = vadd.f32 %v1867_v3, %v1765_v41  ;;  %v2165_v38 = vrot.slane %v2092_v58, 2  ;;  %v2238_v54 = vmul.f32 %v5289_v18, %v1513_v15  ;;  %v2239_v60 = vmul.f32 %v5289_v18, %v5678_v37  ;;  %v5739_v3 = vld [vmem:[#allocation2 + $0xe8] sm:$0x3] }
 0x1c2   :  { %v2240_v29 = vmul.f32 %v5289_v18, %v5680_v26  ;;  %v2309_v34 = vrot.slane %v2237_v55, 2  ;;  %v1914_v63 = vadd.f32 %v1870_v61, %v1766_v23  ;;  %v2018_v14 = vsel %vm421_vm0, %v2016_v51, %v2017_v62 }
 0x1c3   :  { %v2061_v1 = vadd.f32 %v2015_v9, %v1913_v25  ;;  %v2385_v13 = vmul.f32 %v5260_v49, %v5678_v37  ;;  %v2310_v35 = vrot.slane %v2238_v54, 2  ;;  %v2312_v2 = vrot.slane %v2239_v60, 2 }
 0x1c4   :  { %v2313_v22 = vrot.slane %v2240_v29, 2  ;;  %v2386_v15 = vmul.f32 %v5260_v49, %v5680_v26  ;;  %v2062_v11 = vadd.f32 %v2018_v14, %v1914_v63  ;;  %v2388_v45 = vmul.f32 %v5260_v49, %v5649_v52 }
 0x1c5   :  { %v2209_v17 = vadd.f32 %v5661_v36, %v2061_v1  ;;  %v2457_v57 = vrot.slane %v2385_v13, 2  ;;  %v2166_v4 = vsel %vm866_vm1, %v2164_v31, %v2165_v38  ;;  %v2311_v44 = vsel %vm866_vm1, %v2309_v34, %v2310_v35 }
 0x1c6   :  { %v2458_v48 = vrot.slane %v2386_v15, 2  ;;  %v2460_v40 = vrot.slane %v5670_v47, 2  ;;  %v2210_v43 = vadd.f32 %v2166_v4, %v2062_v11  ;;  %v2461_v30 = vrot.slane %v2388_v45, 2 }
 0x1c7   :  { %v2357_v39 = vadd.f32 %v2311_v44, %v2209_v17  ;;  %v1547_v36 = vmul.f32 %v5270_v33, %v5678_v37  ;;  %v2314_v20 = vsel %vm866_vm1, %v2312_v2, %v2313_v22  ;;  %v1567_v12 = vmul.f32 %v5283_v50, %v5647_v53 }
 0x1c8   :  { %v2459_v5 = vsel %vm866_vm1, %v2457_v57, %v2458_v48  ;;  %v5728_v6 = vmul.f32 %v5244_v21, %v1529_v27  ;;  %v2358_v56 = vadd.f32 %v2314_v20, %v2210_v43  ;;  %v2462_v47 = vsel %vm866_vm1, %v2460_v40, %v2461_v30 }
 0x1c9   :  { %v2505_v46 = vadd.f32 %v2459_v5, %v2357_v39  ;;  %v1568_v51 = vmul.f32 %v5283_v50, %v5719_v7  ;;  %v1583_v62 = vadd.f32 %v1567_v12, %v1547_v36  ;;  %v1603_v28 = vmul.f32 %v5276_v16, %v5719_v7  ;;  %v4293_v39 = vld [vmem:[%s6795_s3] ss:$0 sm:$0xff] }
 0x1ca   :  { %v1649_v41 = vmul.f32 %v5234_v59, %v5678_v37  ;;  %v1650_v10 = vmul.f32 %v5234_v59, %v5680_v26  ;;  %v2506_v58 = vadd.f32 %v2462_v47, %v2358_v56  ;;  %v1651_v61 = vmul.f32 %v5234_v59, %v5647_v53  ;;  %v4294_v47 = vld [vmem:[%s6796_s4] ss:$0 sm:$0xff] }
 0x1cb   :  { %v1652_v31 = vmul.f32 %v5234_v59, %v5649_v52  ;;  %v1797_v55 = vmul.f32 %v5286_v32, %v5647_v53  ;;  %v1619_v23 = vadd.f32 %v1603_v28, %v1583_v62  ;;  %v1798_v38 = vmul.f32 %v5286_v32, %v5649_v52 }
 0x1cc   :  { %v1723_v25 = vrot.slane %v1649_v41, 1  ;;  %v1724_v9 = vrot.slane %v1650_v10, 1  ;;  %v2517_v54 = vpack.c.bf16 %v2506_v58, %v2505_v46  ;;  %v1726_v60 = vrot.slane %v1651_v61, 1 }
 0x1cd   :  { %v1727_v29 = vrot.slane %v1652_v31, 1  ;;  %v1799_v34 = vmul.f32 %v5286_v32, %v5719_v7  ;;  %v1800_v14 = vmul.f32 %v5286_v32, %v5739_v3  ;;  %v1871_v1 = vrot.slane %v1797_v55, 1 }
 0x1ce   :  { %v1725_v63 = vsel %vm421_vm0, %v1723_v25, %v1724_v9  ;;  %v1872_v13 = vrot.slane %v1798_v38, 1  ;;  %4200 = vmatprep.mubr.bf16.mxu1 %v2517_v54  ;;  %v1548_v35 = vmul.f32 %v5270_v33, %v5647_v53  ;;  %v1945_v15 = vmul.f32 %v5244_v21, %v5719_v7 }
 0x1cf   :  { %v1767_v2 = vadd.f32 %v1725_v63, %v1619_v23  ;;  %v1874_v22 = vrot.slane %v1799_v34, 1  ;;  %v1875_v17 = vrot.slane %v1800_v14, 1  ;;  %v1946_v45 = vmul.f32 %v5244_v21, %v5739_v3 }
 0x1d0   :  { %v1873_v11 = vsel %vm421_vm0, %v1871_v1, %v1872_v13  ;;  %v2093_v57 = vmul.f32 %v5237_v0, %v5678_v37  ;;  %v4174_v4 = vpop.f32.mrf.mxu0  ;;  %v2019_v48 = vrot.slane %v1945_v15, 1  ;;  %v2094_v40 = vmul.f32 %v5237_v0, %v5680_v26 }
 0x1d1   :  { %v1915_v44 = vadd.f32 %v1873_v11, %v1767_v2  ;;  %v5766_v43 = vmul.f32 %v5260_v49, %v1529_v27  ;;  %v1433_v30 = vmul.f32 %v4293_v39, %v4174_v4  ;;  %v5771_v36 = vadd.f32 %v1568_v51, %v1548_v35 }
 0x1d2   :  { %v5774_v20 = vsel %vm421_vm0, %v1726_v60, %v1727_v29  ;;  %v2020_v37 = vrot.slane %v1946_v45, 1  ;;  %v1397_v5 = vpop.f32.mrf.mxu0  ;;  %v2095_v12 = vmul.f32 %v5237_v0, %v5647_v53  ;;  %v2167_v56 = vrot.slane %v2093_v57, 2 }
 0x1d3   :  { %v2168_v26 = vrot.slane %v2094_v40, 2  ;;  %v2241_v27 = vmul.f32 %v5289_v18, %v5647_v53  ;;  %v1456_v46 = vadd.f32 %v4294_v47, %v1433_v30  ;;  %v1431_v51 = vmul.f32 %v4293_v39, %v1397_v5 }
 0x1d4   :  { %v5784_v62 = vsel %vm421_vm0, %v1874_v22, %v1875_v17  ;;  %v2021_v28 = vsel %vm421_vm0, %v2019_v48, %v2020_v37  ;;  %v4175_v41 = vpop.f32.mrf.mxu0  ;;  %v2096_v58 = vmul.f32 %v5237_v0, %v5649_v52  ;;  %v2242_v61 = vmul.f32 %v5289_v18, %v5649_v52 }
 0x1d5   :  { %v2063_v10 = vadd.f32 %v2021_v28, %v1915_v44  ;;  %v2243_v53 = vmul.f32 %v5289_v18, %v5719_v7  ;;  %v1472_v31 = vmax.f32 %v1456_v46, 0.0  ;;  %v1454_v55 = vadd.f32 %v4294_v47, %v1431_v51 }
 0x1d6   :  { %v1434_v23 = vmul.f32 %v4293_v39, %v4175_v41  ;;  %v2169_v25 = vsel %vm866_vm1, %v2167_v56, %v2168_v26  ;;  %v1400_v9 = vpop.f32.mrf.mxu0  ;;  %v2244_v54 = vmul.f32 %v5289_v18, %v5739_v3  ;;  %v2315_v60 = vrot.slane %v2241_v27, 2 }
 0x1d7   :  { %v2211_v38 = vadd.f32 %v2169_v25, %v2063_v10  ;;  %v2316_v29 = vrot.slane %v2242_v61, 2  ;;  %1488 = vst [vmem:[#allocation2 + $0x111] sm:$0xff] %v1472_v31  ;;  %v1470_v34 = vmax.f32 %v1454_v55, 0.0  ;;  %v1432_v14 = vmul.f32 %v4293_v39, %v1400_v9 }
 0x1d8   :  { %v1457_v63 = vadd.f32 %v4294_v47, %v1434_v23  ;;  %v2170_v52 = vrot.slane %v2095_v12, 2  ;;  %v2171_v1 = vrot.slane %v2096_v58, 2  ;;  %v2318_v13 = vrot.slane %v2243_v53, 2 }
 0x1d9   :  { %v2389_v35 = vmul.f32 %v5260_v49, %v5719_v7  ;;  %v2390_v2 = vmul.f32 %v5260_v49, %v5739_v3  ;;  %1486 = vst [vmem:[#allocation2 + $0xf1] sm:$0xff] %v1470_v34  ;;  %v1455_v15 = vadd.f32 %v4294_v47, %v1432_v14  ;;  %v2317_v11 = vsel %vm866_vm1, %v2315_v60, %v2316_v29 }
 0x1da   :  { %v1473_v22 = vmax.f32 %v1457_v63, 0.0  ;;  %v2319_v17 = vrot.slane %v2244_v54, 2  ;;  %v2359_v45 = vadd.f32 %v2317_v11, %v2211_v38  ;;  %v1653_v44 = vmul.f32 %v5234_v59, %v5719_v7 }
 0x1db   :  { %v2463_v57 = vrot.slane %v2389_v35, 2  ;;  %v2464_v4 = vrot.slane %v2390_v2, 2  ;;  %v1471_v48 = vmax.f32 %v1455_v15, 0.0  ;;  %v1654_v40 = vmul.f32 %v5234_v59, %v5739_v3 }
 0x1dc   :  { %1489 = vst [vmem:[#allocation2 + $0x121] sm:$0xff] %v1473_v22  ;;  %v2097_v39 = vmul.f32 %v5237_v0, %v5719_v7  ;;  %v2098_v30 = vmul.f32 %v5237_v0, %v5739_v3  ;;  %v5810_v37 = vsel %vm866_vm1, %v2170_v52, %v2171_v1  ;;  %v1549_v5 = vmul.f32 %v5270_v33, %v5719_v7 }
 0x1dd   :  { %v1729_v12 = vrot.slane %v1653_v44, 1  ;;  %v2035_v56 = vrot.slane %v5728_v6, 1  ;;  %1487 = vst [vmem:[#allocation2 + $0x101] sm:$0xff] %v1471_v48  ;;  %v2465_v26 = vsel %vm866_vm1, %v2463_v57, %v2464_v4  ;;  %v1730_v27 = vrot.slane %v1654_v40, 1 }
 0x1de   :  { %v2173_v47 = vrot.slane %v2097_v39, 2  ;;  %v2174_v46 = vrot.slane %v2098_v30, 2  ;;  %v5817_v51 = vsel %vm866_vm1, %v2318_v13, %v2319_v17  ;;  %v5819_v28 = vadd.f32 %v2465_v26, %v2359_v45  ;;  %v5821_v3 = vld [vmem:[#allocation2 + $0x110] sm:$0xff]  ;;  %v5823_v41 = vld [vmem:[#allocation2 + $0x118] sm:$0x3] }
 0x1df   :  { %v6821_v7 = vrot.slane %v5253_v19, 1  ;;  %v2479_v6 = vrot.slane %v5766_v43, 2  ;;  %v1606_v58 = vmul.f32 %v5276_v16, %v5821_v3  ;;  %v1731_v61 = vsel %vm421_vm0, %v1729_v12, %v1730_v27  ;;  %v4286_v43 = vld [vmem:[#allocation12 + $0x28] sm:$0xff]  }
 0x1e0   :  { %v5836_v53 = vmul.f32 %v5244_v21, %v5821_v3  ;;  %v5840_v31 = vmul.f32 %v5244_v21, %v5823_v41  ;;  %v5842_v55 = vld [vmem:[#allocation2 + $0xf0] sm:$0xff]  ;;  %v1521_v19 = vld [vmem:[#allocation2 + $0xf8] sm:$0x3]  ;;  %v5845_v23 = vsel %vm866_vm1, %v2173_v47, %v2174_v46  ;;  %v5849_v25 = vmul.f32 %v5260_v49, %v5821_v3 }
 0x1e1   :  { %v5828_v10 = vsel %vm421_vm0, %v6821_v7, %v2035_v56  ;;  %v5853_v9 = vmul.f32 %v5260_v49, %v5823_v41  ;;  %v5857_v38 = vmul.f32 %v5270_v33, %v5821_v3  ;;  %v1604_v54 = vmul.f32 %v5276_v16, %v5842_v55 }
 0x1e2   :  { %v1947_v60 = vmul.f32 %v5244_v21, %v5842_v55  ;;  %v1948_v29 = vmul.f32 %v5244_v21, %v1521_v19  ;;  %v2391_v34 = vmul.f32 %v5260_v49, %v5842_v55  ;;  %v2392_v63 = vmul.f32 %v5260_v49, %v1521_v19 }
 0x1e3   :  { %v1550_v14 = vmul.f32 %v5270_v33, %v5842_v55  ;;  %v1569_v52 = vmul.f32 %v5283_v50, %v5842_v55  ;;  %v1655_v1 = vmul.f32 %v5234_v59, %v5842_v55  ;;  %v1620_v13 = vadd.f32 %v1604_v54, %v5771_v36 }
 0x1e4   :  { %v2022_v35 = vrot.slane %v1947_v60, 1  ;;  %v2023_v2 = vrot.slane %v1948_v29, 1  ;;  %v2466_v22 = vrot.slane %v2391_v34, 2  ;;  %v2467_v15 = vrot.slane %v2392_v63, 2  ;;  %v5874_v11 = vld [vmem:[#allocation2 + $0x100] sm:$0xff] }
 0x1e5   :  { %v1585_v17 = vadd.f32 %v1569_v52, %v1549_v5  ;;  %v1656_v45 = vmul.f32 %v5234_v59, %v1521_v19  ;;  %v1732_v57 = vrot.slane %v1655_v1, 1  ;;  %v1768_v4 = vadd.f32 %v5774_v20, %v1620_v13  ;;  %v5879_v48 = vld [vmem:[#allocation2 + $0x108] sm:$0x3] }
 0x1e6   :  { %v2024_v44 = vsel %vm421_vm0, %v2022_v35, %v2023_v2  ;;  %v1570_v40 = vmul.f32 %v5283_v50, %v5874_v11  ;;  %v1605_v36 = vmul.f32 %v5276_v16, %v5874_v11  ;;  %v2468_v39 = vsel %vm866_vm1, %v2466_v22, %v2467_v15 }
 0x1e7   :  { %v1733_v30 = vrot.slane %v1656_v45, 1  ;;  %v1801_v5 = vmul.f32 %v5286_v32, %v5842_v55  ;;  %v1802_v12 = vmul.f32 %v5286_v32, %v1521_v19  ;;  %v1916_v20 = vadd.f32 %v5784_v62, %v1768_v4 }
 0x1e8   :  { %v1586_v56 = vadd.f32 %v1570_v40, %v1550_v14  ;;  %v1621_v26 = vadd.f32 %v1605_v36, %v1585_v17  ;;  %v1803_v27 = vmul.f32 %v5286_v32, %v5874_v11  ;;  %v1804_v46 = vmul.f32 %v5286_v32, %v5879_v48 }
 0x1e9   :  { %v1734_v47 = vsel %vm421_vm0, %v1732_v57, %v1733_v30  ;;  %v1877_v7 = vrot.slane %v1801_v5, 1  ;;  %v1878_v54 = vrot.slane %v1802_v12, 1  ;;  %v2064_v60 = vadd.f32 %v2024_v44, %v1916_v20 }
 0x1ea   :  { %v1622_v29 = vadd.f32 %v1606_v58, %v1586_v56  ;;  %v1769_v34 = vadd.f32 %v1731_v61, %v1621_v26  ;;  %v1880_v63 = vrot.slane %v1803_v27, 1  ;;  %v1881_v1 = vrot.slane %v1804_v46, 1 }
 0x1eb   :  { %v1879_v52 = vsel %vm421_vm0, %v1877_v7, %v1878_v54  ;;  %v1949_v62 = vmul.f32 %v5244_v21, %v5874_v11  ;;  %v1950_v14 = vmul.f32 %v5244_v21, %v5879_v48  ;;  %v2212_v13 = vadd.f32 %v5810_v37, %v2064_v60  ;;  %v5924_v60 = vld [vmem:[#allocation2 + $0x120] sm:$0xff] }
 0x1ec   :  { %v1770_v35 = vadd.f32 %v1734_v47, %v1622_v29  ;;  %v1917_v2 = vadd.f32 %v1879_v52, %v1769_v34  ;;  %v2028_v22 = vrot.slane %v5836_v53, 1  ;;  %v1882_v15 = vsel %vm421_vm0, %v1880_v63, %v1881_v1 }
 0x1ed   :  { %v2025_v58 = vrot.slane %v1949_v62, 1  ;;  %v2026_v61 = vrot.slane %v1950_v14, 1  ;;  %v2029_v17 = vrot.slane %v5840_v31, 1  ;;  %v2360_v45 = vadd.f32 %v5817_v51, %v2212_v13 }
 0x1ee   :  { %v1918_v57 = vadd.f32 %v1882_v15, %v1770_v35  ;;  %v2099_v4 = vmul.f32 %v5237_v0, %v5842_v55  ;;  %v2100_v44 = vmul.f32 %v5237_v0, %v1521_v19  ;;  %v2245_v53 = vmul.f32 %v5289_v18, %v5842_v55 }
 0x1ef   :  { %v2027_v37 = vsel %vm421_vm0, %v2025_v58, %v2026_v61  ;;  %v2030_v40 = vsel %vm421_vm0, %v2028_v22, %v2029_v17  ;;  %v2246_v36 = vmul.f32 %v5289_v18, %v1521_v19  ;;  %v2508_v30 = vadd.f32 %v2468_v39, %v2360_v45  ;;  %v1527_v45 = vld [vmem:[#allocation2 + $0x128] sm:$0x3] }
 0x1f0   :  { %v2065_v5 = vadd.f32 %v2027_v37, %v1917_v2  ;;  %v2066_v31 = vadd.f32 %v2030_v40, %v1918_v57  ;;  %v2176_v12 = vrot.slane %v2099_v4, 2  ;;  %v2177_v51 = vrot.slane %v2100_v44, 2 }
 0x1f1   :  { %v2247_v20 = vmul.f32 %v5289_v18, %v5874_v11  ;;  %v2248_v56 = vmul.f32 %v5289_v18, %v5879_v48  ;;  %v2321_v26 = vrot.slane %v2245_v53, 2  ;;  %v2518_v27 = vpack.c.bf16 %v2508_v30, %v5819_v28 }
 0x1f2   :  { %v2213_v47 = vadd.f32 %v5845_v23, %v2065_v5  ;;  %v2322_v46 = vrot.slane %v2246_v36, 2  ;;  %v2393_v55 = vmul.f32 %v5260_v49, %v5874_v11  ;;  %v2178_v19 = vsel %vm866_vm1, %v2176_v12, %v2177_v51 }
 0x1f3   :  { %v2324_v39 = vrot.slane %v2247_v20, 2  ;;  %v2325_v7 = vrot.slane %v2248_v56, 2  ;;  %v2394_v54 = vmul.f32 %v5260_v49, %v5879_v48  ;;  %4201 = vmatmul.mubr.bf16.gmra.mxu1 %v2518_v27  ;;  %v2214_v29 = vadd.f32 %v2178_v19, %v2066_v31 }
 0x1f4   :  { %v2323_v34 = vsel %vm866_vm1, %v2321_v26, %v2322_v46  ;;  %v2469_v28 = vrot.slane %v2393_v55, 2  ;;  %v2472_v23 = vrot.slane %v5849_v25, 2  ;;  %v2473_v62 = vrot.slane %v5853_v9, 2 }
 0x1f5   :  { %v2326_v63 = vsel %vm866_vm1, %v2324_v39, %v2325_v7  ;;  %v2361_v52 = vadd.f32 %v2323_v34, %v2213_v47  ;;  %v2470_v1 = vrot.slane %v2394_v54, 2  ;;  %v1551_v13 = vmul.f32 %v5270_v33, %v5874_v11 }
 0x1f6   :  { %v2362_v14 = vadd.f32 %v2326_v63, %v2214_v29  ;;  %v1571_v35 = vmul.f32 %v5283_v50, %v5821_v3  ;;  %v1572_v2 = vmul.f32 %v5283_v50, %v5924_v60  ;;  %v2474_v25 = vsel %vm866_vm1, %v2472_v23, %v2473_v62 }
 0x1f7   :  { %v2471_v22 = vsel %vm866_vm1, %v2469_v28, %v2470_v1  ;;  %v1607_v15 = vmul.f32 %v5276_v16, %v5924_v60  ;;  %v1657_v9 = vmul.f32 %v5234_v59, %v5874_v11  ;;  %v1658_v57 = vmul.f32 %v5234_v59, %v5879_v48 }
 0x1f8   :  { %v2509_v58 = vadd.f32 %v2471_v22, %v2361_v52  ;;  %v2510_v61 = vadd.f32 %v2474_v25, %v2362_v14  ;;  %v1587_v17 = vadd.f32 %v1571_v35, %v1551_v13  ;;  %v1588_v33 = vadd.f32 %v1572_v2, %v5857_v38 }
 0x1f9   :  { %v1659_v50 = vmul.f32 %v5234_v59, %v5821_v3  ;;  %v1660_v4 = vmul.f32 %v5234_v59, %v5823_v41  ;;  %v1735_v44 = vrot.slane %v1657_v9, 1  ;;  %v1805_v53 = vmul.f32 %v5286_v32, %v5821_v3 }
 0x1fa   :  { %v2519_v16 = vpack.c.bf16 %v2510_v61, %v2509_v58  ;;  %v1623_v37 = vadd.f32 %v1607_v15, %v1587_v17  ;;  %v1624_v40 = vadd.f32 %v5302_v42, %v1588_v33  ;;  %v1736_v36 = vrot.slane %v1658_v57, 1  ;;  %v4284_v57 = vld [vmem:[#allocation12 + $0x38] sm:$0xff]  }
 0x1fb   :  { %v1738_v38 = vrot.slane %v1659_v50, 1  ;;  %v1739_v30 = vrot.slane %v1660_v4, 1  ;;  %v1806_v5 = vmul.f32 %v5286_v32, %v5823_v41  ;;  %v1807_v31 = vmul.f32 %v5286_v32, %v5924_v60  ;;  %4208 = vmatprep.subr.bf16.mxu0 %v4284_v57  ;;  %4240 = vmatprep.subr.bf16.mxu1 %v4284_v57 }
 0x1fc   :  { %4204 = vmatprep.mubr.bf16.mxu1 %v2519_v16  ;;  %v1808_v59 = vmul.f32 %v5286_v32, %v1527_v45  ;;  %v1883_v12 = vrot.slane %v1805_v53, 1  ;;  %v1953_v51 = vmul.f32 %v5244_v21, %v5924_v60  ;;  %v1737_v42 = vsel %vm421_vm0, %v1735_v44, %v1736_v36  ;;  %4209 = vmatpush3.bf16.msra.mxu0 %v4284_v57 }
 0x1fd   :  { %v1740_v20 = vsel %vm421_vm0, %v1738_v38, %v1739_v30  ;;  %v1884_v56 = vrot.slane %v1806_v5, 1  ;;  %v1954_v26 = vmul.f32 %v5244_v21, %v1527_v45  ;;  %v1771_v27 = vadd.f32 %v1737_v42, %v1623_v37  ;;  %4248 = vmatpush3.bf16.msra.mxu1 %v4284_v57  ;;  %v4289_v38 = vld [vmem:[#allocation12 + $0x10] sm:$0xff]   ;;  %v4290_v30 = vld [vmem:[#allocation12 + $0x8] sm:$0xff]  }
 0x1fe   :  { %v1772_v47 = vadd.f32 %v1740_v20, %v1624_v40  ;;  %v1886_v46 = vrot.slane %v1807_v31, 1  ;;  %v1887_v55 = vrot.slane %v1808_v59, 1  ;;  %v2031_v39 = vrot.slane %v1953_v51, 1  ;;  %v5997_v5 = vld [vmem:[%s6799_s7] ss:$0 sm:$0xff] }
 0x1ff   :  { %v1885_v19 = vsel %vm421_vm0, %v1883_v12, %v1884_v56  ;;  %v2032_v7 = vrot.slane %v1954_v26, 1  ;;  %v2101_v32 = vmul.f32 %v5237_v0, %v5874_v11  ;;  %v2102_v34 = vmul.f32 %v5237_v0, %v5879_v48  ;;  %v2800_v31 = vld [vmem:[%s6801_s9] sm:$0x7]  ;;  %v2802_v59 = vld [vmem:[%s6801_s9 + $0x8] sm:$0x7]  ;;  %v4291_v56 = vld [vmem:[#allocation12] sm:$0xff]  }
 0x200   :  { %v1888_v54 = vsel %vm421_vm0, %v1886_v46, %v1887_v55  ;;  %v1919_v29 = vadd.f32 %v1885_v19, %v1771_v27  ;;  %v2103_v21 = vmul.f32 %v5237_v0, %v5821_v3  ;;  %v2104_v63 = vmul.f32 %v5237_v0, %v5823_v41  ;;  %v6008_v51 = vld [vmem:[%s6800_s8] ss:$0 sm:$0xff]  ;;  %v2761_v42 = vld [vmem:[#allocation2 + $0x8] sm:$0x3] }
 0x201   :  { %v1920_v28 = vadd.f32 %v1888_v54, %v1772_v47  ;;  %v2033_v23 = vsel %vm421_vm0, %v2031_v39, %v2032_v7  ;;  %v2179_v52 = vrot.slane %v2101_v32, 2  ;;  %v2180_v62 = vrot.slane %v2102_v34, 2  ;;  %v6823_v46 = vld [vmem:[#allocation21_spill] sm:$0xff]  ;;  %v2779_v34 = vld [vmem:[#allocation2 + $0x98] sm:$0x3] }
 0x202   :  { %v2067_v1 = vadd.f32 %v2033_v23, %v1919_v29  ;;  %v2182_v14 = vrot.slane %v2103_v21, 2  ;;  %v2249_v11 = vmul.f32 %v5289_v18, %v5821_v3  ;;  %v2183_v35 = vrot.slane %v2104_v63, 2  ;;  %v4295_v32 = vld [vmem:[#allocation2] sm:$0xff] }
 0x203   :  { %v2068_v13 = vadd.f32 %v5828_v10, %v1920_v28  ;;  %v2250_v48 = vmul.f32 %v5289_v18, %v5823_v41  ;;  %v2251_v2 = vmul.f32 %v5289_v18, %v5924_v60  ;;  %v2181_v22 = vsel %vm866_vm1, %v2179_v52, %v2180_v62 }
 0x204   :  { %v2252_v0 = vmul.f32 %v5289_v18, %v1527_v45  ;;  %v2327_v25 = vrot.slane %v2249_v11, 2  ;;  %v2397_v15 = vmul.f32 %v5260_v49, %v5924_v60  ;;  %v2184_v9 = vsel %vm866_vm1, %v2182_v14, %v2183_v35 }
 0x205   :  { %v2215_v3 = vadd.f32 %v2181_v22, %v2067_v1  ;;  %v2328_v58 = vrot.slane %v2250_v48, 2  ;;  %v2330_v10 = vrot.slane %v2251_v2, 2  ;;  %v2216_v61 = vadd.f32 %v2184_v9, %v2068_v13 }
 0x206   :  { %v2331_v17 = vrot.slane %v2252_v0, 2  ;;  %v2398_v41 = vmul.f32 %v5260_v49, %v1527_v45  ;;  %v2475_v33 = vrot.slane %v2397_v15, 2  ;;  %v6822_v60 = vrot.slane %v5266_v24, 2  ;;  %v4285_v45 = vld [vmem:[#allocation12 + $0x30] sm:$0xff]   ;;  %v4287_v24 = vld [vmem:[#allocation12 + $0x20] sm:$0xff]  }
 0x207   :  { %v2329_v50 = vsel %vm866_vm1, %v2327_v25, %v2328_v58  ;;  %4210 = vmatprep.subr.bf16.mxu0 %v4285_v45  ;;  %4241 = vmatprep.subr.bf16.mxu1 %v4285_v45  ;;  %v6012_v26 = vrot.slane %v2800_v31, %v4568_v8  ;;  %v6015_v47 = vrot.slane %v2802_v59, %v4568_v8  ;;  %v2781_v0 = vld [vmem:[#allocation2 + $0xa8] sm:$0x3] }
 0x208   :  { %v2332_v4 = vsel %vm866_vm1, %v2330_v10, %v2331_v17  ;;  %v2363_v18 = vadd.f32 %v2329_v50, %v2215_v3  ;;  %v2476_v44 = vrot.slane %v2398_v41, 2  ;;  %v2480_v16 = vsel %vm866_vm1, %v6822_v60, %v2479_v6  ;;  %4211 = vmatpush3.bf16.msra.mxu0 %v4285_v45  ;;  %4249 = vmatpush3.bf16.msra.mxu1 %v4285_v45  ;;  %v4288_v6 = vld [vmem:[#allocation12 + $0x18] sm:$0xff]  }
 0x209   :  { %v2364_v37 = vadd.f32 %v2332_v4, %v2216_v61  ;;  %4212 = vmatprep.subr.bf16.mxu0 %v4286_v43  ;;  %4242 = vmatprep.subr.bf16.mxu1 %v4286_v43  ;;  %v6018_v55 = vrot.slane %v2800_v31, %v6823_v46  ;;  %v6021_v19 = vrot.slane %v2802_v59, %v6823_v46  ;;  %v2801_v61 = vld [vmem:[%s6801_s9 + $0x4] sm:$0x7] }
 0x20a   :  { %v2477_v49 = vsel %vm866_vm1, %v2475_v33, %v2476_v44  ;;  %v6026_v54 = vmul.f32 %v4295_v32, %v6012_v26  ;;  %v2900_v29 = vmul.f32 %v6012_v26, %v2761_v42  ;;  %v6034_v63 = vmul.f32 %v4295_v32, %v6015_v47  ;;  %v6824_v44 = vld [vmem:[#allocation20_spill] sm:$0xff] }
 0x20b   :  { %v2511_v40 = vadd.f32 %v2477_v49, %v2363_v18  ;;  %v2512_v53 = vadd.f32 %v2480_v16, %v2364_v37  ;;  %v6030_v28 = vmul.f32 %v4295_v32, %v6018_v55  ;;  %v3344_v23 = vmul.f32 %v6018_v55, %v2761_v42 }
 0x20c   :  { %4213 = vmatpush3.bf16.msra.mxu0 %v4286_v43  ;;  %4250 = vmatpush3.bf16.msra.mxu1 %v4286_v43  ;;  %v6039_v14 = vmul.f32 %v4295_v32, %v6021_v19  ;;  %v3210_v13 = vmul.f32 %v6015_v47, %v2779_v34  ;;  %v3654_v35 = vmul.f32 %v6021_v19, %v2779_v34  ;;  %v6816_v25 = vrot.slane %v6026_v54, 1 }
 0x20d   :  { %v2520_v36 = vpack.c.bf16 %v2512_v53, %v2511_v40  ;;  %4214 = vmatprep.subr.bf16.mxu0 %v4287_v24  ;;  %4243 = vmatprep.subr.bf16.mxu1 %v4287_v24  ;;  %v2964_v15 = vrot.slane %v2900_v29, 1  ;;  %v6815_v9 = vrot.slane %v6030_v28, 2  ;;  %v3408_v3 = vrot.slane %v3344_v23, 2 }
 0x20e   :  { %v6814_v17 = vrot.slane %v6034_v63, 1  ;;  %v6813_v41 = vrot.slane %v6039_v14, 2  ;;  %v3281_v33 = vrot.slane %v3210_v13, 1  ;;  %v3725_v57 = vrot.slane %v3654_v35, 2 }
 0x20f   :  { %4205 = vmatmul.mubr.bf16.gmra.mxu1 %v2520_v36  ;;  %v6054_v50 = vmul.f32 %v6012_v26, %v2781_v0  ;;  %v6057_v4 = vmul.f32 %v6018_v55, %v2781_v0  ;;  %v6060_v60 = vrot.slane %v2800_v31, %v6824_v44  ;;  %v6063_v16 = vrot.slane %v2802_v59, %v6824_v44 }
 0x210   :  { %4215 = vmatpush3.bf16.msra.mxu0 %v4287_v24  ;;  %4251 = vmatpush3.bf16.msra.mxu1 %v4287_v24  ;;  %v6066_v37 = vrot.slane %v2801_v61, %v6824_v44  ;;  %v6069_v49 = vrot.slane %v2801_v61, %v4568_v8  ;;  %v6072_v45 = vrot.slane %v2801_v61, %v6823_v46 }
 0x211   :  { %4216 = vmatprep.subr.bf16.mxu0 %v4288_v6  ;;  %4244 = vmatprep.subr.bf16.mxu1 %v4288_v6  ;;  %v6075_v40 = vmul.f32 %v4295_v32, %v6060_v60  ;;  %v2965_v53 = vsel %vm421_vm0, %v6816_v25, %v2964_v15  ;;  %v6083_v36 = vsel %vm866_vm1, %v6815_v9, %v3408_v3 }
 0x212   :  { %v6086_v43 = vmul.f32 %v4295_v32, %v6063_v16 }
 0x214   :  { %4217 = vmatpush3.bf16.msra.mxu0 %v4288_v6  ;;  %4252 = vmatpush3.bf16.msra.mxu1 %v4288_v6  ;;  %v6095_v6 = vsel %vm421_vm0, %v6814_v17, %v3281_v33 }
 0x215   :  { %4218 = vmatprep.subr.bf16.mxu0 %v4289_v38  ;;  %4245 = vmatprep.subr.bf16.mxu1 %v4289_v38 }
 0x218   :  { %4219 = vmatpush3.bf16.msra.mxu0 %v4289_v38  ;;  %4253 = vmatpush3.bf16.msra.mxu1 %v4289_v38  ;;  %v6100_v38 = vsel %vm866_vm1, %v6813_v41, %v3725_v57 }
 0x219   :  { %4220 = vmatprep.subr.bf16.mxu0 %v4290_v30  ;;  %4246 = vmatprep.subr.bf16.mxu1 %v4290_v30 }
 0x21c   :  { %4221 = vmatpush3.bf16.msra.mxu0 %v4290_v30  ;;  %4254 = vmatpush3.bf16.msra.mxu1 %v4290_v30  ;;  %v2988_v30 = vrot.slane %v6054_v50, 1 }
 0x21d   :  { %4222 = vmatprep.subr.bf16.mxu0 %v4291_v56  ;;  %4247 = vmatprep.subr.bf16.mxu1 %v4291_v56 }
 0x220   :  { %4223 = vmatpush3.bf16.msra.mxu0 %v4291_v56  ;;  %4255 = vmatpush3.bf16.msra.mxu1 %v4291_v56 }
 0x25e   :  { %v4194_v12 = vpop.f32.mrf.mxu1 }
 0x25f   :  { %v2691_v20 = vmul.f32 %v4194_v12, %v5997_v5 }
 0x260   :  { %v2619_v27 = vpop.f32.mrf.mxu1 }
 0x261   :  { %v2714_v39 = vadd.f32 %v6008_v51, %v2691_v20  ;;  %v2689_v7 = vmul.f32 %v5997_v5, %v2619_v27 }
 0x262   :  { %v4195_v21 = vpop.f32.mrf.mxu1 }
 0x263   :  { %v2730_v52 = vmax.f32 %v2714_v39, 0.0  ;;  %v2712_v1 = vadd.f32 %v6008_v51, %v2689_v7  ;;  %v2692_v62 = vmul.f32 %v4195_v21, %v5997_v5 }
 0x264   :  { %v2622_v11 = vpop.f32.mrf.mxu1 }
 0x265   :  { %2746 = vst [vmem:[#allocation2 + $0x31] sm:$0xff] %v2730_v52  ;;  %v2728_v48 = vmax.f32 %v2712_v1, 0.0  ;;  %v2715_v2 = vadd.f32 %v6008_v51, %v2692_v62  ;;  %v2690_v22 = vmul.f32 %v5997_v5, %v2622_v11 }
 0x267   :  { %2744 = vst [vmem:[#allocation2 + $0x11] sm:$0xff] %v2728_v48  ;;  %v2731_v58 = vmax.f32 %v2715_v2, 0.0  ;;  %v2713_v10 = vadd.f32 %v6008_v51, %v2690_v22 }
 0x269   :  { %2747 = vst [vmem:[#allocation2 + $0x41] sm:$0xff] %v2731_v58  ;;  %v2729_v18 = vmax.f32 %v2713_v10, 0.0 }
 0x26b   :  { %2745 = vst [vmem:[#allocation2 + $0x21] sm:$0xff] %v2729_v18 }
 0x26c   :  { %v6088_v8 = vld [vmem:[#allocation2 + $0x30] sm:$0xff]  ;;  %v6090_v24 = vld [vmem:[#allocation2 + $0x38] sm:$0x3] }
 0x26d   :  { %v2864_v59 = vmul.f32 %v6063_v16, %v6088_v8  ;;  %v3197_v12 = vmul.f32 %v6015_v47, %v6088_v8  ;;  %v3198_v42 = vmul.f32 %v6015_v47, %v6090_v24  ;;  %v6112_v20 = vmul.f32 %v6021_v19, %v6088_v8 }
 0x26e   :  { %v2762_v56 = vld [vmem:[#allocation2 + $0x10] sm:$0xff]  ;;  %v2763_v27 = vld [vmem:[#allocation2 + $0x18] sm:$0x3]  ;;  %v6116_v46 = vmul.f32 %v6021_v19, %v6090_v24  ;;  %v6120_v39 = vmul.f32 %v6060_v60, %v6088_v8  ;;  %v6124_v7 = vmul.f32 %v6066_v37, %v6088_v8  ;;  %v6128_v32 = vmul.f32 %v6012_v26, %v6088_v8 }
 0x26f   :  { %v2808_v29 = vmul.f32 %v6060_v60, %v2762_v56  ;;  %v2827_v34 = vmul.f32 %v6066_v37, %v2762_v56  ;;  %v2901_v21 = vmul.f32 %v6012_v26, %v2762_v56  ;;  %v2902_v23 = vmul.f32 %v6012_v26, %v2763_v27 }
 0x270   :  { %v3047_v52 = vmul.f32 %v6069_v49, %v2762_v56  ;;  %v3048_v1 = vmul.f32 %v6069_v49, %v2763_v27  ;;  %v3262_v62 = vrot.slane %v3197_v12, 1  ;;  %v3263_v11 = vrot.slane %v3198_v42, 1 }
 0x271   :  { %v2843_v13 = vadd.f32 %v2827_v34, %v6075_v40  ;;  %v2966_v35 = vrot.slane %v2901_v21, 1  ;;  %v2967_v48 = vrot.slane %v2902_v23, 1  ;;  %v3345_v2 = vmul.f32 %v6018_v55, %v2762_v56 }
 0x272   :  { %v6138_v22 = vld [vmem:[#allocation2 + $0x20] sm:$0xff]  ;;  %v6140_v0 = vld [vmem:[#allocation2 + $0x28] sm:$0x3]  ;;  %v3111_v15 = vrot.slane %v3047_v52, 1  ;;  %v3112_v3 = vrot.slane %v3048_v1, 1  ;;  %v3264_v58 = vsel %vm421_vm0, %v3262_v62, %v3263_v11  ;;  %v3346_v10 = vmul.f32 %v6018_v55, %v2763_v27 }
 0x273   :  { %v2828_v61 = vmul.f32 %v6066_v37, %v6138_v22  ;;  %v2863_v33 = vmul.f32 %v6063_v16, %v6138_v22  ;;  %v2968_v57 = vsel %vm421_vm0, %v2966_v35, %v2967_v48  ;;  %v3049_v18 = vmul.f32 %v6069_v49, %v6138_v22 }
 0x274   :  { %v3050_v44 = vmul.f32 %v6069_v49, %v6140_v0  ;;  %v3113_v12 = vsel %vm421_vm0, %v3111_v15, %v3112_v3  ;;  %v3195_v42 = vmul.f32 %v6015_v47, %v6138_v22  ;;  %v3196_v34 = vmul.f32 %v6015_v47, %v6140_v0 }
 0x275   :  { %v2844_v21 = vadd.f32 %v2828_v61, %v2808_v29  ;;  %v2879_v23 = vadd.f32 %v2863_v33, %v2843_v13  ;;  %v3114_v52 = vrot.slane %v3049_v18, 1  ;;  %v3410_v1 = vrot.slane %v3345_v2, 2 }
 0x276   :  { %v3115_v62 = vrot.slane %v3050_v44, 1  ;;  %v3259_v11 = vrot.slane %v3195_v42, 1  ;;  %v3260_v35 = vrot.slane %v3196_v34, 1  ;;  %v3411_v48 = vrot.slane %v3346_v10, 2  ;;  %v6172_v34 = vld [vmem:[#allocation2 + $0x40] sm:$0xff] }
 0x277   :  { %v2880_v41 = vadd.f32 %v2864_v59, %v2844_v21  ;;  %v3027_v17 = vadd.f32 %v2965_v53, %v2879_v23  ;;  %v3491_v9 = vmul.f32 %v6072_v45, %v2762_v56  ;;  %v3492_v15 = vmul.f32 %v6072_v45, %v2763_v27 }
 0x278   :  { %v3116_v3 = vsel %vm421_vm0, %v3114_v52, %v3115_v62  ;;  %v3261_v31 = vsel %vm421_vm0, %v3259_v11, %v3260_v35  ;;  %v3412_v25 = vsel %vm866_vm1, %v3410_v1, %v3411_v48  ;;  %v3493_v29 = vmul.f32 %v6072_v45, %v6138_v22 }
 0x279   :  { %v3028_v13 = vadd.f32 %v2968_v57, %v2880_v41  ;;  %v3175_v2 = vadd.f32 %v3113_v12, %v3027_v17  ;;  %v3494_v10 = vmul.f32 %v6072_v45, %v6140_v0  ;;  %v3555_v59 = vrot.slane %v3491_v9, 2 }
 0x27a   :  { %v3556_v53 = vrot.slane %v3492_v15, 2  ;;  %v3558_v61 = vrot.slane %v3493_v29, 2  ;;  %v3639_v56 = vmul.f32 %v6021_v19, %v6138_v22  ;;  %v3640_v27 = vmul.f32 %v6021_v19, %v6140_v0 }
 0x27b   :  { %v3176_v33 = vadd.f32 %v3116_v3, %v3028_v13  ;;  %v3323_v18 = vadd.f32 %v3261_v31, %v3175_v2  ;;  %v3559_v44 = vrot.slane %v3494_v10, 2  ;;  %v3706_v42 = vrot.slane %v6112_v20, 2 }
 0x27c   :  { %v4198_v17 = vpop.f32.mrf.mxu1  ;;  %v3557_v41 = vsel %vm866_vm1, %v3555_v59, %v3556_v53  ;;  %v3703_v57 = vrot.slane %v3639_v56, 2  ;;  %v3704_v9 = vrot.slane %v3640_v27, 2  ;;  %v3707_v12 = vrot.slane %v6116_v46, 2 }
 0x27d   :  { %v2695_v21 = vmul.f32 %v4198_v17, %v5997_v5  ;;  %v3324_v23 = vadd.f32 %v3264_v58, %v3176_v33  ;;  %v3471_v52 = vadd.f32 %v6083_v36, %v3323_v18  ;;  %v3560_v1 = vsel %vm866_vm1, %v3558_v61, %v3559_v44  ;;  %v6203_v17 = vld [vmem:[#allocation2 + $0x48] sm:$0x3] }
 0x27e   :  { %v2635_v31 = vpop.f32.mrf.mxu1  ;;  %v3705_v62 = vsel %vm866_vm1, %v3703_v57, %v3704_v9  ;;  %v3708_v20 = vsel %vm866_vm1, %v3706_v42, %v3707_v12  ;;  %v2809_v11 = vmul.f32 %v6060_v60, %v6138_v22  ;;  %v2830_v35 = vmul.f32 %v6066_v37, %v6172_v34 }
 0x27f   :  { %v2718_v46 = vadd.f32 %v6008_v51, %v2695_v21  ;;  %v2693_v48 = vmul.f32 %v5997_v5, %v2635_v31  ;;  %v3472_v58 = vadd.f32 %v3412_v25, %v3324_v23  ;;  %v3619_v15 = vadd.f32 %v3557_v41, %v3471_v52 }
 0x280   :  { %v4199_v36 = vpop.f32.mrf.mxu1  ;;  %v2845_v3 = vadd.f32 %v6124_v7, %v2809_v11  ;;  %v6189_v29 = vadd.f32 %v2830_v35, %v6120_v39  ;;  %v2865_v13 = vmul.f32 %v6063_v16, %v6172_v34  ;;  %v2903_v2 = vmul.f32 %v6012_v26, %v6138_v22 }
 0x281   :  { %v2734_v10 = vmax.f32 %v2718_v46, 0.0  ;;  %v2716_v59 = vadd.f32 %v6008_v51, %v2693_v48  ;;  %v2696_v53 = vmul.f32 %v4199_v36, %v5997_v5  ;;  %v3620_v61 = vadd.f32 %v3560_v1, %v3472_v58 }
 0x282   :  { %v2638_v25 = vpop.f32.mrf.mxu1  ;;  %v3767_v56 = vadd.f32 %v3705_v62, %v3619_v15  ;;  %v2881_v27 = vadd.f32 %v2865_v13, %v2845_v3  ;;  %v2904_v7 = vmul.f32 %v6012_v26, %v6140_v0  ;;  %v2906_v39 = vmul.f32 %v6012_v26, %v6090_v24 }
 0x283   :  { %2750 = vst [vmem:[#allocation2 + $0x71] sm:$0xff] %v2734_v10  ;;  %v2732_v33 = vmax.f32 %v2716_v59, 0.0  ;;  %v2719_v18 = vadd.f32 %v6008_v51, %v2696_v53  ;;  %v2694_v44 = vmul.f32 %v5997_v5, %v2638_v25  ;;  %v3768_v42 = vadd.f32 %v3708_v20, %v3620_v61 }
 0x284   :  { %v2969_v41 = vrot.slane %v2903_v2, 1  ;;  %v2970_v57 = vrot.slane %v2904_v7, 1  ;;  %v2972_v9 = vrot.slane %v6128_v32, 1  ;;  %v2973_v12 = vrot.slane %v2906_v39, 1 }
 0x285   :  { %2748 = vst [vmem:[#allocation2 + $0x51] sm:$0xff] %v2732_v33  ;;  %v2735_v21 = vmax.f32 %v2719_v18, 0.0  ;;  %v2717_v23 = vadd.f32 %v6008_v51, %v2694_v44  ;;  %v3783_v52 = vpack.c.bf16 %v3768_v42, %v3767_v56  ;;  %v3051_v1 = vmul.f32 %v6069_v49, %v6088_v8 }
 0x286   :  { %v2971_v31 = vsel %vm421_vm0, %v2969_v41, %v2970_v57  ;;  %v2974_v62 = vsel %vm421_vm0, %v2972_v9, %v2973_v12  ;;  %v3052_v20 = vmul.f32 %v6069_v49, %v6090_v24  ;;  %v3053_v11 = vmul.f32 %v6069_v49, %v6172_v34 }
 0x287   :  { %2751 = vst [vmem:[#allocation2 + $0x81] sm:$0xff] %v2735_v21  ;;  %v2733_v32 = vmax.f32 %v2717_v23, 0.0  ;;  %4224 = vmatprep.mubr.bf16.mxu0 %v3783_v52  ;;  %v3029_v35 = vadd.f32 %v2971_v31, %v2881_v27  ;;  %v3054_v46 = vmul.f32 %v6069_v49, %v6203_v17  ;;  %v3117_v48 = vrot.slane %v3051_v1, 1 }
 0x288   :  { %v3118_v58 = vrot.slane %v3052_v20, 1  ;;  %v3120_v15 = vrot.slane %v3053_v11, 1  ;;  %v3199_v36 = vmul.f32 %v6015_v47, %v6172_v34  ;;  %v3200_v3 = vmul.f32 %v6015_v47, %v6203_v17 }
 0x289   :  { %2749 = vst [vmem:[#allocation2 + $0x61] sm:$0xff] %v2733_v32  ;;  %v3121_v13 = vrot.slane %v3054_v46, 1  ;;  %v3347_v2 = vmul.f32 %v6018_v55, %v6138_v22  ;;  %v3348_v10 = vmul.f32 %v6018_v55, %v6140_v0  ;;  %v3349_v59 = vmul.f32 %v6018_v55, %v6088_v8 }
 0x28a   :  { %v3119_v53 = vsel %vm421_vm0, %v3117_v48, %v3118_v58  ;;  %v3265_v61 = vrot.slane %v3199_v36, 1  ;;  %v3266_v25 = vrot.slane %v3200_v3, 1  ;;  %v3350_v56 = vmul.f32 %v6018_v55, %v6090_v24 }
 0x28b   :  { %v3122_v27 = vsel %vm421_vm0, %v3120_v15, %v3121_v13  ;;  %v3177_v7 = vadd.f32 %v3119_v53, %v3029_v35  ;;  %v3413_v39 = vrot.slane %v3347_v2, 2  ;;  %v3414_v33 = vrot.slane %v3348_v10, 2 }
 0x28c   :  { %v6231_v18 = vld [vmem:[#allocation2 + $0x50] sm:$0xff]  ;;  %v6233_v22 = vld [vmem:[#allocation2 + $0x58] sm:$0x3]  ;;  %v3267_v0 = vsel %vm421_vm0, %v3265_v61, %v3266_v25  ;;  %v3416_v44 = vrot.slane %v3349_v59, 2  ;;  %v3417_v42 = vrot.slane %v3350_v56, 2  ;;  %v3495_v41 = vmul.f32 %v6072_v45, %v6088_v8 }
 0x28d   :  { %v2866_v57 = vmul.f32 %v6063_v16, %v6231_v18  ;;  %v3201_v9 = vmul.f32 %v6015_v47, %v6231_v18  ;;  %v3202_v12 = vmul.f32 %v6015_v47, %v6233_v22  ;;  %v3325_v21 = vadd.f32 %v3267_v0, %v3177_v7 }
 0x28e   :  { %v3415_v23 = vsel %vm866_vm1, %v3413_v39, %v3414_v33  ;;  %v3418_v52 = vsel %vm866_vm1, %v3416_v44, %v3417_v42  ;;  %v3496_v1 = vmul.f32 %v6072_v45, %v6090_v24  ;;  %v3497_v8 = vmul.f32 %v6072_v45, %v6172_v34  ;;  %v6266_v33 = vld [vmem:[#allocation2 + $0x70] sm:$0xff] }
 0x28f   :  { %v2882_v31 = vadd.f32 %v2866_v57, %v6189_v29  ;;  %v3268_v20 = vrot.slane %v3201_v9, 1  ;;  %v3269_v11 = vrot.slane %v3202_v12, 1  ;;  %v3473_v32 = vadd.f32 %v3415_v23, %v3325_v21 }
 0x290   :  { %v3498_v35 = vmul.f32 %v6072_v45, %v6203_v17  ;;  %v3561_v46 = vrot.slane %v3495_v41, 2  ;;  %v3562_v48 = vrot.slane %v3496_v1, 2  ;;  %v3564_v58 = vrot.slane %v3497_v8, 2  ;;  %v6263_v25 = vld [vmem:[#allocation2 + $0x60] sm:$0xff] }
 0x291   :  { %v3030_v15 = vadd.f32 %v2974_v62, %v2882_v31  ;;  %v3270_v36 = vsel %vm421_vm0, %v3268_v20, %v3269_v11  ;;  %v3643_v24 = vmul.f32 %v6021_v19, %v6172_v34  ;;  %v3644_v3 = vmul.f32 %v6021_v19, %v6203_v17  ;;  %v6284_v20 = vld [vmem:[#allocation2 + $0x68] sm:$0x3] }
 0x292   :  { %v3563_v29 = vsel %vm866_vm1, %v3561_v46, %v3562_v48  ;;  %v3565_v13 = vrot.slane %v3498_v35, 2  ;;  %v3645_v2 = vmul.f32 %v6021_v19, %v6231_v18  ;;  %v3646_v10 = vmul.f32 %v6021_v19, %v6233_v22 }
 0x293   :  { %v3178_v59 = vadd.f32 %v3122_v27, %v3030_v15  ;;  %v3621_v53 = vadd.f32 %v3563_v29, %v3473_v32  ;;  %v3709_v62 = vrot.slane %v3643_v24, 2  ;;  %v3710_v61 = vrot.slane %v3644_v3, 2 }
 0x294   :  { %v3566_v56 = vsel %vm866_vm1, %v3564_v58, %v3565_v13  ;;  %v3712_v7 = vrot.slane %v3645_v2, 2  ;;  %v3713_v39 = vrot.slane %v3646_v10, 2  ;;  %v2811_v0 = vmul.f32 %v6060_v60, %v6172_v34 }
 0x295   :  { %v3326_v44 = vadd.f32 %v3270_v36, %v3178_v59  ;;  %v3711_v42 = vsel %vm866_vm1, %v3709_v62, %v3710_v61  ;;  %v2812_v27 = vmul.f32 %v6060_v60, %v6231_v18  ;;  %v2831_v41 = vmul.f32 %v6066_v37, %v6231_v18 }
 0x296   :  { %v3714_v57 = vsel %vm866_vm1, %v3712_v7, %v3713_v39  ;;  %v3769_v9 = vadd.f32 %v3711_v42, %v3621_v53  ;;  %v2832_v12 = vmul.f32 %v6066_v37, %v6263_v25  ;;  %v2867_v21 = vmul.f32 %v6063_v16, %v6263_v25  ;;  %v6300_v53 = vld [vmem:[#allocation2 + $0x78] sm:$0x3] }
 0x297   :  { %v3474_v23 = vadd.f32 %v3418_v52, %v3326_v44  ;;  %v2847_v1 = vadd.f32 %v2831_v41, %v2811_v0  ;;  %v2868_v8 = vmul.f32 %v6063_v16, %v6266_v33  ;;  %v2907_v31 = vmul.f32 %v6012_v26, %v6172_v34 }
 0x298   :  { %v2848_v11 = vadd.f32 %v2832_v12, %v2812_v27  ;;  %v2908_v32 = vmul.f32 %v6012_v26, %v6203_v17  ;;  %v2909_v35 = vmul.f32 %v6012_v26, %v6231_v18  ;;  %v2910_v46 = vmul.f32 %v6012_v26, %v6233_v22 }
 0x299   :  { %v3622_v52 = vadd.f32 %v3566_v56, %v3474_v23  ;;  %v2883_v48 = vadd.f32 %v2867_v21, %v2847_v1  ;;  %v2975_v58 = vrot.slane %v2907_v31, 1  ;;  %v3055_v15 = vmul.f32 %v6069_v49, %v6231_v18 }
 0x29a   :  { %v2884_v36 = vadd.f32 %v2868_v8, %v2848_v11  ;;  %v2976_v24 = vrot.slane %v2908_v32, 1  ;;  %v2978_v3 = vrot.slane %v2909_v35, 1  ;;  %v2979_v29 = vrot.slane %v2910_v46, 1 }
 0x29b   :  { %v3770_v13 = vadd.f32 %v3714_v57, %v3622_v52  ;;  %v3056_v2 = vmul.f32 %v6069_v49, %v6233_v22  ;;  %v3057_v10 = vmul.f32 %v6069_v49, %v6263_v25  ;;  %v3058_v59 = vmul.f32 %v6069_v49, %v6284_v20 }
 0x29c   :  { %v2977_v62 = vsel %vm421_vm0, %v2975_v58, %v2976_v24  ;;  %v2980_v61 = vsel %vm421_vm0, %v2978_v3, %v2979_v29  ;;  %v3123_v56 = vrot.slane %v3055_v15, 1  ;;  %v3203_v7 = vmul.f32 %v6015_v47, %v6263_v25 }
 0x29d   :  { %v3784_v39 = vpack.c.bf16 %v3770_v13, %v3769_v9  ;;  %v3031_v0 = vadd.f32 %v2977_v62, %v2883_v48  ;;  %v3032_v44 = vadd.f32 %v2980_v61, %v2884_v36  ;;  %v3124_v42 = vrot.slane %v3056_v2, 1 }
 0x29e   :  { %v3126_v27 = vrot.slane %v3057_v10, 1  ;;  %v3127_v41 = vrot.slane %v3058_v59, 1  ;;  %v3204_v57 = vmul.f32 %v6015_v47, %v6284_v20  ;;  %v3205_v12 = vmul.f32 %v6015_v47, %v6266_v33 }
 0x29f   :  { %4225 = vmatmul.mubr.bf16.vlgmr.msra.gmra.mxu0 %v3784_v39  ;;  %v3125_v21 = vsel %vm421_vm0, %v3123_v56, %v3124_v42  ;;  %v3206_v23 = vmul.f32 %v6015_v47, %v6300_v53  ;;  %v3271_v1 = vrot.slane %v3203_v7, 1  ;;  %v3351_v9 = vmul.f32 %v6018_v55, %v6172_v34 }
 0x2a0   :  { %v3128_v8 = vsel %vm421_vm0, %v3126_v27, %v3127_v41  ;;  %v3179_v31 = vadd.f32 %v3125_v21, %v3031_v0  ;;  %v3272_v11 = vrot.slane %v3204_v57, 1  ;;  %v3274_v32 = vrot.slane %v3205_v12, 1 }
 0x2a1   :  { %v3180_v35 = vadd.f32 %v3128_v8, %v3032_v44  ;;  %v3275_v46 = vrot.slane %v3206_v23, 1  ;;  %v3352_v52 = vmul.f32 %v6018_v55, %v6203_v17  ;;  %v3353_v48 = vmul.f32 %v6018_v55, %v6231_v18  ;;  %v6343_v23 = vld [vmem:[#allocation2 + $0x80] sm:$0xff] }
 0x2a2   :  { %v3273_v58 = vsel %vm421_vm0, %v3271_v1, %v3272_v11  ;;  %v3354_v15 = vmul.f32 %v6018_v55, %v6233_v22  ;;  %v3419_v36 = vrot.slane %v3351_v9, 2  ;;  %v3499_v34 = vmul.f32 %v6072_v45, %v6231_v18 }
 0x2a3   :  { %v3276_v24 = vsel %vm421_vm0, %v3274_v32, %v3275_v46  ;;  %v3327_v3 = vadd.f32 %v3273_v58, %v3179_v31  ;;  %v3420_v29 = vrot.slane %v3352_v52, 2  ;;  %v3422_v13 = vrot.slane %v3353_v48, 2 }
 0x2a4   :  { %v3328_v2 = vadd.f32 %v3276_v24, %v3180_v35  ;;  %v3423_v10 = vrot.slane %v3354_v15, 2  ;;  %v3500_v17 = vmul.f32 %v6072_v45, %v6233_v22  ;;  %v3501_v59 = vmul.f32 %v6072_v45, %v6263_v25 }
 0x2a5   :  { %v3421_v62 = vsel %vm866_vm1, %v3419_v36, %v3420_v29  ;;  %v3502_v61 = vmul.f32 %v6072_v45, %v6284_v20  ;;  %v3567_v56 = vrot.slane %v3499_v34, 2  ;;  %v3647_v18 = vmul.f32 %v6021_v19, %v6263_v25 }
 0x2a6   :  { %v3424_v7 = vsel %vm866_vm1, %v3422_v13, %v3423_v10  ;;  %v3475_v39 = vadd.f32 %v3421_v62, %v3327_v3  ;;  %v3568_v0 = vrot.slane %v3500_v17, 2  ;;  %v3570_v44 = vrot.slane %v3501_v59, 2 }
 0x2a7   :  { %v3476_v42 = vadd.f32 %v3424_v7, %v3328_v2  ;;  %v3571_v27 = vrot.slane %v3502_v61, 2  ;;  %v3648_v22 = vmul.f32 %v6021_v19, %v6284_v20  ;;  %v3649_v41 = vmul.f32 %v6021_v19, %v6266_v33  ;;  %v6362_v2 = vld [vmem:[#allocation2 + $0x88] sm:$0x3] }
 0x2a8   :  { %v3569_v57 = vsel %vm866_vm1, %v3567_v56, %v3568_v0  ;;  %v3650_v12 = vmul.f32 %v6021_v19, %v6300_v53  ;;  %v3715_v21 = vrot.slane %v3647_v18, 2  ;;  %v2813_v1 = vmul.f32 %v6060_v60, %v6263_v25 }
 0x2a9   :  { %v3572_v9 = vsel %vm866_vm1, %v3570_v44, %v3571_v27  ;;  %v3623_v8 = vadd.f32 %v3569_v57, %v3475_v39  ;;  %v3716_v31 = vrot.slane %v3648_v22, 2  ;;  %v3718_v11 = vrot.slane %v3649_v41, 2 }
 0x2aa   :  { %v3624_v32 = vadd.f32 %v3572_v9, %v3476_v42  ;;  %v3719_v35 = vrot.slane %v3650_v12, 2  ;;  %v2814_v46 = vmul.f32 %v6060_v60, %v6266_v33  ;;  %v2833_v52 = vmul.f32 %v6066_v37, %v6266_v33 }
 0x2ab   :  { %v3717_v48 = vsel %vm866_vm1, %v3715_v21, %v3716_v31  ;;  %v2834_v58 = vmul.f32 %v6066_v37, %v6343_v23  ;;  %v2869_v15 = vmul.f32 %v6063_v16, %v6343_v23  ;;  %v2911_v36 = vmul.f32 %v6012_v26, %v6263_v25 }
 0x2ac   :  { %v3720_v34 = vsel %vm866_vm1, %v3718_v11, %v3719_v35  ;;  %v3771_v24 = vadd.f32 %v3717_v48, %v3623_v8  ;;  %v2849_v3 = vadd.f32 %v2833_v52, %v2813_v1  ;;  %v2912_v29 = vmul.f32 %v6012_v26, %v6284_v20 }
 0x2ad   :  { %v3772_v13 = vadd.f32 %v3720_v34, %v3624_v32  ;;  %v2850_v10 = vadd.f32 %v2834_v58, %v2814_v46  ;;  %v2913_v17 = vmul.f32 %v6012_v26, %v6266_v33  ;;  %v2914_v59 = vmul.f32 %v6012_v26, %v6300_v53 }
 0x2ae   :  { %v2885_v62 = vadd.f32 %v2869_v15, %v2849_v3  ;;  %v2981_v61 = vrot.slane %v2911_v36, 1  ;;  %v2982_v56 = vrot.slane %v2912_v29, 1  ;;  %v3059_v18 = vmul.f32 %v6069_v49, %v6266_v33 }
 0x2af   :  { %v3785_v7 = vpack.c.bf16 %v3772_v13, %v3771_v24  ;;  %v2886_v39 = vadd.f32 %v6086_v43, %v2850_v10  ;;  %v2984_v0 = vrot.slane %v2913_v17, 1  ;;  %v2985_v44 = vrot.slane %v2914_v59, 1 }
 0x2b0   :  { %v2983_v42 = vsel %vm421_vm0, %v2981_v61, %v2982_v56  ;;  %v3060_v27 = vmul.f32 %v6069_v49, %v6300_v53  ;;  %v3061_v22 = vmul.f32 %v6069_v49, %v6343_v23  ;;  %v3062_v41 = vmul.f32 %v6069_v49, %v6362_v2 }
 0x2b1   :  { %4228 = vmatprep.mubr.bf16.mxu0 %v3785_v7  ;;  %v2986_v57 = vsel %vm421_vm0, %v2984_v0, %v2985_v44  ;;  %v3033_v12 = vadd.f32 %v2983_v42, %v2885_v62  ;;  %v3129_v21 = vrot.slane %v3059_v18, 1  ;;  %v3207_v1 = vmul.f32 %v6015_v47, %v6343_v23 }
 0x2b2   :  { %v3034_v9 = vadd.f32 %v2986_v57, %v2886_v39  ;;  %v3130_v8 = vrot.slane %v3060_v27, 1  ;;  %v3132_v31 = vrot.slane %v3061_v22, 1  ;;  %v3133_v11 = vrot.slane %v3062_v41, 1 }
 0x2b3   :  { %v4202_v32 = vpop.f32.mrf.mxu1  ;;  %v3208_v35 = vmul.f32 %v6015_v47, %v6362_v2  ;;  %v3277_v46 = vrot.slane %v3207_v1, 1  ;;  %v3355_v52 = vmul.f32 %v6018_v55, %v6263_v25  ;;  %v3356_v48 = vmul.f32 %v6018_v55, %v6284_v20 }
 0x2b4   :  { %v2699_v58 = vmul.f32 %v4202_v32, %v5997_v5  ;;  %v3131_v15 = vsel %vm421_vm0, %v3129_v21, %v3130_v8  ;;  %v3134_v36 = vsel %vm421_vm0, %v3132_v31, %v3133_v11  ;;  %v3357_v34 = vmul.f32 %v6018_v55, %v6266_v33  ;;  %v2799_v8 = vld [vmem:[#allocation2 + $0x138] sm:$0x3] }
 0x2b5   :  { %v2651_v24 = vpop.f32.mrf.mxu1  ;;  %v3181_v3 = vadd.f32 %v3131_v15, %v3033_v12  ;;  %v3182_v29 = vadd.f32 %v3134_v36, %v3034_v9  ;;  %v3278_v13 = vrot.slane %v3208_v35, 1  ;;  %v3358_v10 = vmul.f32 %v6018_v55, %v6300_v53 }
 0x2b6   :  { %v2722_v25 = vadd.f32 %v6008_v51, %v2699_v58  ;;  %v2697_v20 = vmul.f32 %v5997_v5, %v2651_v24  ;;  %v3425_v17 = vrot.slane %v3355_v52, 2  ;;  %v3426_v59 = vrot.slane %v3356_v48, 2 }
 0x2b7   :  { %v4203_v62 = vpop.f32.mrf.mxu1  ;;  %v3279_v61 = vsel %vm421_vm0, %v3277_v46, %v3278_v13  ;;  %v3330_v56 = vadd.f32 %v6095_v6, %v3182_v29  ;;  %v3428_v18 = vrot.slane %v3357_v34, 2  ;;  %v3429_v7 = vrot.slane %v3358_v10, 2 }
 0x2b8   :  { %v2738_v39 = vmax.f32 %v2722_v25, 0.0  ;;  %v2720_v0 = vadd.f32 %v6008_v51, %v2697_v20  ;;  %v2700_v44 = vmul.f32 %v4203_v62, %v5997_v5  ;;  %v3329_v42 = vadd.f32 %v3279_v61, %v3181_v3 }
 0x2b9   :  { %v2654_v27 = vpop.f32.mrf.mxu1  ;;  %v3427_v22 = vsel %vm866_vm1, %v3425_v17, %v3426_v59  ;;  %v3430_v41 = vsel %vm866_vm1, %v3428_v18, %v3429_v7  ;;  %v3503_v57 = vmul.f32 %v6072_v45, %v6266_v33  ;;  %v3504_v12 = vmul.f32 %v6072_v45, %v6300_v53 }
 0x2ba   :  { %2754 = vst [vmem:[#allocation2 + $0xd1] sm:$0xff] %v2738_v39  ;;  %v2736_v6 = vmax.f32 %v2720_v0, 0.0  ;;  %v2723_v21 = vadd.f32 %v6008_v51, %v2700_v44  ;;  %v2698_v1 = vmul.f32 %v5997_v5, %v2654_v27  ;;  %v3477_v9 = vadd.f32 %v3427_v22, %v3329_v42 }
 0x2bb   :  { %v3478_v31 = vadd.f32 %v3430_v41, %v3330_v56  ;;  %v3505_v11 = vmul.f32 %v6072_v45, %v6343_v23  ;;  %v3506_v32 = vmul.f32 %v6072_v45, %v6362_v2  ;;  %v3573_v35 = vrot.slane %v3503_v57, 2 }
 0x2bc   :  { %2752 = vst [vmem:[#allocation2 + $0xb1] sm:$0xff] %v2736_v6  ;;  %v2739_v33 = vmax.f32 %v2723_v21, 0.0  ;;  %v2721_v53 = vadd.f32 %v6008_v51, %v2698_v1  ;;  %v3574_v46 = vrot.slane %v3504_v12, 2  ;;  %v3651_v52 = vmul.f32 %v6021_v19, %v6343_v23 }
 0x2bd   :  { %v3576_v48 = vrot.slane %v3505_v11, 2  ;;  %v3577_v58 = vrot.slane %v3506_v32, 2  ;;  %v3652_v15 = vmul.f32 %v6021_v19, %v6362_v2  ;;  %v3226_v36 = vmul.f32 %v6015_v47, %v2799_v8 }
 0x2be   :  { %2755 = vst [vmem:[#allocation2 + $0xe1] sm:$0xff] %v2739_v33  ;;  %v2737_v34 = vmax.f32 %v2721_v53, 0.0  ;;  %v3575_v24 = vsel %vm866_vm1, %v3573_v35, %v3574_v46  ;;  %v3721_v3 = vrot.slane %v3651_v52, 2  ;;  %v6420_v29 = vmul.f32 %v6021_v19, %v2799_v8 }
 0x2bf   :  { %v3578_v51 = vsel %vm866_vm1, %v3576_v48, %v3577_v58  ;;  %v3625_v13 = vadd.f32 %v3575_v24, %v3477_v9  ;;  %v3722_v10 = vrot.slane %v3652_v15, 2  ;;  %v3305_v23 = vrot.slane %v3226_v36, 1 }
 0x2c0   :  { %2753 = vst [vmem:[#allocation2 + $0xc1] sm:$0xff] %v2737_v34  ;;  %v3626_v25 = vadd.f32 %v3578_v51, %v3478_v31  ;;  %v6825_v2 = vrot.slane %v6026_v54, 1  ;;  %v6826_v61 = vrot.slane %v6057_v4, 2  ;;  %v6827_v56 = vrot.slane %v6030_v28, 2 }
 0x2c1   :  { %v3723_v17 = vsel %vm866_vm1, %v3721_v3, %v3722_v10  ;;  %v6429_v59 = vld [vmem:[#allocation2 + $0xd0] sm:$0xff]  ;;  %v6431_v62 = vld [vmem:[#allocation2 + $0xd8] sm:$0x3]  ;;  %v6828_v7 = vrot.slane %v6034_v63, 1  ;;  %v3749_v54 = vrot.slane %v6420_v29, 2 }
 0x2c2   :  { %v2989_v20 = vsel %vm421_vm0, %v6825_v2, %v2988_v30  ;;  %v6438_v18 = vsel %vm866_vm1, %v6827_v56, %v6826_v61  ;;  %v3773_v30 = vadd.f32 %v3723_v17, %v3625_v13  ;;  %v3774_v39 = vadd.f32 %v6100_v38, %v3626_v25  ;;  %v6752_v29 = vld [vmem:[%s6804_s12] ss:$0 sm:$0xff] }
 0x2c3   :  { %v6443_v50 = vsel %vm421_vm0, %v6828_v7, %v3305_v23  ;;  %v2872_v0 = vmul.f32 %v6063_v16, %v6429_v59  ;;  %v3213_v4 = vmul.f32 %v6015_v47, %v6429_v59  ;;  %v2782_v28 = vld [vmem:[#allocation2 + $0xb0] sm:$0xff]  ;;  %v2783_v44 = vld [vmem:[#allocation2 + $0xb8] sm:$0x3]  ;;  %v3214_v42 = vmul.f32 %v6015_v47, %v6431_v62 }
 0x2c4   :  { %v6455_v63 = vmul.f32 %v6021_v19, %v6429_v59  ;;  %v6459_v27 = vmul.f32 %v6021_v19, %v6431_v62  ;;  %v6463_v38 = vmul.f32 %v6060_v60, %v6429_v59  ;;  %v3786_v22 = vpack.c.bf16 %v3774_v39, %v3773_v30 }
 0x2c5   :  { %v2816_v41 = vmul.f32 %v6060_v60, %v2782_v28  ;;  %v2835_v57 = vmul.f32 %v6066_v37, %v2782_v28  ;;  %v2917_v12 = vmul.f32 %v6012_v26, %v2782_v28  ;;  %v2918_v6 = vmul.f32 %v6012_v26, %v2783_v44 }
 0x2c6   :  { %v3063_v21 = vmul.f32 %v6069_v49, %v2782_v28  ;;  %v3064_v1 = vmul.f32 %v6069_v49, %v2783_v44  ;;  %v3286_v9 = vrot.slane %v3213_v4, 1  ;;  %4229 = vmatmul.mubr.bf16.gmra.mxu0 %v3786_v22  ;;  %v3287_v11 = vrot.slane %v3214_v42, 1 }
 0x2c7   :  { %v2851_v8 = vadd.f32 %v2835_v57, %v6075_v40  ;;  %v2990_v31 = vrot.slane %v2917_v12, 1  ;;  %v3361_v32 = vmul.f32 %v6018_v55, %v2782_v28  ;;  %v6473_v35 = vld [vmem:[#allocation2 + $0xc0] sm:$0xff]  ;;  %v6475_v33 = vld [vmem:[#allocation2 + $0xc8] sm:$0x3]  ;;  %v2991_v53 = vrot.slane %v2918_v6, 1 }
 0x2c8   :  { %v3135_v46 = vrot.slane %v3063_v21, 1  ;;  %v3136_v52 = vrot.slane %v3064_v1, 1  ;;  %v3362_v48 = vmul.f32 %v6018_v55, %v2783_v44  ;;  %v2836_v58 = vmul.f32 %v6066_v37, %v6473_v35 }
 0x2c9   :  { %v2871_v15 = vmul.f32 %v6063_v16, %v6473_v35  ;;  %v3065_v40 = vmul.f32 %v6069_v49, %v6473_v35  ;;  %v3066_v36 = vmul.f32 %v6069_v49, %v6475_v33  ;;  %v2992_v34 = vsel %vm421_vm0, %v2990_v31, %v2991_v53 }
 0x2ca   :  { %v3137_v24 = vsel %vm421_vm0, %v3135_v46, %v3136_v52  ;;  %v3211_v3 = vmul.f32 %v6015_v47, %v6473_v35  ;;  %v3212_v51 = vmul.f32 %v6015_v47, %v6475_v33  ;;  %v2852_v13 = vadd.f32 %v2836_v58, %v2816_v41  ;;  %v4296_v46 = vld [vmem:[%s6800_s8] ss:$0 sm:$0xff] }
 0x2cb   :  { %v2887_v10 = vadd.f32 %v2871_v15, %v2851_v8  ;;  %v3138_v23 = vrot.slane %v3065_v40, 1  ;;  %v3139_v25 = vrot.slane %v3066_v36, 1  ;;  %v3288_v61 = vsel %vm421_vm0, %v3286_v9, %v3287_v11 }
 0x2cc   :  { %v3283_v2 = vrot.slane %v3211_v3, 1  ;;  %v3284_v17 = vrot.slane %v3212_v51, 1  ;;  %v3434_v56 = vrot.slane %v3361_v32, 2  ;;  %v2888_v7 = vadd.f32 %v2872_v0, %v2852_v13 }
 0x2cd   :  { %v3035_v30 = vadd.f32 %v2989_v20, %v2887_v10  ;;  %v3140_v39 = vsel %vm421_vm0, %v3138_v23, %v3139_v25  ;;  %v3435_v4 = vrot.slane %v3362_v48, 2  ;;  %v3507_v22 = vmul.f32 %v6072_v45, %v2782_v28  ;;  %v4297_v48 = vld [vmem:[%s6799_s7] ss:$0 sm:$0xff] }
 0x2ce   :  { %v3285_v42 = vsel %vm421_vm0, %v3283_v2, %v3284_v17  ;;  %v3508_v57 = vmul.f32 %v6072_v45, %v2783_v44  ;;  %v3509_v41 = vmul.f32 %v6072_v45, %v6473_v35  ;;  %v3036_v6 = vadd.f32 %v2992_v34, %v2888_v7 }
 0x2cf   :  { %v4206_v12 = vpop.f32.mrf.mxu1  ;;  %v3183_v21 = vadd.f32 %v3137_v24, %v3035_v30  ;;  %v3436_v1 = vsel %vm866_vm1, %v3434_v56, %v3435_v4  ;;  %v3510_v20 = vmul.f32 %v6072_v45, %v6475_v33  ;;  %v3579_v9 = vrot.slane %v3507_v22, 2  ;;  %v6518_v30 = vld [vmem:[#allocation2 + $0xe0] sm:$0xff] }
 0x2d0   :  { %v2703_v0 = vmul.f32 %v4206_v12, %v5997_v5  ;;  %v3580_v8 = vrot.slane %v3508_v57, 2  ;;  %v3582_v31 = vrot.slane %v3509_v41, 2  ;;  %v3184_v28 = vadd.f32 %v3140_v39, %v3036_v6 }
 0x2d1   :  { %v2667_v11 = vpop.f32.mrf.mxu1  ;;  %v3331_v32 = vadd.f32 %v3285_v42, %v3183_v21  ;;  %v3583_v44 = vrot.slane %v3510_v20, 2  ;;  %v3655_v53 = vmul.f32 %v6021_v19, %v6473_v35  ;;  %v3656_v15 = vmul.f32 %v6021_v19, %v6475_v33 }
 0x2d2   :  { %v2726_v52 = vadd.f32 %v4296_v46, %v2703_v0  ;;  %v2701_v5 = vmul.f32 %v4297_v48, %v2667_v11  ;;  %v3581_v58 = vsel %vm866_vm1, %v3579_v9, %v3580_v8  ;;  %v3332_v36 = vadd.f32 %v3288_v61, %v3184_v28  ;;  %v6534_v8 = vld [vmem:[#allocation2 + $0xe8] sm:$0x3] }
 0x2d3   :  { %v4207_v40 = vpop.f32.mrf.mxu1  ;;  %v3479_v34 = vadd.f32 %v6438_v18, %v3331_v32  ;;  %v3584_v24 = vsel %vm866_vm1, %v3582_v31, %v3583_v44  ;;  %v3727_v3 = vrot.slane %v3655_v53, 2  ;;  %v3728_v23 = vrot.slane %v3656_v15, 2 }
 0x2d4   :  { %v2742_v51 = vmax.f32 %v2726_v52, 0.0  ;;  %v2724_v13 = vadd.f32 %v4296_v46, %v2701_v5  ;;  %v2704_v10 = vmul.f32 %v4297_v48, %v4207_v40  ;;  %v3480_v2 = vadd.f32 %v3436_v1, %v3332_v36 }
 0x2d5   :  { %v2670_v25 = vpop.f32.mrf.mxu1  ;;  %v3627_v17 = vadd.f32 %v3581_v58, %v3479_v34  ;;  %v3730_v56 = vrot.slane %v6455_v63, 2  ;;  %v3731_v7 = vrot.slane %v6459_v27, 2  ;;  %v3729_v4 = vsel %vm866_vm1, %v3727_v3, %v3728_v23 }
 0x2d6   :  { %2758 = vst [vmem:[#allocation2 + $0x111] sm:$0xff] %v2742_v51  ;;  %v2740_v61 = vmax.f32 %v2724_v13, 0.0  ;;  %v2727_v39 = vadd.f32 %v4296_v46, %v2704_v10  ;;  %v2702_v18 = vmul.f32 %v4297_v48, %v2670_v25  ;;  %v3628_v42 = vadd.f32 %v3584_v24, %v3480_v2 }
 0x2d7   :  { %v3732_v22 = vsel %vm866_vm1, %v3730_v56, %v3731_v7  ;;  %v3775_v57 = vadd.f32 %v3729_v4, %v3627_v17  ;;  %v2817_v41 = vmul.f32 %v6060_v60, %v6473_v35  ;;  %v2837_v27 = vmul.f32 %v6066_v37, %v6429_v59 }
 0x2d8   :  { %2756 = vst [vmem:[#allocation2 + $0xf1] sm:$0xff] %v2740_v61  ;;  %v2743_v12 = vmax.f32 %v2727_v39, 0.0  ;;  %v2725_v63 = vadd.f32 %v4296_v46, %v2702_v18  ;;  %v2838_v6 = vmul.f32 %v6066_v37, %v6518_v30  ;;  %v3776_v21 = vadd.f32 %v3732_v22, %v3628_v42 }
 0x2d9   :  { %v2873_v1 = vmul.f32 %v6063_v16, %v6518_v30  ;;  %v2919_v20 = vmul.f32 %v6012_v26, %v6473_v35  ;;  %v2920_v0 = vmul.f32 %v6012_v26, %v6475_v33  ;;  %v2853_v31 = vadd.f32 %v2837_v27, %v2817_v41 }
 0x2da   :  { %2759 = vst [vmem:[#allocation2 + $0x121] sm:$0xff] %v2743_v12  ;;  %v2741_v9 = vmax.f32 %v2725_v63, 0.0  ;;  %v2854_v11 = vadd.f32 %v2838_v6, %v6463_v38  ;;  %v2921_v28 = vmul.f32 %v6012_v26, %v6429_v59  ;;  %v3787_v32 = vpack.c.bf16 %v3776_v21, %v3775_v57 }
 0x2db   :  { %v2922_v44 = vmul.f32 %v6012_v26, %v6431_v62  ;;  %v2993_v53 = vrot.slane %v2919_v20, 1  ;;  %v2994_v46 = vrot.slane %v2920_v0, 1  ;;  %v2889_v52 = vadd.f32 %v2873_v1, %v2853_v31 }
 0x2dc   :  { %2757 = vst [vmem:[#allocation2 + $0x101] sm:$0xff] %v2741_v9  ;;  %v2996_v48 = vrot.slane %v2921_v28, 1  ;;  %v3067_v5 = vmul.f32 %v6069_v49, %v6429_v59  ;;  %v3068_v58 = vmul.f32 %v6069_v49, %v6431_v62  ;;  %4232 = vmatprep.mubr.bf16.mxu1 %v3787_v32  ;;  %v3069_v40 = vmul.f32 %v6069_v49, %v6518_v30 }
 0x2dd   :  { %v2995_v38 = vsel %vm421_vm0, %v2993_v53, %v2994_v46  ;;  %v2997_v15 = vrot.slane %v2922_v44, 1  ;;  %v3070_v36 = vmul.f32 %v6069_v49, %v6534_v8  ;;  %v3215_v51 = vmul.f32 %v6015_v47, %v6518_v30 }
 0x2de   :  { %v3037_v34 = vadd.f32 %v2995_v38, %v2889_v52  ;;  %v3141_v24 = vrot.slane %v3067_v5, 1  ;;  %v3142_v3 = vrot.slane %v3068_v58, 1  ;;  %v3144_v25 = vrot.slane %v3069_v40, 1 }
 0x2df   :  { %v6552_v13 = vld [vmem:[#allocation2 + $0xf0] sm:$0xff]  ;;  %v6554_v10 = vld [vmem:[#allocation2 + $0xf8] sm:$0x3]  ;;  %v2998_v23 = vsel %vm421_vm0, %v2996_v48, %v2997_v15  ;;  %v3145_v2 = vrot.slane %v3070_v36, 1  ;;  %v3216_v17 = vmul.f32 %v6015_v47, %v6534_v8  ;;  %v3289_v42 = vrot.slane %v3215_v51, 1 }
 0x2e0   :  { %v2874_v56 = vmul.f32 %v6063_v16, %v6552_v13  ;;  %v3143_v7 = vsel %vm421_vm0, %v3141_v24, %v3142_v3  ;;  %v3217_v61 = vmul.f32 %v6015_v47, %v6552_v13  ;;  %v3218_v39 = vmul.f32 %v6015_v47, %v6554_v10 }
 0x2e1   :  { %v3146_v18 = vsel %vm421_vm0, %v3144_v25, %v3145_v2  ;;  %v3185_v4 = vadd.f32 %v3143_v7, %v3037_v34  ;;  %v3290_v22 = vrot.slane %v3216_v17, 1  ;;  %v3363_v63 = vmul.f32 %v6018_v55, %v6473_v35  ;;  %v6598_v2 = vld [vmem:[#allocation2 + $0x110] sm:$0xff] }
 0x2e2   :  { %v2890_v57 = vadd.f32 %v2874_v56, %v2854_v11  ;;  %v3292_v41 = vrot.slane %v3217_v61, 1  ;;  %v3293_v12 = vrot.slane %v3218_v39, 1  ;;  %v3364_v6 = vmul.f32 %v6018_v55, %v6475_v33 }
 0x2e3   :  { %v3291_v27 = vsel %vm421_vm0, %v3289_v42, %v3290_v22  ;;  %v3365_v21 = vmul.f32 %v6018_v55, %v6429_v59  ;;  %v3366_v1 = vmul.f32 %v6018_v55, %v6431_v62  ;;  %v3437_v31 = vrot.slane %v3363_v63, 2  ;;  %v6596_v25 = vld [vmem:[#allocation2 + $0x100] sm:$0xff] }
 0x2e4   :  { %v3038_v20 = vadd.f32 %v2998_v23, %v2890_v57  ;;  %v3294_v0 = vsel %vm421_vm0, %v3292_v41, %v3293_v12  ;;  %v3333_v9 = vadd.f32 %v3291_v27, %v3185_v4  ;;  %v3438_v11 = vrot.slane %v3364_v6, 2 }
 0x2e5   :  { %v3440_v28 = vrot.slane %v3365_v21, 2  ;;  %v3441_v32 = vrot.slane %v3366_v1, 2  ;;  %v3511_v35 = vmul.f32 %v6072_v45, %v6429_v59  ;;  %v3512_v33 = vmul.f32 %v6072_v45, %v6431_v62 }
 0x2e6   :  { %v3186_v44 = vadd.f32 %v3146_v18, %v3038_v20  ;;  %v3513_v53 = vmul.f32 %v6072_v45, %v6518_v30  ;;  %v3514_v46 = vmul.f32 %v6072_v45, %v6534_v8  ;;  %v3439_v52 = vsel %vm866_vm1, %v3437_v31, %v3438_v11 }
 0x2e7   :  { %v3442_v48 = vsel %vm866_vm1, %v3440_v28, %v3441_v32  ;;  %v3585_v5 = vrot.slane %v3511_v35, 2  ;;  %v3659_v58 = vmul.f32 %v6021_v19, %v6518_v30  ;;  %v3481_v59 = vadd.f32 %v3439_v52, %v3333_v9 }
 0x2e8   :  { %v3334_v38 = vadd.f32 %v3294_v0, %v3186_v44  ;;  %v3586_v15 = vrot.slane %v3512_v33, 2  ;;  %v3588_v40 = vrot.slane %v3513_v53, 2  ;;  %v3589_v36 = vrot.slane %v3514_v46, 2  ;;  %v6617_v0 = vld [vmem:[#allocation2 + $0x108] sm:$0x3] }
 0x2e9   :  { %v3660_v62 = vmul.f32 %v6021_v19, %v6534_v8  ;;  %v3661_v34 = vmul.f32 %v6021_v19, %v6552_v13  ;;  %v3662_v24 = vmul.f32 %v6021_v19, %v6554_v10  ;;  %v3733_v23 = vrot.slane %v3659_v58, 2 }
 0x2ea   :  { %v3482_v3 = vadd.f32 %v3442_v48, %v3334_v38  ;;  %v3587_v51 = vsel %vm866_vm1, %v3585_v5, %v3586_v15  ;;  %v2819_v17 = vmul.f32 %v6060_v60, %v6518_v30  ;;  %v3590_v56 = vsel %vm866_vm1, %v3588_v40, %v3589_v36  ;;  %v6627_v48 = vld [vmem:[#allocation2 + $0x118] sm:$0x3] }
 0x2eb   :  { %v3629_v7 = vadd.f32 %v3587_v51, %v3481_v59  ;;  %v3734_v61 = vrot.slane %v3660_v62, 2  ;;  %v3736_v39 = vrot.slane %v3661_v34, 2  ;;  %v3737_v4 = vrot.slane %v3662_v24, 2 }
 0x2ec   :  { %v3630_v18 = vadd.f32 %v3590_v56, %v3482_v3  ;;  %v2820_v42 = vmul.f32 %v6060_v60, %v6552_v13  ;;  %v2839_v22 = vmul.f32 %v6066_v37, %v6552_v13  ;;  %v2840_v41 = vmul.f32 %v6066_v37, %v6596_v25 }
 0x2ed   :  { %v3735_v57 = vsel %vm866_vm1, %v3733_v23, %v3734_v61  ;;  %v2875_v12 = vmul.f32 %v6063_v16, %v6596_v25  ;;  %v2876_v63 = vmul.f32 %v6063_v16, %v6598_v2  ;;  %v3738_v27 = vsel %vm866_vm1, %v3736_v39, %v3737_v4 }
 0x2ee   :  { %v3777_v6 = vadd.f32 %v3735_v57, %v3629_v7  ;;  %v2855_v21 = vadd.f32 %v2839_v22, %v2819_v17  ;;  %v2923_v1 = vmul.f32 %v6012_v26, %v6518_v30  ;;  %v3778_v20 = vadd.f32 %v3738_v27, %v3630_v18 }
 0x2ef   :  { %v2856_v9 = vadd.f32 %v2840_v41, %v2820_v42  ;;  %v2924_v31 = vmul.f32 %v6012_v26, %v6534_v8  ;;  %v2925_v11 = vmul.f32 %v6012_v26, %v6552_v13  ;;  %v2926_v32 = vmul.f32 %v6012_v26, %v6554_v10 }
 0x2f0   :  { %v2891_v28 = vadd.f32 %v2875_v12, %v2855_v21  ;;  %v2999_v35 = vrot.slane %v2923_v1, 1  ;;  %v3071_v44 = vmul.f32 %v6069_v49, %v6552_v13  ;;  %v3788_v33 = vpack.c.bf16 %v3778_v20, %v3777_v6 }
 0x2f1   :  { %v2892_v53 = vadd.f32 %v2876_v63, %v2856_v9  ;;  %v3000_v46 = vrot.slane %v2924_v31, 1  ;;  %v3002_v52 = vrot.slane %v2925_v11, 1  ;;  %v3003_v5 = vrot.slane %v2926_v32, 1 }
 0x2f2   :  { %v3072_v58 = vmul.f32 %v6069_v49, %v6554_v10  ;;  %v3073_v38 = vmul.f32 %v6069_v49, %v6596_v25  ;;  %v3074_v59 = vmul.f32 %v6069_v49, %v6617_v0  ;;  %4233 = vmatmul.mubr.bf16.vlgmr.msra.gmra.mxu1 %v3788_v33  ;;  %v3147_v40 = vrot.slane %v3071_v44, 1 }
 0x2f3   :  { %v3001_v15 = vsel %vm421_vm0, %v2999_v35, %v3000_v46  ;;  %v3219_v36 = vmul.f32 %v6015_v47, %v6596_v25  ;;  %v3220_v62 = vmul.f32 %v6015_v47, %v6617_v0  ;;  %v3004_v34 = vsel %vm421_vm0, %v3002_v52, %v3003_v5 }
 0x2f4   :  { %v3039_v24 = vadd.f32 %v3001_v15, %v2891_v28  ;;  %v3148_v3 = vrot.slane %v3072_v58, 1  ;;  %v3150_v51 = vrot.slane %v3073_v38, 1  ;;  %v3040_v23 = vadd.f32 %v3004_v34, %v2892_v53 }
 0x2f5   :  { %v3151_v17 = vrot.slane %v3074_v59, 1  ;;  %v3221_v56 = vmul.f32 %v6015_v47, %v6598_v2  ;;  %v3222_v7 = vmul.f32 %v6015_v47, %v6627_v48  ;;  %v3295_v39 = vrot.slane %v3219_v36, 1 }
 0x2f6   :  { %v3149_v61 = vsel %vm421_vm0, %v3147_v40, %v3148_v3  ;;  %v3296_v18 = vrot.slane %v3220_v62, 1  ;;  %v3367_v4 = vmul.f32 %v6018_v55, %v6518_v30  ;;  %v3368_v27 = vmul.f32 %v6018_v55, %v6534_v8 }
 0x2f7   :  { %v3152_v42 = vsel %vm421_vm0, %v3150_v51, %v3151_v17  ;;  %v3187_v22 = vadd.f32 %v3149_v61, %v3039_v24  ;;  %v3298_v57 = vrot.slane %v3221_v56, 1  ;;  %v3299_v41 = vrot.slane %v3222_v7, 1  ;;  %v6676_v24 = vld [vmem:[#allocation2 + $0x120] sm:$0xff] }
 0x2f8   :  { %v3188_v12 = vadd.f32 %v3152_v42, %v3040_v23  ;;  %v3297_v63 = vsel %vm421_vm0, %v3295_v39, %v3296_v18  ;;  %v3369_v6 = vmul.f32 %v6018_v55, %v6552_v13  ;;  %v3370_v30 = vmul.f32 %v6018_v55, %v6554_v10 }
 0x2f9   :  { %v3300_v21 = vsel %vm421_vm0, %v3298_v57, %v3299_v41  ;;  %v3335_v1 = vadd.f32 %v3297_v63, %v3187_v22  ;;  %v3443_v20 = vrot.slane %v3367_v4, 2  ;;  %v3444_v31 = vrot.slane %v3368_v27, 2  ;;  %v2797_v27 = vld [vmem:[#allocation2 + $0x128] sm:$0x3] }
 0x2fa   :  { %v3336_v9 = vadd.f32 %v3300_v21, %v3188_v12  ;;  %v3446_v11 = vrot.slane %v3369_v6, 2  ;;  %v3515_v28 = vmul.f32 %v6072_v45, %v6552_v13  ;;  %v3447_v32 = vrot.slane %v3370_v30, 2 }
 0x2fb   :  { %v3516_v8 = vmul.f32 %v6072_v45, %v6554_v10  ;;  %v3517_v35 = vmul.f32 %v6072_v45, %v6596_v25  ;;  %v3518_v44 = vmul.f32 %v6072_v45, %v6617_v0  ;;  %v3445_v33 = vsel %vm866_vm1, %v3443_v20, %v3444_v31 }
 0x2fc   :  { %v3591_v53 = vrot.slane %v3515_v28, 2  ;;  %v3663_v46 = vmul.f32 %v6021_v19, %v6596_v25  ;;  %v3664_v52 = vmul.f32 %v6021_v19, %v6617_v0  ;;  %v3448_v13 = vsel %vm866_vm1, %v3446_v11, %v3447_v32 }
 0x2fd   :  { %v3483_v5 = vadd.f32 %v3445_v33, %v3335_v1  ;;  %v3592_v58 = vrot.slane %v3516_v8, 2  ;;  %v3594_v10 = vrot.slane %v3517_v35, 2  ;;  %v3484_v38 = vadd.f32 %v3448_v13, %v3336_v9 }
 0x2fe   :  { %v3595_v59 = vrot.slane %v3518_v44, 2  ;;  %v3665_v15 = vmul.f32 %v6021_v19, %v6598_v2  ;;  %v3666_v40 = vmul.f32 %v6021_v19, %v6627_v48  ;;  %v3739_v62 = vrot.slane %v3663_v46, 2 }
 0x2ff   :  { %v3593_v36 = vsel %vm866_vm1, %v3591_v53, %v3592_v58  ;;  %v3740_v34 = vrot.slane %v3664_v52, 2  ;;  %v2821_v3 = vmul.f32 %v6060_v60, %v6596_v25  ;;  %v2822_v39 = vmul.f32 %v6060_v60, %v6598_v2 }
 0x300   :  { %v3596_v51 = vsel %vm866_vm1, %v3594_v10, %v3595_v59  ;;  %v3631_v23 = vadd.f32 %v3593_v36, %v3483_v5  ;;  %v3742_v17 = vrot.slane %v3665_v15, 2  ;;  %v3743_v56 = vrot.slane %v3666_v40, 2 }
 0x301   :  { %v3632_v7 = vadd.f32 %v3596_v51, %v3484_v38  ;;  %v3741_v61 = vsel %vm866_vm1, %v3739_v62, %v3740_v34  ;;  %v2841_v18 = vmul.f32 %v6066_v37, %v6598_v2  ;;  %v2842_v22 = vmul.f32 %v6066_v37, %v6676_v24 }
 0x302   :  { %v3744_v4 = vsel %vm866_vm1, %v3742_v17, %v3743_v56  ;;  %v3779_v42 = vadd.f32 %v3741_v61, %v3631_v23  ;;  %v2877_v57 = vmul.f32 %v6063_v16, %v6676_v24  ;;  %v2927_v63 = vmul.f32 %v6012_v26, %v6596_v25 }
 0x303   :  { %v3780_v41 = vadd.f32 %v3744_v4, %v3632_v7  ;;  %v2857_v12 = vadd.f32 %v2841_v18, %v2821_v3  ;;  %v2928_v60 = vmul.f32 %v6012_v26, %v6617_v0  ;;  %v2858_v6 = vadd.f32 %v2842_v22, %v2822_v39 }
 0x304   :  { %v2929_v21 = vmul.f32 %v6012_v26, %v6598_v2  ;;  %v2930_v1 = vmul.f32 %v6012_v26, %v6627_v48  ;;  %v3075_v37 = vmul.f32 %v6069_v49, %v6598_v2  ;;  %v3005_v20 = vrot.slane %v2927_v63, 1 }
 0x305   :  { %v3789_v16 = vpack.c.bf16 %v3780_v41, %v3779_v42  ;;  %v2893_v30 = vadd.f32 %v2877_v57, %v2857_v12  ;;  %v3006_v9 = vrot.slane %v2928_v60, 1  ;;  %v2894_v31 = vadd.f32 %v6086_v43, %v2858_v6 }
 0x306   :  { %v3008_v11 = vrot.slane %v2929_v21, 1  ;;  %v3009_v28 = vrot.slane %v2930_v1, 1  ;;  %v3076_v32 = vmul.f32 %v6069_v49, %v6627_v48  ;;  %v3077_v26 = vmul.f32 %v6069_v49, %v6676_v24 }
 0x307   :  { %4236 = vmatprep.mubr.bf16.mxu1 %v3789_v16  ;;  %v3007_v8 = vsel %vm421_vm0, %v3005_v20, %v3006_v9  ;;  %v3078_v35 = vmul.f32 %v6069_v49, %v2797_v27  ;;  %v3153_v44 = vrot.slane %v3075_v37, 1  ;;  %v3223_v43 = vmul.f32 %v6015_v47, %v6676_v24  ;;  %v6747_v20 = vld [vmem:[%s6803_s11] ss:$0 sm:$0xff]  ;;  %s4459_s11 = smov [#allocation14]  }
 0x308   :  { %v3010_v33 = vsel %vm421_vm0, %v3008_v11, %v3009_v28  ;;  %v3041_v53 = vadd.f32 %v3007_v8, %v2893_v30  ;;  %v3154_v46 = vrot.slane %v3076_v32, 1  ;;  %v3156_v13 = vrot.slane %v3077_v26, 1  ;;  %v3998_v32 = vld [vmem:[#allocation3] sm:$0xff]  ;;  %s4051_s12 = sshll.u32 %s4459_s11, 4  ;;  %s4052_s12 = int_to_ptr.vmem [resolvable:$true] %s4051_s12 }
 0x309   :  { %v3042_v52 = vadd.f32 %v3010_v33, %v2894_v31  ;;  %v3157_v5 = vrot.slane %v3078_v35, 1  ;;  %v3224_v58 = vmul.f32 %v6015_v47, %v2797_v27  ;;  %v3301_v38 = vrot.slane %v3223_v43, 1  ;;  %v4001_v33 = vld [vmem:[#allocation3 + $0x18] sm:$0xff]  ;;  %s4418_s6 = scalar_lea.vmem %s4052_s12, 2048  ;;  %p4423_p3 = scmp.lt.s32.totalorder %s4052_s12, %s4052_s12 }
 0x30a   :  { %v3155_v10 = vsel %vm421_vm0, %v3153_v44, %v3154_v46  ;;  %v3371_v59 = vmul.f32 %v6018_v55, %v6596_v25  ;;  %v3372_v49 = vmul.f32 %v6018_v55, %v6617_v0  ;;  %v3373_v62 = vmul.f32 %v6018_v55, %v6598_v2  ;;  %p4419_p2 = scmp.ne.s32.totalorder %s4052_s12, %s4418_s6  ;;  %p4424_p4 = scmp.lt.s32.totalorder %s4418_s6, %s4418_s6 }
 0x30b   :  { %v3158_v15 = vsel %vm421_vm0, %v3156_v13, %v3157_v5  ;;  %v3189_v40 = vadd.f32 %v3155_v10, %v3041_v53  ;;  %v3302_v36 = vrot.slane %v3224_v58, 1  ;;  %v3374_v47 = vmul.f32 %v6018_v55, %v6627_v48  ;;  %v3999_v13 = vld [vmem:[#allocation3 + $0x8] sm:$0xff] }
 0x30c   :  { %v3190_v34 = vadd.f32 %v3158_v15, %v3042_v52  ;;  %v3449_v3 = vrot.slane %v3371_v59, 2  ;;  %v3450_v51 = vrot.slane %v3372_v49, 2  ;;  %v3452_v17 = vrot.slane %v3373_v62, 2  ;;  %v4004_v49 = vld [vmem:[#allocation3 + $0x30] sm:$0xff]  ;;  %v4002_v62 = vld [vmem:[#allocation3 + $0x20] sm:$0xff]  ;;  %p4425_p5 = por %p4424_p4, %p4423_p3 }
 0x30d   :  { %v3303_v23 = vsel %vm421_vm0, %v3301_v38, %v3302_v36  ;;  %v3519_v25 = vmul.f32 %v6072_v45, %v6598_v2  ;;  %v3520_v0 = vmul.f32 %v6072_v45, %v6627_v48  ;;  %v3453_v39 = vrot.slane %v3374_v47, 2 }
 0x30e   :  { %v3337_v56 = vadd.f32 %v3303_v23, %v3189_v40  ;;  %v3338_v7 = vadd.f32 %v6443_v50, %v3190_v34  ;;  %v3451_v61 = vsel %vm866_vm1, %v3449_v3, %v3450_v51  ;;  %v3521_v55 = vmul.f32 %v6072_v45, %v6676_v24  ;;  %v4005_v23 = vld [vmem:[#allocation3 + $0x38] sm:$0xff]  ;;  %p4426_p6 = pnand %p4425_p5, %p4419_p2 }
 0x30f   :  { %v3522_v18 = vmul.f32 %v6072_v45, %v2797_v27  ;;  %v3597_v4 = vrot.slane %v3519_v25, 2  ;;  %v3598_v42 = vrot.slane %v3520_v0, 2  ;;  %v3454_v22 = vsel %vm866_vm1, %v3452_v17, %v3453_v39 }
 0x310   :  { %v3485_v57 = vadd.f32 %v3451_v61, %v3337_v56  ;;  %v3667_v2 = vmul.f32 %v6021_v19, %v6676_v24  ;;  %v3668_v48 = vmul.f32 %v6021_v19, %v2797_v27  ;;  %v3486_v41 = vadd.f32 %v3454_v22, %v3338_v7  ;;  %v4003_v7 = vld [vmem:[#allocation3 + $0x28] sm:$0xff] }
 0x311   :  { %v3599_v50 = vsel %vm866_vm1, %v3597_v4, %v3598_v42  ;;  %v3600_v12 = vrot.slane %v3521_v55, 2  ;;  %v3601_v63 = vrot.slane %v3522_v18, 2  ;;  %v6829_v1 = vrot.slane %v6039_v14, 2  ;;  %v4008_v42 = vld [vmem:[#allocation3 + $0x50] sm:$0xff] }
 0x312   :  { %v3633_v60 = vadd.f32 %v3599_v50, %v3485_v57  ;;  %v3745_v6 = vrot.slane %v3667_v2, 2  ;;  %v3746_v21 = vrot.slane %v3668_v48, 2  ;;  %v4006_v48 = vld [vmem:[#allocation3 + $0x40] sm:$0xff] }
 0x313   :  { %v3602_v45 = vsel %vm866_vm1, %v3600_v12, %v3601_v63  ;;  %v3750_v37 = vsel %vm866_vm1, %v6829_v1, %v3749_v54  ;;  %v4000_v54 = vld [vmem:[#allocation3 + $0x10] sm:$0xff] }
 0x314   :  { %v3634_v16 = vadd.f32 %v3602_v45, %v3486_v41  ;;  %v3747_v24 = vsel %vm866_vm1, %v3745_v6, %v3746_v21 }
 0x315   :  { %v3781_v19 = vadd.f32 %v3747_v24, %v3633_v60  ;;  %v4009_v60 = vld [vmem:[#allocation3 + $0x58] sm:$0xff] }
 0x316   :  { %v3782_v27 = vadd.f32 %v3750_v37, %v3634_v16  ;;  %v4007_v37 = vld [vmem:[#allocation3 + $0x48] sm:$0xff] }
 0x318   :  { %v3790_v30 = vpack.c.bf16 %v3782_v27, %v3781_v19 }
 0x31a   :  { %4237 = vmatmul.mubr.bf16.gmra.mxu1 %v3790_v30 }
 0x35f   :  { %v4226_v9 = vpop.f32.mrf.mxu0 }
 0x360   :  { %v3961_v14 = vmul.f32 %v4226_v9, %v6747_v20  ;;  %v4012_v9 = vld [vmem:[#allocation3 + $0x70] sm:$0xff] }
 0x361   :  { %v3889_v31 = vpop.f32.mrf.mxu0 }
 0x362   :  { %v3984_v11 = vadd.f32 %v6752_v29, %v3961_v14  ;;  %v3959_v28 = vmul.f32 %v6747_v20, %v3889_v31 }
 0x363   :  { %v4227_v8 = vpop.f32.mrf.mxu0 }
 0x364   :  { %v4016_v26 = vadd.f32 %v4000_v54, %v3984_v11  ;;  %v3982_v35 = vadd.f32 %v6752_v29, %v3959_v28  ;;  %v3962_v44 = vmul.f32 %v4227_v8, %v6747_v20  ;;  %v4010_v11 = vld [vmem:[#allocation3 + $0x60] sm:$0xff] }
 0x365   :  { %v3892_v53 = vpop.f32.mrf.mxu0 }
 0x366   :  { %4032 = vst [vmem:[#allocation14 + $0x10] sm:$0xff] %v4016_v26  ;;  %v4014_v46 = vadd.f32 %v3998_v32, %v3982_v35  ;;  %v3985_v43 = vadd.f32 %v6752_v29, %v3962_v44  ;;  %v3960_v52 = vmul.f32 %v6747_v20, %v3892_v53  ;;  %v4013_v35 = vld [vmem:[#allocation3 + $0x78] sm:$0xff] }
 0x368   :  { %4030 = vst [vmem:[#allocation14] sm:$0xff] %v4014_v46  ;;  %v4017_v5 = vadd.f32 %v4001_v33, %v3985_v43  ;;  %v3983_v58 = vadd.f32 %v6752_v29, %v3960_v52  ;;  %v4011_v43 = vld [vmem:[#allocation3 + $0x68] sm:$0xff] }
 0x36a   :  { %4033 = vst [vmem:[#allocation14 + $0x18] sm:$0xff] %v4017_v5  ;;  %v4015_v10 = vadd.f32 %v3999_v13, %v3983_v58 }
 0x36c   :  { %4031 = vst [vmem:[#allocation14 + $0x8] sm:$0xff] %v4015_v10 }
 0x386   :  { %v4230_v38 = vpop.f32.mrf.mxu0 }
 0x387   :  { %v3965_v59 = vmul.f32 %v4230_v38, %v6747_v20 }
 0x388   :  { %v3905_v15 = vpop.f32.mrf.mxu0 }
 0x389   :  { %v3988_v40 = vadd.f32 %v6752_v29, %v3965_v59  ;;  %v3963_v36 = vmul.f32 %v6747_v20, %v3905_v15 }
 0x38a   :  { %v4231_v34 = vpop.f32.mrf.mxu0 }
 0x38b   :  { %v4020_v47 = vadd.f32 %v4004_v49, %v3988_v40  ;;  %v3986_v3 = vadd.f32 %v6752_v29, %v3963_v36  ;;  %v3966_v51 = vmul.f32 %v4231_v34, %v6747_v20 }
 0x38c   :  { %v3908_v17 = vpop.f32.mrf.mxu0 }
 0x38d   :  { %4036 = vst [vmem:[#allocation14 + $0x30] sm:$0xff] %v4020_v47  ;;  %v4018_v25 = vadd.f32 %v4002_v62, %v3986_v3  ;;  %v3989_v0 = vadd.f32 %v6752_v29, %v3966_v51  ;;  %v3964_v56 = vmul.f32 %v6747_v20, %v3908_v17 }
 0x38f   :  { %4034 = vst [vmem:[#allocation14 + $0x20] sm:$0xff] %v4018_v25  ;;  %v4021_v61 = vadd.f32 %v4005_v23, %v3989_v0  ;;  %v3987_v39 = vadd.f32 %v6752_v29, %v3964_v56 }
 0x391   :  { %4037 = vst [vmem:[#allocation14 + $0x38] sm:$0xff] %v4021_v61  ;;  %v4019_v55 = vadd.f32 %v4003_v7, %v3987_v39 }
 0x393   :  { %4035 = vst [vmem:[#allocation14 + $0x28] sm:$0xff] %v4019_v55 }
 0x3b2   :  { %v4234_v18 = vpop.f32.mrf.mxu1 }
 0x3b3   :  { %v3969_v4 = vmul.f32 %v4234_v18, %v6747_v20 }
 0x3b4   :  { %v3921_v22 = vpop.f32.mrf.mxu1 }
 0x3b5   :  { %v3992_v57 = vadd.f32 %v6752_v29, %v3969_v4  ;;  %v3967_v2 = vmul.f32 %v6747_v20, %v3921_v22 }
 0x3b6   :  { %v4235_v41 = vpop.f32.mrf.mxu1 }
 0x3b7   :  { %v4024_v50 = vadd.f32 %v4008_v42, %v3992_v57  ;;  %v3990_v12 = vadd.f32 %v6752_v29, %v3967_v2  ;;  %v3970_v63 = vmul.f32 %v4235_v41, %v6747_v20 }
 0x3b8   :  { %v3924_v6 = vpop.f32.mrf.mxu1 }
 0x3b9   :  { %4040 = vst [vmem:[#allocation14 + $0x50] sm:$0xff] %v4024_v50  ;;  %v4022_v21 = vadd.f32 %v4006_v48, %v3990_v12  ;;  %v3993_v45 = vadd.f32 %v6752_v29, %v3970_v63  ;;  %v3968_v1 = vmul.f32 %v6747_v20, %v3924_v6 }
 0x3bb   :  { %4038 = vst [vmem:[#allocation14 + $0x40] sm:$0xff] %v4022_v21  ;;  %v4025_v16 = vadd.f32 %v4009_v60, %v3993_v45  ;;  %v3991_v24 = vadd.f32 %v6752_v29, %v3968_v1 }
 0x3bd   :  { %4041 = vst [vmem:[#allocation14 + $0x58] sm:$0xff] %v4025_v16  ;;  %v4023_v19 = vadd.f32 %v4007_v37, %v3991_v24 }
 0x3bf   :  { %4039 = vst [vmem:[#allocation14 + $0x48] sm:$0xff] %v4023_v19 }
 0x3da   :  { %v4238_v27 = vpop.f32.mrf.mxu1 }
 0x3db   :  { %v3973_v30 = vmul.f32 %v4238_v27, %v6747_v20 }
 0x3dc   :  { %v3937_v14 = vpop.f32.mrf.mxu1 }
 0x3dd   :  { %v3996_v54 = vadd.f32 %v6752_v29, %v3973_v30  ;;  %v3971_v31 = vmul.f32 %v6747_v20, %v3937_v14 }
 0x3de   :  { %v4239_v28 = vpop.f32.mrf.mxu1 }
 0x3df   :  { %v4028_v32 = vadd.f32 %v4012_v9, %v3996_v54  ;;  %v3994_v8 = vadd.f32 %v6752_v29, %v3971_v31  ;;  %v3974_v26 = vmul.f32 %v4239_v28, %v6747_v20 }
 0x3e0   :  { %v3940_v44 = vpop.f32.mrf.mxu1 }
 0x3e1   :  { %4044 = vst [vmem:[#allocation14 + $0x70] sm:$0xff] %v4028_v32  ;;  %v4026_v33 = vadd.f32 %v4010_v11, %v3994_v8  ;;  %v3997_v53 = vadd.f32 %v6752_v29, %v3974_v26  ;;  %v3972_v46 = vmul.f32 %v6747_v20, %v3940_v44 }
 0x3e3   :  { %4042 = vst [vmem:[#allocation14 + $0x60] sm:$0xff] %v4026_v33  ;;  %v4029_v52 = vadd.f32 %v4013_v35, %v3997_v53  ;;  %v3995_v13 = vadd.f32 %v6752_v29, %v3972_v46 }
 0x3e5   :  { %4045 = vst [vmem:[#allocation14 + $0x78] sm:$0xff] %v4029_v52  ;;  %v4027_v5 = vadd.f32 %v4011_v43, %v3995_v13 }
 0x3e7   :  { %4043 = vst [vmem:[#allocation14 + $0x68] sm:$0xff] %v4027_v5 }
 0x3e8   :  { %4429 = shalt.err (!%p4426_p6)
}
 0x3e9   :  { %4057 = dma.vmem_to_hbm [thread:$0]  %s4052_s12, 2048, %s6805_s13, [#allocation5], %s4453_s22, %s4453_s22, %s4454_s23  }
 0x3ea   :  { %4446 = dma.done.wait [#allocation5], 2048  }
 0x3eb   :  { %4447 = vsyncadd [#allocation5], 4294965248 }
 0x3ec   :  { %4061 = vsyncpa [#allocation4], 1 }
 0x3ed   :  { %4062 = vsyncpa [#allocation7], 1 }
 0x3ee   :  { %4063 = vsyncpa [#allocation10], 1 }
 0x3ef   :  { %4064 = vsyncpa [#allocation13], 1 }
 0x3f0   :  { %4065 = vsyncpa [#allocation5], 1 }

</bundles_post_ra>
